<compile_context>
chip_gen: v7x
topology: tpu7x:2x2x1
jax: 0.10.0
libtpu: 0.0.40
codegen_flags: <defaults>
</compile_context>

<pallas_src>
import functools
import numpy as np
import jax
import jax.numpy as jnp
from jax.experimental import pallas as pl
from jax.experimental.pallas import tpu as pltpu

# ------------------------------- config (small synthetic hps, RVC-32k-like topology) ----------
INITIAL_CHANNEL = 8                 # == inter_channels of the synthesizer
UPSAMPLE_INITIAL_CHANNEL = 16
UPSAMPLE_RATES = [2, 2]
UPSAMPLE_KERNEL_SIZES = [4, 4]
RESBLOCK_KERNEL_SIZES = [3]
RESBLOCK_DILATION_SIZES = [[1, 3, 5]]
GIN_CHANNELS = 8
SR = 32000
LRELU_SLOPE = 0.1
SINE_AMP = 0.1
NOISE_STD = 0.003
UPP = int(np.prod(UPSAMPLE_RATES))


# ------------------------------------------------------------------ fused Conv1d Pallas kernel
def _conv_kernel(*refs, dilation, pre_slope, post_tanh, has_bias, has_add):
    """One batch element: (Lp, Cin) conv-padded input -> (Lout, Cout) with fused epilogue."""
    x_ref, w_ref = refs[0], refs[1]
    i = 2
    b_ref = refs[i] if has_bias else None
    i += 1 if has_bias else 0
    a_ref = refs[i] if has_add else None
    i += 1 if has_add else 0
    o_ref = refs[i]

    K, Cin, _ = w_ref.shape
    Lout, Cout = o_ref.shape[-2], o_ref.shape[-1]

    x = x_ref[0]                                            # (Lp, Cin) f32
    if pre_slope is not None:                               # fused leaky_relu pre-activation
        x = jnp.where(x >= 0, x, pre_slope * x)

    acc = jnp.zeros((Lout, Cout), jnp.float32)
    for t in range(K):                                      # tap accumulation, no im2col
        s = t * dilation
        xt = x[s:s + Lout, :]
        if Cin == 1:                                        # rank-1 contraction -> VPU broadcast-mul
            acc = acc + xt * w_ref[t, :, :].astype(jnp.float32)
        else:                                               # MXU: bf16 inputs, f32 accumulate
            acc = acc + jnp.dot(xt.astype(jnp.bfloat16), w_ref[t, :, :],
                                preferred_element_type=jnp.float32)
    if has_bias:
        acc = acc + b_ref[...]                              # (1, Cout)
    if has_add:
        acc = acc + a_ref[0]                                # (1, Cout) cond or (Lout, Cout) residual
    if post_tanh:
        acc = jnp.tanh(acc)
    o_ref[0] = acc.astype(o_ref.dtype)


def conv1d_nlc(x, w, bias=None, *, padding=0, dilation=1, stride=1,
               pre_slope=None, post_tanh=False, add=None):
    """Fused Conv1d (PyTorch semantics) on NLC activations.

    x: (B, Lin, Cin) f32; w: (K, Cin, Cout) bf16; bias: (1, Cout) f32 or None.
    add: optional fused epilogue add of shape (B, 1, Cout) (broadcast over time) or
         (B, Lout, Cout) (residual / noise-branch add).  stride>1 is realised as a stride-1
         conv + host subsample (only used by the tiny single-channel noise conv).
    """
    B, Lin, Cin = x.shape
    K, _, Cout = w.shape
    if padding:
        x = jnp.pad(x, ((0, 0), (padding, padding), (0, 0)))
    Lp = Lin + 2 * padding
    Lfull = Lp - dilation * (K - 1)
    assert Lfull >= 1
    assert stride == 1 or add is None

    inputs = [x, w]
    in_specs = [pl.BlockSpec((1, Lp, Cin), lambda b: (b, 0, 0)),
                pl.BlockSpec((K, Cin, Cout), lambda b: (0, 0, 0))]
    if bias is not None:
        inputs.append(bias)
        in_specs.append(pl.BlockSpec((1, Cout), lambda b: (0, 0)))
    if add is not None:
        assert add.shape[0] == B and add.shape[2] == Cout
        La = add.shape[1]
        inputs.append(add)
        in_specs.append(pl.BlockSpec((1, La, Cout), lambda b: (b, 0, 0)))

    kernel = functools.partial(_conv_kernel, dilation=dilation, pre_slope=pre_slope,
                               post_tanh=post_tanh, has_bias=bias is not None,
                               has_add=add is not None)
    out = pl.pallas_call(
        kernel,
        grid=(B,),
        in_specs=in_specs,
        out_specs=pl.BlockSpec((1, Lfull, Cout), lambda b: (b, 0, 0)),
        out_shape=jax.ShapeDtypeStruct((B, Lfull, Cout), jnp.float32),
        compiler_params=pltpu.CompilerParams(dimension_semantics=("parallel",)),
    )(*inputs)
    if stride > 1:
        out = out[:, ::stride, :]
    return out


def conv_transpose1d_nlc(x, w, bias, *, stride, padding, pre_slope=None, add=None):
    """PyTorch ConvTranspose1d via zero-insertion + fused stride-1 conv.
    `w` is stored pre-converted to the equivalent-conv (K, Cin, Cout) layout (taps flipped).
    leaky_relu(0)==0, so fusing the pre-activation after zero-insertion is exact."""
    B, Lin, Cin = x.shape
    K = w.shape[0]
    Ld = (Lin - 1) * stride + 1
    xd = jnp.zeros((B, Ld, Cin), x.dtype).at[:, ::stride, :].set(x)
    return conv1d_nlc(xd, w, bias, padding=K - 1 - padding,
                      pre_slope=pre_slope, add=add)


# ------------------------------------------------------------------ fused ResBlock1 kernel
def _resblock_kernel(x_ref, w1_ref, b1_ref, w2_ref, b2_ref, o_ref, xbuf, hbuf,
                     *, dilations, slope):
    """Whole ResBlock1 for one batch element: for each dilation d
       x = x + c2(leaky(c1(leaky(x))));  zero padding is done in VMEM scratch."""
    K = w1_ref.shape[1]
    L, C = o_ref.shape[-2], o_ref.shape[-1]
    pad_max = (xbuf.shape[0] - L) // 2
    pad2 = (hbuf.shape[0] - L) // 2
    # zero the halos once; the [pad, pad+L) middles are fully rewritten every unit.
    xbuf[...] = jnp.zeros(xbuf.shape, xbuf.dtype)
    hbuf[...] = jnp.zeros(hbuf.shape, hbuf.dtype)

    x = x_ref[0]                                            # (L, C) f32
    for i, d in enumerate(dilations):
        pad1 = (K - 1) * d // 2
        xbuf[pl.ds(pad_max, L), :] = jnp.where(x >= 0, x, slope * x)
        off = pad_max - pad1
        h = jnp.zeros((L, C), jnp.float32)
        for t in range(K):
            h = h + jnp.dot(xbuf[pl.ds(off + t * d, L), :].astype(jnp.bfloat16),
                            w1_ref[i, t, :, :], preferred_element_type=jnp.float32)
        h = h + b1_ref[i]
        hbuf[pl.ds(pad2, L), :] = jnp.where(h >= 0, h, slope * h)
        y = jnp.zeros((L, C), jnp.float32)
        for t in range(K):
            y = y + jnp.dot(hbuf[pl.ds(t, L), :].astype(jnp.bfloat16),
                            w2_ref[i, t, :, :], preferred_element_type=jnp.float32)
        x = y + b2_ref[i] + x                               # fused residual add
    o_ref[0] = x.astype(o_ref.dtype)


def resblock1_fused(rp, x, k, dilations):
    B, L, C = x.shape
    nd = len(dilations)
    assert k % 2 == 1
    pad_max = (k - 1) * max(dilations) // 2
    pad2 = (k - 1) // 2
    kernel = functools.partial(_resblock_kernel, dilations=tuple(dilations), slope=LRELU_SLOPE)
    return pl.pallas_call(
        kernel,
        grid=(B,),
        in_specs=[pl.BlockSpec((1, L, C), lambda b: (b, 0, 0)),
                  pl.BlockSpec((nd, k, C, C), lambda b: (0, 0, 0, 0)),
                  pl.BlockSpec((nd, 1, C), lambda b: (0, 0, 0)),
                  pl.BlockSpec((nd, k, C, C), lambda b: (0, 0, 0, 0)),
                  pl.BlockSpec((nd, 1, C), lambda b: (0, 0, 0))],
        out_specs=pl.BlockSpec((1, L, C), lambda b: (b, 0, 0)),
        out_shape=jax.ShapeDtypeStruct((B, L, C), jnp.float32),
        scratch_shapes=[pltpu.VMEM((L + 2 * pad_max, C), jnp.float32),
                        pltpu.VMEM((L + 2 * pad2, C), jnp.float32)],
        compiler_params=pltpu.CompilerParams(dimension_semantics=("parallel",)),
    )(x, rp['w1'], rp['b1'], rp['w2'], rp['b2'])


# ------------------------------------------------------------------ SourceModuleHnNSF (NSF source)
def _source_kernel(sine_ref, uv_ref, nz_ref, wb_ref, o_ref):
    """sine/noise mixing + Linear(1,1) + tanh, fused; scalar weights read from SMEM."""
    sine = sine_ref[0]                                      # (Lu, 1), already sin()*sine_amp
    uv = uv_ref[0]
    nz = nz_ref[0]
    noise_amp = uv * NOISE_STD + (1.0 - uv) * (SINE_AMP / 3.0)
    src = sine * uv + noise_amp * nz
    o_ref[0] = jnp.tanh(src * wb_ref[0, 0] + wb_ref[0, 1])


def interp_linear_align_corners(x, upp):
    """F.interpolate(..., scale_factor=upp, mode='linear', align_corners=True) on (B, L, C)."""
    B, L, C = x.shape
    Lout = L * upp
    if L == 1:
        return jnp.repeat(x, upp, axis=1)
    pos = jnp.arange(Lout, dtype=jnp.float32) * (L - 1) / (Lout - 1)
    lo = jnp.floor(pos).astype(jnp.int32)
    hi = jnp.minimum(lo + 1, L - 1)
    w = pos - lo.astype(jnp.float32)
    return x[:, lo, :] * (1.0 - w)[None, :, None] + x[:, hi, :] * w[None, :, None]


def source_module(p, f0, key):
    """SourceModuleHnNSF (harmonic_num=0): SineGen phase prep stays in plain JAX (tiny
    sequential cumsums); the per-sample mixing + Linear + tanh is one fused Pallas kernel."""
    B, L = f0.shape
    f0c = f0[:, :, None]
    rad = (f0c / SR) % 1.0                                  # rand_ini is zeroed for harmonic 0
    over = jnp.cumsum(rad, axis=1) * UPP
    over = interp_linear_align_corners(over, UPP) % 1.0     # (B, Lu, 1)
    rad_up = jnp.repeat(rad, UPP, axis=1)                   # nearest upsample
    neg = (over[:, 1:, :] - over[:, :-1, :]) < 0
    shift = jnp.concatenate([jnp.zeros((B, 1, 1), jnp.float32),
                             jnp.where(neg, -1.0, 0.0)], axis=1)
    phase = jnp.cumsum(rad_up + shift, axis=1)
    # TODO(synk): move the sin() into the Pallas kernel once Mosaic sin lowering is verified.
    sine = jnp.sin(phase * (2.0 * np.pi)) * SINE_AMP
    uv = jnp.repeat((f0c > 0.0).astype(jnp.float32), UPP, axis=1)
    Lu = L * UPP
    noise = jax.random.normal(key, (B, Lu, 1), dtype=jnp.float32)
    return pl.pallas_call(
        _source_kernel,
        grid=(B,),
        in_specs=[pl.BlockSpec((1, Lu, 1), lambda b: (b, 0, 0)),
                  pl.BlockSpec((1, Lu, 1), lambda b: (b, 0, 0)),
                  pl.BlockSpec((1, Lu, 1), lambda b: (b, 0, 0)),
                  pl.BlockSpec(memory_space=pltpu.MemorySpace.SMEM)],
        out_specs=pl.BlockSpec((1, Lu, 1), lambda b: (b, 0, 0)),
        out_shape=jax.ShapeDtypeStruct((B, Lu, 1), jnp.float32),
        compiler_params=pltpu.CompilerParams(dimension_semantics=("parallel",)),
    )(sine, uv, noise, p['wb'])


# ------------------------------------------------------------------ GeneratorNSF forward
def generator_nsf_forward(p, x_ncl, f0, g_ncl, noise_key):
    num_kernels = len(RESBLOCK_KERNEL_SIZES)
    x = jnp.transpose(x_ncl, (0, 2, 1))                     # NCL -> NLC (lane-dense channels)
    g = jnp.transpose(g_ncl, (0, 2, 1))                     # (B, 1, gin)

    har = source_module(p['m_source'], f0, noise_key)       # (B, T*upp, 1)
    cond = conv1d_nlc(g, p['cond']['w'], p['cond']['b'])    # (B, 1, C_up)
    # conv_pre + cond(g) add fused in one kernel
    x = conv1d_nlc(x, p['conv_pre']['w'], p['conv_pre']['b'], padding=3, add=cond)

    for i, (u, k) in enumerate(zip(UPSAMPLE_RATES, UPSAMPLE_KERNEL_SIZES)):
        nc = p['noise_convs'][i]
        if i + 1 < len(UPSAMPLE_RATES):
            sf = int(np.prod(UPSAMPLE_RATES[i + 1:]))
            x_source = conv1d_nlc(har, nc['w'], nc['b'], padding=sf // 2, stride=sf)
        else:
            x_source = conv1d_nlc(har, nc['w'], nc['b'])
        # leaky_relu + ConvTranspose1d + bias + noise-branch add, all in one kernel
        x = conv_transpose1d_nlc(x, p['ups'][i]['w'], p['ups'][i]['b'],
                                 stride=u, padding=(k - u) // 2,
                                 pre_slope=LRELU_SLOPE, add=x_source)
        xs = None
        for j in range(num_kernels):
            rb = p['resblocks'][i * num_kernels + j]
            r = resblock1_fused(rb, x, RESBLOCK_KERNEL_SIZES[j], RESBLOCK_DILATION_SIZES[j])
            xs = r if xs is None else xs + r
        x = xs if num_kernels == 1 else xs / float(num_kernels)

    # F.leaky_relu (default slope 0.01) + conv_post (no bias) + tanh, fused in one kernel
    x = conv1d_nlc(x, p['conv_post']['w'], None, padding=3, pre_slope=0.01, post_tanh=True)
    return jnp.transpose(x, (0, 2, 1))                      # back to (B, 1, L_out)


# ------------------------------------------------------------------ synthetic parameter init
class KeyGen:
    def __init__(self, seed):
        self._key = jax.random.PRNGKey(seed)

    def __call__(self):
        self._key, sub = jax.random.split(self._key)
        return sub


def _randn(kg, shape, scale=0.1):
    return scale * jax.random.normal(kg(), shape, dtype=jnp.float32)


def conv_param(kg, cin, cout, k, bias=True):
    w_torch = _randn(kg, (cout, cin, k))                            # PyTorch Conv1d layout
    w = jnp.transpose(w_torch, (2, 1, 0)).astype(jnp.bfloat16)      # -> (K, Cin, Cout) bf16
    return {'w': w, 'b': _randn(kg, (1, cout)) if bias else None}


def convT_param(kg, cin, cout, k):
    w_torch = _randn(kg, (cin, cout, k))                            # PyTorch ConvTranspose1d layout
    w = jnp.transpose(jnp.flip(w_torch, axis=2), (2, 0, 1)).astype(jnp.bfloat16)
    return {'w': w, 'b': _randn(kg, (1, cout))}


def resblock_param(kg, ch, k, dilations):
    def stack():
        ws, bs = [], []
        for _ in dilations:
            cp = conv_param(kg, ch, ch, k)
            ws.append(cp['w'])
            bs.append(cp['b'])
        return jnp.stack(ws), jnp.stack(bs)                         # (nd,K,C,C), (nd,1,C)
    w1, b1 = stack()
    w2, b2 = stack()
    return {'w1': w1, 'b1': b1, 'w2': w2, 'b2': b2}


def init_params(kg):
    p = {}
    lw = _randn(kg, (1, 1))
    lb = _randn(kg, (1, 1))
    p['m_source'] = {'wb': jnp.concatenate([lw, lb], axis=1)}       # Linear(1,1): [[weight, bias]]
    p['conv_pre'] = conv_param(kg, INITIAL_CHANNEL, UPSAMPLE_INITIAL_CHANNEL, 7)
    p['cond'] = conv_param(kg, GIN_CHANNELS, UPSAMPLE_INITIAL_CHANNEL, 1)
    p['ups'], p['noise_convs'], p['resblocks'] = [], [], []
    for i, (u, k) in enumerate(zip(UPSAMPLE_RATES, UPSAMPLE_KERNEL_SIZES)):
        cin = UPSAMPLE_INITIAL_CHANNEL // (2 ** i)
        cout = UPSAMPLE_INITIAL_CHANNEL // (2 ** (i + 1))
        p['ups'].append(convT_param(kg, cin, cout, k))
        if i + 1 < len(UPSAMPLE_RATES):
            sf = int(np.prod(UPSAMPLE_RATES[i + 1:]))
            p['noise_convs'].append(conv_param(kg, 1, cout, sf * 2))
        else:
            p['noise_convs'].append(conv_param(kg, 1, cout, 1))
        for j, ks in enumerate(RESBLOCK_KERNEL_SIZES):
            p['resblocks'].append(resblock_param(kg, cout, ks, RESBLOCK_DILATION_SIZES[j]))
    ch = UPSAMPLE_INITIAL_CHANNEL // (2 ** len(UPSAMPLE_RATES))
    p['conv_post'] = conv_param(kg, ch, 1, 7, bias=False)
    return p


# ------------------------------------------------------------------ main
if __name__ == "__main__":
    params = init_params(KeyGen(42))

    key = jax.random.PRNGKey(0)
    k_x, k_f0, k_g, k_noise = jax.random.split(key, 4)
    B, T = 2, 16

    x = jax.random.normal(k_x, (B, INITIAL_CHANNEL, T), dtype=jnp.float32)
    f0 = jax.random.uniform(k_f0, (B, T), minval=80.0, maxval=400.0, dtype=jnp.float32)
    f0 = f0.at[0, :4].set(0.0)                              # a few unvoiced frames
    g = jax.random.normal(k_g, (B, GIN_CHANNELS, 1), dtype=jnp.float32)

    fwd = jax.jit(generator_nsf_forward)
    out = fwd(params, x, f0, g, k_noise)
    out = jax.block_until_ready(out)

    assert out.shape == (B, 1, T * UPP), out.shape
    assert bool(jnp.all(jnp.isfinite(out)))
    print("KERNEL_OK")
</pallas_src>

<mosaic_0001>
module attributes {stable_mosaic.version = 11 : i64} {
  func.func @_source_kernel(%arg0: i32, %arg1: memref<1x64x1xf32, #tpu.memory_space<vmem>>, %arg2: memref<1x64x1xf32, #tpu.memory_space<vmem>>, %arg3: memref<1x64x1xf32, #tpu.memory_space<vmem>>, %arg4: memref<1x2xf32, #tpu.memory_space<smem>>, %arg5: memref<1x64x1xf32, #tpu.memory_space<vmem>>) attributes {dimension_semantics = [#tpu.dimension_semantics<parallel>], iteration_bounds = array<i64: 2>, scalar_prefetch = 0 : i64, scratch_operands = 0 : i64, tpu.core_type = #tpu.core_type<tc>, window_params = [{transform_indices = @transform_0, window_bounds = array<i64: 1, 64, 1>}, {transform_indices = @transform_1, window_bounds = array<i64: 1, 64, 1>}, {transform_indices = @transform_2, window_bounds = array<i64: 1, 64, 1>}, {transform_indices = @transform_3, window_bounds = array<i64: 1, 2>}, {transform_indices = @transform_4, window_bounds = array<i64: 1, 64, 1>}]} {
    %c0 = arith.constant 0 : index
    %c0_0 = arith.constant 0 : index
    %c0_1 = arith.constant 0 : index
    %0 = vector.load %arg1[%c0, %c0_0, %c0_1] : memref<1x64x1xf32, #tpu.memory_space<vmem>>, vector<1x64x1xf32>
    %1 = vector.shape_cast %0 : vector<1x64x1xf32> to vector<64x1xf32>
    %c0_2 = arith.constant 0 : index
    %c0_3 = arith.constant 0 : index
    %c0_4 = arith.constant 0 : index
    %2 = vector.load %arg2[%c0_2, %c0_3, %c0_4] : memref<1x64x1xf32, #tpu.memory_space<vmem>>, vector<1x64x1xf32>
    %3 = vector.shape_cast %2 : vector<1x64x1xf32> to vector<64x1xf32>
    %c0_5 = arith.constant 0 : index
    %c0_6 = arith.constant 0 : index
    %c0_7 = arith.constant 0 : index
    %4 = vector.load %arg3[%c0_5, %c0_6, %c0_7] : memref<1x64x1xf32, #tpu.memory_space<vmem>>, vector<1x64x1xf32>
    %5 = vector.shape_cast %4 : vector<1x64x1xf32> to vector<64x1xf32>
    %cst = arith.constant 3.000000e-03 : f32
    %6 = vector.broadcast %cst : f32 to vector<64x1xf32>
    %7 = arith.mulf %3, %6 : vector<64x1xf32>
    %cst_8 = arith.constant 1.000000e+00 : f32
    %8 = vector.broadcast %cst_8 : f32 to vector<64x1xf32>
    %9 = arith.subf %8, %3 : vector<64x1xf32>
    %cst_9 = arith.constant 0.0333333351 : f32
    %10 = vector.broadcast %cst_9 : f32 to vector<64x1xf32>
    %11 = arith.mulf %9, %10 : vector<64x1xf32>
    %12 = arith.addf %7, %11 : vector<64x1xf32>
    %13 = arith.mulf %1, %3 : vector<64x1xf32>
    %14 = arith.mulf %12, %5 : vector<64x1xf32>
    %15 = arith.addf %13, %14 : vector<64x1xf32>
    %c0_10 = arith.constant 0 : index
    %c0_11 = arith.constant 0 : index
    %16 = memref.load %arg4[%c0_10, %c0_11] : memref<1x2xf32, #tpu.memory_space<smem>>
    %17 = vector.broadcast %16 : f32 to vector<64x1xf32>
    %18 = arith.mulf %15, %17 : vector<64x1xf32>
    %c0_12 = arith.constant 0 : index
    %c1 = arith.constant 1 : index
    %19 = memref.load %arg4[%c0_12, %c1] : memref<1x2xf32, #tpu.memory_space<smem>>
    %20 = vector.broadcast %19 : f32 to vector<64x1xf32>
    %21 = arith.addf %18, %20 : vector<64x1xf32>
    %22 = math.tanh %21 : vector<64x1xf32>
    %c0_13 = arith.constant 0 : index
    %c0_14 = arith.constant 0 : index
    %c0_15 = arith.constant 0 : index
    %23 = vector.load %arg5[%c0_13, %c0_14, %c0_15] : memref<1x64x1xf32, #tpu.memory_space<vmem>>, vector<1x64x1xf32>
    %24 = vector.shape_cast %23 : vector<1x64x1xf32> to vector<64x1xf32>
    %25 = vector.shape_cast %22 : vector<64x1xf32> to vector<1x64x1xf32>
    tpu.vector_store %arg5[%c0_13, %c0_14, %c0_15], %25 {strides = array<i32>} : memref<1x64x1xf32, #tpu.memory_space<vmem>>, vector<1x64x1xf32>,
    return
  }
  func.func @transform_0(%arg0: i32) -> (i32, i32, i32) {
    %c0_i32 = arith.constant 0 : i32
    %c0_i32_0 = arith.constant 0 : i32
    %c0_i32_1 = arith.constant 0 : i32
    return %arg0, %c0_i32, %c0_i32_0 : i32, i32, i32
  }
  func.func @transform_1(%arg0: i32) -> (i32, i32, i32) {
    %c0_i32 = arith.constant 0 : i32
    %c0_i32_0 = arith.constant 0 : i32
    %c0_i32_1 = arith.constant 0 : i32
    return %arg0, %c0_i32, %c0_i32_0 : i32, i32, i32
  }
  func.func @transform_2(%arg0: i32) -> (i32, i32, i32) {
    %c0_i32 = arith.constant 0 : i32
    %c0_i32_0 = arith.constant 0 : i32
    %c0_i32_1 = arith.constant 0 : i32
    return %arg0, %c0_i32, %c0_i32_0 : i32, i32, i32
  }
  func.func @transform_3(%arg0: i32) -> (i32, i32) {
    %c0_i32 = arith.constant 0 : i32
    %c0_i32_0 = arith.constant 0 : i32
    %c0_i32_1 = arith.constant 0 : i32
    return %c0_i32, %c0_i32_0 : i32, i32
  }
  func.func @transform_4(%arg0: i32) -> (i32, i32, i32) {
    %c0_i32 = arith.constant 0 : i32
    %c0_i32_0 = arith.constant 0 : i32
    %c0_i32_1 = arith.constant 0 : i32
    return %arg0, %c0_i32, %c0_i32_0 : i32, i32, i32
  }
}

module attributes {stable_mosaic.version = 11 : i64} {
  func.func @_conv_kernel(%arg0: i32, %arg1: memref<1x66x1xf32, #tpu.memory_space<vmem>>, %arg2: memref<4x1x8xbf16, #tpu.memory_space<vmem>>, %arg3: memref<1x8xf32, #tpu.memory_space<vmem>>, %arg4: memref<1x63x8xf32, #tpu.memory_space<vmem>>) attributes {dimension_semantics = [#tpu.dimension_semantics<parallel>], iteration_bounds = array<i64: 2>, scalar_prefetch = 0 : i64, scratch_operands = 0 : i64, tpu.core_type = #tpu.core_type<tc>, window_params = [{transform_indices = @transform_0, window_bounds = array<i64: 1, 66, 1>}, {pipeline_mode = #tpu.pipeline_mode<synchronous>, transform_indices = @transform_1, window_bounds = array<i64: 4, 1, 8>}, {pipeline_mode = #tpu.pipeline_mode<synchronous>, transform_indices = @transform_2, window_bounds = array<i64: 1, 8>}, {transform_indices = @transform_3, window_bounds = array<i64: 1, 63, 8>}]} {
    %c0 = arith.constant 0 : index
    %c0_0 = arith.constant 0 : index
    %c0_1 = arith.constant 0 : index
    %0 = vector.load %arg1[%c0, %c0_0, %c0_1] : memref<1x66x1xf32, #tpu.memory_space<vmem>>, vector<1x66x1xf32>
    %1 = vector.shape_cast %0 : vector<1x66x1xf32> to vector<66x1xf32>
    %cst = arith.constant 0.000000e+00 : f32
    %2 = vector.broadcast %cst : f32 to vector<63x8xf32>
    %3 = vector.extract_strided_slice %1 {offsets = [0, 0], sizes = [63, 1], strides = [1, 1]} : vector<66x1xf32> to vector<63x1xf32>
    %c0_2 = arith.constant 0 : index
    %c0_3 = arith.constant 0 : index
    %c0_4 = arith.constant 0 : index
    %4 = vector.load %arg2[%c0_2, %c0_3, %c0_4] : memref<4x1x8xbf16, #tpu.memory_space<vmem>>, vector<1x1x8xbf16>
    %5 = vector.shape_cast %4 : vector<1x1x8xbf16> to vector<1x8xbf16>
    %6 = arith.extf %5 : vector<1x8xbf16> to vector<1x8xf32>
    %7 = vector.broadcast %3 : vector<63x1xf32> to vector<63x8xf32>
    %8 = vector.broadcast %6 : vector<1x8xf32> to vector<63x8xf32>
    %9 = arith.mulf %7, %8 : vector<63x8xf32>
    %10 = arith.addf %2, %9 : vector<63x8xf32>
    %11 = vector.extract_strided_slice %1 {offsets = [1, 0], sizes = [63, 1], strides = [1, 1]} : vector<66x1xf32> to vector<63x1xf32>
    %c1 = arith.constant 1 : index
    %c0_5 = arith.constant 0 : index
    %c0_6 = arith.constant 0 : index
    %12 = vector.load %arg2[%c1, %c0_5, %c0_6] : memref<4x1x8xbf16, #tpu.memory_space<vmem>>, vector<1x1x8xbf16>
    %13 = vector.shape_cast %12 : vector<1x1x8xbf16> to vector<1x8xbf16>
    %14 = arith.extf %13 : vector<1x8xbf16> to vector<1x8xf32>
    %15 = vector.broadcast %11 : vector<63x1xf32> to vector<63x8xf32>
    %16 = vector.broadcast %14 : vector<1x8xf32> to vector<63x8xf32>
    %17 = arith.mulf %15, %16 : vector<63x8xf32>
    %18 = arith.addf %10, %17 : vector<63x8xf32>
    %19 = vector.extract_strided_slice %1 {offsets = [2, 0], sizes = [63, 1], strides = [1, 1]} : vector<66x1xf32> to vector<63x1xf32>
    %c2 = arith.constant 2 : index
    %c0_7 = arith.constant 0 : index
    %c0_8 = arith.constant 0 : index
    %20 = vector.load %arg2[%c2, %c0_7, %c0_8] : memref<4x1x8xbf16, #tpu.memory_space<vmem>>, vector<1x1x8xbf16>
    %21 = vector.shape_cast %20 : vector<1x1x8xbf16> to vector<1x8xbf16>
    %22 = arith.extf %21 : vector<1x8xbf16> to vector<1x8xf32>
    %23 = vector.broadcast %19 : vector<63x1xf32> to vector<63x8xf32>
    %24 = vector.broadcast %22 : vector<1x8xf32> to vector<63x8xf32>
    %25 = arith.mulf %23, %24 : vector<63x8xf32>
    %26 = arith.addf %18, %25 : vector<63x8xf32>
    %27 = vector.extract_strided_slice %1 {offsets = [3, 0], sizes = [63, 1], strides = [1, 1]} : vector<66x1xf32> to vector<63x1xf32>
    %c3 = arith.constant 3 : index
    %c0_9 = arith.constant 0 : index
    %c0_10 = arith.constant 0 : index
    %28 = vector.load %arg2[%c3, %c0_9, %c0_10] : memref<4x1x8xbf16, #tpu.memory_space<vmem>>, vector<1x1x8xbf16>
    %29 = vector.shape_cast %28 : vector<1x1x8xbf16> to vector<1x8xbf16>
    %30 = arith.extf %29 : vector<1x8xbf16> to vector<1x8xf32>
    %31 = vector.broadcast %27 : vector<63x1xf32> to vector<63x8xf32>
    %32 = vector.broadcast %30 : vector<1x8xf32> to vector<63x8xf32>
    %33 = arith.mulf %31, %32 : vector<63x8xf32>
    %34 = arith.addf %26, %33 : vector<63x8xf32>
    %c0_11 = arith.constant 0 : index
    %c0_12 = arith.constant 0 : index
    %35 = vector.load %arg3[%c0_11, %c0_12] : memref<1x8xf32, #tpu.memory_space<vmem>>, vector<1x8xf32>
    %36 = vector.broadcast %35 : vector<1x8xf32> to vector<63x8xf32>
    %37 = arith.addf %34, %36 : vector<63x8xf32>
    %c0_13 = arith.constant 0 : index
    %c0_14 = arith.constant 0 : index
    %c0_15 = arith.constant 0 : index
    %38 = vector.load %arg4[%c0_13, %c0_14, %c0_15] : memref<1x63x8xf32, #tpu.memory_space<vmem>>, vector<1x63x8xf32>
    %39 = vector.shape_cast %38 : vector<1x63x8xf32> to vector<63x8xf32>
    %40 = vector.shape_cast %37 : vector<63x8xf32> to vector<1x63x8xf32>
    tpu.vector_store %arg4[%c0_13, %c0_14, %c0_15], %40 {strides = array<i32>} : memref<1x63x8xf32, #tpu.memory_space<vmem>>, vector<1x63x8xf32>,
    return
  }
  func.func @transform_0(%arg0: i32) -> (i32, i32, i32) {
    %c0_i32 = arith.constant 0 : i32
    %c0_i32_0 = arith.constant 0 : i32
    %c0_i32_1 = arith.constant 0 : i32
    return %arg0, %c0_i32, %c0_i32_0 : i32, i32, i32
  }
  func.func @transform_1(%arg0: i32) -> (i32, i32, i32) {
    %c0_i32 = arith.constant 0 : i32
    %c0_i32_0 = arith.constant 0 : i32
    %c0_i32_1 = arith.constant 0 : i32
    %c0_i32_2 = arith.constant 0 : i32
    return %c0_i32, %c0_i32_0, %c0_i32_1 : i32, i32, i32
  }
  func.func @transform_2(%arg0: i32) -> (i32, i32) {
    %c0_i32 = arith.constant 0 : i32
    %c0_i32_0 = arith.constant 0 : i32
    %c0_i32_1 = arith.constant 0 : i32
    return %c0_i32, %c0_i32_0 : i32, i32
  }
  func.func @transform_3(%arg0: i32) -> (i32, i32, i32) {
    %c0_i32 = arith.constant 0 : i32
    %c0_i32_0 = arith.constant 0 : i32
    %c0_i32_1 = arith.constant 0 : i32
    return %arg0, %c0_i32, %c0_i32_0 : i32, i32, i32
  }
}

module attributes {stable_mosaic.version = 11 : i64} {
  func.func @_conv_kernel(%arg0: i32, %arg1: memref<1x22x8xf32, #tpu.memory_space<vmem>>, %arg2: memref<7x8x16xbf16, #tpu.memory_space<vmem>>, %arg3: memref<1x16xf32, #tpu.memory_space<vmem>>, %arg4: memref<1x1x16xf32, #tpu.memory_space<vmem>>, %arg5: memref<1x16x16xf32, #tpu.memory_space<vmem>>) attributes {dimension_semantics = [#tpu.dimension_semantics<parallel>], iteration_bounds = array<i64: 2>, scalar_prefetch = 0 : i64, scratch_operands = 0 : i64, tpu.core_type = #tpu.core_type<tc>, window_params = [{transform_indices = @transform_0, window_bounds = array<i64: 1, 22, 8>}, {pipeline_mode = #tpu.pipeline_mode<synchronous>, transform_indices = @transform_1, window_bounds = array<i64: 7, 8, 16>}, {pipeline_mode = #tpu.pipeline_mode<synchronous>, transform_indices = @transform_2, window_bounds = array<i64: 1, 16>}, {transform_indices = @transform_3, window_bounds = array<i64: 1, 1, 16>}, {transform_indices = @transform_4, window_bounds = array<i64: 1, 16, 16>}]} {
    %c0 = arith.constant 0 : index
    %c0_0 = arith.constant 0 : index
    %c0_1 = arith.constant 0 : index
    %0 = vector.load %arg1[%c0, %c0_0, %c0_1] : memref<1x22x8xf32, #tpu.memory_space<vmem>>, vector<1x22x8xf32>
    %1 = vector.shape_cast %0 : vector<1x22x8xf32> to vector<22x8xf32>
    %cst = arith.constant 0.000000e+00 : f32
    %2 = vector.broadcast %cst : f32 to vector<16x16xf32>
    %3 = vector.extract_strided_slice %1 {offsets = [0, 0], sizes = [16, 8], strides = [1, 1]} : vector<22x8xf32> to vector<16x8xf32>
    %4 = arith.truncf %3 : vector<16x8xf32> to vector<16x8xbf16>
    %c0_2 = arith.constant 0 : index
    %c0_3 = arith.constant 0 : index
    %c0_4 = arith.constant 0 : index
    %5 = vector.load %arg2[%c0_2, %c0_3, %c0_4] : memref<7x8x16xbf16, #tpu.memory_space<vmem>>, vector<1x8x16xbf16>
    %6 = vector.shape_cast %5 : vector<1x8x16xbf16> to vector<8x16xbf16>
    %cst_5 = arith.constant dense<0.000000e+00> : vector<16x16xf32>
    %7 = tpu.matmul %4, %6, %cst_5 {dimension_numbers = #tpu.dot_dimension_numbers<[1], [0], [0], [1], [0, 0, 1, 1], [], []>} : vector<16x8xbf16>, vector<8x16xbf16>, vector<16x16xf32> -> vector<16x16xf32>
    %8 = arith.addf %2, %7 : vector<16x16xf32>
    %9 = vector.extract_strided_slice %1 {offsets = [1, 0], sizes = [16, 8], strides = [1, 1]} : vector<22x8xf32> to vector<16x8xf32>
    %10 = arith.truncf %9 : vector<16x8xf32> to vector<16x8xbf16>
    %c1 = arith.constant 1 : index
    %c0_6 = arith.constant 0 : index
    %c0_7 = arith.constant 0 : index
    %11 = vector.load %arg2[%c1, %c0_6, %c0_7] : memref<7x8x16xbf16, #tpu.memory_space<vmem>>, vector<1x8x16xbf16>
    %12 = vector.shape_cast %11 : vector<1x8x16xbf16> to vector<8x16xbf16>
    %cst_8 = arith.constant dense<0.000000e+00> : vector<16x16xf32>
    %13 = tpu.matmul %10, %12, %cst_8 {dimension_numbers = #tpu.dot_dimension_numbers<[1], [0], [0], [1], [0, 0, 1, 1], [], []>} : vector<16x8xbf16>, vector<8x16xbf16>, vector<16x16xf32> -> vector<16x16xf32>
    %14 = arith.addf %8, %13 : vector<16x16xf32>
    %15 = vector.extract_strided_slice %1 {offsets = [2, 0], sizes = [16, 8], strides = [1, 1]} : vector<22x8xf32> to vector<16x8xf32>
    %16 = arith.truncf %15 : vector<16x8xf32> to vector<16x8xbf16>
    %c2 = arith.constant 2 : index
    %c0_9 = arith.constant 0 : index
    %c0_10 = arith.constant 0 : index
    %17 = vector.load %arg2[%c2, %c0_9, %c0_10] : memref<7x8x16xbf16, #tpu.memory_space<vmem>>, vector<1x8x16xbf16>
    %18 = vector.shape_cast %17 : vector<1x8x16xbf16> to vector<8x16xbf16>
    %cst_11 = arith.constant dense<0.000000e+00> : vector<16x16xf32>
    %19 = tpu.matmul %16, %18, %cst_11 {dimension_numbers = #tpu.dot_dimension_numbers<[1], [0], [0], [1], [0, 0, 1, 1], [], []>} : vector<16x8xbf16>, vector<8x16xbf16>, vector<16x16xf32> -> vector<16x16xf32>
    %20 = arith.addf %14, %19 : vector<16x16xf32>
    %21 = vector.extract_strided_slice %1 {offsets = [3, 0], sizes = [16, 8], strides = [1, 1]} : vector<22x8xf32> to vector<16x8xf32>
    %22 = arith.truncf %21 : vector<16x8xf32> to vector<16x8xbf16>
    %c3 = arith.constant 3 : index
    %c0_12 = arith.constant 0 : index
    %c0_13 = arith.constant 0 : index
    %23 = vector.load %arg2[%c3, %c0_12, %c0_13] : memref<7x8x16xbf16, #tpu.memory_space<vmem>>, vector<1x8x16xbf16>
    %24 = vector.shape_cast %23 : vector<1x8x16xbf16> to vector<8x16xbf16>
    %cst_14 = arith.constant dense<0.000000e+00> : vector<16x16xf32>
    %25 = tpu.matmul %22, %24, %cst_14 {dimension_numbers = #tpu.dot_dimension_numbers<[1], [0], [0], [1], [0, 0, 1, 1], [], []>} : vector<16x8xbf16>, vector<8x16xbf16>, vector<16x16xf32> -> vector<16x16xf32>
    %26 = arith.addf %20, %25 : vector<16x16xf32>
    %27 = vector.extract_strided_slice %1 {offsets = [4, 0], sizes = [16, 8], strides = [1, 1]} : vector<22x8xf32> to vector<16x8xf32>
    %28 = arith.truncf %27 : vector<16x8xf32> to vector<16x8xbf16>
    %c4 = arith.constant 4 : index
    %c0_15 = arith.constant 0 : index
    %c0_16 = arith.constant 0 : index
    %29 = vector.load %arg2[%c4, %c0_15, %c0_16] : memref<7x8x16xbf16, #tpu.memory_space<vmem>>, vector<1x8x16xbf16>
    %30 = vector.shape_cast %29 : vector<1x8x16xbf16> to vector<8x16xbf16>
    %cst_17 = arith.constant dense<0.000000e+00> : vector<16x16xf32>
    %31 = tpu.matmul %28, %30, %cst_17 {dimension_numbers = #tpu.dot_dimension_numbers<[1], [0], [0], [1], [0, 0, 1, 1], [], []>} : vector<16x8xbf16>, vector<8x16xbf16>, vector<16x16xf32> -> vector<16x16xf32>
    %32 = arith.addf %26, %31 : vector<16x16xf32>
    %33 = vector.extract_strided_slice %1 {offsets = [5, 0], sizes = [16, 8], strides = [1, 1]} : vector<22x8xf32> to vector<16x8xf32>
    %34 = arith.truncf %33 : vector<16x8xf32> to vector<16x8xbf16>
    %c5 = arith.constant 5 : index
    %c0_18 = arith.constant 0 : index
    %c0_19 = arith.constant 0 : index
    %35 = vector.load %arg2[%c5, %c0_18, %c0_19] : memref<7x8x16xbf16, #tpu.memory_space<vmem>>, vector<1x8x16xbf16>
    %36 = vector.shape_cast %35 : vector<1x8x16xbf16> to vector<8x16xbf16>
    %cst_20 = arith.constant dense<0.000000e+00> : vector<16x16xf32>
    %37 = tpu.matmul %34, %36, %cst_20 {dimension_numbers = #tpu.dot_dimension_numbers<[1], [0], [0], [1], [0, 0, 1, 1], [], []>} : vector<16x8xbf16>, vector<8x16xbf16>, vector<16x16xf32> -> vector<16x16xf32>
    %38 = arith.addf %32, %37 : vector<16x16xf32>
    %39 = vector.extract_strided_slice %1 {offsets = [6, 0], sizes = [16, 8], strides = [1, 1]} : vector<22x8xf32> to vector<16x8xf32>
    %40 = arith.truncf %39 : vector<16x8xf32> to vector<16x8xbf16>
    %c6 = arith.constant 6 : index
    %c0_21 = arith.constant 0 : index
    %c0_22 = arith.constant 0 : index
    %41 = vector.load %arg2[%c6, %c0_21, %c0_22] : memref<7x8x16xbf16, #tpu.memory_space<vmem>>, vector<1x8x16xbf16>
    %42 = vector.shape_cast %41 : vector<1x8x16xbf16> to vector<8x16xbf16>
    %cst_23 = arith.constant dense<0.000000e+00> : vector<16x16xf32>
    %43 = tpu.matmul %40, %42, %cst_23 {dimension_numbers = #tpu.dot_dimension_numbers<[1], [0], [0], [1], [0, 0, 1, 1], [], []>} : vector<16x8xbf16>, vector<8x16xbf16>, vector<16x16xf32> -> vector<16x16xf32>
    %44 = arith.addf %38, %43 : vector<16x16xf32>
    %c0_24 = arith.constant 0 : index
    %c0_25 = arith.constant 0 : index
    %45 = vector.load %arg3[%c0_24, %c0_25] : memref<1x16xf32, #tpu.memory_space<vmem>>, vector<1x16xf32>
    %46 = vector.broadcast %45 : vector<1x16xf32> to vector<16x16xf32>
    %47 = arith.addf %44, %46 : vector<16x16xf32>
    %c0_26 = arith.constant 0 : index
    %c0_27 = arith.constant 0 : index
    %c0_28 = arith.constant 0 : index
    %48 = vector.load %arg4[%c0_26, %c0_27, %c0_28] : memref<1x1x16xf32, #tpu.memory_space<vmem>>, vector<1x1x16xf32>
    %49 = vector.shape_cast %48 : vector<1x1x16xf32> to vector<1x16xf32>
    %50 = vector.broadcast %49 : vector<1x16xf32> to vector<16x16xf32>
    %51 = arith.addf %47, %50 : vector<16x16xf32>
    %c0_29 = arith.constant 0 : index
    %c0_30 = arith.constant 0 : index
    %c0_31 = arith.constant 0 : index
    %52 = vector.load %arg5[%c0_29, %c0_30, %c0_31] : memref<1x16x16xf32, #tpu.memory_space<vmem>>, vector<1x16x16xf32>
    %53 = vector.shape_cast %52 : vector<1x16x16xf32> to vector<16x16xf32>
    %54 = vector.shape_cast %51 : vector<16x16xf32> to vector<1x16x16xf32>
    tpu.vector_store %arg5[%c0_29, %c0_30, %c0_31], %54 {strides = array<i32>} : memref<1x16x16xf32, #tpu.memory_space<vmem>>, vector<1x16x16xf32>,
    return
  }
  func.func @transform_0(%arg0: i32) -> (i32, i32, i32) {
    %c0_i32 = arith.constant 0 : i32
    %c0_i32_0 = arith.constant 0 : i32
    %c0_i32_1 = arith.constant 0 : i32
    return %arg0, %c0_i32, %c0_i32_0 : i32, i32, i32
  }
  func.func @transform_1(%arg0: i32) -> (i32, i32, i32) {
    %c0_i32 = arith.constant 0 : i32
    %c0_i32_0 = arith.constant 0 : i32
    %c0_i32_1 = arith.constant 0 : i32
    %c0_i32_2 = arith.constant 0 : i32
    return %c0_i32, %c0_i32_0, %c0_i32_1 : i32, i32, i32
  }
  func.func @transform_2(%arg0: i32) -> (i32, i32) {
    %c0_i32 = arith.constant 0 : i32
    %c0_i32_0 = arith.constant 0 : i32
    %c0_i32_1 = arith.constant 0 : i32
    return %c0_i32, %c0_i32_0 : i32, i32
  }
  func.func @transform_3(%arg0: i32) -> (i32, i32, i32) {
    %c0_i32 = arith.constant 0 : i32
    %c0_i32_0 = arith.constant 0 : i32
    %c0_i32_1 = arith.constant 0 : i32
    return %arg0, %c0_i32, %c0_i32_0 : i32, i32, i32
  }
  func.func @transform_4(%arg0: i32) -> (i32, i32, i32) {
    %c0_i32 = arith.constant 0 : i32
    %c0_i32_0 = arith.constant 0 : i32
    %c0_i32_1 = arith.constant 0 : i32
    return %arg0, %c0_i32, %c0_i32_0 : i32, i32, i32
  }
}

module attributes {stable_mosaic.version = 11 : i64} {
  func.func @_conv_kernel(%arg0: i32, %arg1: memref<1x1x8xf32, #tpu.memory_space<vmem>>, %arg2: memref<1x8x16xbf16, #tpu.memory_space<vmem>>, %arg3: memref<1x16xf32, #tpu.memory_space<vmem>>, %arg4: memref<1x1x16xf32, #tpu.memory_space<vmem>>) attributes {dimension_semantics = [#tpu.dimension_semantics<parallel>], iteration_bounds = array<i64: 2>, scalar_prefetch = 0 : i64, scratch_operands = 0 : i64, tpu.core_type = #tpu.core_type<tc>, window_params = [{transform_indices = @transform_0, window_bounds = array<i64: 1, 1, 8>}, {pipeline_mode = #tpu.pipeline_mode<synchronous>, transform_indices = @transform_1, window_bounds = array<i64: 1, 8, 16>}, {pipeline_mode = #tpu.pipeline_mode<synchronous>, transform_indices = @transform_2, window_bounds = array<i64: 1, 16>}, {transform_indices = @transform_3, window_bounds = array<i64: 1, 1, 16>}]} {
    %c0 = arith.constant 0 : index
    %c0_0 = arith.constant 0 : index
    %c0_1 = arith.constant 0 : index
    %0 = vector.load %arg1[%c0, %c0_0, %c0_1] : memref<1x1x8xf32, #tpu.memory_space<vmem>>, vector<1x1x8xf32>
    %1 = vector.shape_cast %0 : vector<1x1x8xf32> to vector<1x8xf32>
    %cst = arith.constant 0.000000e+00 : f32
    %2 = vector.broadcast %cst : f32 to vector<1x16xf32>
    %3 = arith.truncf %1 : vector<1x8xf32> to vector<1x8xbf16>
    %c0_2 = arith.constant 0 : index
    %c0_3 = arith.constant 0 : index
    %c0_4 = arith.constant 0 : index
    %4 = vector.load %arg2[%c0_2, %c0_3, %c0_4] : memref<1x8x16xbf16, #tpu.memory_space<vmem>>, vector<1x8x16xbf16>
    %5 = vector.shape_cast %4 : vector<1x8x16xbf16> to vector<8x16xbf16>
    %cst_5 = arith.constant dense<0.000000e+00> : vector<1x16xf32>
    %6 = tpu.matmul %3, %5, %cst_5 {dimension_numbers = #tpu.dot_dimension_numbers<[1], [0], [0], [1], [0, 0, 1, 1], [], []>} : vector<1x8xbf16>, vector<8x16xbf16>, vector<1x16xf32> -> vector<1x16xf32>
    %7 = arith.addf %2, %6 : vector<1x16xf32>
    %c0_6 = arith.constant 0 : index
    %c0_7 = arith.constant 0 : index
    %8 = vector.load %arg3[%c0_6, %c0_7] : memref<1x16xf32, #tpu.memory_space<vmem>>, vector<1x16xf32>
    %9 = arith.addf %7, %8 : vector<1x16xf32>
    %c0_8 = arith.constant 0 : index
    %c0_9 = arith.constant 0 : index
    %c0_10 = arith.constant 0 : index
    %10 = vector.load %arg4[%c0_8, %c0_9, %c0_10] : memref<1x1x16xf32, #tpu.memory_space<vmem>>, vector<1x1x16xf32>
    %11 = vector.shape_cast %10 : vector<1x1x16xf32> to vector<1x16xf32>
    %12 = vector.shape_cast %9 : vector<1x16xf32> to vector<1x1x16xf32>
    tpu.vector_store %arg4[%c0_8, %c0_9, %c0_10], %12 {strides = array<i32>} : memref<1x1x16xf32, #tpu.memory_space<vmem>>, vector<1x1x16xf32>,
    return
  }
  func.func @transform_0(%arg0: i32) -> (i32, i32, i32) {
    %c0_i32 = arith.constant 0 : i32
    %c0_i32_0 = arith.constant 0 : i32
    %c0_i32_1 = arith.constant 0 : i32
    return %arg0, %c0_i32, %c0_i32_0 : i32, i32, i32
  }
  func.func @transform_1(%arg0: i32) -> (i32, i32, i32) {
    %c0_i32 = arith.constant 0 : i32
    %c0_i32_0 = arith.constant 0 : i32
    %c0_i32_1 = arith.constant 0 : i32
    %c0_i32_2 = arith.constant 0 : i32
    return %c0_i32, %c0_i32_0, %c0_i32_1 : i32, i32, i32
  }
  func.func @transform_2(%arg0: i32) -> (i32, i32) {
    %c0_i32 = arith.constant 0 : i32
    %c0_i32_0 = arith.constant 0 : i32
    %c0_i32_1 = arith.constant 0 : i32
    return %c0_i32, %c0_i32_0 : i32, i32
  }
  func.func @transform_3(%arg0: i32) -> (i32, i32, i32) {
    %c0_i32 = arith.constant 0 : i32
    %c0_i32_0 = arith.constant 0 : i32
    %c0_i32_1 = arith.constant 0 : i32
    return %arg0, %c0_i32, %c0_i32_0 : i32, i32, i32
  }
}

module attributes {stable_mosaic.version = 11 : i64} {
  func.func @_conv_kernel(%arg0: i32, %arg1: memref<1x35x16xf32, #tpu.memory_space<vmem>>, %arg2: memref<4x16x8xbf16, #tpu.memory_space<vmem>>, %arg3: memref<1x8xf32, #tpu.memory_space<vmem>>, %arg4: memref<1x32x8xf32, #tpu.memory_space<vmem>>, %arg5: memref<1x32x8xf32, #tpu.memory_space<vmem>>) attributes {dimension_semantics = [#tpu.dimension_semantics<parallel>], iteration_bounds = array<i64: 2>, scalar_prefetch = 0 : i64, scratch_operands = 0 : i64, tpu.core_type = #tpu.core_type<tc>, window_params = [{transform_indices = @transform_0, window_bounds = array<i64: 1, 35, 16>}, {pipeline_mode = #tpu.pipeline_mode<synchronous>, transform_indices = @transform_1, window_bounds = array<i64: 4, 16, 8>}, {pipeline_mode = #tpu.pipeline_mode<synchronous>, transform_indices = @transform_2, window_bounds = array<i64: 1, 8>}, {transform_indices = @transform_3, window_bounds = array<i64: 1, 32, 8>}, {transform_indices = @transform_4, window_bounds = array<i64: 1, 32, 8>}]} {
    %c0 = arith.constant 0 : index
    %c0_0 = arith.constant 0 : index
    %c0_1 = arith.constant 0 : index
    %0 = vector.load %arg1[%c0, %c0_0, %c0_1] : memref<1x35x16xf32, #tpu.memory_space<vmem>>, vector<1x35x16xf32>
    %1 = vector.shape_cast %0 : vector<1x35x16xf32> to vector<35x16xf32>
    %cst = arith.constant 0.000000e+00 : f32
    %2 = vector.broadcast %cst : f32 to vector<35x16xf32>
    %3 = arith.cmpf oge, %1, %2 : vector<35x16xf32>
    %cst_2 = arith.constant 1.000000e-01 : f32
    %4 = vector.broadcast %cst_2 : f32 to vector<35x16xf32>
    %5 = arith.mulf %4, %1 : vector<35x16xf32>
    %6 = arith.select %3, %1, %5 : vector<35x16xi1>, vector<35x16xf32>
    %cst_3 = arith.constant 0.000000e+00 : f32
    %7 = vector.broadcast %cst_3 : f32 to vector<32x8xf32>
    %8 = vector.extract_strided_slice %6 {offsets = [0, 0], sizes = [32, 16], strides = [1, 1]} : vector<35x16xf32> to vector<32x16xf32>
    %9 = arith.truncf %8 : vector<32x16xf32> to vector<32x16xbf16>
    %c0_4 = arith.constant 0 : index
    %c0_5 = arith.constant 0 : index
    %c0_6 = arith.constant 0 : index
    %10 = vector.load %arg2[%c0_4, %c0_5, %c0_6] : memref<4x16x8xbf16, #tpu.memory_space<vmem>>, vector<1x16x8xbf16>
    %11 = vector.shape_cast %10 : vector<1x16x8xbf16> to vector<16x8xbf16>
    %cst_7 = arith.constant dense<0.000000e+00> : vector<32x8xf32>
    %12 = tpu.matmul %9, %11, %cst_7 {dimension_numbers = #tpu.dot_dimension_numbers<[1], [0], [0], [1], [0, 0, 1, 1], [], []>} : vector<32x16xbf16>, vector<16x8xbf16>, vector<32x8xf32> -> vector<32x8xf32>
    %13 = arith.addf %7, %12 : vector<32x8xf32>
    %14 = vector.extract_strided_slice %6 {offsets = [1, 0], sizes = [32, 16], strides = [1, 1]} : vector<35x16xf32> to vector<32x16xf32>
    %15 = arith.truncf %14 : vector<32x16xf32> to vector<32x16xbf16>
    %c1 = arith.constant 1 : index
    %c0_8 = arith.constant 0 : index
    %c0_9 = arith.constant 0 : index
    %16 = vector.load %arg2[%c1, %c0_8, %c0_9] : memref<4x16x8xbf16, #tpu.memory_space<vmem>>, vector<1x16x8xbf16>
    %17 = vector.shape_cast %16 : vector<1x16x8xbf16> to vector<16x8xbf16>
    %cst_10 = arith.constant dense<0.000000e+00> : vector<32x8xf32>
    %18 = tpu.matmul %15, %17, %cst_10 {dimension_numbers = #tpu.dot_dimension_numbers<[1], [0], [0], [1], [0, 0, 1, 1], [], []>} : vector<32x16xbf16>, vector<16x8xbf16>, vector<32x8xf32> -> vector<32x8xf32>
    %19 = arith.addf %13, %18 : vector<32x8xf32>
    %20 = vector.extract_strided_slice %6 {offsets = [2, 0], sizes = [32, 16], strides = [1, 1]} : vector<35x16xf32> to vector<32x16xf32>
    %21 = arith.truncf %20 : vector<32x16xf32> to vector<32x16xbf16>
    %c2 = arith.constant 2 : index
    %c0_11 = arith.constant 0 : index
    %c0_12 = arith.constant 0 : index
    %22 = vector.load %arg2[%c2, %c0_11, %c0_12] : memref<4x16x8xbf16, #tpu.memory_space<vmem>>, vector<1x16x8xbf16>
    %23 = vector.shape_cast %22 : vector<1x16x8xbf16> to vector<16x8xbf16>
    %cst_13 = arith.constant dense<0.000000e+00> : vector<32x8xf32>
    %24 = tpu.matmul %21, %23, %cst_13 {dimension_numbers = #tpu.dot_dimension_numbers<[1], [0], [0], [1], [0, 0, 1, 1], [], []>} : vector<32x16xbf16>, vector<16x8xbf16>, vector<32x8xf32> -> vector<32x8xf32>
    %25 = arith.addf %19, %24 : vector<32x8xf32>
    %26 = vector.extract_strided_slice %6 {offsets = [3, 0], sizes = [32, 16], strides = [1, 1]} : vector<35x16xf32> to vector<32x16xf32>
    %27 = arith.truncf %26 : vector<32x16xf32> to vector<32x16xbf16>
    %c3 = arith.constant 3 : index
    %c0_14 = arith.constant 0 : index
    %c0_15 = arith.constant 0 : index
    %28 = vector.load %arg2[%c3, %c0_14, %c0_15] : memref<4x16x8xbf16, #tpu.memory_space<vmem>>, vector<1x16x8xbf16>
    %29 = vector.shape_cast %28 : vector<1x16x8xbf16> to vector<16x8xbf16>
    %cst_16 = arith.constant dense<0.000000e+00> : vector<32x8xf32>
    %30 = tpu.matmul %27, %29, %cst_16 {dimension_numbers = #tpu.dot_dimension_numbers<[1], [0], [0], [1], [0, 0, 1, 1], [], []>} : vector<32x16xbf16>, vector<16x8xbf16>, vector<32x8xf32> -> vector<32x8xf32>
    %31 = arith.addf %25, %30 : vector<32x8xf32>
    %c0_17 = arith.constant 0 : index
    %c0_18 = arith.constant 0 : index
    %32 = vector.load %arg3[%c0_17, %c0_18] : memref<1x8xf32, #tpu.memory_space<vmem>>, vector<1x8xf32>
    %33 = vector.broadcast %32 : vector<1x8xf32> to vector<32x8xf32>
    %34 = arith.addf %31, %33 : vector<32x8xf32>
    %c0_19 = arith.constant 0 : index
    %c0_20 = arith.constant 0 : index
    %c0_21 = arith.constant 0 : index
    %35 = vector.load %arg4[%c0_19, %c0_20, %c0_21] : memref<1x32x8xf32, #tpu.memory_space<vmem>>, vector<1x32x8xf32>
    %36 = vector.shape_cast %35 : vector<1x32x8xf32> to vector<32x8xf32>
    %37 = arith.addf %34, %36 : vector<32x8xf32>
    %c0_22 = arith.constant 0 : index
    %c0_23 = arith.constant 0 : index
    %c0_24 = arith.constant 0 : index
    %38 = vector.load %arg5[%c0_22, %c0_23, %c0_24] : memref<1x32x8xf32, #tpu.memory_space<vmem>>, vector<1x32x8xf32>
    %39 = vector.shape_cast %38 : vector<1x32x8xf32> to vector<32x8xf32>
    %40 = vector.shape_cast %37 : vector<32x8xf32> to vector<1x32x8xf32>
    tpu.vector_store %arg5[%c0_22, %c0_23, %c0_24], %40 {strides = array<i32>} : memref<1x32x8xf32, #tpu.memory_space<vmem>>, vector<1x32x8xf32>,
    return
  }
  func.func @transform_0(%arg0: i32) -> (i32, i32, i32) {
    %c0_i32 = arith.constant 0 : i32
    %c0_i32_0 = arith.constant 0 : i32
    %c0_i32_1 = arith.constant 0 : i32
    return %arg0, %c0_i32, %c0_i32_0 : i32, i32, i32
  }
  func.func @transform_1(%arg0: i32) -> (i32, i32, i32) {
    %c0_i32 = arith.constant 0 : i32
    %c0_i32_0 = arith.constant 0 : i32
    %c0_i32_1 = arith.constant 0 : i32
    %c0_i32_2 = arith.constant 0 : i32
    return %c0_i32, %c0_i32_0, %c0_i32_1 : i32, i32, i32
  }
  func.func @transform_2(%arg0: i32) -> (i32, i32) {
    %c0_i32 = arith.constant 0 : i32
    %c0_i32_0 = arith.constant 0 : i32
    %c0_i32_1 = arith.constant 0 : i32
    return %c0_i32, %c0_i32_0 : i32, i32
  }
  func.func @transform_3(%arg0: i32) -> (i32, i32, i32) {
    %c0_i32 = arith.constant 0 : i32
    %c0_i32_0 = arith.constant 0 : i32
    %c0_i32_1 = arith.constant 0 : i32
    return %arg0, %c0_i32, %c0_i32_0 : i32, i32, i32
  }
  func.func @transform_4(%arg0: i32) -> (i32, i32, i32) {
    %c0_i32 = arith.constant 0 : i32
    %c0_i32_0 = arith.constant 0 : i32
    %c0_i32_1 = arith.constant 0 : i32
    return %arg0, %c0_i32, %c0_i32_0 : i32, i32, i32
  }
}

module attributes {stable_mosaic.version = 11 : i64} {
  func.func @_resblock_kernel(%arg0: i32, %arg1: memref<1x32x8xf32, #tpu.memory_space<vmem>>, %arg2: memref<3x3x8x8xbf16, #tpu.memory_space<vmem>>, %arg3: memref<3x1x8xf32, #tpu.memory_space<vmem>>, %arg4: memref<3x3x8x8xbf16, #tpu.memory_space<vmem>>, %arg5: memref<3x1x8xf32, #tpu.memory_space<vmem>>, %arg6: memref<1x32x8xf32, #tpu.memory_space<vmem>>, %arg7: memref<42x8xf32, #tpu.memory_space<vmem>>, %arg8: memref<34x8xf32, #tpu.memory_space<vmem>>) attributes {dimension_semantics = [#tpu.dimension_semantics<parallel>], iteration_bounds = array<i64: 2>, scalar_prefetch = 0 : i64, scratch_operands = 2 : i64, tpu.core_type = #tpu.core_type<tc>, window_params = [{transform_indices = @transform_0, window_bounds = array<i64: 1, 32, 8>}, {pipeline_mode = #tpu.pipeline_mode<synchronous>, transform_indices = @transform_1, window_bounds = array<i64: 3, 3, 8, 8>}, {pipeline_mode = #tpu.pipeline_mode<synchronous>, transform_indices = @transform_2, window_bounds = array<i64: 3, 1, 8>}, {pipeline_mode = #tpu.pipeline_mode<synchronous>, transform_indices = @transform_3, window_bounds = array<i64: 3, 3, 8, 8>}, {pipeline_mode = #tpu.pipeline_mode<synchronous>, transform_indices = @transform_4, window_bounds = array<i64: 3, 1, 8>}, {transform_indices = @transform_5, window_bounds = array<i64: 1, 32, 8>}]} {
    %cst = arith.constant 0.000000e+00 : f32
    %0 = vector.broadcast %cst : f32 to vector<42x8xf32>
    %c0 = arith.constant 0 : index
    %c0_0 = arith.constant 0 : index
    %1 = vector.load %arg7[%c0, %c0_0] : memref<42x8xf32, #tpu.memory_space<vmem>>, vector<42x8xf32>
    tpu.vector_store %arg7[%c0, %c0_0], %0 {strides = array<i32>} : memref<42x8xf32, #tpu.memory_space<vmem>>, vector<42x8xf32>,
    %cst_1 = arith.constant 0.000000e+00 : f32
    %2 = vector.broadcast %cst_1 : f32 to vector<34x8xf32>
    %c0_2 = arith.constant 0 : index
    %c0_3 = arith.constant 0 : index
    %3 = vector.load %arg8[%c0_2, %c0_3] : memref<34x8xf32, #tpu.memory_space<vmem>>, vector<34x8xf32>
    tpu.vector_store %arg8[%c0_2, %c0_3], %2 {strides = array<i32>} : memref<34x8xf32, #tpu.memory_space<vmem>>, vector<34x8xf32>,
    %c0_4 = arith.constant 0 : index
    %c0_5 = arith.constant 0 : index
    %c0_6 = arith.constant 0 : index
    %4 = vector.load %arg1[%c0_4, %c0_5, %c0_6] : memref<1x32x8xf32, #tpu.memory_space<vmem>>, vector<1x32x8xf32>
    %5 = vector.shape_cast %4 : vector<1x32x8xf32> to vector<32x8xf32>
    %cst_7 = arith.constant 0.000000e+00 : f32
    %6 = vector.broadcast %cst_7 : f32 to vector<32x8xf32>
    %7 = arith.cmpf oge, %5, %6 : vector<32x8xf32>
    %cst_8 = arith.constant 1.000000e-01 : f32
    %8 = vector.broadcast %cst_8 : f32 to vector<32x8xf32>
    %9 = arith.mulf %8, %5 : vector<32x8xf32>
    %10 = arith.select %7, %5, %9 : vector<32x8xi1>, vector<32x8xf32>
    %c5 = arith.constant 5 : index
    %c0_9 = arith.constant 0 : index
    %11 = vector.load %arg7[%c5, %c0_9] : memref<42x8xf32, #tpu.memory_space<vmem>>, vector<32x8xf32>
    tpu.vector_store %arg7[%c5, %c0_9], %10 {strides = array<i32>} : memref<42x8xf32, #tpu.memory_space<vmem>>, vector<32x8xf32>,
    %cst_10 = arith.constant 0.000000e+00 : f32
    %12 = vector.broadcast %cst_10 : f32 to vector<32x8xf32>
    %c4 = arith.constant 4 : index
    %c0_11 = arith.constant 0 : index
    %13 = vector.load %arg7[%c4, %c0_11] : memref<42x8xf32, #tpu.memory_space<vmem>>, vector<32x8xf32>
    %14 = arith.truncf %13 : vector<32x8xf32> to vector<32x8xbf16>
    %c0_12 = arith.constant 0 : index
    %c0_13 = arith.constant 0 : index
    %c0_14 = arith.constant 0 : index
    %c0_15 = arith.constant 0 : index
    %15 = vector.load %arg2[%c0_12, %c0_13, %c0_14, %c0_15] : memref<3x3x8x8xbf16, #tpu.memory_space<vmem>>, vector<1x1x8x8xbf16>
    %16 = vector.shape_cast %15 : vector<1x1x8x8xbf16> to vector<8x8xbf16>
    %cst_16 = arith.constant dense<0.000000e+00> : vector<32x8xf32>
    %17 = tpu.matmul %14, %16, %cst_16 {dimension_numbers = #tpu.dot_dimension_numbers<[1], [0], [0], [1], [0, 0, 1, 1], [], []>} : vector<32x8xbf16>, vector<8x8xbf16>, vector<32x8xf32> -> vector<32x8xf32>
    %18 = arith.addf %12, %17 : vector<32x8xf32>
    %c5_17 = arith.constant 5 : index
    %c0_18 = arith.constant 0 : index
    %19 = vector.load %arg7[%c5_17, %c0_18] : memref<42x8xf32, #tpu.memory_space<vmem>>, vector<32x8xf32>
    %20 = arith.truncf %19 : vector<32x8xf32> to vector<32x8xbf16>
    %c0_19 = arith.constant 0 : index
    %c1 = arith.constant 1 : index
    %c0_20 = arith.constant 0 : index
    %c0_21 = arith.constant 0 : index
    %21 = vector.load %arg2[%c0_19, %c1, %c0_20, %c0_21] : memref<3x3x8x8xbf16, #tpu.memory_space<vmem>>, vector<1x1x8x8xbf16>
    %22 = vector.shape_cast %21 : vector<1x1x8x8xbf16> to vector<8x8xbf16>
    %cst_22 = arith.constant dense<0.000000e+00> : vector<32x8xf32>
    %23 = tpu.matmul %20, %22, %cst_22 {dimension_numbers = #tpu.dot_dimension_numbers<[1], [0], [0], [1], [0, 0, 1, 1], [], []>} : vector<32x8xbf16>, vector<8x8xbf16>, vector<32x8xf32> -> vector<32x8xf32>
    %24 = arith.addf %18, %23 : vector<32x8xf32>
    %c6 = arith.constant 6 : index
    %c0_23 = arith.constant 0 : index
    %25 = vector.load %arg7[%c6, %c0_23] : memref<42x8xf32, #tpu.memory_space<vmem>>, vector<32x8xf32>
    %26 = arith.truncf %25 : vector<32x8xf32> to vector<32x8xbf16>
    %c0_24 = arith.constant 0 : index
    %c2 = arith.constant 2 : index
    %c0_25 = arith.constant 0 : index
    %c0_26 = arith.constant 0 : index
    %27 = vector.load %arg2[%c0_24, %c2, %c0_25, %c0_26] : memref<3x3x8x8xbf16, #tpu.memory_space<vmem>>, vector<1x1x8x8xbf16>
    %28 = vector.shape_cast %27 : vector<1x1x8x8xbf16> to vector<8x8xbf16>
    %cst_27 = arith.constant dense<0.000000e+00> : vector<32x8xf32>
    %29 = tpu.matmul %26, %28, %cst_27 {dimension_numbers = #tpu.dot_dimension_numbers<[1], [0], [0], [1], [0, 0, 1, 1], [], []>} : vector<32x8xbf16>, vector<8x8xbf16>, vector<32x8xf32> -> vector<32x8xf32>
    %30 = arith.addf %24, %29 : vector<32x8xf32>
    %c0_28 = arith.constant 0 : index
    %c0_29 = arith.constant 0 : index
    %c0_30 = arith.constant 0 : index
    %31 = vector.load %arg3[%c0_28, %c0_29, %c0_30] : memref<3x1x8xf32, #tpu.memory_space<vmem>>, vector<1x1x8xf32>
    %32 = vector.shape_cast %31 : vector<1x1x8xf32> to vector<1x8xf32>
    %33 = vector.broadcast %32 : vector<1x8xf32> to vector<32x8xf32>
    %34 = arith.addf %30, %33 : vector<32x8xf32>
    %cst_31 = arith.constant 0.000000e+00 : f32
    %35 = vector.broadcast %cst_31 : f32 to vector<32x8xf32>
    %36 = arith.cmpf oge, %34, %35 : vector<32x8xf32>
    %cst_32 = arith.constant 1.000000e-01 : f32
    %37 = vector.broadcast %cst_32 : f32 to vector<32x8xf32>
    %38 = arith.mulf %37, %34 : vector<32x8xf32>
    %39 = arith.select %36, %34, %38 : vector<32x8xi1>, vector<32x8xf32>
    %c1_33 = arith.constant 1 : index
    %c0_34 = arith.constant 0 : index
    %40 = vector.load %arg8[%c1_33, %c0_34] : memref<34x8xf32, #tpu.memory_space<vmem>>, vector<32x8xf32>
    tpu.vector_store %arg8[%c1_33, %c0_34], %39 {strides = array<i32>} : memref<34x8xf32, #tpu.memory_space<vmem>>, vector<32x8xf32>,
    %cst_35 = arith.constant 0.000000e+00 : f32
    %41 = vector.broadcast %cst_35 : f32 to vector<32x8xf32>
    %c0_36 = arith.constant 0 : index
    %c0_37 = arith.constant 0 : index
    %42 = vector.load %arg8[%c0_36, %c0_37] : memref<34x8xf32, #tpu.memory_space<vmem>>, vector<32x8xf32>
    %43 = arith.truncf %42 : vector<32x8xf32> to vector<32x8xbf16>
    %c0_38 = arith.constant 0 : index
    %c0_39 = arith.constant 0 : index
    %c0_40 = arith.constant 0 : index
    %c0_41 = arith.constant 0 : index
    %44 = vector.load %arg4[%c0_38, %c0_39, %c0_40, %c0_41] : memref<3x3x8x8xbf16, #tpu.memory_space<vmem>>, vector<1x1x8x8xbf16>
    %45 = vector.shape_cast %44 : vector<1x1x8x8xbf16> to vector<8x8xbf16>
    %cst_42 = arith.constant dense<0.000000e+00> : vector<32x8xf32>
    %46 = tpu.matmul %43, %45, %cst_42 {dimension_numbers = #tpu.dot_dimension_numbers<[1], [0], [0], [1], [0, 0, 1, 1], [], []>} : vector<32x8xbf16>, vector<8x8xbf16>, vector<32x8xf32> -> vector<32x8xf32>
    %47 = arith.addf %41, %46 : vector<32x8xf32>
    %c1_43 = arith.constant 1 : index
    %c0_44 = arith.constant 0 : index
    %48 = vector.load %arg8[%c1_43, %c0_44] : memref<34x8xf32, #tpu.memory_space<vmem>>, vector<32x8xf32>
    %49 = arith.truncf %48 : vector<32x8xf32> to vector<32x8xbf16>
    %c0_45 = arith.constant 0 : index
    %c1_46 = arith.constant 1 : index
    %c0_47 = arith.constant 0 : index
    %c0_48 = arith.constant 0 : index
    %50 = vector.load %arg4[%c0_45, %c1_46, %c0_47, %c0_48] : memref<3x3x8x8xbf16, #tpu.memory_space<vmem>>, vector<1x1x8x8xbf16>
    %51 = vector.shape_cast %50 : vector<1x1x8x8xbf16> to vector<8x8xbf16>
    %cst_49 = arith.constant dense<0.000000e+00> : vector<32x8xf32>
    %52 = tpu.matmul %49, %51, %cst_49 {dimension_numbers = #tpu.dot_dimension_numbers<[1], [0], [0], [1], [0, 0, 1, 1], [], []>} : vector<32x8xbf16>, vector<8x8xbf16>, vector<32x8xf32> -> vector<32x8xf32>
    %53 = arith.addf %47, %52 : vector<32x8xf32>
    %c2_50 = arith.constant 2 : index
    %c0_51 = arith.constant 0 : index
    %54 = vector.load %arg8[%c2_50, %c0_51] : memref<34x8xf32, #tpu.memory_space<vmem>>, vector<32x8xf32>
    %55 = arith.truncf %54 : vector<32x8xf32> to vector<32x8xbf16>
    %c0_52 = arith.constant 0 : index
    %c2_53 = arith.constant 2 : index
    %c0_54 = arith.constant 0 : index
    %c0_55 = arith.constant 0 : index
    %56 = vector.load %arg4[%c0_52, %c2_53, %c0_54, %c0_55] : memref<3x3x8x8xbf16, #tpu.memory_space<vmem>>, vector<1x1x8x8xbf16>
    %57 = vector.shape_cast %56 : vector<1x1x8x8xbf16> to vector<8x8xbf16>
    %cst_56 = arith.constant dense<0.000000e+00> : vector<32x8xf32>
    %58 = tpu.matmul %55, %57, %cst_56 {dimension_numbers = #tpu.dot_dimension_numbers<[1], [0], [0], [1], [0, 0, 1, 1], [], []>} : vector<32x8xbf16>, vector<8x8xbf16>, vector<32x8xf32> -> vector<32x8xf32>
    %59 = arith.addf %53, %58 : vector<32x8xf32>
    %c0_57 = arith.constant 0 : index
    %c0_58 = arith.constant 0 : index
    %c0_59 = arith.constant 0 : index
    %60 = vector.load %arg5[%c0_57, %c0_58, %c0_59] : memref<3x1x8xf32, #tpu.memory_space<vmem>>, vector<1x1x8xf32>
    %61 = vector.shape_cast %60 : vector<1x1x8xf32> to vector<1x8xf32>
    %62 = vector.broadcast %61 : vector<1x8xf32> to vector<32x8xf32>
    %63 = arith.addf %59, %62 : vector<32x8xf32>
    %64 = arith.addf %63, %5 : vector<32x8xf32>
    %cst_60 = arith.constant 0.000000e+00 : f32
    %65 = vector.broadcast %cst_60 : f32 to vector<32x8xf32>
    %66 = arith.cmpf oge, %64, %65 : vector<32x8xf32>
    %cst_61 = arith.constant 1.000000e-01 : f32
    %67 = vector.broadcast %cst_61 : f32 to vector<32x8xf32>
    %68 = arith.mulf %67, %64 : vector<32x8xf32>
    %69 = arith.select %66, %64, %68 : vector<32x8xi1>, vector<32x8xf32>
    %c5_62 = arith.constant 5 : index
    %c0_63 = arith.constant 0 : index
    %70 = vector.load %arg7[%c5_62, %c0_63] : memref<42x8xf32, #tpu.memory_space<vmem>>, vector<32x8xf32>
    tpu.vector_store %arg7[%c5_62, %c0_63], %69 {strides = array<i32>} : memref<42x8xf32, #tpu.memory_space<vmem>>, vector<32x8xf32>,
    %cst_64 = arith.constant 0.000000e+00 : f32
    %71 = vector.broadcast %cst_64 : f32 to vector<32x8xf32>
    %c2_65 = arith.constant 2 : index
    %c0_66 = arith.constant 0 : index
    %72 = vector.load %arg7[%c2_65, %c0_66] : memref<42x8xf32, #tpu.memory_space<vmem>>, vector<32x8xf32>
    %73 = arith.truncf %72 : vector<32x8xf32> to vector<32x8xbf16>
    %c1_67 = arith.constant 1 : index
    %c0_68 = arith.constant 0 : index
    %c0_69 = arith.constant 0 : index
    %c0_70 = arith.constant 0 : index
    %74 = vector.load %arg2[%c1_67, %c0_68, %c0_69, %c0_70] : memref<3x3x8x8xbf16, #tpu.memory_space<vmem>>, vector<1x1x8x8xbf16>
    %75 = vector.shape_cast %74 : vector<1x1x8x8xbf16> to vector<8x8xbf16>
    %cst_71 = arith.constant dense<0.000000e+00> : vector<32x8xf32>
    %76 = tpu.matmul %73, %75, %cst_71 {dimension_numbers = #tpu.dot_dimension_numbers<[1], [0], [0], [1], [0, 0, 1, 1], [], []>} : vector<32x8xbf16>, vector<8x8xbf16>, vector<32x8xf32> -> vector<32x8xf32>
    %77 = arith.addf %71, %76 : vector<32x8xf32>
    %c5_72 = arith.constant 5 : index
    %c0_73 = arith.constant 0 : index
    %78 = vector.load %arg7[%c5_72, %c0_73] : memref<42x8xf32, #tpu.memory_space<vmem>>, vector<32x8xf32>
    %79 = arith.truncf %78 : vector<32x8xf32> to vector<32x8xbf16>
    %c1_74 = arith.constant 1 : index
    %c1_75 = arith.constant 1 : index
    %c0_76 = arith.constant 0 : index
    %c0_77 = arith.constant 0 : index
    %80 = vector.load %arg2[%c1_74, %c1_75, %c0_76, %c0_77] : memref<3x3x8x8xbf16, #tpu.memory_space<vmem>>, vector<1x1x8x8xbf16>
    %81 = vector.shape_cast %80 : vector<1x1x8x8xbf16> to vector<8x8xbf16>
    %cst_78 = arith.constant dense<0.000000e+00> : vector<32x8xf32>
    %82 = tpu.matmul %79, %81, %cst_78 {dimension_numbers = #tpu.dot_dimension_numbers<[1], [0], [0], [1], [0, 0, 1, 1], [], []>} : vector<32x8xbf16>, vector<8x8xbf16>, vector<32x8xf32> -> vector<32x8xf32>
    %83 = arith.addf %77, %82 : vector<32x8xf32>
    %c8 = arith.constant 8 : index
    %c0_79 = arith.constant 0 : index
    %84 = vector.load %arg7[%c8, %c0_79] : memref<42x8xf32, #tpu.memory_space<vmem>>, vector<32x8xf32>
    %85 = arith.truncf %84 : vector<32x8xf32> to vector<32x8xbf16>
    %c1_80 = arith.constant 1 : index
    %c2_81 = arith.constant 2 : index
    %c0_82 = arith.constant 0 : index
    %c0_83 = arith.constant 0 : index
    %86 = vector.load %arg2[%c1_80, %c2_81, %c0_82, %c0_83] : memref<3x3x8x8xbf16, #tpu.memory_space<vmem>>, vector<1x1x8x8xbf16>
    %87 = vector.shape_cast %86 : vector<1x1x8x8xbf16> to vector<8x8xbf16>
    %cst_84 = arith.constant dense<0.000000e+00> : vector<32x8xf32>
    %88 = tpu.matmul %85, %87, %cst_84 {dimension_numbers = #tpu.dot_dimension_numbers<[1], [0], [0], [1], [0, 0, 1, 1], [], []>} : vector<32x8xbf16>, vector<8x8xbf16>, vector<32x8xf32> -> vector<32x8xf32>
    %89 = arith.addf %83, %88 : vector<32x8xf32>
    %c1_85 = arith.constant 1 : index
    %c0_86 = arith.constant 0 : index
    %c0_87 = arith.constant 0 : index
    %90 = vector.load %arg3[%c1_85, %c0_86, %c0_87] : memref<3x1x8xf32, #tpu.memory_space<vmem>>, vector<1x1x8xf32>
    %91 = vector.shape_cast %90 : vector<1x1x8xf32> to vector<1x8xf32>
    %92 = vector.broadcast %91 : vector<1x8xf32> to vector<32x8xf32>
    %93 = arith.addf %89, %92 : vector<32x8xf32>
    %cst_88 = arith.constant 0.000000e+00 : f32
    %94 = vector.broadcast %cst_88 : f32 to vector<32x8xf32>
    %95 = arith.cmpf oge, %93, %94 : vector<32x8xf32>
    %cst_89 = arith.constant 1.000000e-01 : f32
    %96 = vector.broadcast %cst_89 : f32 to vector<32x8xf32>
    %97 = arith.mulf %96, %93 : vector<32x8xf32>
    %98 = arith.select %95, %93, %97 : vector<32x8xi1>, vector<32x8xf32>
    %c1_90 = arith.constant 1 : index
    %c0_91 = arith.constant 0 : index
    %99 = vector.load %arg8[%c1_90, %c0_91] : memref<34x8xf32, #tpu.memory_space<vmem>>, vector<32x8xf32>
    tpu.vector_store %arg8[%c1_90, %c0_91], %98 {strides = array<i32>} : memref<34x8xf32, #tpu.memory_space<vmem>>, vector<32x8xf32>,
    %cst_92 = arith.constant 0.000000e+00 : f32
    %100 = vector.broadcast %cst_92 : f32 to vector<32x8xf32>
    %c0_93 = arith.constant 0 : index
    %c0_94 = arith.constant 0 : index
    %101 = vector.load %arg8[%c0_93, %c0_94] : memref<34x8xf32, #tpu.memory_space<vmem>>, vector<32x8xf32>
    %102 = arith.truncf %101 : vector<32x8xf32> to vector<32x8xbf16>
    %c1_95 = arith.constant 1 : index
    %c0_96 = arith.constant 0 : index
    %c0_97 = arith.constant 0 : index
    %c0_98 = arith.constant 0 : index
    %103 = vector.load %arg4[%c1_95, %c0_96, %c0_97, %c0_98] : memref<3x3x8x8xbf16, #tpu.memory_space<vmem>>, vector<1x1x8x8xbf16>
    %104 = vector.shape_cast %103 : vector<1x1x8x8xbf16> to vector<8x8xbf16>
    %cst_99 = arith.constant dense<0.000000e+00> : vector<32x8xf32>
    %105 = tpu.matmul %102, %104, %cst_99 {dimension_numbers = #tpu.dot_dimension_numbers<[1], [0], [0], [1], [0, 0, 1, 1], [], []>} : vector<32x8xbf16>, vector<8x8xbf16>, vector<32x8xf32> -> vector<32x8xf32>
    %106 = arith.addf %100, %105 : vector<32x8xf32>
    %c1_100 = arith.constant 1 : index
    %c0_101 = arith.constant 0 : index
    %107 = vector.load %arg8[%c1_100, %c0_101] : memref<34x8xf32, #tpu.memory_space<vmem>>, vector<32x8xf32>
    %108 = arith.truncf %107 : vector<32x8xf32> to vector<32x8xbf16>
    %c1_102 = arith.constant 1 : index
    %c1_103 = arith.constant 1 : index
    %c0_104 = arith.constant 0 : index
    %c0_105 = arith.constant 0 : index
    %109 = vector.load %arg4[%c1_102, %c1_103, %c0_104, %c0_105] : memref<3x3x8x8xbf16, #tpu.memory_space<vmem>>, vector<1x1x8x8xbf16>
    %110 = vector.shape_cast %109 : vector<1x1x8x8xbf16> to vector<8x8xbf16>
    %cst_106 = arith.constant dense<0.000000e+00> : vector<32x8xf32>
    %111 = tpu.matmul %108, %110, %cst_106 {dimension_numbers = #tpu.dot_dimension_numbers<[1], [0], [0], [1], [0, 0, 1, 1], [], []>} : vector<32x8xbf16>, vector<8x8xbf16>, vector<32x8xf32> -> vector<32x8xf32>
    %112 = arith.addf %106, %111 : vector<32x8xf32>
    %c2_107 = arith.constant 2 : index
    %c0_108 = arith.constant 0 : index
    %113 = vector.load %arg8[%c2_107, %c0_108] : memref<34x8xf32, #tpu.memory_space<vmem>>, vector<32x8xf32>
    %114 = arith.truncf %113 : vector<32x8xf32> to vector<32x8xbf16>
    %c1_109 = arith.constant 1 : index
    %c2_110 = arith.constant 2 : index
    %c0_111 = arith.constant 0 : index
    %c0_112 = arith.constant 0 : index
    %115 = vector.load %arg4[%c1_109, %c2_110, %c0_111, %c0_112] : memref<3x3x8x8xbf16, #tpu.memory_space<vmem>>, vector<1x1x8x8xbf16>
    %116 = vector.shape_cast %115 : vector<1x1x8x8xbf16> to vector<8x8xbf16>
    %cst_113 = arith.constant dense<0.000000e+00> : vector<32x8xf32>
    %117 = tpu.matmul %114, %116, %cst_113 {dimension_numbers = #tpu.dot_dimension_numbers<[1], [0], [0], [1], [0, 0, 1, 1], [], []>} : vector<32x8xbf16>, vector<8x8xbf16>, vector<32x8xf32> -> vector<32x8xf32>
    %118 = arith.addf %112, %117 : vector<32x8xf32>
    %c1_114 = arith.constant 1 : index
    %c0_115 = arith.constant 0 : index
    %c0_116 = arith.constant 0 : index
    %119 = vector.load %arg5[%c1_114, %c0_115, %c0_116] : memref<3x1x8xf32, #tpu.memory_space<vmem>>, vector<1x1x8xf32>
    %120 = vector.shape_cast %119 : vector<1x1x8xf32> to vector<1x8xf32>
    %121 = vector.broadcast %120 : vector<1x8xf32> to vector<32x8xf32>
    %122 = arith.addf %118, %121 : vector<32x8xf32>
    %123 = arith.addf %122, %64 : vector<32x8xf32>
    %cst_117 = arith.constant 0.000000e+00 : f32
    %124 = vector.broadcast %cst_117 : f32 to vector<32x8xf32>
    %125 = arith.cmpf oge, %123, %124 : vector<32x8xf32>
    %cst_118 = arith.constant 1.000000e-01 : f32
    %126 = vector.broadcast %cst_118 : f32 to vector<32x8xf32>
    %127 = arith.mulf %126, %123 : vector<32x8xf32>
    %128 = arith.select %125, %123, %127 : vector<32x8xi1>, vector<32x8xf32>
    %c5_119 = arith.constant 5 : index
    %c0_120 = arith.constant 0 : index
    %129 = vector.load %arg7[%c5_119, %c0_120] : memref<42x8xf32, #tpu.memory_space<vmem>>, vector<32x8xf32>
    tpu.vector_store %arg7[%c5_119, %c0_120], %128 {strides = array<i32>} : memref<42x8xf32, #tpu.memory_space<vmem>>, vector<32x8xf32>,
    %cst_121 = arith.constant 0.000000e+00 : f32
    %130 = vector.broadcast %cst_121 : f32 to vector<32x8xf32>
    %c0_122 = arith.constant 0 : index
    %c0_123 = arith.constant 0 : index
    %131 = vector.load %arg7[%c0_122, %c0_123] : memref<42x8xf32, #tpu.memory_space<vmem>>, vector<32x8xf32>
    %132 = arith.truncf %131 : vector<32x8xf32> to vector<32x8xbf16>
    %c2_124 = arith.constant 2 : index
    %c0_125 = arith.constant 0 : index
    %c0_126 = arith.constant 0 : index
    %c0_127 = arith.constant 0 : index
    %133 = vector.load %arg2[%c2_124, %c0_125, %c0_126, %c0_127] : memref<3x3x8x8xbf16, #tpu.memory_space<vmem>>, vector<1x1x8x8xbf16>
    %134 = vector.shape_cast %133 : vector<1x1x8x8xbf16> to vector<8x8xbf16>
    %cst_128 = arith.constant dense<0.000000e+00> : vector<32x8xf32>
    %135 = tpu.matmul %132, %134, %cst_128 {dimension_numbers = #tpu.dot_dimension_numbers<[1], [0], [0], [1], [0, 0, 1, 1], [], []>} : vector<32x8xbf16>, vector<8x8xbf16>, vector<32x8xf32> -> vector<32x8xf32>
    %136 = arith.addf %130, %135 : vector<32x8xf32>
    %c5_129 = arith.constant 5 : index
    %c0_130 = arith.constant 0 : index
    %137 = vector.load %arg7[%c5_129, %c0_130] : memref<42x8xf32, #tpu.memory_space<vmem>>, vector<32x8xf32>
    %138 = arith.truncf %137 : vector<32x8xf32> to vector<32x8xbf16>
    %c2_131 = arith.constant 2 : index
    %c1_132 = arith.constant 1 : index
    %c0_133 = arith.constant 0 : index
    %c0_134 = arith.constant 0 : index
    %139 = vector.load %arg2[%c2_131, %c1_132, %c0_133, %c0_134] : memref<3x3x8x8xbf16, #tpu.memory_space<vmem>>, vector<1x1x8x8xbf16>
    %140 = vector.shape_cast %139 : vector<1x1x8x8xbf16> to vector<8x8xbf16>
    %cst_135 = arith.constant dense<0.000000e+00> : vector<32x8xf32>
    %141 = tpu.matmul %138, %140, %cst_135 {dimension_numbers = #tpu.dot_dimension_numbers<[1], [0], [0], [1], [0, 0, 1, 1], [], []>} : vector<32x8xbf16>, vector<8x8xbf16>, vector<32x8xf32> -> vector<32x8xf32>
    %142 = arith.addf %136, %141 : vector<32x8xf32>
    %c10 = arith.constant 10 : index
    %c0_136 = arith.constant 0 : index
    %143 = vector.load %arg7[%c10, %c0_136] : memref<42x8xf32, #tpu.memory_space<vmem>>, vector<32x8xf32>
    %144 = arith.truncf %143 : vector<32x8xf32> to vector<32x8xbf16>
    %c2_137 = arith.constant 2 : index
    %c2_138 = arith.constant 2 : index
    %c0_139 = arith.constant 0 : index
    %c0_140 = arith.constant 0 : index
    %145 = vector.load %arg2[%c2_137, %c2_138, %c0_139, %c0_140] : memref<3x3x8x8xbf16, #tpu.memory_space<vmem>>, vector<1x1x8x8xbf16>
    %146 = vector.shape_cast %145 : vector<1x1x8x8xbf16> to vector<8x8xbf16>
    %cst_141 = arith.constant dense<0.000000e+00> : vector<32x8xf32>
    %147 = tpu.matmul %144, %146, %cst_141 {dimension_numbers = #tpu.dot_dimension_numbers<[1], [0], [0], [1], [0, 0, 1, 1], [], []>} : vector<32x8xbf16>, vector<8x8xbf16>, vector<32x8xf32> -> vector<32x8xf32>
    %148 = arith.addf %142, %147 : vector<32x8xf32>
    %c2_142 = arith.constant 2 : index
    %c0_143 = arith.constant 0 : index
    %c0_144 = arith.constant 0 : index
    %149 = vector.load %arg3[%c2_142, %c0_143, %c0_144] : memref<3x1x8xf32, #tpu.memory_space<vmem>>, vector<1x1x8xf32>
    %150 = vector.shape_cast %149 : vector<1x1x8xf32> to vector<1x8xf32>
    %151 = vector.broadcast %150 : vector<1x8xf32> to vector<32x8xf32>
    %152 = arith.addf %148, %151 : vector<32x8xf32>
    %cst_145 = arith.constant 0.000000e+00 : f32
    %153 = vector.broadcast %cst_145 : f32 to vector<32x8xf32>
    %154 = arith.cmpf oge, %152, %153 : vector<32x8xf32>
    %cst_146 = arith.constant 1.000000e-01 : f32
    %155 = vector.broadcast %cst_146 : f32 to vector<32x8xf32>
    %156 = arith.mulf %155, %152 : vector<32x8xf32>
    %157 = arith.select %154, %152, %156 : vector<32x8xi1>, vector<32x8xf32>
    %c1_147 = arith.constant 1 : index
    %c0_148 = arith.constant 0 : index
    %158 = vector.load %arg8[%c1_147, %c0_148] : memref<34x8xf32, #tpu.memory_space<vmem>>, vector<32x8xf32>
    tpu.vector_store %arg8[%c1_147, %c0_148], %157 {strides = array<i32>} : memref<34x8xf32, #tpu.memory_space<vmem>>, vector<32x8xf32>,
    %cst_149 = arith.constant 0.000000e+00 : f32
    %159 = vector.broadcast %cst_149 : f32 to vector<32x8xf32>
    %c0_150 = arith.constant 0 : index
    %c0_151 = arith.constant 0 : index
    %160 = vector.load %arg8[%c0_150, %c0_151] : memref<34x8xf32, #tpu.memory_space<vmem>>, vector<32x8xf32>
    %161 = arith.truncf %160 : vector<32x8xf32> to vector<32x8xbf16>
    %c2_152 = arith.constant 2 : index
    %c0_153 = arith.constant 0 : index
    %c0_154 = arith.constant 0 : index
    %c0_155 = arith.constant 0 : index
    %162 = vector.load %arg4[%c2_152, %c0_153, %c0_154, %c0_155] : memref<3x3x8x8xbf16, #tpu.memory_space<vmem>>, vector<1x1x8x8xbf16>
    %163 = vector.shape_cast %162 : vector<1x1x8x8xbf16> to vector<8x8xbf16>
    %cst_156 = arith.constant dense<0.000000e+00> : vector<32x8xf32>
    %164 = tpu.matmul %161, %163, %cst_156 {dimension_numbers = #tpu.dot_dimension_numbers<[1], [0], [0], [1], [0, 0, 1, 1], [], []>} : vector<32x8xbf16>, vector<8x8xbf16>, vector<32x8xf32> -> vector<32x8xf32>
    %165 = arith.addf %159, %164 : vector<32x8xf32>
    %c1_157 = arith.constant 1 : index
    %c0_158 = arith.constant 0 : index
    %166 = vector.load %arg8[%c1_157, %c0_158] : memref<34x8xf32, #tpu.memory_space<vmem>>, vector<32x8xf32>
    %167 = arith.truncf %166 : vector<32x8xf32> to vector<32x8xbf16>
    %c2_159 = arith.constant 2 : index
    %c1_160 = arith.constant 1 : index
    %c0_161 = arith.constant 0 : index
    %c0_162 = arith.constant 0 : index
    %168 = vector.load %arg4[%c2_159, %c1_160, %c0_161, %c0_162] : memref<3x3x8x8xbf16, #tpu.memory_space<vmem>>, vector<1x1x8x8xbf16>
    %169 = vector.shape_cast %168 : vector<1x1x8x8xbf16> to vector<8x8xbf16>
    %cst_163 = arith.constant dense<0.000000e+00> : vector<32x8xf32>
    %170 = tpu.matmul %167, %169, %cst_163 {dimension_numbers = #tpu.dot_dimension_numbers<[1], [0], [0], [1], [0, 0, 1, 1], [], []>} : vector<32x8xbf16>, vector<8x8xbf16>, vector<32x8xf32> -> vector<32x8xf32>
    %171 = arith.addf %165, %170 : vector<32x8xf32>
    %c2_164 = arith.constant 2 : index
    %c0_165 = arith.constant 0 : index
    %172 = vector.load %arg8[%c2_164, %c0_165] : memref<34x8xf32, #tpu.memory_space<vmem>>, vector<32x8xf32>
    %173 = arith.truncf %172 : vector<32x8xf32> to vector<32x8xbf16>
    %c2_166 = arith.constant 2 : index
    %c2_167 = arith.constant 2 : index
    %c0_168 = arith.constant 0 : index
    %c0_169 = arith.constant 0 : index
    %174 = vector.load %arg4[%c2_166, %c2_167, %c0_168, %c0_169] : memref<3x3x8x8xbf16, #tpu.memory_space<vmem>>, vector<1x1x8x8xbf16>
    %175 = vector.shape_cast %174 : vector<1x1x8x8xbf16> to vector<8x8xbf16>
    %cst_170 = arith.constant dense<0.000000e+00> : vector<32x8xf32>
    %176 = tpu.matmul %173, %175, %cst_170 {dimension_numbers = #tpu.dot_dimension_numbers<[1], [0], [0], [1], [0, 0, 1, 1], [], []>} : vector<32x8xbf16>, vector<8x8xbf16>, vector<32x8xf32> -> vector<32x8xf32>
    %177 = arith.addf %171, %176 : vector<32x8xf32>
    %c2_171 = arith.constant 2 : index
    %c0_172 = arith.constant 0 : index
    %c0_173 = arith.constant 0 : index
    %178 = vector.load %arg5[%c2_171, %c0_172, %c0_173] : memref<3x1x8xf32, #tpu.memory_space<vmem>>, vector<1x1x8xf32>
    %179 = vector.shape_cast %178 : vector<1x1x8xf32> to vector<1x8xf32>
    %180 = vector.broadcast %179 : vector<1x8xf32> to vector<32x8xf32>
    %181 = arith.addf %177, %180 : vector<32x8xf32>
    %182 = arith.addf %181, %123 : vector<32x8xf32>
    %c0_174 = arith.constant 0 : index
    %c0_175 = arith.constant 0 : index
    %c0_176 = arith.constant 0 : index
    %183 = vector.load %arg6[%c0_174, %c0_175, %c0_176] : memref<1x32x8xf32, #tpu.memory_space<vmem>>, vector<1x32x8xf32>
    %184 = vector.shape_cast %183 : vector<1x32x8xf32> to vector<32x8xf32>
    %185 = vector.shape_cast %182 : vector<32x8xf32> to vector<1x32x8xf32>
    tpu.vector_store %arg6[%c0_174, %c0_175, %c0_176], %185 {strides = array<i32>} : memref<1x32x8xf32, #tpu.memory_space<vmem>>, vector<1x32x8xf32>,
    return
  }
  func.func @transform_0(%arg0: i32) -> (i32, i32, i32) {
    %c0_i32 = arith.constant 0 : i32
    %c0_i32_0 = arith.constant 0 : i32
    %c0_i32_1 = arith.constant 0 : i32
    return %arg0, %c0_i32, %c0_i32_0 : i32, i32, i32
  }
  func.func @transform_1(%arg0: i32) -> (i32, i32, i32, i32) {
    %c0_i32 = arith.constant 0 : i32
    %c0_i32_0 = arith.constant 0 : i32
    %c0_i32_1 = arith.constant 0 : i32
    %c0_i32_2 = arith.constant 0 : i32
    %c0_i32_3 = arith.constant 0 : i32
    return %c0_i32, %c0_i32_0, %c0_i32_1, %c0_i32_2 : i32, i32, i32, i32
  }
  func.func @transform_2(%arg0: i32) -> (i32, i32, i32) {
    %c0_i32 = arith.constant 0 : i32
    %c0_i32_0 = arith.constant 0 : i32
    %c0_i32_1 = arith.constant 0 : i32
    %c0_i32_2 = arith.constant 0 : i32
    return %c0_i32, %c0_i32_0, %c0_i32_1 : i32, i32, i32
  }
  func.func @transform_3(%arg0: i32) -> (i32, i32, i32, i32) {
    %c0_i32 = arith.constant 0 : i32
    %c0_i32_0 = arith.constant 0 : i32
    %c0_i32_1 = arith.constant 0 : i32
    %c0_i32_2 = arith.constant 0 : i32
    %c0_i32_3 = arith.constant 0 : i32
    return %c0_i32, %c0_i32_0, %c0_i32_1, %c0_i32_2 : i32, i32, i32, i32
  }
  func.func @transform_4(%arg0: i32) -> (i32, i32, i32) {
    %c0_i32 = arith.constant 0 : i32
    %c0_i32_0 = arith.constant 0 : i32
    %c0_i32_1 = arith.constant 0 : i32
    %c0_i32_2 = arith.constant 0 : i32
    return %c0_i32, %c0_i32_0, %c0_i32_1 : i32, i32, i32
  }
  func.func @transform_5(%arg0: i32) -> (i32, i32, i32) {
    %c0_i32 = arith.constant 0 : i32
    %c0_i32_0 = arith.constant 0 : i32
    %c0_i32_1 = arith.constant 0 : i32
    return %arg0, %c0_i32, %c0_i32_0 : i32, i32, i32
  }
}

module attributes {stable_mosaic.version = 11 : i64} {
  func.func @_conv_kernel(%arg0: i32, %arg1: memref<1x64x1xf32, #tpu.memory_space<vmem>>, %arg2: memref<1x1x4xbf16, #tpu.memory_space<vmem>>, %arg3: memref<1x4xf32, #tpu.memory_space<vmem>>, %arg4: memref<1x64x4xf32, #tpu.memory_space<vmem>>) attributes {dimension_semantics = [#tpu.dimension_semantics<parallel>], iteration_bounds = array<i64: 2>, scalar_prefetch = 0 : i64, scratch_operands = 0 : i64, tpu.core_type = #tpu.core_type<tc>, window_params = [{transform_indices = @transform_0, window_bounds = array<i64: 1, 64, 1>}, {pipeline_mode = #tpu.pipeline_mode<synchronous>, transform_indices = @transform_1, window_bounds = array<i64: 1, 1, 4>}, {pipeline_mode = #tpu.pipeline_mode<synchronous>, transform_indices = @transform_2, window_bounds = array<i64: 1, 4>}, {transform_indices = @transform_3, window_bounds = array<i64: 1, 64, 4>}]} {
    %c0 = arith.constant 0 : index
    %c0_0 = arith.constant 0 : index
    %c0_1 = arith.constant 0 : index
    %0 = vector.load %arg1[%c0, %c0_0, %c0_1] : memref<1x64x1xf32, #tpu.memory_space<vmem>>, vector<1x64x1xf32>
    %1 = vector.shape_cast %0 : vector<1x64x1xf32> to vector<64x1xf32>
    %cst = arith.constant 0.000000e+00 : f32
    %2 = vector.broadcast %cst : f32 to vector<64x4xf32>
    %c0_2 = arith.constant 0 : index
    %c0_3 = arith.constant 0 : index
    %c0_4 = arith.constant 0 : index
    %3 = vector.load %arg2[%c0_2, %c0_3, %c0_4] : memref<1x1x4xbf16, #tpu.memory_space<vmem>>, vector<1x1x4xbf16>
    %4 = vector.shape_cast %3 : vector<1x1x4xbf16> to vector<1x4xbf16>
    %5 = arith.extf %4 : vector<1x4xbf16> to vector<1x4xf32>
    %6 = vector.broadcast %1 : vector<64x1xf32> to vector<64x4xf32>
    %7 = vector.broadcast %5 : vector<1x4xf32> to vector<64x4xf32>
    %8 = arith.mulf %6, %7 : vector<64x4xf32>
    %9 = arith.addf %2, %8 : vector<64x4xf32>
    %c0_5 = arith.constant 0 : index
    %c0_6 = arith.constant 0 : index
    %10 = vector.load %arg3[%c0_5, %c0_6] : memref<1x4xf32, #tpu.memory_space<vmem>>, vector<1x4xf32>
    %11 = vector.broadcast %10 : vector<1x4xf32> to vector<64x4xf32>
    %12 = arith.addf %9, %11 : vector<64x4xf32>
    %c0_7 = arith.constant 0 : index
    %c0_8 = arith.constant 0 : index
    %c0_9 = arith.constant 0 : index
    %13 = vector.load %arg4[%c0_7, %c0_8, %c0_9] : memref<1x64x4xf32, #tpu.memory_space<vmem>>, vector<1x64x4xf32>
    %14 = vector.shape_cast %13 : vector<1x64x4xf32> to vector<64x4xf32>
    %15 = vector.shape_cast %12 : vector<64x4xf32> to vector<1x64x4xf32>
    tpu.vector_store %arg4[%c0_7, %c0_8, %c0_9], %15 {strides = array<i32>} : memref<1x64x4xf32, #tpu.memory_space<vmem>>, vector<1x64x4xf32>,
    return
  }
  func.func @transform_0(%arg0: i32) -> (i32, i32, i32) {
    %c0_i32 = arith.constant 0 : i32
    %c0_i32_0 = arith.constant 0 : i32
    %c0_i32_1 = arith.constant 0 : i32
    return %arg0, %c0_i32, %c0_i32_0 : i32, i32, i32
  }
  func.func @transform_1(%arg0: i32) -> (i32, i32, i32) {
    %c0_i32 = arith.constant 0 : i32
    %c0_i32_0 = arith.constant 0 : i32
    %c0_i32_1 = arith.constant 0 : i32
    %c0_i32_2 = arith.constant 0 : i32
    return %c0_i32, %c0_i32_0, %c0_i32_1 : i32, i32, i32
  }
  func.func @transform_2(%arg0: i32) -> (i32, i32) {
    %c0_i32 = arith.constant 0 : i32
    %c0_i32_0 = arith.constant 0 : i32
    %c0_i32_1 = arith.constant 0 : i32
    return %c0_i32, %c0_i32_0 : i32, i32
  }
  func.func @transform_3(%arg0: i32) -> (i32, i32, i32) {
    %c0_i32 = arith.constant 0 : i32
    %c0_i32_0 = arith.constant 0 : i32
    %c0_i32_1 = arith.constant 0 : i32
    return %arg0, %c0_i32, %c0_i32_0 : i32, i32, i32
  }
}

module attributes {stable_mosaic.version = 11 : i64} {
  func.func @_conv_kernel(%arg0: i32, %arg1: memref<1x67x8xf32, #tpu.memory_space<vmem>>, %arg2: memref<4x8x4xbf16, #tpu.memory_space<vmem>>, %arg3: memref<1x4xf32, #tpu.memory_space<vmem>>, %arg4: memref<1x64x4xf32, #tpu.memory_space<vmem>>, %arg5: memref<1x64x4xf32, #tpu.memory_space<vmem>>) attributes {dimension_semantics = [#tpu.dimension_semantics<parallel>], iteration_bounds = array<i64: 2>, scalar_prefetch = 0 : i64, scratch_operands = 0 : i64, tpu.core_type = #tpu.core_type<tc>, window_params = [{transform_indices = @transform_0, window_bounds = array<i64: 1, 67, 8>}, {pipeline_mode = #tpu.pipeline_mode<synchronous>, transform_indices = @transform_1, window_bounds = array<i64: 4, 8, 4>}, {pipeline_mode = #tpu.pipeline_mode<synchronous>, transform_indices = @transform_2, window_bounds = array<i64: 1, 4>}, {transform_indices = @transform_3, window_bounds = array<i64: 1, 64, 4>}, {transform_indices = @transform_4, window_bounds = array<i64: 1, 64, 4>}]} {
    %c0 = arith.constant 0 : index
    %c0_0 = arith.constant 0 : index
    %c0_1 = arith.constant 0 : index
    %0 = vector.load %arg1[%c0, %c0_0, %c0_1] : memref<1x67x8xf32, #tpu.memory_space<vmem>>, vector<1x67x8xf32>
    %1 = vector.shape_cast %0 : vector<1x67x8xf32> to vector<67x8xf32>
    %cst = arith.constant 0.000000e+00 : f32
    %2 = vector.broadcast %cst : f32 to vector<67x8xf32>
    %3 = arith.cmpf oge, %1, %2 : vector<67x8xf32>
    %cst_2 = arith.constant 1.000000e-01 : f32
    %4 = vector.broadcast %cst_2 : f32 to vector<67x8xf32>
    %5 = arith.mulf %4, %1 : vector<67x8xf32>
    %6 = arith.select %3, %1, %5 : vector<67x8xi1>, vector<67x8xf32>
    %cst_3 = arith.constant 0.000000e+00 : f32
    %7 = vector.broadcast %cst_3 : f32 to vector<64x4xf32>
    %8 = vector.extract_strided_slice %6 {offsets = [0, 0], sizes = [64, 8], strides = [1, 1]} : vector<67x8xf32> to vector<64x8xf32>
    %9 = arith.truncf %8 : vector<64x8xf32> to vector<64x8xbf16>
    %c0_4 = arith.constant 0 : index
    %c0_5 = arith.constant 0 : index
    %c0_6 = arith.constant 0 : index
    %10 = vector.load %arg2[%c0_4, %c0_5, %c0_6] : memref<4x8x4xbf16, #tpu.memory_space<vmem>>, vector<1x8x4xbf16>
    %11 = vector.shape_cast %10 : vector<1x8x4xbf16> to vector<8x4xbf16>
    %cst_7 = arith.constant dense<0.000000e+00> : vector<64x4xf32>
    %12 = tpu.matmul %9, %11, %cst_7 {dimension_numbers = #tpu.dot_dimension_numbers<[1], [0], [0], [1], [0, 0, 1, 1], [], []>} : vector<64x8xbf16>, vector<8x4xbf16>, vector<64x4xf32> -> vector<64x4xf32>
    %13 = arith.addf %7, %12 : vector<64x4xf32>
    %14 = vector.extract_strided_slice %6 {offsets = [1, 0], sizes = [64, 8], strides = [1, 1]} : vector<67x8xf32> to vector<64x8xf32>
    %15 = arith.truncf %14 : vector<64x8xf32> to vector<64x8xbf16>
    %c1 = arith.constant 1 : index
    %c0_8 = arith.constant 0 : index
    %c0_9 = arith.constant 0 : index
    %16 = vector.load %arg2[%c1, %c0_8, %c0_9] : memref<4x8x4xbf16, #tpu.memory_space<vmem>>, vector<1x8x4xbf16>
    %17 = vector.shape_cast %16 : vector<1x8x4xbf16> to vector<8x4xbf16>
    %cst_10 = arith.constant dense<0.000000e+00> : vector<64x4xf32>
    %18 = tpu.matmul %15, %17, %cst_10 {dimension_numbers = #tpu.dot_dimension_numbers<[1], [0], [0], [1], [0, 0, 1, 1], [], []>} : vector<64x8xbf16>, vector<8x4xbf16>, vector<64x4xf32> -> vector<64x4xf32>
    %19 = arith.addf %13, %18 : vector<64x4xf32>
    %20 = vector.extract_strided_slice %6 {offsets = [2, 0], sizes = [64, 8], strides = [1, 1]} : vector<67x8xf32> to vector<64x8xf32>
    %21 = arith.truncf %20 : vector<64x8xf32> to vector<64x8xbf16>
    %c2 = arith.constant 2 : index
    %c0_11 = arith.constant 0 : index
    %c0_12 = arith.constant 0 : index
    %22 = vector.load %arg2[%c2, %c0_11, %c0_12] : memref<4x8x4xbf16, #tpu.memory_space<vmem>>, vector<1x8x4xbf16>
    %23 = vector.shape_cast %22 : vector<1x8x4xbf16> to vector<8x4xbf16>
    %cst_13 = arith.constant dense<0.000000e+00> : vector<64x4xf32>
    %24 = tpu.matmul %21, %23, %cst_13 {dimension_numbers = #tpu.dot_dimension_numbers<[1], [0], [0], [1], [0, 0, 1, 1], [], []>} : vector<64x8xbf16>, vector<8x4xbf16>, vector<64x4xf32> -> vector<64x4xf32>
    %25 = arith.addf %19, %24 : vector<64x4xf32>
    %26 = vector.extract_strided_slice %6 {offsets = [3, 0], sizes = [64, 8], strides = [1, 1]} : vector<67x8xf32> to vector<64x8xf32>
    %27 = arith.truncf %26 : vector<64x8xf32> to vector<64x8xbf16>
    %c3 = arith.constant 3 : index
    %c0_14 = arith.constant 0 : index
    %c0_15 = arith.constant 0 : index
    %28 = vector.load %arg2[%c3, %c0_14, %c0_15] : memref<4x8x4xbf16, #tpu.memory_space<vmem>>, vector<1x8x4xbf16>
    %29 = vector.shape_cast %28 : vector<1x8x4xbf16> to vector<8x4xbf16>
    %cst_16 = arith.constant dense<0.000000e+00> : vector<64x4xf32>
    %30 = tpu.matmul %27, %29, %cst_16 {dimension_numbers = #tpu.dot_dimension_numbers<[1], [0], [0], [1], [0, 0, 1, 1], [], []>} : vector<64x8xbf16>, vector<8x4xbf16>, vector<64x4xf32> -> vector<64x4xf32>
    %31 = arith.addf %25, %30 : vector<64x4xf32>
    %c0_17 = arith.constant 0 : index
    %c0_18 = arith.constant 0 : index
    %32 = vector.load %arg3[%c0_17, %c0_18] : memref<1x4xf32, #tpu.memory_space<vmem>>, vector<1x4xf32>
    %33 = vector.broadcast %32 : vector<1x4xf32> to vector<64x4xf32>
    %34 = arith.addf %31, %33 : vector<64x4xf32>
    %c0_19 = arith.constant 0 : index
    %c0_20 = arith.constant 0 : index
    %c0_21 = arith.constant 0 : index
    %35 = vector.load %arg4[%c0_19, %c0_20, %c0_21] : memref<1x64x4xf32, #tpu.memory_space<vmem>>, vector<1x64x4xf32>
    %36 = vector.shape_cast %35 : vector<1x64x4xf32> to vector<64x4xf32>
    %37 = arith.addf %34, %36 : vector<64x4xf32>
    %c0_22 = arith.constant 0 : index
    %c0_23 = arith.constant 0 : index
    %c0_24 = arith.constant 0 : index
    %38 = vector.load %arg5[%c0_22, %c0_23, %c0_24] : memref<1x64x4xf32, #tpu.memory_space<vmem>>, vector<1x64x4xf32>
    %39 = vector.shape_cast %38 : vector<1x64x4xf32> to vector<64x4xf32>
    %40 = vector.shape_cast %37 : vector<64x4xf32> to vector<1x64x4xf32>
    tpu.vector_store %arg5[%c0_22, %c0_23, %c0_24], %40 {strides = array<i32>} : memref<1x64x4xf32, #tpu.memory_space<vmem>>, vector<1x64x4xf32>,
    return
  }
  func.func @transform_0(%arg0: i32) -> (i32, i32, i32) {
    %c0_i32 = arith.constant 0 : i32
    %c0_i32_0 = arith.constant 0 : i32
    %c0_i32_1 = arith.constant 0 : i32
    return %arg0, %c0_i32, %c0_i32_0 : i32, i32, i32
  }
  func.func @transform_1(%arg0: i32) -> (i32, i32, i32) {
    %c0_i32 = arith.constant 0 : i32
    %c0_i32_0 = arith.constant 0 : i32
    %c0_i32_1 = arith.constant 0 : i32
    %c0_i32_2 = arith.constant 0 : i32
    return %c0_i32, %c0_i32_0, %c0_i32_1 : i32, i32, i32
  }
  func.func @transform_2(%arg0: i32) -> (i32, i32) {
    %c0_i32 = arith.constant 0 : i32
    %c0_i32_0 = arith.constant 0 : i32
    %c0_i32_1 = arith.constant 0 : i32
    return %c0_i32, %c0_i32_0 : i32, i32
  }
  func.func @transform_3(%arg0: i32) -> (i32, i32, i32) {
    %c0_i32 = arith.constant 0 : i32
    %c0_i32_0 = arith.constant 0 : i32
    %c0_i32_1 = arith.constant 0 : i32
    return %arg0, %c0_i32, %c0_i32_0 : i32, i32, i32
  }
  func.func @transform_4(%arg0: i32) -> (i32, i32, i32) {
    %c0_i32 = arith.constant 0 : i32
    %c0_i32_0 = arith.constant 0 : i32
    %c0_i32_1 = arith.constant 0 : i32
    return %arg0, %c0_i32, %c0_i32_0 : i32, i32, i32
  }
}

module attributes {stable_mosaic.version = 11 : i64} {
  func.func @_resblock_kernel(%arg0: i32, %arg1: memref<1x64x4xf32, #tpu.memory_space<vmem>>, %arg2: memref<3x3x4x4xbf16, #tpu.memory_space<vmem>>, %arg3: memref<3x1x4xf32, #tpu.memory_space<vmem>>, %arg4: memref<3x3x4x4xbf16, #tpu.memory_space<vmem>>, %arg5: memref<3x1x4xf32, #tpu.memory_space<vmem>>, %arg6: memref<1x64x4xf32, #tpu.memory_space<vmem>>, %arg7: memref<74x4xf32, #tpu.memory_space<vmem>>, %arg8: memref<66x4xf32, #tpu.memory_space<vmem>>) attributes {dimension_semantics = [#tpu.dimension_semantics<parallel>], iteration_bounds = array<i64: 2>, scalar_prefetch = 0 : i64, scratch_operands = 2 : i64, tpu.core_type = #tpu.core_type<tc>, window_params = [{transform_indices = @transform_0, window_bounds = array<i64: 1, 64, 4>}, {pipeline_mode = #tpu.pipeline_mode<synchronous>, transform_indices = @transform_1, window_bounds = array<i64: 3, 3, 4, 4>}, {pipeline_mode = #tpu.pipeline_mode<synchronous>, transform_indices = @transform_2, window_bounds = array<i64: 3, 1, 4>}, {pipeline_mode = #tpu.pipeline_mode<synchronous>, transform_indices = @transform_3, window_bounds = array<i64: 3, 3, 4, 4>}, {pipeline_mode = #tpu.pipeline_mode<synchronous>, transform_indices = @transform_4, window_bounds = array<i64: 3, 1, 4>}, {transform_indices = @transform_5, window_bounds = array<i64: 1, 64, 4>}]} {
    %cst = arith.constant 0.000000e+00 : f32
    %0 = vector.broadcast %cst : f32 to vector<74x4xf32>
    %c0 = arith.constant 0 : index
    %c0_0 = arith.constant 0 : index
    %1 = vector.load %arg7[%c0, %c0_0] : memref<74x4xf32, #tpu.memory_space<vmem>>, vector<74x4xf32>
    tpu.vector_store %arg7[%c0, %c0_0], %0 {strides = array<i32>} : memref<74x4xf32, #tpu.memory_space<vmem>>, vector<74x4xf32>,
    %cst_1 = arith.constant 0.000000e+00 : f32
    %2 = vector.broadcast %cst_1 : f32 to vector<66x4xf32>
    %c0_2 = arith.constant 0 : index
    %c0_3 = arith.constant 0 : index
    %3 = vector.load %arg8[%c0_2, %c0_3] : memref<66x4xf32, #tpu.memory_space<vmem>>, vector<66x4xf32>
    tpu.vector_store %arg8[%c0_2, %c0_3], %2 {strides = array<i32>} : memref<66x4xf32, #tpu.memory_space<vmem>>, vector<66x4xf32>,
    %c0_4 = arith.constant 0 : index
    %c0_5 = arith.constant 0 : index
    %c0_6 = arith.constant 0 : index
    %4 = vector.load %arg1[%c0_4, %c0_5, %c0_6] : memref<1x64x4xf32, #tpu.memory_space<vmem>>, vector<1x64x4xf32>
    %5 = vector.shape_cast %4 : vector<1x64x4xf32> to vector<64x4xf32>
    %cst_7 = arith.constant 0.000000e+00 : f32
    %6 = vector.broadcast %cst_7 : f32 to vector<64x4xf32>
    %7 = arith.cmpf oge, %5, %6 : vector<64x4xf32>
    %cst_8 = arith.constant 1.000000e-01 : f32
    %8 = vector.broadcast %cst_8 : f32 to vector<64x4xf32>
    %9 = arith.mulf %8, %5 : vector<64x4xf32>
    %10 = arith.select %7, %5, %9 : vector<64x4xi1>, vector<64x4xf32>
    %c5 = arith.constant 5 : index
    %c0_9 = arith.constant 0 : index
    %11 = vector.load %arg7[%c5, %c0_9] : memref<74x4xf32, #tpu.memory_space<vmem>>, vector<64x4xf32>
    tpu.vector_store %arg7[%c5, %c0_9], %10 {strides = array<i32>} : memref<74x4xf32, #tpu.memory_space<vmem>>, vector<64x4xf32>,
    %cst_10 = arith.constant 0.000000e+00 : f32
    %12 = vector.broadcast %cst_10 : f32 to vector<64x4xf32>
    %c4 = arith.constant 4 : index
    %c0_11 = arith.constant 0 : index
    %13 = vector.load %arg7[%c4, %c0_11] : memref<74x4xf32, #tpu.memory_space<vmem>>, vector<64x4xf32>
    %14 = arith.truncf %13 : vector<64x4xf32> to vector<64x4xbf16>
    %c0_12 = arith.constant 0 : index
    %c0_13 = arith.constant 0 : index
    %c0_14 = arith.constant 0 : index
    %c0_15 = arith.constant 0 : index
    %15 = vector.load %arg2[%c0_12, %c0_13, %c0_14, %c0_15] : memref<3x3x4x4xbf16, #tpu.memory_space<vmem>>, vector<1x1x4x4xbf16>
    %16 = vector.shape_cast %15 : vector<1x1x4x4xbf16> to vector<4x4xbf16>
    %cst_16 = arith.constant dense<0.000000e+00> : vector<64x4xf32>
    %17 = tpu.matmul %14, %16, %cst_16 {dimension_numbers = #tpu.dot_dimension_numbers<[1], [0], [0], [1], [0, 0, 1, 1], [], []>} : vector<64x4xbf16>, vector<4x4xbf16>, vector<64x4xf32> -> vector<64x4xf32>
    %18 = arith.addf %12, %17 : vector<64x4xf32>
    %c5_17 = arith.constant 5 : index
    %c0_18 = arith.constant 0 : index
    %19 = vector.load %arg7[%c5_17, %c0_18] : memref<74x4xf32, #tpu.memory_space<vmem>>, vector<64x4xf32>
    %20 = arith.truncf %19 : vector<64x4xf32> to vector<64x4xbf16>
    %c0_19 = arith.constant 0 : index
    %c1 = arith.constant 1 : index
    %c0_20 = arith.constant 0 : index
    %c0_21 = arith.constant 0 : index
    %21 = vector.load %arg2[%c0_19, %c1, %c0_20, %c0_21] : memref<3x3x4x4xbf16, #tpu.memory_space<vmem>>, vector<1x1x4x4xbf16>
    %22 = vector.shape_cast %21 : vector<1x1x4x4xbf16> to vector<4x4xbf16>
    %cst_22 = arith.constant dense<0.000000e+00> : vector<64x4xf32>
    %23 = tpu.matmul %20, %22, %cst_22 {dimension_numbers = #tpu.dot_dimension_numbers<[1], [0], [0], [1], [0, 0, 1, 1], [], []>} : vector<64x4xbf16>, vector<4x4xbf16>, vector<64x4xf32> -> vector<64x4xf32>
    %24 = arith.addf %18, %23 : vector<64x4xf32>
    %c6 = arith.constant 6 : index
    %c0_23 = arith.constant 0 : index
    %25 = vector.load %arg7[%c6, %c0_23] : memref<74x4xf32, #tpu.memory_space<vmem>>, vector<64x4xf32>
    %26 = arith.truncf %25 : vector<64x4xf32> to vector<64x4xbf16>
    %c0_24 = arith.constant 0 : index
    %c2 = arith.constant 2 : index
    %c0_25 = arith.constant 0 : index
    %c0_26 = arith.constant 0 : index
    %27 = vector.load %arg2[%c0_24, %c2, %c0_25, %c0_26] : memref<3x3x4x4xbf16, #tpu.memory_space<vmem>>, vector<1x1x4x4xbf16>
    %28 = vector.shape_cast %27 : vector<1x1x4x4xbf16> to vector<4x4xbf16>
    %cst_27 = arith.constant dense<0.000000e+00> : vector<64x4xf32>
    %29 = tpu.matmul %26, %28, %cst_27 {dimension_numbers = #tpu.dot_dimension_numbers<[1], [0], [0], [1], [0, 0, 1, 1], [], []>} : vector<64x4xbf16>, vector<4x4xbf16>, vector<64x4xf32> -> vector<64x4xf32>
    %30 = arith.addf %24, %29 : vector<64x4xf32>
    %c0_28 = arith.constant 0 : index
    %c0_29 = arith.constant 0 : index
    %c0_30 = arith.constant 0 : index
    %31 = vector.load %arg3[%c0_28, %c0_29, %c0_30] : memref<3x1x4xf32, #tpu.memory_space<vmem>>, vector<1x1x4xf32>
    %32 = vector.shape_cast %31 : vector<1x1x4xf32> to vector<1x4xf32>
    %33 = vector.broadcast %32 : vector<1x4xf32> to vector<64x4xf32>
    %34 = arith.addf %30, %33 : vector<64x4xf32>
    %cst_31 = arith.constant 0.000000e+00 : f32
    %35 = vector.broadcast %cst_31 : f32 to vector<64x4xf32>
    %36 = arith.cmpf oge, %34, %35 : vector<64x4xf32>
    %cst_32 = arith.constant 1.000000e-01 : f32
    %37 = vector.broadcast %cst_32 : f32 to vector<64x4xf32>
    %38 = arith.mulf %37, %34 : vector<64x4xf32>
    %39 = arith.select %36, %34, %38 : vector<64x4xi1>, vector<64x4xf32>
    %c1_33 = arith.constant 1 : index
    %c0_34 = arith.constant 0 : index
    %40 = vector.load %arg8[%c1_33, %c0_34] : memref<66x4xf32, #tpu.memory_space<vmem>>, vector<64x4xf32>
    tpu.vector_store %arg8[%c1_33, %c0_34], %39 {strides = array<i32>} : memref<66x4xf32, #tpu.memory_space<vmem>>, vector<64x4xf32>,
    %cst_35 = arith.constant 0.000000e+00 : f32
    %41 = vector.broadcast %cst_35 : f32 to vector<64x4xf32>
    %c0_36 = arith.constant 0 : index
    %c0_37 = arith.constant 0 : index
    %42 = vector.load %arg8[%c0_36, %c0_37] : memref<66x4xf32, #tpu.memory_space<vmem>>, vector<64x4xf32>
    %43 = arith.truncf %42 : vector<64x4xf32> to vector<64x4xbf16>
    %c0_38 = arith.constant 0 : index
    %c0_39 = arith.constant 0 : index
    %c0_40 = arith.constant 0 : index
    %c0_41 = arith.constant 0 : index
    %44 = vector.load %arg4[%c0_38, %c0_39, %c0_40, %c0_41] : memref<3x3x4x4xbf16, #tpu.memory_space<vmem>>, vector<1x1x4x4xbf16>
    %45 = vector.shape_cast %44 : vector<1x1x4x4xbf16> to vector<4x4xbf16>
    %cst_42 = arith.constant dense<0.000000e+00> : vector<64x4xf32>
    %46 = tpu.matmul %43, %45, %cst_42 {dimension_numbers = #tpu.dot_dimension_numbers<[1], [0], [0], [1], [0, 0, 1, 1], [], []>} : vector<64x4xbf16>, vector<4x4xbf16>, vector<64x4xf32> -> vector<64x4xf32>
    %47 = arith.addf %41, %46 : vector<64x4xf32>
    %c1_43 = arith.constant 1 : index
    %c0_44 = arith.constant 0 : index
    %48 = vector.load %arg8[%c1_43, %c0_44] : memref<66x4xf32, #tpu.memory_space<vmem>>, vector<64x4xf32>
    %49 = arith.truncf %48 : vector<64x4xf32> to vector<64x4xbf16>
    %c0_45 = arith.constant 0 : index
    %c1_46 = arith.constant 1 : index
    %c0_47 = arith.constant 0 : index
    %c0_48 = arith.constant 0 : index
    %50 = vector.load %arg4[%c0_45, %c1_46, %c0_47, %c0_48] : memref<3x3x4x4xbf16, #tpu.memory_space<vmem>>, vector<1x1x4x4xbf16>
    %51 = vector.shape_cast %50 : vector<1x1x4x4xbf16> to vector<4x4xbf16>
    %cst_49 = arith.constant dense<0.000000e+00> : vector<64x4xf32>
    %52 = tpu.matmul %49, %51, %cst_49 {dimension_numbers = #tpu.dot_dimension_numbers<[1], [0], [0], [1], [0, 0, 1, 1], [], []>} : vector<64x4xbf16>, vector<4x4xbf16>, vector<64x4xf32> -> vector<64x4xf32>
    %53 = arith.addf %47, %52 : vector<64x4xf32>
    %c2_50 = arith.constant 2 : index
    %c0_51 = arith.constant 0 : index
    %54 = vector.load %arg8[%c2_50, %c0_51] : memref<66x4xf32, #tpu.memory_space<vmem>>, vector<64x4xf32>
    %55 = arith.truncf %54 : vector<64x4xf32> to vector<64x4xbf16>
    %c0_52 = arith.constant 0 : index
    %c2_53 = arith.constant 2 : index
    %c0_54 = arith.constant 0 : index
    %c0_55 = arith.constant 0 : index
    %56 = vector.load %arg4[%c0_52, %c2_53, %c0_54, %c0_55] : memref<3x3x4x4xbf16, #tpu.memory_space<vmem>>, vector<1x1x4x4xbf16>
    %57 = vector.shape_cast %56 : vector<1x1x4x4xbf16> to vector<4x4xbf16>
    %cst_56 = arith.constant dense<0.000000e+00> : vector<64x4xf32>
    %58 = tpu.matmul %55, %57, %cst_56 {dimension_numbers = #tpu.dot_dimension_numbers<[1], [0], [0], [1], [0, 0, 1, 1], [], []>} : vector<64x4xbf16>, vector<4x4xbf16>, vector<64x4xf32> -> vector<64x4xf32>
    %59 = arith.addf %53, %58 : vector<64x4xf32>
    %c0_57 = arith.constant 0 : index
    %c0_58 = arith.constant 0 : index
    %c0_59 = arith.constant 0 : index
    %60 = vector.load %arg5[%c0_57, %c0_58, %c0_59] : memref<3x1x4xf32, #tpu.memory_space<vmem>>, vector<1x1x4xf32>
    %61 = vector.shape_cast %60 : vector<1x1x4xf32> to vector<1x4xf32>
    %62 = vector.broadcast %61 : vector<1x4xf32> to vector<64x4xf32>
    %63 = arith.addf %59, %62 : vector<64x4xf32>
    %64 = arith.addf %63, %5 : vector<64x4xf32>
    %cst_60 = arith.constant 0.000000e+00 : f32
    %65 = vector.broadcast %cst_60 : f32 to vector<64x4xf32>
    %66 = arith.cmpf oge, %64, %65 : vector<64x4xf32>
    %cst_61 = arith.constant 1.000000e-01 : f32
    %67 = vector.broadcast %cst_61 : f32 to vector<64x4xf32>
    %68 = arith.mulf %67, %64 : vector<64x4xf32>
    %69 = arith.select %66, %64, %68 : vector<64x4xi1>, vector<64x4xf32>
    %c5_62 = arith.constant 5 : index
    %c0_63 = arith.constant 0 : index
    %70 = vector.load %arg7[%c5_62, %c0_63] : memref<74x4xf32, #tpu.memory_space<vmem>>, vector<64x4xf32>
    tpu.vector_store %arg7[%c5_62, %c0_63], %69 {strides = array<i32>} : memref<74x4xf32, #tpu.memory_space<vmem>>, vector<64x4xf32>,
    %cst_64 = arith.constant 0.000000e+00 : f32
    %71 = vector.broadcast %cst_64 : f32 to vector<64x4xf32>
    %c2_65 = arith.constant 2 : index
    %c0_66 = arith.constant 0 : index
    %72 = vector.load %arg7[%c2_65, %c0_66] : memref<74x4xf32, #tpu.memory_space<vmem>>, vector<64x4xf32>
    %73 = arith.truncf %72 : vector<64x4xf32> to vector<64x4xbf16>
    %c1_67 = arith.constant 1 : index
    %c0_68 = arith.constant 0 : index
    %c0_69 = arith.constant 0 : index
    %c0_70 = arith.constant 0 : index
    %74 = vector.load %arg2[%c1_67, %c0_68, %c0_69, %c0_70] : memref<3x3x4x4xbf16, #tpu.memory_space<vmem>>, vector<1x1x4x4xbf16>
    %75 = vector.shape_cast %74 : vector<1x1x4x4xbf16> to vector<4x4xbf16>
    %cst_71 = arith.constant dense<0.000000e+00> : vector<64x4xf32>
    %76 = tpu.matmul %73, %75, %cst_71 {dimension_numbers = #tpu.dot_dimension_numbers<[1], [0], [0], [1], [0, 0, 1, 1], [], []>} : vector<64x4xbf16>, vector<4x4xbf16>, vector<64x4xf32> -> vector<64x4xf32>
    %77 = arith.addf %71, %76 : vector<64x4xf32>
    %c5_72 = arith.constant 5 : index
    %c0_73 = arith.constant 0 : index
    %78 = vector.load %arg7[%c5_72, %c0_73] : memref<74x4xf32, #tpu.memory_space<vmem>>, vector<64x4xf32>
    %79 = arith.truncf %78 : vector<64x4xf32> to vector<64x4xbf16>
    %c1_74 = arith.constant 1 : index
    %c1_75 = arith.constant 1 : index
    %c0_76 = arith.constant 0 : index
    %c0_77 = arith.constant 0 : index
    %80 = vector.load %arg2[%c1_74, %c1_75, %c0_76, %c0_77] : memref<3x3x4x4xbf16, #tpu.memory_space<vmem>>, vector<1x1x4x4xbf16>
    %81 = vector.shape_cast %80 : vector<1x1x4x4xbf16> to vector<4x4xbf16>
    %cst_78 = arith.constant dense<0.000000e+00> : vector<64x4xf32>
    %82 = tpu.matmul %79, %81, %cst_78 {dimension_numbers = #tpu.dot_dimension_numbers<[1], [0], [0], [1], [0, 0, 1, 1], [], []>} : vector<64x4xbf16>, vector<4x4xbf16>, vector<64x4xf32> -> vector<64x4xf32>
    %83 = arith.addf %77, %82 : vector<64x4xf32>
    %c8 = arith.constant 8 : index
    %c0_79 = arith.constant 0 : index
    %84 = vector.load %arg7[%c8, %c0_79] : memref<74x4xf32, #tpu.memory_space<vmem>>, vector<64x4xf32>
    %85 = arith.truncf %84 : vector<64x4xf32> to vector<64x4xbf16>
    %c1_80 = arith.constant 1 : index
    %c2_81 = arith.constant 2 : index
    %c0_82 = arith.constant 0 : index
    %c0_83 = arith.constant 0 : index
    %86 = vector.load %arg2[%c1_80, %c2_81, %c0_82, %c0_83] : memref<3x3x4x4xbf16, #tpu.memory_space<vmem>>, vector<1x1x4x4xbf16>
    %87 = vector.shape_cast %86 : vector<1x1x4x4xbf16> to vector<4x4xbf16>
    %cst_84 = arith.constant dense<0.000000e+00> : vector<64x4xf32>
    %88 = tpu.matmul %85, %87, %cst_84 {dimension_numbers = #tpu.dot_dimension_numbers<[1], [0], [0], [1], [0, 0, 1, 1], [], []>} : vector<64x4xbf16>, vector<4x4xbf16>, vector<64x4xf32> -> vector<64x4xf32>
    %89 = arith.addf %83, %88 : vector<64x4xf32>
    %c1_85 = arith.constant 1 : index
    %c0_86 = arith.constant 0 : index
    %c0_87 = arith.constant 0 : index
    %90 = vector.load %arg3[%c1_85, %c0_86, %c0_87] : memref<3x1x4xf32, #tpu.memory_space<vmem>>, vector<1x1x4xf32>
    %91 = vector.shape_cast %90 : vector<1x1x4xf32> to vector<1x4xf32>
    %92 = vector.broadcast %91 : vector<1x4xf32> to vector<64x4xf32>
    %93 = arith.addf %89, %92 : vector<64x4xf32>
    %cst_88 = arith.constant 0.000000e+00 : f32
    %94 = vector.broadcast %cst_88 : f32 to vector<64x4xf32>
    %95 = arith.cmpf oge, %93, %94 : vector<64x4xf32>
    %cst_89 = arith.constant 1.000000e-01 : f32
    %96 = vector.broadcast %cst_89 : f32 to vector<64x4xf32>
    %97 = arith.mulf %96, %93 : vector<64x4xf32>
    %98 = arith.select %95, %93, %97 : vector<64x4xi1>, vector<64x4xf32>
    %c1_90 = arith.constant 1 : index
    %c0_91 = arith.constant 0 : index
    %99 = vector.load %arg8[%c1_90, %c0_91] : memref<66x4xf32, #tpu.memory_space<vmem>>, vector<64x4xf32>
    tpu.vector_store %arg8[%c1_90, %c0_91], %98 {strides = array<i32>} : memref<66x4xf32, #tpu.memory_space<vmem>>, vector<64x4xf32>,
    %cst_92 = arith.constant 0.000000e+00 : f32
    %100 = vector.broadcast %cst_92 : f32 to vector<64x4xf32>
    %c0_93 = arith.constant 0 : index
    %c0_94 = arith.constant 0 : index
    %101 = vector.load %arg8[%c0_93, %c0_94] : memref<66x4xf32, #tpu.memory_space<vmem>>, vector<64x4xf32>
    %102 = arith.truncf %101 : vector<64x4xf32> to vector<64x4xbf16>
    %c1_95 = arith.constant 1 : index
    %c0_96 = arith.constant 0 : index
    %c0_97 = arith.constant 0 : index
    %c0_98 = arith.constant 0 : index
    %103 = vector.load %arg4[%c1_95, %c0_96, %c0_97, %c0_98] : memref<3x3x4x4xbf16, #tpu.memory_space<vmem>>, vector<1x1x4x4xbf16>
    %104 = vector.shape_cast %103 : vector<1x1x4x4xbf16> to vector<4x4xbf16>
    %cst_99 = arith.constant dense<0.000000e+00> : vector<64x4xf32>
    %105 = tpu.matmul %102, %104, %cst_99 {dimension_numbers = #tpu.dot_dimension_numbers<[1], [0], [0], [1], [0, 0, 1, 1], [], []>} : vector<64x4xbf16>, vector<4x4xbf16>, vector<64x4xf32> -> vector<64x4xf32>
    %106 = arith.addf %100, %105 : vector<64x4xf32>
    %c1_100 = arith.constant 1 : index
    %c0_101 = arith.constant 0 : index
    %107 = vector.load %arg8[%c1_100, %c0_101] : memref<66x4xf32, #tpu.memory_space<vmem>>, vector<64x4xf32>
    %108 = arith.truncf %107 : vector<64x4xf32> to vector<64x4xbf16>
    %c1_102 = arith.constant 1 : index
    %c1_103 = arith.constant 1 : index
    %c0_104 = arith.constant 0 : index
    %c0_105 = arith.constant 0 : index
    %109 = vector.load %arg4[%c1_102, %c1_103, %c0_104, %c0_105] : memref<3x3x4x4xbf16, #tpu.memory_space<vmem>>, vector<1x1x4x4xbf16>
    %110 = vector.shape_cast %109 : vector<1x1x4x4xbf16> to vector<4x4xbf16>
    %cst_106 = arith.constant dense<0.000000e+00> : vector<64x4xf32>
    %111 = tpu.matmul %108, %110, %cst_106 {dimension_numbers = #tpu.dot_dimension_numbers<[1], [0], [0], [1], [0, 0, 1, 1], [], []>} : vector<64x4xbf16>, vector<4x4xbf16>, vector<64x4xf32> -> vector<64x4xf32>
    %112 = arith.addf %106, %111 : vector<64x4xf32>
    %c2_107 = arith.constant 2 : index
    %c0_108 = arith.constant 0 : index
    %113 = vector.load %arg8[%c2_107, %c0_108] : memref<66x4xf32, #tpu.memory_space<vmem>>, vector<64x4xf32>
    %114 = arith.truncf %113 : vector<64x4xf32> to vector<64x4xbf16>
    %c1_109 = arith.constant 1 : index
    %c2_110 = arith.constant 2 : index
    %c0_111 = arith.constant 0 : index
    %c0_112 = arith.constant 0 : index
    %115 = vector.load %arg4[%c1_109, %c2_110, %c0_111, %c0_112] : memref<3x3x4x4xbf16, #tpu.memory_space<vmem>>, vector<1x1x4x4xbf16>
    %116 = vector.shape_cast %115 : vector<1x1x4x4xbf16> to vector<4x4xbf16>
    %cst_113 = arith.constant dense<0.000000e+00> : vector<64x4xf32>
    %117 = tpu.matmul %114, %116, %cst_113 {dimension_numbers = #tpu.dot_dimension_numbers<[1], [0], [0], [1], [0, 0, 1, 1], [], []>} : vector<64x4xbf16>, vector<4x4xbf16>, vector<64x4xf32> -> vector<64x4xf32>
    %118 = arith.addf %112, %117 : vector<64x4xf32>
    %c1_114 = arith.constant 1 : index
    %c0_115 = arith.constant 0 : index
    %c0_116 = arith.constant 0 : index
    %119 = vector.load %arg5[%c1_114, %c0_115, %c0_116] : memref<3x1x4xf32, #tpu.memory_space<vmem>>, vector<1x1x4xf32>
    %120 = vector.shape_cast %119 : vector<1x1x4xf32> to vector<1x4xf32>
    %121 = vector.broadcast %120 : vector<1x4xf32> to vector<64x4xf32>
    %122 = arith.addf %118, %121 : vector<64x4xf32>
    %123 = arith.addf %122, %64 : vector<64x4xf32>
    %cst_117 = arith.constant 0.000000e+00 : f32
    %124 = vector.broadcast %cst_117 : f32 to vector<64x4xf32>
    %125 = arith.cmpf oge, %123, %124 : vector<64x4xf32>
    %cst_118 = arith.constant 1.000000e-01 : f32
    %126 = vector.broadcast %cst_118 : f32 to vector<64x4xf32>
    %127 = arith.mulf %126, %123 : vector<64x4xf32>
    %128 = arith.select %125, %123, %127 : vector<64x4xi1>, vector<64x4xf32>
    %c5_119 = arith.constant 5 : index
    %c0_120 = arith.constant 0 : index
    %129 = vector.load %arg7[%c5_119, %c0_120] : memref<74x4xf32, #tpu.memory_space<vmem>>, vector<64x4xf32>
    tpu.vector_store %arg7[%c5_119, %c0_120], %128 {strides = array<i32>} : memref<74x4xf32, #tpu.memory_space<vmem>>, vector<64x4xf32>,
    %cst_121 = arith.constant 0.000000e+00 : f32
    %130 = vector.broadcast %cst_121 : f32 to vector<64x4xf32>
    %c0_122 = arith.constant 0 : index
    %c0_123 = arith.constant 0 : index
    %131 = vector.load %arg7[%c0_122, %c0_123] : memref<74x4xf32, #tpu.memory_space<vmem>>, vector<64x4xf32>
    %132 = arith.truncf %131 : vector<64x4xf32> to vector<64x4xbf16>
    %c2_124 = arith.constant 2 : index
    %c0_125 = arith.constant 0 : index
    %c0_126 = arith.constant 0 : index
    %c0_127 = arith.constant 0 : index
    %133 = vector.load %arg2[%c2_124, %c0_125, %c0_126, %c0_127] : memref<3x3x4x4xbf16, #tpu.memory_space<vmem>>, vector<1x1x4x4xbf16>
    %134 = vector.shape_cast %133 : vector<1x1x4x4xbf16> to vector<4x4xbf16>
    %cst_128 = arith.constant dense<0.000000e+00> : vector<64x4xf32>
    %135 = tpu.matmul %132, %134, %cst_128 {dimension_numbers = #tpu.dot_dimension_numbers<[1], [0], [0], [1], [0, 0, 1, 1], [], []>} : vector<64x4xbf16>, vector<4x4xbf16>, vector<64x4xf32> -> vector<64x4xf32>
    %136 = arith.addf %130, %135 : vector<64x4xf32>
    %c5_129 = arith.constant 5 : index
    %c0_130 = arith.constant 0 : index
    %137 = vector.load %arg7[%c5_129, %c0_130] : memref<74x4xf32, #tpu.memory_space<vmem>>, vector<64x4xf32>
    %138 = arith.truncf %137 : vector<64x4xf32> to vector<64x4xbf16>
    %c2_131 = arith.constant 2 : index
    %c1_132 = arith.constant 1 : index
    %c0_133 = arith.constant 0 : index
    %c0_134 = arith.constant 0 : index
    %139 = vector.load %arg2[%c2_131, %c1_132, %c0_133, %c0_134] : memref<3x3x4x4xbf16, #tpu.memory_space<vmem>>, vector<1x1x4x4xbf16>
    %140 = vector.shape_cast %139 : vector<1x1x4x4xbf16> to vector<4x4xbf16>
    %cst_135 = arith.constant dense<0.000000e+00> : vector<64x4xf32>
    %141 = tpu.matmul %138, %140, %cst_135 {dimension_numbers = #tpu.dot_dimension_numbers<[1], [0], [0], [1], [0, 0, 1, 1], [], []>} : vector<64x4xbf16>, vector<4x4xbf16>, vector<64x4xf32> -> vector<64x4xf32>
    %142 = arith.addf %136, %141 : vector<64x4xf32>
    %c10 = arith.constant 10 : index
    %c0_136 = arith.constant 0 : index
    %143 = vector.load %arg7[%c10, %c0_136] : memref<74x4xf32, #tpu.memory_space<vmem>>, vector<64x4xf32>
    %144 = arith.truncf %143 : vector<64x4xf32> to vector<64x4xbf16>
    %c2_137 = arith.constant 2 : index
    %c2_138 = arith.constant 2 : index
    %c0_139 = arith.constant 0 : index
    %c0_140 = arith.constant 0 : index
    %145 = vector.load %arg2[%c2_137, %c2_138, %c0_139, %c0_140] : memref<3x3x4x4xbf16, #tpu.memory_space<vmem>>, vector<1x1x4x4xbf16>
    %146 = vector.shape_cast %145 : vector<1x1x4x4xbf16> to vector<4x4xbf16>
    %cst_141 = arith.constant dense<0.000000e+00> : vector<64x4xf32>
    %147 = tpu.matmul %144, %146, %cst_141 {dimension_numbers = #tpu.dot_dimension_numbers<[1], [0], [0], [1], [0, 0, 1, 1], [], []>} : vector<64x4xbf16>, vector<4x4xbf16>, vector<64x4xf32> -> vector<64x4xf32>
    %148 = arith.addf %142, %147 : vector<64x4xf32>
    %c2_142 = arith.constant 2 : index
    %c0_143 = arith.constant 0 : index
    %c0_144 = arith.constant 0 : index
    %149 = vector.load %arg3[%c2_142, %c0_143, %c0_144] : memref<3x1x4xf32, #tpu.memory_space<vmem>>, vector<1x1x4xf32>
    %150 = vector.shape_cast %149 : vector<1x1x4xf32> to vector<1x4xf32>
    %151 = vector.broadcast %150 : vector<1x4xf32> to vector<64x4xf32>
    %152 = arith.addf %148, %151 : vector<64x4xf32>
    %cst_145 = arith.constant 0.000000e+00 : f32
    %153 = vector.broadcast %cst_145 : f32 to vector<64x4xf32>
    %154 = arith.cmpf oge, %152, %153 : vector<64x4xf32>
    %cst_146 = arith.constant 1.000000e-01 : f32
    %155 = vector.broadcast %cst_146 : f32 to vector<64x4xf32>
    %156 = arith.mulf %155, %152 : vector<64x4xf32>
    %157 = arith.select %154, %152, %156 : vector<64x4xi1>, vector<64x4xf32>
    %c1_147 = arith.constant 1 : index
    %c0_148 = arith.constant 0 : index
    %158 = vector.load %arg8[%c1_147, %c0_148] : memref<66x4xf32, #tpu.memory_space<vmem>>, vector<64x4xf32>
    tpu.vector_store %arg8[%c1_147, %c0_148], %157 {strides = array<i32>} : memref<66x4xf32, #tpu.memory_space<vmem>>, vector<64x4xf32>,
    %cst_149 = arith.constant 0.000000e+00 : f32
    %159 = vector.broadcast %cst_149 : f32 to vector<64x4xf32>
    %c0_150 = arith.constant 0 : index
    %c0_151 = arith.constant 0 : index
    %160 = vector.load %arg8[%c0_150, %c0_151] : memref<66x4xf32, #tpu.memory_space<vmem>>, vector<64x4xf32>
    %161 = arith.truncf %160 : vector<64x4xf32> to vector<64x4xbf16>
    %c2_152 = arith.constant 2 : index
    %c0_153 = arith.constant 0 : index
    %c0_154 = arith.constant 0 : index
    %c0_155 = arith.constant 0 : index
    %162 = vector.load %arg4[%c2_152, %c0_153, %c0_154, %c0_155] : memref<3x3x4x4xbf16, #tpu.memory_space<vmem>>, vector<1x1x4x4xbf16>
    %163 = vector.shape_cast %162 : vector<1x1x4x4xbf16> to vector<4x4xbf16>
    %cst_156 = arith.constant dense<0.000000e+00> : vector<64x4xf32>
    %164 = tpu.matmul %161, %163, %cst_156 {dimension_numbers = #tpu.dot_dimension_numbers<[1], [0], [0], [1], [0, 0, 1, 1], [], []>} : vector<64x4xbf16>, vector<4x4xbf16>, vector<64x4xf32> -> vector<64x4xf32>
    %165 = arith.addf %159, %164 : vector<64x4xf32>
    %c1_157 = arith.constant 1 : index
    %c0_158 = arith.constant 0 : index
    %166 = vector.load %arg8[%c1_157, %c0_158] : memref<66x4xf32, #tpu.memory_space<vmem>>, vector<64x4xf32>
    %167 = arith.truncf %166 : vector<64x4xf32> to vector<64x4xbf16>
    %c2_159 = arith.constant 2 : index
    %c1_160 = arith.constant 1 : index
    %c0_161 = arith.constant 0 : index
    %c0_162 = arith.constant 0 : index
    %168 = vector.load %arg4[%c2_159, %c1_160, %c0_161, %c0_162] : memref<3x3x4x4xbf16, #tpu.memory_space<vmem>>, vector<1x1x4x4xbf16>
    %169 = vector.shape_cast %168 : vector<1x1x4x4xbf16> to vector<4x4xbf16>
    %cst_163 = arith.constant dense<0.000000e+00> : vector<64x4xf32>
    %170 = tpu.matmul %167, %169, %cst_163 {dimension_numbers = #tpu.dot_dimension_numbers<[1], [0], [0], [1], [0, 0, 1, 1], [], []>} : vector<64x4xbf16>, vector<4x4xbf16>, vector<64x4xf32> -> vector<64x4xf32>
    %171 = arith.addf %165, %170 : vector<64x4xf32>
    %c2_164 = arith.constant 2 : index
    %c0_165 = arith.constant 0 : index
    %172 = vector.load %arg8[%c2_164, %c0_165] : memref<66x4xf32, #tpu.memory_space<vmem>>, vector<64x4xf32>
    %173 = arith.truncf %172 : vector<64x4xf32> to vector<64x4xbf16>
    %c2_166 = arith.constant 2 : index
    %c2_167 = arith.constant 2 : index
    %c0_168 = arith.constant 0 : index
    %c0_169 = arith.constant 0 : index
    %174 = vector.load %arg4[%c2_166, %c2_167, %c0_168, %c0_169] : memref<3x3x4x4xbf16, #tpu.memory_space<vmem>>, vector<1x1x4x4xbf16>
    %175 = vector.shape_cast %174 : vector<1x1x4x4xbf16> to vector<4x4xbf16>
    %cst_170 = arith.constant dense<0.000000e+00> : vector<64x4xf32>
    %176 = tpu.matmul %173, %175, %cst_170 {dimension_numbers = #tpu.dot_dimension_numbers<[1], [0], [0], [1], [0, 0, 1, 1], [], []>} : vector<64x4xbf16>, vector<4x4xbf16>, vector<64x4xf32> -> vector<64x4xf32>
    %177 = arith.addf %171, %176 : vector<64x4xf32>
    %c2_171 = arith.constant 2 : index
    %c0_172 = arith.constant 0 : index
    %c0_173 = arith.constant 0 : index
    %178 = vector.load %arg5[%c2_171, %c0_172, %c0_173] : memref<3x1x4xf32, #tpu.memory_space<vmem>>, vector<1x1x4xf32>
    %179 = vector.shape_cast %178 : vector<1x1x4xf32> to vector<1x4xf32>
    %180 = vector.broadcast %179 : vector<1x4xf32> to vector<64x4xf32>
    %181 = arith.addf %177, %180 : vector<64x4xf32>
    %182 = arith.addf %181, %123 : vector<64x4xf32>
    %c0_174 = arith.constant 0 : index
    %c0_175 = arith.constant 0 : index
    %c0_176 = arith.constant 0 : index
    %183 = vector.load %arg6[%c0_174, %c0_175, %c0_176] : memref<1x64x4xf32, #tpu.memory_space<vmem>>, vector<1x64x4xf32>
    %184 = vector.shape_cast %183 : vector<1x64x4xf32> to vector<64x4xf32>
    %185 = vector.shape_cast %182 : vector<64x4xf32> to vector<1x64x4xf32>
    tpu.vector_store %arg6[%c0_174, %c0_175, %c0_176], %185 {strides = array<i32>} : memref<1x64x4xf32, #tpu.memory_space<vmem>>, vector<1x64x4xf32>,
    return
  }
  func.func @transform_0(%arg0: i32) -> (i32, i32, i32) {
    %c0_i32 = arith.constant 0 : i32
    %c0_i32_0 = arith.constant 0 : i32
    %c0_i32_1 = arith.constant 0 : i32
    return %arg0, %c0_i32, %c0_i32_0 : i32, i32, i32
  }
  func.func @transform_1(%arg0: i32) -> (i32, i32, i32, i32) {
    %c0_i32 = arith.constant 0 : i32
    %c0_i32_0 = arith.constant 0 : i32
    %c0_i32_1 = arith.constant 0 : i32
    %c0_i32_2 = arith.constant 0 : i32
    %c0_i32_3 = arith.constant 0 : i32
    return %c0_i32, %c0_i32_0, %c0_i32_1, %c0_i32_2 : i32, i32, i32, i32
  }
  func.func @transform_2(%arg0: i32) -> (i32, i32, i32) {
    %c0_i32 = arith.constant 0 : i32
    %c0_i32_0 = arith.constant 0 : i32
    %c0_i32_1 = arith.constant 0 : i32
    %c0_i32_2 = arith.constant 0 : i32
    return %c0_i32, %c0_i32_0, %c0_i32_1 : i32, i32, i32
  }
  func.func @transform_3(%arg0: i32) -> (i32, i32, i32, i32) {
    %c0_i32 = arith.constant 0 : i32
    %c0_i32_0 = arith.constant 0 : i32
    %c0_i32_1 = arith.constant 0 : i32
    %c0_i32_2 = arith.constant 0 : i32
    %c0_i32_3 = arith.constant 0 : i32
    return %c0_i32, %c0_i32_0, %c0_i32_1, %c0_i32_2 : i32, i32, i32, i32
  }
  func.func @transform_4(%arg0: i32) -> (i32, i32, i32) {
    %c0_i32 = arith.constant 0 : i32
    %c0_i32_0 = arith.constant 0 : i32
    %c0_i32_1 = arith.constant 0 : i32
    %c0_i32_2 = arith.constant 0 : i32
    return %c0_i32, %c0_i32_0, %c0_i32_1 : i32, i32, i32
  }
  func.func @transform_5(%arg0: i32) -> (i32, i32, i32) {
    %c0_i32 = arith.constant 0 : i32
    %c0_i32_0 = arith.constant 0 : i32
    %c0_i32_1 = arith.constant 0 : i32
    return %arg0, %c0_i32, %c0_i32_0 : i32, i32, i32
  }
}

module attributes {stable_mosaic.version = 11 : i64} {
  func.func @_conv_kernel(%arg0: i32, %arg1: memref<1x70x4xf32, #tpu.memory_space<vmem>>, %arg2: memref<7x4x1xbf16, #tpu.memory_space<vmem>>, %arg3: memref<1x64x1xf32, #tpu.memory_space<vmem>>) attributes {dimension_semantics = [#tpu.dimension_semantics<parallel>], iteration_bounds = array<i64: 2>, scalar_prefetch = 0 : i64, scratch_operands = 0 : i64, tpu.core_type = #tpu.core_type<tc>, window_params = [{transform_indices = @transform_0, window_bounds = array<i64: 1, 70, 4>}, {pipeline_mode = #tpu.pipeline_mode<synchronous>, transform_indices = @transform_1, window_bounds = array<i64: 7, 4, 1>}, {transform_indices = @transform_2, window_bounds = array<i64: 1, 64, 1>}]} {
    %c0 = arith.constant 0 : index
    %c0_0 = arith.constant 0 : index
    %c0_1 = arith.constant 0 : index
    %0 = vector.load %arg1[%c0, %c0_0, %c0_1] : memref<1x70x4xf32, #tpu.memory_space<vmem>>, vector<1x70x4xf32>
    %1 = vector.shape_cast %0 : vector<1x70x4xf32> to vector<70x4xf32>
    %cst = arith.constant 0.000000e+00 : f32
    %2 = vector.broadcast %cst : f32 to vector<70x4xf32>
    %3 = arith.cmpf oge, %1, %2 : vector<70x4xf32>
    %cst_2 = arith.constant 0.00999999977 : f32
    %4 = vector.broadcast %cst_2 : f32 to vector<70x4xf32>
    %5 = arith.mulf %4, %1 : vector<70x4xf32>
    %6 = arith.select %3, %1, %5 : vector<70x4xi1>, vector<70x4xf32>
    %cst_3 = arith.constant 0.000000e+00 : f32
    %7 = vector.broadcast %cst_3 : f32 to vector<64x1xf32>
    %8 = vector.extract_strided_slice %6 {offsets = [0, 0], sizes = [64, 4], strides = [1, 1]} : vector<70x4xf32> to vector<64x4xf32>
    %9 = arith.truncf %8 : vector<64x4xf32> to vector<64x4xbf16>
    %c0_4 = arith.constant 0 : index
    %c0_5 = arith.constant 0 : index
    %c0_6 = arith.constant 0 : index
    %10 = vector.load %arg2[%c0_4, %c0_5, %c0_6] : memref<7x4x1xbf16, #tpu.memory_space<vmem>>, vector<1x4x1xbf16>
    %11 = vector.shape_cast %10 : vector<1x4x1xbf16> to vector<4x1xbf16>
    %cst_7 = arith.constant dense<0.000000e+00> : vector<64x1xf32>
    %12 = tpu.matmul %9, %11, %cst_7 {dimension_numbers = #tpu.dot_dimension_numbers<[1], [0], [0], [1], [0, 0, 1, 1], [], []>} : vector<64x4xbf16>, vector<4x1xbf16>, vector<64x1xf32> -> vector<64x1xf32>
    %13 = arith.addf %7, %12 : vector<64x1xf32>
    %14 = vector.extract_strided_slice %6 {offsets = [1, 0], sizes = [64, 4], strides = [1, 1]} : vector<70x4xf32> to vector<64x4xf32>
    %15 = arith.truncf %14 : vector<64x4xf32> to vector<64x4xbf16>
    %c1 = arith.constant 1 : index
    %c0_8 = arith.constant 0 : index
    %c0_9 = arith.constant 0 : index
    %16 = vector.load %arg2[%c1, %c0_8, %c0_9] : memref<7x4x1xbf16, #tpu.memory_space<vmem>>, vector<1x4x1xbf16>
    %17 = vector.shape_cast %16 : vector<1x4x1xbf16> to vector<4x1xbf16>
    %cst_10 = arith.constant dense<0.000000e+00> : vector<64x1xf32>
    %18 = tpu.matmul %15, %17, %cst_10 {dimension_numbers = #tpu.dot_dimension_numbers<[1], [0], [0], [1], [0, 0, 1, 1], [], []>} : vector<64x4xbf16>, vector<4x1xbf16>, vector<64x1xf32> -> vector<64x1xf32>
    %19 = arith.addf %13, %18 : vector<64x1xf32>
    %20 = vector.extract_strided_slice %6 {offsets = [2, 0], sizes = [64, 4], strides = [1, 1]} : vector<70x4xf32> to vector<64x4xf32>
    %21 = arith.truncf %20 : vector<64x4xf32> to vector<64x4xbf16>
    %c2 = arith.constant 2 : index
    %c0_11 = arith.constant 0 : index
    %c0_12 = arith.constant 0 : index
    %22 = vector.load %arg2[%c2, %c0_11, %c0_12] : memref<7x4x1xbf16, #tpu.memory_space<vmem>>, vector<1x4x1xbf16>
    %23 = vector.shape_cast %22 : vector<1x4x1xbf16> to vector<4x1xbf16>
    %cst_13 = arith.constant dense<0.000000e+00> : vector<64x1xf32>
    %24 = tpu.matmul %21, %23, %cst_13 {dimension_numbers = #tpu.dot_dimension_numbers<[1], [0], [0], [1], [0, 0, 1, 1], [], []>} : vector<64x4xbf16>, vector<4x1xbf16>, vector<64x1xf32> -> vector<64x1xf32>
    %25 = arith.addf %19, %24 : vector<64x1xf32>
    %26 = vector.extract_strided_slice %6 {offsets = [3, 0], sizes = [64, 4], strides = [1, 1]} : vector<70x4xf32> to vector<64x4xf32>
    %27 = arith.truncf %26 : vector<64x4xf32> to vector<64x4xbf16>
    %c3 = arith.constant 3 : index
    %c0_14 = arith.constant 0 : index
    %c0_15 = arith.constant 0 : index
    %28 = vector.load %arg2[%c3, %c0_14, %c0_15] : memref<7x4x1xbf16, #tpu.memory_space<vmem>>, vector<1x4x1xbf16>
    %29 = vector.shape_cast %28 : vector<1x4x1xbf16> to vector<4x1xbf16>
    %cst_16 = arith.constant dense<0.000000e+00> : vector<64x1xf32>
    %30 = tpu.matmul %27, %29, %cst_16 {dimension_numbers = #tpu.dot_dimension_numbers<[1], [0], [0], [1], [0, 0, 1, 1], [], []>} : vector<64x4xbf16>, vector<4x1xbf16>, vector<64x1xf32> -> vector<64x1xf32>
    %31 = arith.addf %25, %30 : vector<64x1xf32>
    %32 = vector.extract_strided_slice %6 {offsets = [4, 0], sizes = [64, 4], strides = [1, 1]} : vector<70x4xf32> to vector<64x4xf32>
    %33 = arith.truncf %32 : vector<64x4xf32> to vector<64x4xbf16>
    %c4 = arith.constant 4 : index
    %c0_17 = arith.constant 0 : index
    %c0_18 = arith.constant 0 : index
    %34 = vector.load %arg2[%c4, %c0_17, %c0_18] : memref<7x4x1xbf16, #tpu.memory_space<vmem>>, vector<1x4x1xbf16>
    %35 = vector.shape_cast %34 : vector<1x4x1xbf16> to vector<4x1xbf16>
    %cst_19 = arith.constant dense<0.000000e+00> : vector<64x1xf32>
    %36 = tpu.matmul %33, %35, %cst_19 {dimension_numbers = #tpu.dot_dimension_numbers<[1], [0], [0], [1], [0, 0, 1, 1], [], []>} : vector<64x4xbf16>, vector<4x1xbf16>, vector<64x1xf32> -> vector<64x1xf32>
    %37 = arith.addf %31, %36 : vector<64x1xf32>
    %38 = vector.extract_strided_slice %6 {offsets = [5, 0], sizes = [64, 4], strides = [1, 1]} : vector<70x4xf32> to vector<64x4xf32>
    %39 = arith.truncf %38 : vector<64x4xf32> to vector<64x4xbf16>
    %c5 = arith.constant 5 : index
    %c0_20 = arith.constant 0 : index
    %c0_21 = arith.constant 0 : index
    %40 = vector.load %arg2[%c5, %c0_20, %c0_21] : memref<7x4x1xbf16, #tpu.memory_space<vmem>>, vector<1x4x1xbf16>
    %41 = vector.shape_cast %40 : vector<1x4x1xbf16> to vector<4x1xbf16>
    %cst_22 = arith.constant dense<0.000000e+00> : vector<64x1xf32>
    %42 = tpu.matmul %39, %41, %cst_22 {dimension_numbers = #tpu.dot_dimension_numbers<[1], [0], [0], [1], [0, 0, 1, 1], [], []>} : vector<64x4xbf16>, vector<4x1xbf16>, vector<64x1xf32> -> vector<64x1xf32>
    %43 = arith.addf %37, %42 : vector<64x1xf32>
    %44 = vector.extract_strided_slice %6 {offsets = [6, 0], sizes = [64, 4], strides = [1, 1]} : vector<70x4xf32> to vector<64x4xf32>
    %45 = arith.truncf %44 : vector<64x4xf32> to vector<64x4xbf16>
    %c6 = arith.constant 6 : index
    %c0_23 = arith.constant 0 : index
    %c0_24 = arith.constant 0 : index
    %46 = vector.load %arg2[%c6, %c0_23, %c0_24] : memref<7x4x1xbf16, #tpu.memory_space<vmem>>, vector<1x4x1xbf16>
    %47 = vector.shape_cast %46 : vector<1x4x1xbf16> to vector<4x1xbf16>
    %cst_25 = arith.constant dense<0.000000e+00> : vector<64x1xf32>
    %48 = tpu.matmul %45, %47, %cst_25 {dimension_numbers = #tpu.dot_dimension_numbers<[1], [0], [0], [1], [0, 0, 1, 1], [], []>} : vector<64x4xbf16>, vector<4x1xbf16>, vector<64x1xf32> -> vector<64x1xf32>
    %49 = arith.addf %43, %48 : vector<64x1xf32>
    %50 = math.tanh %49 : vector<64x1xf32>
    %c0_26 = arith.constant 0 : index
    %c0_27 = arith.constant 0 : index
    %c0_28 = arith.constant 0 : index
    %51 = vector.load %arg3[%c0_26, %c0_27, %c0_28] : memref<1x64x1xf32, #tpu.memory_space<vmem>>, vector<1x64x1xf32>
    %52 = vector.shape_cast %51 : vector<1x64x1xf32> to vector<64x1xf32>
    %53 = vector.shape_cast %50 : vector<64x1xf32> to vector<1x64x1xf32>
    tpu.vector_store %arg3[%c0_26, %c0_27, %c0_28], %53 {strides = array<i32>} : memref<1x64x1xf32, #tpu.memory_space<vmem>>, vector<1x64x1xf32>,
    return
  }
  func.func @transform_0(%arg0: i32) -> (i32, i32, i32) {
    %c0_i32 = arith.constant 0 : i32
    %c0_i32_0 = arith.constant 0 : i32
    %c0_i32_1 = arith.constant 0 : i32
    return %arg0, %c0_i32, %c0_i32_0 : i32, i32, i32
  }
  func.func @transform_1(%arg0: i32) -> (i32, i32, i32) {
    %c0_i32 = arith.constant 0 : i32
    %c0_i32_0 = arith.constant 0 : i32
    %c0_i32_1 = arith.constant 0 : i32
    %c0_i32_2 = arith.constant 0 : i32
    return %c0_i32, %c0_i32_0, %c0_i32_1 : i32, i32, i32
  }
  func.func @transform_2(%arg0: i32) -> (i32, i32, i32) {
    %c0_i32 = arith.constant 0 : i32
    %c0_i32_0 = arith.constant 0 : i32
    %c0_i32_1 = arith.constant 0 : i32
    return %arg0, %c0_i32, %c0_i32_0 : i32, i32, i32
  }
}

</mosaic_0001>

<bundles_post_ra>
// kernel: generator_nsf_forward.12
= control target key start
LH: loop header
LB: loop body
LE: loop exit
PB: predicated region body
PF: predicated region fallthrough
CT: control target
= control target key end

     0   :  { %9 = vsyncpa [#allocation3], 0  ;;  %s570_s15 = smov 0   ;;  %s671_s0 = inlined_call_operand.vmem [shape: f32[2,64,1], index: 0, kind: input, shape index: {}]   ;;  %s672_s1 = inlined_call_operand.vmem [shape: f32[2,64,1], index: 1, kind: input, shape index: {}]   ;;  %s673_s2 = inlined_call_operand.vmem [shape: f32[2,64,1], index: 2, kind: input, shape index: {}]   ;;  %s674_s3 = inlined_call_operand.vmem [shape: f32[1,2], index: 3, kind: input, shape index: {}]   ;;  %s675_s4 = inlined_call_operand.vmem [shape: f32[2,64,1], index: 4, kind: output, shape index: {}]  }
   0x1 LB: > { %s460_s16 = sadd.s32 4294967295, %s542_s15   ;;  %p462_p0 = scmp.ge.s32.totalorder %s542_s15, 1  ;;  %s542_s15 = sphi %s570_s15, %s15_s15  }
   0x2   : > { %p145_p1 = scmp.lt.s32.totalorder %s542_s15, 3  ;;  %s158_s19 = sshll.u32 %s674_s3, 4  ;;  %s159_s19 = int_to_ptr.vmem [resolvable:$true] %s158_s19 }
   0x3   : > { %p490_p3 = scmp.eq.s32.totalorder %s460_s16, 0  ;;  %s517_s21 = scalar_lea.vmem %s159_s19, 16 }
   0x4   : > { %p581_p2 = pnand %p462_p0, %p145_p1  ;;  %p518_p6 = scmp.ne.s32.totalorder %s159_s19, %s517_s21 }
   0x5   : > { %p525_p10 = scmp.lt.s32.totalorder %s159_s19, %s159_s19  ;;  %p526_p11 = scmp.lt.s32.totalorder %s517_s21, %s517_s21 }
   0x6   : > { %p486_p4 = pneg %p581_p2 }
   0x7   : > { %p527_p12 = por %p526_p11, %p525_p10 }
   0x8   : > { %p487_p5 = pnand %p490_p3, %p486_p4 }
   0xa   : > { %p519_p7 = pneg %p487_p5 }
   0xc   : > { %p520_p8 = pnand %p519_p7, %p518_p6 }
   0xe   : > { %p521_p9 = pneg %p520_p8 }
  0x10   : > { %p528_p13 = pnand %p527_p12, %p521_p9 }
  0x12   : > { %531 = shalt.err (!%p528_p13)
}
  0x13   : > { %s544_s22 = smov [#allocation2]   ;;  %195 = sbr.rel (%p581_p2) target bundleno = 76 (0x4c), region = 36 }
  0x14   : > { %489 = dma.vmem_to_smem (!%p487_p5), %s159_s19, 16, %s544_s22, [#allocation3]  }
  0x1a   : > { %537 = dma.done.wait (%p490_p3), [#allocation3], 16  }
  0x1b   : > { %539 = vsyncadd (%p490_p3), [#allocation3], 4294967280 }
  0x1c   : > { %201 = sfence }
  0x1d   : > { %p232_p0 = scmp.lt.s32.totalorder %s460_s16, 1  ;;  %s332_s23 = sld [smem:[#allocation2]]  ;;  %vm360_vm0 = vcmask 7168  }
  0x1e   : > { %s475_s24 = sld [smem:[#allocation2 + $0x1]] }
  0x1f   : > { %s678_s16 = smov (!%p232_p0, %s460_s16), 1 }
  0x20   : > { %s592_s25 = sshll.u32 %s678_s16, 6 }
  0x21   : > { %s598_s28 = scalar_lea.vmem %s671_s0, %s592_s25  ;;  %s604_s5 = scalar_lea.vmem %s672_s1, %s592_s25 }
  0x22   : > { %s610_s8 = scalar_lea.vmem %s673_s2, %s592_s25  ;;  %v252_v0 = vld [vmem:[%s598_s28] sm:$0xff]  ;;  %v253_v4 = vld [vmem:[%s598_s28 + $0x8] sm:$0xff]  ;;  %v254_v10 = vld [vmem:[%s598_s28 + $0x10] sm:$0xff]  ;;  %s251_s11 = scalar_lea.vmem %s675_s4, %s592_s25 }
  0x23   : > { %v260_v1 = vld [vmem:[%s604_s5] sm:$0xff]  ;;  %v261_v5 = vld [vmem:[%s604_s5 + $0x8] sm:$0xff]  ;;  %v617_v7 = vstv %s332_s23  ;;  %v262_v11 = vld [vmem:[%s604_s5 + $0x10] sm:$0xff] }
  0x24   : > { %v276_v2 = vmul.f32 0.003, %v260_v1  ;;  %v284_v3 = vsub.f32 1.0, %v260_v1  ;;  %v268_v6 = vld [vmem:[%s610_s8] sm:$0xff]  ;;  %v277_v8 = vmul.f32 0.003, %v261_v5  ;;  %v308_v13 = vmul.f32 %v260_v1, %v252_v0 }
  0x25   : > { %v285_v9 = vsub.f32 1.0, %v261_v5  ;;  %v278_v14 = vmul.f32 0.003, %v262_v11  ;;  %v286_v15 = vsub.f32 1.0, %v262_v11  ;;  %v255_v16 = vld [vmem:[%s598_s28 + $0x18] sm:$0xff]  ;;  %v622_v17 = vstv %s475_s24  ;;  %v269_v18 = vld [vmem:[%s610_s8 + $0x8] sm:$0xff] }
  0x26   : > { %v292_v12 = vmul.f32 0.033333335, %v284_v3  ;;  %v309_v20 = vmul.f32 %v261_v5, %v253_v4  ;;  %v310_v21 = vmul.f32 %v262_v11, %v254_v10  ;;  %v263_v22 = vld [vmem:[%s604_s5 + $0x18] sm:$0xff]  ;;  %v256_v23 = vld [vmem:[%s598_s28 + $0x20] sm:$0xff]  ;;  %v270_v30 = vld [vmem:[%s610_s8 + $0x10] sm:$0xff] }
  0x27   : > { %v293_v19 = vmul.f32 0.033333335, %v285_v9  ;;  %v294_v25 = vmul.f32 0.033333335, %v286_v15  ;;  %v279_v26 = vmul.f32 0.003, %v263_v22  ;;  %v311_v31 = vmul.f32 %v263_v22, %v255_v16 }
  0x28   : > { %v300_v24 = vadd.f32 %v292_v12, %v276_v2  ;;  %v287_v27 = vsub.f32 1.0, %v263_v22  ;;  %v264_v28 = vld [vmem:[%s604_s5 + $0x20] sm:$0xff]  ;;  %v257_v34 = vld [vmem:[%s598_s28 + $0x28] sm:$0xff]  ;;  %v271_v38 = vld [vmem:[%s610_s8 + $0x18] sm:$0xff] }
  0x29   : > { %v301_v29 = vadd.f32 %v293_v19, %v277_v8  ;;  %v280_v32 = vmul.f32 0.003, %v264_v28  ;;  %v288_v33 = vsub.f32 1.0, %v264_v28  ;;  %v265_v35 = vld [vmem:[%s604_s5 + $0x28] sm:$0xff]  ;;  %v302_v37 = vadd.f32 %v294_v25, %v278_v14  ;;  %v266_v45 = vld [vmem:[%s604_s5 + $0x30] sm:$0xff]  ;;  %v272_v49 = vld [vmem:[%s610_s8 + $0x20] sm:$0xff] }
  0x2a   : > { %v316_v36 = vmul.f32 %v300_v24, %v268_v6  ;;  %v295_v39 = vmul.f32 0.033333335, %v287_v27  ;;  %v312_v40 = vmul.f32 %v264_v28, %v256_v23  ;;  %v281_v43 = vmul.f32 0.003, %v265_v35  ;;  %v258_v51 = vld [vmem:[%s598_s28 + $0x30] sm:$0xff]  ;;  %v273_v59 = vld [vmem:[%s610_s8 + $0x28] sm:$0xff] }
  0x2b   : > { %v317_v41 = vmul.f32 %v301_v29, %v269_v18  ;;  %v296_v42 = vmul.f32 0.033333335, %v288_v33  ;;  %v289_v44 = vsub.f32 1.0, %v265_v35  ;;  %v318_v47 = vmul.f32 %v302_v37, %v270_v30  ;;  %v267_v5 = vld [vmem:[%s604_s5 + $0x38] sm:$0xff]  ;;  %v274_v10 = vld [vmem:[%s610_s8 + $0x30] sm:$0xff] }
  0x2c   : > { %v324_v46 = vadd.f32 %v316_v36, %v308_v13  ;;  %v303_v48 = vadd.f32 %v295_v39, %v279_v26  ;;  %v313_v50 = vmul.f32 %v265_v35, %v257_v34  ;;  %v282_v55 = vmul.f32 0.003, %v266_v45  ;;  %v275_v26 = vld [vmem:[%s610_s8 + $0x38] sm:$0xff] }
  0x2d   : > { %v325_v52 = vadd.f32 %v317_v41, %v309_v20  ;;  %v304_v53 = vadd.f32 %v296_v42, %v280_v32  ;;  %v297_v54 = vmul.f32 0.033333335, %v289_v44  ;;  %v326_v57 = vadd.f32 %v318_v47, %v310_v21  ;;  %v259_v21 = vld [vmem:[%s598_s28 + $0x38] sm:$0xff] }
  0x2e   : > { %v334_v56 = vmul.f32 %v617_v7, %v324_v46  ;;  %v319_v58 = vmul.f32 %v303_v48, %v271_v38  ;;  %v290_v60 = vsub.f32 1.0, %v266_v45  ;;  %v314_v0 = vmul.f32 %v266_v45, %v258_v51 }
  0x2f   : > { %v335_v61 = vmul.f32 %v617_v7, %v325_v52  ;;  %v320_v62 = vmul.f32 %v304_v53, %v272_v49  ;;  %v305_v63 = vadd.f32 %v297_v54, %v281_v43  ;;  %v336_v2 = vmul.f32 %v617_v7, %v326_v57 }
  0x30   : > { %v344_v1 = vadd.f32 %v622_v17, %v334_v56  ;;  %v327_v3 = vadd.f32 %v319_v58, %v311_v31  ;;  %v298_v4 = vmul.f32 0.033333335, %v290_v60  ;;  %v283_v11 = vmul.f32 0.003, %v267_v5 }
  0x31   : > { %v345_v6 = vadd.f32 %v622_v17, %v335_v61  ;;  %v328_v8 = vadd.f32 %v320_v62, %v312_v40  ;;  %v321_v9 = vmul.f32 %v305_v63, %v273_v59  ;;  %v346_v12 = vadd.f32 %v622_v17, %v336_v2 }
  0x32   : > { %501 = vtanh.f32 %v344_v1  ;;  %v337_v13 = vmul.f32 %v617_v7, %v327_v3  ;;  %v306_v14 = vadd.f32 %v298_v4, %v282_v55  ;;  %v291_v18 = vsub.f32 1.0, %v267_v5 }
  0x33   : > { %503 = vtanh.f32 %v345_v6  ;;  %v338_v15 = vmul.f32 %v617_v7, %v328_v8  ;;  %v329_v16 = vadd.f32 %v321_v9, %v313_v50  ;;  %v315_v29 = vmul.f32 %v267_v5, %v259_v21 }
  0x34   : > { %505 = vtanh.f32 %v346_v12  ;;  %v347_v19 = vadd.f32 %v622_v17, %v337_v13  ;;  %v322_v20 = vmul.f32 %v306_v14, %v274_v10  ;;  %v299_v24 = vmul.f32 0.033333335, %v291_v18 }
  0x35   : > { %v348_v22 = vadd.f32 %v622_v17, %v338_v15  ;;  %v339_v23 = vmul.f32 %v617_v7, %v329_v16 }
  0x36   : > { %507 = vtanh.f32 %v347_v19  ;;  %v330_v25 = vadd.f32 %v322_v20, %v314_v0  ;;  %v307_v28 = vadd.f32 %v299_v24, %v283_v11 }
  0x37   : > { %509 = vtanh.f32 %v348_v22  ;;  %v349_v27 = vadd.f32 %v622_v17, %v339_v23 }
  0x38   : > { %v340_v30 = vmul.f32 %v617_v7, %v330_v25  ;;  %v323_v31 = vmul.f32 %v307_v28, %v275_v26 }
  0x39   : > { %511 = vtanh.f32 %v349_v27 }
  0x3a   : > { %v350_v32 = vadd.f32 %v622_v17, %v340_v30  ;;  %v331_v33 = vadd.f32 %v323_v31, %v315_v29 }
  0x3c   : > { %v502_v34 = vpop.eup %501  ;;  %513 = vtanh.f32 %v350_v32  ;;  %v341_v36 = vmul.f32 %v617_v7, %v331_v33 }
  0x3d   : > { %v504_v35 = vpop.eup %503  ;;  %361 = vst.msk [vmem:[%s251_s11] sm:$0xff] %vm360_vm0, %v502_v34 }
  0x3e   : > { %v506_v37 = vpop.eup %505  ;;  %362 = vst.msk [vmem:[%s251_s11 + $0x8] sm:$0xff] %vm360_vm0, %v504_v35  ;;  %v351_v38 = vadd.f32 %v622_v17, %v341_v36 }
  0x3f   : > { %363 = vst.msk [vmem:[%s251_s11 + $0x10] sm:$0xff] %vm360_vm0, %v506_v37 }
  0x40   : > { %v508_v39 = vpop.eup %507  ;;  %515 = vtanh.f32 %v351_v38 }
  0x41   : > { %v510_v40 = vpop.eup %509  ;;  %364 = vst.msk [vmem:[%s251_s11 + $0x18] sm:$0xff] %vm360_vm0, %v508_v39 }
  0x42   : > { %365 = vst.msk [vmem:[%s251_s11 + $0x20] sm:$0xff] %vm360_vm0, %v510_v40 }
  0x43   : > { %v512_v41 = vpop.eup %511 }
  0x44   : > { %366 = vst.msk [vmem:[%s251_s11 + $0x28] sm:$0xff] %vm360_vm0, %v512_v41 }
  0x46   : > { %v514_v42 = vpop.eup %513 }
  0x47   : > { %367 = vst.msk [vmem:[%s251_s11 + $0x30] sm:$0xff] %vm360_vm0, %v514_v42 }
  0x4a   : > { %v516_v7 = vpop.eup %515 }
  0x4b   : > { %368 = vst.msk [vmem:[%s251_s11 + $0x38] sm:$0xff] %vm360_vm0, %v516_v7 }
  0x4c PF: > { %s15_s15 = sadd.s32 1, %s542_s15  }
  0x4d   : > { %p12_p1 = scmp.ge.s32.totalorder %s15_s15, 4  }
  0x4f   :  { %14 = sbr.rel (!%p12_p1) target bundleno = 1 (0x1), region = 77 }
  0x56   :  { %390 = vsyncpa [#allocation3], 1 }
  0x57   :  { %392 = vsyncpa [#allocation3 + $0x1], 1 }

// kernel: generator_nsf_forward.13
= control target key start
LH: loop header
LB: loop body
LE: loop exit
PB: predicated region body
PF: predicated region fallthrough
CT: control target
= control target key end

     0   :  { %s556_s12 = smov 0   ;;  %s699_s0 = inlined_call_operand.vmem [shape: f32[2,66,1], index: 0, kind: input, shape index: {}]   ;;  %s700_s1 = inlined_call_operand.vmem [shape: bf16[4,1,8], index: 1, kind: input, shape index: {}]   ;;  %s701_s2 = inlined_call_operand.vmem [shape: f32[1,8], index: 2, kind: input, shape index: {}]   ;;  %s702_s3 = inlined_call_operand.vmem [shape: f32[2,63,8], index: 3, kind: output, shape index: {}]  }
   0x1 LB: > { %s500_s13 = sadd.s32 4294967295, %s533_s12   ;;  %p504_p0 = scmp.ge.s32.totalorder %s533_s12, 1  ;;  %s533_s12 = sphi %s556_s12, %s13_s12  }
   0x2   : > { %p137_p1 = scmp.lt.s32.totalorder %s533_s12, 3 }
   0x4   : > { %p138_p2 = pnand %p504_p0, %p137_p1 }
   0x5   : > { %p161_p3 = scmp.lt.s32.totalorder (!%p138_p2), %s500_s13, 1  ;;  %v535_v0 = vmov (!%p138_p2), 0   ;;  %v222_v10 = vlaneseq (!%p138_p2)  ;;  %v508_v12 = vld [vmem:[%s700_s1 + $0x1] sm:$0x1] (!%p138_p2)  ;;  %v509_v13 = vld [vmem:[%s700_s1 + $0x2] sm:$0x1] (!%p138_p2) }
   0x6   : > { %141 = sbr.rel (%p138_p2) target bundleno = 181 (0xb5), region = 32  ;;  %526 = vset.pattern.permute.xlu1 (!%p138_p2), %v535_v0  ;;  %525 = vset.pattern.permute.xlu0 (!%p138_p2), %v535_v0  ;;  %v510_v14 = vld [vmem:[%s700_s1 + $0x3] sm:$0x1] (!%p138_p2)  ;;  %v180_v15 = vld [vmem:[%s700_s1] sm:$0x1] (!%p138_p2)  ;;  %v244_v17 = vunpack.c.l.bf16 (!%p138_p2), %v508_v12  ;;  %v299_v18 = vunpack.c.l.bf16 (!%p138_p2), %v509_v13  ;;  %vm265_vm0 = vcmask (!%p138_p2), 1046528  }
   0x7   : > { %v223_v11 = vshrl.u32 (!%p138_p2), %v222_v10, 7  ;;  %v363_v19 = vunpack.c.l.bf16 (!%p138_p2), %v510_v14  ;;  %v181_v20 = vunpack.c.l.bf16 (!%p138_p2), %v180_v15  ;;  %vm327_vm1 = vcmask (!%p138_p2), 1045504  }
   0x8   : > { %vm386_vm2 = vcmask (!%p138_p2), 1044480   ;;  %vm435_vm3 = vcmask (!%p138_p2), 64512   ;;  %vm443_vm4 = vcmask (!%p138_p2), 63488  }
   0x9   : > { %v224_v16 = vsub.s32 (!%p138_p2), 0, %v223_v11 }
   0xb   : > { %v582_v21 = vrot.slane (!%p138_p2), %v244_v17, %v224_v16  ;;  %v584_v22 = vrot.slane (!%p138_p2), %v299_v18, %v224_v16  ;;  %v586_v23 = vrot.slane (!%p138_p2), %v363_v19, %v224_v16  ;;  %v588_v24 = vrot.slane (!%p138_p2), %v181_v20, %v224_v16 }
   0xd   : > { %s704_s13 = smov (!%p161_p3, %s500_s13), 1 }
   0xe   : > { %s515_s14 = smul.u32 72, %s704_s13  ;;  %s514_s26 = sshll.u32 %s704_s13, 6 }
   0xf   : > { %s642_s4 = scalar_lea.vmem %s702_s3, %s514_s26 }
  0x10   : > { %s165_s17 = scalar_lea.vmem %s699_s0, %s515_s14 }
  0x11   : > { %v173_v1 = vld [vmem:[%s165_s17 + $0x10] sm:$0xff]  ;;  %v171_v2 = vld [vmem:[%s165_s17] sm:$0xff]  ;;  %v174_v3 = vld [vmem:[%s165_s17 + $0x18] sm:$0xff] }
  0x12   : > { %194 = vperm.xlu1 %526, %v173_v1   ;;  %184 = vperm.xlu0 %525, %v171_v2   ;;  %v172_v4 = vld [vmem:[%s165_s17 + $0x8] sm:$0xff]  ;;  %v175_v6 = vld [vmem:[%s165_s17 + $0x20] sm:$0xff]  ;;  %v178_v7 = vld [vmem:[%s165_s17 + $0x38] sm:$0xff] }
  0x13   : > { %v176_v5 = vld [vmem:[%s165_s17 + $0x28] sm:$0xff]  ;;  %v177_v8 = vld [vmem:[%s165_s17 + $0x30] sm:$0xff]  ;;  %v179_v9 = vld [vmem:[%s165_s17 + $0x40] sm:$0x3] }
  0x16   : > { %199 = vperm.xlu1 %526, %v174_v3   ;;  %189 = vperm.xlu0 %525, %v172_v4  }
  0x1a   : > { %209 = vperm.xlu1 %526, %v176_v5   ;;  %204 = vperm.xlu0 %525, %v175_v6  }
  0x1e   : > { %219 = vperm.xlu1 %526, %v178_v7   ;;  %214 = vperm.xlu0 %525, %v177_v8  }
  0x22   : > { %302 = vperm.xlu0 %525, %v179_v9   ;;  %v630_v9 = vld [vmem:[%s701_s2] ss:$0 sm:$0xff] }
  0x91   : > { %v195_v25 = vpop.permute.xlu1 %194  ;;  %v185_v26 = vpop.permute.xlu0 %184 }
  0x92   : > { %v251_v27 = vmul.f32 %v582_v21, %v195_v25  ;;  %v311_v28 = vmul.f32 %v584_v22, %v195_v25  ;;  %v370_v29 = vmul.f32 %v586_v23, %v195_v25  ;;  %v249_v30 = vmul.f32 %v582_v21, %v185_v26 }
  0x93   : > { %v228_v31 = vmul.f32 %v588_v24, %v195_v25  ;;  %v309_v32 = vmul.f32 %v584_v22, %v185_v26  ;;  %v226_v35 = vmul.f32 %v588_v24, %v185_v26  ;;  %v368_v36 = vmul.f32 %v586_v23, %v185_v26 }
  0x94   : > { %v269_v33 = vrot.slane %v251_v27, 1  ;;  %v331_v34 = vrot.slane %v311_v28, 2  ;;  %v390_v39 = vrot.slane %v370_v29, 3  ;;  %v266_v43 = vrot.slane %v249_v30, 1 }
  0x95   : > { %v200_v37 = vpop.permute.xlu1 %199  ;;  %v190_v38 = vpop.permute.xlu0 %189  ;;  %v328_v47 = vrot.slane %v309_v32, 2  ;;  %v387_v51 = vrot.slane %v368_v36, 3 }
  0x96   : > { %v252_v40 = vmul.f32 %v582_v21, %v200_v37  ;;  %v600_v41 = vmul.f32 %v584_v22, %v200_v37  ;;  %v603_v42 = vmul.f32 %v586_v23, %v200_v37  ;;  %v250_v44 = vmul.f32 %v582_v21, %v190_v38 }
  0x97   : > { %v310_v45 = vmul.f32 %v584_v22, %v190_v38  ;;  %v369_v46 = vmul.f32 %v586_v23, %v190_v38  ;;  %v229_v57 = vmul.f32 %v588_v24, %v200_v37  ;;  %v227_v60 = vmul.f32 %v588_v24, %v190_v38 }
  0x98   : > { %v271_v48 = vrot.slane %v252_v40, 1  ;;  %v333_v49 = vrot.slane %v600_v41, 2  ;;  %v392_v50 = vrot.slane %v603_v42, 3  ;;  %v267_v52 = vrot.slane %v250_v44, 1 }
  0x99   : > { %v329_v53 = vrot.slane %v310_v45, 2  ;;  %v388_v54 = vrot.slane %v369_v46, 3  ;;  %v210_v55 = vpop.permute.xlu1 %209  ;;  %v205_v56 = vpop.permute.xlu0 %204 }
  0x9a   : > { %v272_v58 = vsel %vm265_vm0, %v269_v33, %v271_v48  ;;  %v334_v59 = vsel %vm327_vm1, %v331_v34, %v333_v49  ;;  %v393_v62 = vsel %vm386_vm2, %v390_v39, %v392_v50  ;;  %v268_v63 = vsel %vm265_vm0, %v266_v43, %v267_v52 }
  0x9b   : > { %v291_v61 = vadd.f32 %v272_v58, %v228_v31  ;;  %v270_v0 = vsel %vm265_vm0, %v267_v52, %v269_v33  ;;  %v289_v1 = vadd.f32 %v268_v63, %v226_v35  ;;  %v330_v3 = vsel %vm327_vm1, %v328_v47, %v329_v53 }
  0x9c   : > { %v290_v2 = vadd.f32 %v270_v0, %v227_v60  ;;  %v332_v4 = vsel %vm327_vm1, %v329_v53, %v331_v34  ;;  %v389_v6 = vsel %vm386_vm2, %v387_v51, %v388_v54  ;;  %v622_v7 = vmul.f32 %v582_v21, %v210_v55 }
  0x9d   : > { %v355_v5 = vadd.f32 %v334_v59, %v291_v61  ;;  %v625_v8 = vmul.f32 %v584_v22, %v210_v55  ;;  %v353_v10 = vadd.f32 %v330_v3, %v289_v1  ;;  %v391_v12 = vsel %vm386_vm2, %v388_v54, %v390_v39  ;;  %v220_v18 = vpop.permute.xlu1 %219  ;;  %v215_v19 = vpop.permute.xlu0 %214 }
  0x9e   : > { %v354_v11 = vadd.f32 %v332_v4, %v290_v2  ;;  %v634_v13 = vmul.f32 %v586_v23, %v210_v55  ;;  %v275_v15 = vrot.slane %v622_v7, 1  ;;  %v230_v16 = vmul.f32 %v588_v24, %v205_v56 }
  0x9f   : > { %v414_v14 = vadd.f32 %v393_v62, %v355_v5  ;;  %v253_v17 = vmul.f32 %v582_v21, %v205_v56  ;;  %v412_v20 = vadd.f32 %v389_v6, %v353_v10  ;;  %v337_v26 = vrot.slane %v625_v8, 2 }
  0xa0   : > { %v413_v25 = vadd.f32 %v391_v12, %v354_v11  ;;  %v313_v27 = vmul.f32 %v584_v22, %v205_v56  ;;  %v396_v29 = vrot.slane %v634_v13, 3  ;;  %v372_v31 = vmul.f32 %v586_v23, %v205_v56 }
  0xa1   : > { %v429_v28 = vadd.f32 %v630_v9, %v414_v14  ;;  %v273_v30 = vrot.slane %v253_v17, 1  ;;  %v427_v32 = vadd.f32 %v630_v9, %v412_v20  ;;  %v256_v35 = vmul.f32 %v582_v21, %v220_v18  ;;  %v303_v46 = vpop.permute.xlu0 %302 }
  0xa2   : > { %v428_v33 = vadd.f32 %v630_v9, %v413_v25  ;;  %v335_v34 = vrot.slane %v313_v27, 2  ;;  %v394_v38 = vrot.slane %v372_v31, 3  ;;  %v231_v39 = vmul.f32 %v588_v24, %v210_v55 }
  0xa3   : > { %438 = vst.msk [vmem:[%s642_s4 + $0x10] sm:$0xff] %vm435_vm3, %v429_v28  ;;  %v274_v36 = vsel %vm265_vm0, %v271_v48, %v273_v30  ;;  %v276_v37 = vsel %vm265_vm0, %v273_v30, %v275_v15  ;;  %436 = vst.msk [vmem:[%s642_s4] sm:$0xff] %vm435_vm3, %v427_v32  ;;  %v316_v45 = vmul.f32 %v584_v22, %v220_v18  ;;  %v279_v52 = vrot.slane %v256_v35, 1 }
  0xa4   : > { %437 = vst.msk [vmem:[%s642_s4 + $0x8] sm:$0xff] %vm435_vm3, %v428_v33  ;;  %v292_v40 = vadd.f32 %v274_v36, %v229_v57  ;;  %v293_v41 = vadd.f32 %v276_v37, %v230_v16  ;;  %v336_v42 = vsel %vm327_vm1, %v333_v49, %v335_v34  ;;  %v338_v43 = vsel %vm327_vm1, %v335_v34, %v337_v26 }
  0xa5   : > { %v395_v44 = vsel %vm386_vm2, %v392_v50, %v394_v38  ;;  %v397_v51 = vsel %vm386_vm2, %v394_v38, %v396_v29  ;;  %v375_v53 = vmul.f32 %v586_v23, %v220_v18  ;;  %v255_v54 = vmul.f32 %v582_v21, %v215_v19 }
  0xa6   : > { %v356_v47 = vadd.f32 %v336_v42, %v292_v40  ;;  %v357_v48 = vadd.f32 %v338_v43, %v293_v41  ;;  %v315_v55 = vmul.f32 %v584_v22, %v215_v19  ;;  %v374_v49 = vmul.f32 %v586_v23, %v215_v19 }
  0xa7   : > { %v233_v50 = vmul.f32 %v588_v24, %v220_v18  ;;  %v317_v58 = vmul.f32 %v584_v22, %v303_v46  ;;  %v341_v59 = vrot.slane %v316_v45, 2  ;;  %v277_v60 = vrot.slane %v255_v54, 1 }
  0xa8   : > { %v415_v56 = vadd.f32 %v395_v44, %v356_v47  ;;  %v416_v57 = vadd.f32 %v397_v51, %v357_v48  ;;  %v339_v61 = vrot.slane %v315_v55, 2  ;;  %v376_v62 = vmul.f32 %v586_v23, %v303_v46 }
  0xa9   : > { %v232_v0 = vmul.f32 %v588_v24, %v215_v19  ;;  %v343_v1 = vrot.slane %v317_v58, 2  ;;  %v400_v2 = vrot.slane %v375_v53, 3  ;;  %v278_v3 = vsel %vm265_vm0, %v275_v15, %v277_v60 }
  0xaa   : > { %v430_v63 = vadd.f32 %v630_v9, %v415_v56  ;;  %v431_v21 = vadd.f32 %v630_v9, %v416_v57  ;;  %v280_v4 = vsel %vm265_vm0, %v277_v60, %v279_v52  ;;  %v398_v5 = vrot.slane %v374_v49, 3 }
  0xab   : > { %v296_v22 = vadd.f32 %v279_v52, %v233_v50  ;;  %v294_v6 = vadd.f32 %v278_v3, %v231_v39  ;;  %v295_v23 = vadd.f32 %v280_v4, %v232_v0  ;;  %v340_v7 = vsel %vm327_vm1, %v337_v26, %v339_v61 }
  0xac   : > { %439 = vst.msk [vmem:[%s642_s4 + $0x18] sm:$0xff] %vm435_vm3, %v430_v63  ;;  %440 = vst.msk [vmem:[%s642_s4 + $0x20] sm:$0xff] %vm435_vm3, %v431_v21  ;;  %v342_v8 = vsel %vm327_vm1, %v339_v61, %v341_v59  ;;  %v344_v24 = vsel %vm327_vm1, %v341_v59, %v343_v1  ;;  %v402_v10 = vrot.slane %v376_v62, 3  ;;  %v399_v14 = vsel %vm386_vm2, %v396_v29, %v398_v5 }
  0xad   : > { %v358_v11 = vadd.f32 %v340_v7, %v294_v6  ;;  %v359_v12 = vadd.f32 %v342_v8, %v295_v23  ;;  %v360_v13 = vadd.f32 %v344_v24, %v296_v22  ;;  %v401_v15 = vsel %vm386_vm2, %v398_v5, %v400_v2 }
  0xae   : > { %v403_v16 = vsel %vm386_vm2, %v400_v2, %v402_v10 }
  0xaf   : > { %v417_v17 = vadd.f32 %v399_v14, %v358_v11  ;;  %v418_v18 = vadd.f32 %v401_v15, %v359_v12  ;;  %v419_v19 = vadd.f32 %v403_v16, %v360_v13 }
  0xb1   : > { %v432_v20 = vadd.f32 %v630_v9, %v417_v17  ;;  %v433_v25 = vadd.f32 %v630_v9, %v418_v18  ;;  %v434_v26 = vadd.f32 %v630_v9, %v419_v19 }
  0xb3   : > { %441 = vst.msk [vmem:[%s642_s4 + $0x28] sm:$0xff] %vm435_vm3, %v432_v20  ;;  %442 = vst.msk [vmem:[%s642_s4 + $0x30] sm:$0xff] %vm435_vm3, %v433_v25 }
  0xb4   : > { %444 = vst.msk [vmem:[%s642_s4 + $0x38] sm:$0x7f] %vm443_vm4, %v434_v26 }
  0xb5 PF: > { %s13_s12 = sadd.s32 1, %s533_s12  }
  0xb6   : > { %p10_p4 = scmp.ge.s32.totalorder %s13_s12, 4  }
  0xb8   :  { %12 = sbr.rel (!%p10_p4) target bundleno = 1 (0x1), region = 65 }

// kernel: generator_nsf_forward.10
= control target key start
LH: loop header
LB: loop body
LE: loop exit
PB: predicated region body
PF: predicated region fallthrough
CT: control target
= control target key end

     0   :  { %s316_s12 = smov 0   ;;  %s339_s0 = inlined_call_operand.vmem [shape: f32[2,1,8], index: 0, kind: input, shape index: {}]   ;;  %s340_s1 = inlined_call_operand.vmem [shape: bf16[1,8,16], index: 1, kind: input, shape index: {}]   ;;  %s341_s2 = inlined_call_operand.vmem [shape: f32[1,16], index: 2, kind: input, shape index: {}]   ;;  %s342_s3 = inlined_call_operand.vmem [shape: f32[2,1,16], index: 3, kind: output, shape index: {}]  }
   0x1 LB: > { %s260_s13 = sadd.s32 4294967295, %s292_s12   ;;  %p264_p0 = scmp.ge.s32.totalorder %s292_s12, 1  ;;  %s292_s12 = sphi %s316_s12, %s13_s12  }
   0x2   : > { %p135_p1 = scmp.lt.s32.totalorder %s292_s12, 3 }
   0x4   : > { %p136_p2 = pnand %p264_p0, %p135_p1 }
   0x5   : > { %v164_v0 = vld [vmem:[%s340_s1] sm:$0xf] (!%p136_p2)  ;;  %vm170_vm0 = vcmask (!%p136_p2), 1043456   ;;  %p155_p3 = scmp.lt.s32.totalorder (!%p136_p2), %s260_s13, 1  ;;  %v294_v1 = vmov (!%p136_p2), 0.0   ;;  %vm295_vm1 = vmmov (!%p136_p2), 0  }
   0x6   : > { %139 = sbr.rel (%p136_p2) target bundleno = 233 (0xe9), region = 32  ;;  %270 = vmatprep.subr.bf16.mxu0 (!%p136_p2), %v294_v1  ;;  %v172_v2 = vsel (!%p136_p2), %vm170_vm0, %v164_v0, 0  ;;  %272 = vmatprep.mubr.msk.bf16.mxu0 (!%p136_p2), %vm295_vm1, %v294_v1  ;;  %vm166_vm2 = vcmask (!%p136_p2), 64512   ;;  %v165_v5 = vld [vmem:[%s341_s2] sm:$0x1] (!%p136_p2)  ;;  %vm214_vm3 = vcmask (!%p136_p2), 122880  }
   0x7   : > { %271 = vmatpush3.bf16.msra.mxu0 (!%p136_p2), %v172_v2 }
   0xd   : > { %s344_s13 = smov (!%p155_p3, %s260_s13), 1 }
   0xe   : > { %s157_s18 = scalar_lea.vmem %s339_s0, %s344_s13  ;;  %s160_s23 = scalar_lea.vmem %s342_s3, %s344_s13 }
   0xf   : > { %v162_v3 = vld [vmem:[%s157_s18] sm:$0x1] }
  0x10   : > { %v163_v4 = vpack.c.bf16 %v162_v3, %v162_v3 }
  0x12   : > { %273 = vmatmul.mubr.msk.bf16.vlgmr.msra.gmra.mrb[0].mxu0 %vm166_vm2, %v163_v4 }
  0xe5   : > { %v208_v6 = vpop.f32.mrb[0].mxu0 }
  0xe6   : > { %v209_v7 = vadd.f32 %v208_v6, %v165_v5  ;;  %v274_v8 = vpop.f32.mrb[1].mxu0 }
  0xe7   : > { %v211_v9 = vpop.f32.mrb[2].mxu0 }
  0xe8   : > { %215 = vst.msk [vmem:[%s160_s23] sm:$0x1] %vm214_vm3, %v209_v7  ;;  %v275_v10 = vpop.f32.mrb[3].mxu0 }
  0xe9 PF: > { %s13_s12 = sadd.s32 1, %s292_s12  }
  0xea   : > { %p10_p4 = scmp.ge.s32.totalorder %s13_s12, 4  }
  0xec   :  { %12 = sbr.rel (!%p10_p4) target bundleno = 1 (0x1), region = 62 }

// kernel: generator_nsf_forward.11
= control target key start
LH: loop header
LB: loop body
LE: loop exit
PB: predicated region body
PF: predicated region fallthrough
CT: control target
= control target key end

     0   :  { %s829_s15 = smov 0   ;;  %s928_s0 = inlined_call_operand.vmem [shape: f32[2,22,8], index: 0, kind: input, shape index: {}]   ;;  %s929_s1 = inlined_call_operand.vmem [shape: bf16[7,8,16], index: 1, kind: input, shape index: {}]   ;;  %s930_s2 = inlined_call_operand.vmem [shape: f32[1,16], index: 2, kind: input, shape index: {}]   ;;  %s931_s3 = inlined_call_operand.vmem [shape: f32[2,1,16], index: 3, kind: input, shape index: {}]   ;;  %s932_s4 = inlined_call_operand.vmem [shape: f32[2,16,16], index: 4, kind: output, shape index: {}]  }
   0x1 LB: > { %s701_s16 = sadd.s32 4294967295, %s800_s15   ;;  %p705_p0 = scmp.ge.s32.totalorder %s800_s15, 1  ;;  %s800_s15 = sphi %s829_s15, %s14_s15  }
   0x2   : > { %p170_p1 = scmp.lt.s32.totalorder %s800_s15, 3 }
   0x4   : > { %p171_p2 = pnand %p705_p0, %p170_p1 }
   0x5   : > { %v709_v0 = vld [vmem:[%s929_s1 + $0x4] sm:$0xf] (!%p171_p2)  ;;  %vm238_vm0 = vcmask (!%p171_p2), 1043456   ;;  %v217_v1 = vld [vmem:[%s929_s1] sm:$0xf] (!%p171_p2)  ;;  %v802_v2 = vmov (!%p171_p2), 0.0  }
   0x6   : > { %174 = sbr.rel (%p171_p2) target bundleno = 272 (0x110), region = 36  ;;  %741 = vmatprep.subr.bf16.mxu0 (!%p171_p2), %v802_v2  ;;  %v240_v3 = vsel (!%p171_p2), %vm238_vm0, %v709_v0, 0  ;;  %747 = vmatprep.subr.bf16.mxu1 (!%p171_p2), %v802_v2  ;;  %v286_v4 = vsel (!%p171_p2), %vm238_vm0, %v217_v1, 0  ;;  %p199_p3 = scmp.lt.s32.totalorder (!%p171_p2), %s701_s16, 1  ;;  %vm803_vm1 = vmmov (!%p171_p2), 0   ;;  %vm234_vm2 = vcmask (!%p171_p2), 64512  }
   0x7   : > { %742 = vmatpush3.bf16.msra.mxu0 (!%p171_p2), %v240_v3  ;;  %748 = vmatpush3.bf16.msra.mxu1 (!%p171_p2), %v286_v4  ;;  %v714_v5 = vld [vmem:[%s929_s1 + $0xc] sm:$0xf] (!%p171_p2)  ;;  %v712_v18 = vld [vmem:[%s929_s1 + $0x8] sm:$0xf] (!%p171_p2)  ;;  %vm221_vm3 = vsmask.f32 (!%p171_p2), 7424 }
   0x8   : > { %743 = vmatprep.mubr.msk.bf16.mxu0 (!%p171_p2), %vm803_vm1, %v802_v2  ;;  %749 = vmatprep.mubr.msk.bf16.mxu1 (!%p171_p2), %vm803_vm1, %v802_v2  ;;  %v402_v11 = vsel (!%p171_p2), %vm238_vm0, %v714_v5, 0  ;;  %vm388_vm4 = vsmask.f32 (!%p171_p2), 6400  ;;  %v718_v25 = vld [vmem:[%s929_s1 + $0x14] sm:$0xf] (!%p171_p2)  ;;  %v341_v26 = vsel (!%p171_p2), %vm238_vm0, %v712_v18, 0 }
   0x9   : > { %753 = vmatprep.subr.bf16.mxu0 (!%p171_p2), %v802_v2  ;;  %759 = vmatprep.subr.bf16.mxu1 (!%p171_p2), %v802_v2  ;;  %v516_v34 = vsel (!%p171_p2), %vm238_vm0, %v718_v25, 0  ;;  %vm333_vm5 = vcmask (!%p171_p2), 1046528   ;;  %v716_v37 = vld [vmem:[%s929_s1 + $0x10] sm:$0xf] (!%p171_p2)  ;;  %vm504_vm6 = vsmask.f32 (!%p171_p2), 5376 }
   0xa   : > { %v457_v41 = vsel (!%p171_p2), %vm238_vm0, %v716_v37, 0  ;;  %vm449_vm7 = vcmask (!%p171_p2), 1045504   ;;  %v720_v45 = vld [vmem:[%s929_s1 + $0x18] sm:$0xf] (!%p171_p2)  ;;  %vm563_vm8 = vcmask (!%p171_p2), 1044480   ;;  %vm634_vm9 = vcmask (!%p171_p2), 130048  }
   0xb   : > { %v571_v47 = vsel (!%p171_p2), %vm238_vm0, %v720_v45, 0 }
   0xd   : > { %s934_s16 = smov (!%p199_p3, %s701_s16), 1 }
   0xe   : > { %s783_s21 = smul.u32 24, %s934_s16  ;;  %s206_s11 = scalar_lea.vmem %s931_s3, %s934_s16 }
   0xf   : > { %s726_s14 = sshll.u32 %s934_s16, 4  ;;  %v723_v25 = vld [vmem:[%s206_s11] ss:$0 sm:$0xff] }
  0x10   : > { %s203_s26 = scalar_lea.vmem %s928_s0, %s783_s21  ;;  %s211_s19 = scalar_lea.vmem %s932_s4, %s726_s14 }
  0x11   : > { %v213_v6 = vld [vmem:[%s203_s26] sm:$0xff]  ;;  %v214_v7 = vld [vmem:[%s203_s26 + $0x8] sm:$0xff]  ;;  %v215_v8 = vld [vmem:[%s203_s26 + $0x10] sm:$0x3f] }
  0x12   : > { %v862_v9 = vpack.c.bf16 %v214_v7, %v213_v6  ;;  %v864_v10 = vpack.c.bf16 %v215_v8, %v215_v8 }
  0x14   : > { %v223_v12 = vshrl.u32 %v862_v9, 16  ;;  %v225_v13 = vshll.u32 %v862_v9, 16  ;;  %v230_v14 = vshll.u32 %v864_v10, 16  ;;  %750 = vmatmul.mubr.msk.bf16.vlgmr.msra.gmra.mrb[0].mxu1 %vm234_vm2, %v862_v9  ;;  %v392_v15 = vshrl.u32 %v864_v10, 16 }
  0x15   : > { %760 = vmatpush3.bf16.msra.mxu1 %v402_v11  ;;  %761 = vmatprep.mubr.msk.bf16.mxu1 %vm803_vm1, %v802_v2  ;;  %v334_v35 = vrot.slane %v862_v9, 1  ;;  %v335_v36 = vrot.slane %v864_v10, 1  ;;  %v450_v43 = vrot.slane %v862_v9, 2  ;;  %v451_v44 = vrot.slane %v864_v10, 2 }
  0x16   : > { %v227_v16 = vrot.slane %v225_v13, 1  ;;  %v232_v17 = vrot.slane %v230_v14, 1  ;;  %v389_v19 = vrot.slane %v223_v12, 1  ;;  %v390_v20 = vrot.slane %v225_v13, 2  ;;  %771 = vmatprep.subr.bf16.mxu1 %v802_v2 }
  0x17   : > { %v394_v21 = vrot.slane %v392_v15, 1  ;;  %v395_v22 = vrot.slane %v230_v14, 2  ;;  %v505_v28 = vrot.slane %v223_v12, 2  ;;  %v506_v30 = vrot.slane %v225_v13, 3 }
  0x18   : > { %v228_v23 = vor.u32 %v227_v16, %v223_v12  ;;  %v391_v24 = vor.u32 %v390_v20, %v389_v19  ;;  %v508_v31 = vrot.slane %v392_v15, 2  ;;  %v509_v32 = vrot.slane %v230_v14, 3 }
  0x19   : > { %v396_v27 = vor.u32 %v395_v22, %v394_v21  ;;  %v507_v38 = vor.u32 %v506_v30, %v505_v28  ;;  %v336_v40 = vsel %vm333_vm5, %v334_v35, %v335_v36  ;;  %v452_v46 = vsel %vm449_vm7, %v450_v43, %v451_v44  ;;  %v722_v22 = vld [vmem:[%s930_s2] ss:$0 sm:$0xff] }
  0x1a   : > { %v233_v29 = vsel %vm221_vm3, %v228_v23, %v232_v17  ;;  %v510_v39 = vor.u32 %v509_v32, %v508_v31  ;;  %v564_v48 = vrot.slane %v862_v9, 3  ;;  %v565_v49 = vrot.slane %v864_v10, 3 }
  0x1b   : > { %744 = vmatmul.mubr.msk.bf16.vlgmr.msra.gmra.mrb[0].mxu0 %vm234_vm2, %v233_v29  ;;  %v397_v33 = vsel %vm388_vm4, %v391_v24, %v396_v27 }
  0x1c   : > { %754 = vmatpush3.bf16.msra.mxu0 %v341_v26  ;;  %755 = vmatprep.mubr.msk.bf16.mxu0 %vm803_vm1, %v802_v2  ;;  %v511_v42 = vsel %vm504_vm6, %v507_v38, %v510_v39  ;;  %v566_v50 = vsel %vm563_vm8, %v564_v48, %v565_v49 }
  0x1d   : > { %765 = vmatprep.subr.bf16.mxu0 %v802_v2  ;;  %762 = vmatmul.mubr.msk.bf16.vlgmr.msra.gmra.mrb[4].mxu1 %vm234_vm2, %v397_v33 }
  0x1e   : > { %772 = vmatpush3.bf16.msra.mxu1 %v516_v34  ;;  %773 = vmatprep.mubr.msk.bf16.mxu1 %vm803_vm1, %v802_v2 }
  0x23   : > { %756 = vmatmul.mubr.msk.bf16.vlgmr.msra.gmra.mrb[4].mxu0 %vm234_vm2, %v336_v40 }
  0x24   : > { %766 = vmatpush3.bf16.msra.mxu0 %v457_v41  ;;  %767 = vmatprep.mubr.msk.bf16.mxu0 %vm803_vm1, %v802_v2 }
  0x25   : > { %777 = vmatprep.subr.bf16.mxu0 %v802_v2  ;;  %774 = vmatmul.mubr.msk.bf16.vlgmr.msra.gmra.mrb[8].mxu1 %vm234_vm2, %v511_v42 }
  0x2b   : > { %768 = vmatmul.mubr.msk.bf16.vlgmr.msra.gmra.mrb[8].mxu0 %vm234_vm2, %v452_v46 }
  0x2c   : > { %778 = vmatpush3.bf16.msra.mxu0 %v571_v47  ;;  %779 = vmatprep.mubr.msk.bf16.mxu0 %vm803_vm1, %v802_v2 }
  0x33   : > { %780 = vmatmul.mubr.msk.bf16.vlgmr.msra.gmra.mrb[12].mxu0 %vm234_vm2, %v566_v50 }
  0xe7   : > { %v322_v51 = vpop.f32.mrb[0].mxu1 }
  0xe8   : > { %v751_v52 = vpop.f32.mrb[1].mxu1 }
  0xe9   : > { %v325_v53 = vpop.f32.mrb[2].mxu1 }
  0xea   : > { %v752_v54 = vpop.f32.mrb[3].mxu1 }
  0xee   : > { %v276_v55 = vpop.f32.mrb[0].mxu0 }
  0xef   : > { %v323_v56 = vadd.f32 %v322_v51, %v276_v55  ;;  %v745_v57 = vpop.f32.mrb[1].mxu0 }
  0xf0   : > { %v279_v58 = vpop.f32.mrb[2].mxu0  ;;  %v438_v59 = vpop.f32.mrb[4].mxu1 }
  0xf1   : > { %v326_v60 = vadd.f32 %v325_v53, %v279_v58  ;;  %v746_v61 = vpop.f32.mrb[3].mxu0  ;;  %v763_v62 = vpop.f32.mrb[5].mxu1 }
  0xf2   : > { %v441_v63 = vpop.f32.mrb[6].mxu1 }
  0xf3   : > { %v764_v0 = vpop.f32.mrb[7].mxu1 }
  0xf6   : > { %v377_v1 = vpop.f32.mrb[4].mxu0 }
  0xf7   : > { %v384_v2 = vadd.f32 %v377_v1, %v323_v56  ;;  %v757_v3 = vpop.f32.mrb[5].mxu0 }
  0xf8   : > { %v380_v4 = vpop.f32.mrb[6].mxu0  ;;  %v552_v5 = vpop.f32.mrb[8].mxu1 }
  0xf9   : > { %v385_v6 = vadd.f32 %v380_v4, %v326_v60  ;;  %v445_v7 = vadd.f32 %v438_v59, %v384_v2  ;;  %v758_v8 = vpop.f32.mrb[7].mxu0  ;;  %v775_v9 = vpop.f32.mrb[9].mxu1 }
  0xfa   : > { %v555_v10 = vpop.f32.mrb[10].mxu1 }
  0xfb   : > { %v446_v11 = vadd.f32 %v441_v63, %v385_v6  ;;  %v776_v12 = vpop.f32.mrb[11].mxu1 }
  0xfe   : > { %v493_v13 = vpop.f32.mrb[8].mxu0 }
  0xff   : > { %v500_v14 = vadd.f32 %v493_v13, %v445_v7  ;;  %v769_v15 = vpop.f32.mrb[9].mxu0 }
 0x100   : > { %v496_v16 = vpop.f32.mrb[10].mxu0 }
 0x101   : > { %v501_v17 = vadd.f32 %v496_v16, %v446_v11  ;;  %v559_v18 = vadd.f32 %v552_v5, %v500_v14  ;;  %v770_v19 = vpop.f32.mrb[11].mxu0 }
 0x103   : > { %v560_v20 = vadd.f32 %v555_v10, %v501_v17 }
 0x106   : > { %v607_v21 = vpop.f32.mrb[12].mxu0 }
 0x107   : > { %v614_v23 = vadd.f32 %v607_v21, %v559_v18  ;;  %v781_v24 = vpop.f32.mrb[13].mxu0 }
 0x108   : > { %v610_v26 = vpop.f32.mrb[14].mxu0 }
 0x109   : > { %v623_v27 = vadd.f32 %v722_v22, %v614_v23  ;;  %v615_v28 = vadd.f32 %v610_v26, %v560_v20  ;;  %v782_v29 = vpop.f32.mrb[15].mxu0 }
 0x10b   : > { %v632_v30 = vadd.f32 %v723_v25, %v623_v27  ;;  %v624_v31 = vadd.f32 %v722_v22, %v615_v28 }
 0x10d   : > { %635 = vst.msk [vmem:[%s211_s19] sm:$0xff] %vm634_vm9, %v632_v30  ;;  %v633_v32 = vadd.f32 %v723_v25, %v624_v31 }
 0x10f   : > { %636 = vst.msk [vmem:[%s211_s19 + $0x8] sm:$0xff] %vm634_vm9, %v633_v32 }
 0x110 PF: > { %s14_s15 = sadd.s32 1, %s800_s15  }
 0x111   : > { %p11_p4 = scmp.ge.s32.totalorder %s14_s15, 4  }
 0x113   :  { %13 = sbr.rel (!%p11_p4) target bundleno = 1 (0x1), region = 75 }

// kernel: generator_nsf_forward.14
= control target key start
LH: loop header
LB: loop body
LE: loop exit
PB: predicated region body
PF: predicated region fallthrough
CT: control target
= control target key end

     0   :  { %s766_s15 = smov 0   ;;  %s821_s0 = inlined_call_operand.vmem [shape: f32[2,35,16], index: 0, kind: input, shape index: {}]   ;;  %s822_s1 = inlined_call_operand.vmem [shape: bf16[4,16,8], index: 1, kind: input, shape index: {}]   ;;  %s823_s2 = inlined_call_operand.vmem [shape: f32[1,8], index: 2, kind: input, shape index: {}]   ;;  %s824_s3 = inlined_call_operand.vmem [shape: f32[2,32,8], index: 3, kind: input, shape index: {}]   ;;  %s825_s4 = inlined_call_operand.vmem [shape: f32[2,32,8], index: 4, kind: output, shape index: {}]  }
   0x1 LB: > { %s639_s16 = sadd.s32 4294967295, %s739_s15   ;;  %p643_p0 = scmp.ge.s32.totalorder %s739_s15, 1  ;;  %s739_s15 = sphi %s766_s15, %s14_s15  }
   0x2   : > { %p172_p1 = scmp.lt.s32.totalorder %s739_s15, 3 }
   0x4   : > { %p173_p2 = pnand %p643_p0, %p172_p1 }
   0x5   : > { %v729_v0 = vld [vmem:[%s822_s1 + $0x10] sm:$0xff] (!%p173_p2)   ;;  %p203_p3 = scmp.lt.s32.totalorder (!%p173_p2), %s639_s16, 1  ;;  %v730_v1 = vld [vmem:[%s822_s1 + $0x8] sm:$0xff] (!%p173_p2)   ;;  %v785_v2 = vld [vmem:[%s822_s1] sm:$0xff] (!%p173_p2)   ;;  %vm274_vm5 = vcmask (!%p173_p2), 130048   ;;  %vm395_vm6 = vcmask (!%p173_p2), 1046528  }
   0x6   : > { %176 = sbr.rel (%p173_p2) target bundleno = 266 (0x10a), region = 36  ;;  %696 = vmatprep.subr.bf16.mxu0 (!%p173_p2), %v729_v0  ;;  %684 = vmatprep.subr.bf16.mxu1 (!%p173_p2), %v730_v1  ;;  %v732_v3 = vld [vmem:[%s822_s1 + $0x18] sm:$0xff] (!%p173_p2)   ;;  %vm247_vm7 = vsmask.f32 (!%p173_p2), 7424  ;;  %vm469_vm8 = vsmask.f32 (!%p173_p2), 6400 }
   0x7   : > { %697 = vmatpush3.bf16.msra.mxu0 (!%p173_p2), %v729_v0  ;;  %685 = vmatpush3.bf16.msra.mxu1 (!%p173_p2), %v730_v1  ;;  %v667_v56 = vld [vmem:[%s823_s2] ss:$0 sm:$0xff] (!%p173_p2)  ;;  %vm567_vm9 = vcmask (!%p173_p2), 64512  }
   0x8   : > { %690 = vmatprep.subr.bf16.mxu1 (!%p173_p2), %v785_v2  ;;  %702 = vmatprep.subr.bf16.mxu0 (!%p173_p2), %v732_v3 }
   0xd   : > { %s827_s16 = smov (!%p203_p3, %s639_s16), 1 }
   0xe   : > { %s720_s23 = smul.u32 40, %s827_s16  ;;  %s670_s29 = sshll.u32 %s827_s16, 5 }
   0xf   : > { %s212_s6 = scalar_lea.vmem %s824_s3, %s670_s29  ;;  %s217_s11 = scalar_lea.vmem %s825_s4, %s670_s29 }
  0x10   : > { %s207_s28 = scalar_lea.vmem %s821_s0, %s720_s23  ;;  %v561_v59 = vld [vmem:[%s212_s6 + $0x10] sm:$0xff]  ;;  %v559_v63 = vld [vmem:[%s212_s6] sm:$0xff] }
  0x11   : > { %v219_v4 = vld [vmem:[%s207_s28] sm:$0xff]  ;;  %v220_v5 = vld [vmem:[%s207_s28 + $0x8] sm:$0xff]  ;;  %v221_v6 = vld [vmem:[%s207_s28 + $0x10] sm:$0xff] }
  0x12   : > { %v222_v7 = vld [vmem:[%s207_s28 + $0x18] sm:$0xff]  ;;  %vm224_vm0 = vcmp.ge.f32.partialorder %v219_v4, 0.0  ;;  %vm225_vm1 = vcmp.ge.f32.partialorder %v220_v5, 0.0  ;;  %vm226_vm2 = vcmp.ge.f32.partialorder %v221_v6, 0.0  ;;  %v229_v8 = vmul.f32 0.1, %v219_v4 }
  0x13   : > { %vm227_vm3 = vcmp.ge.f32.partialorder %v222_v7, 0.0  ;;  %v230_v9 = vmul.f32 0.1, %v220_v5  ;;  %v231_v10 = vmul.f32 0.1, %v221_v6 }
  0x14   : > { %v232_v11 = vmul.f32 0.1, %v222_v7  ;;  %v234_v12 = vsel %vm224_vm0, %v219_v4, %v229_v8  ;;  %v223_v13 = vld [vmem:[%s207_s28 + $0x20] sm:$0x7] }
  0x15   : > { %v235_v14 = vsel %vm225_vm1, %v220_v5, %v230_v9  ;;  %v236_v15 = vsel %vm226_vm2, %v221_v6, %v231_v10  ;;  %vm228_vm4 = vcmp.ge.f32.partialorder %v223_v13, 0.0  ;;  %v233_v16 = vmul.f32 0.1, %v223_v13 }
  0x16   : > { %v237_v17 = vsel %vm227_vm3, %v222_v7, %v232_v11  ;;  %v239_v18 = vpack.c.bf16 %v235_v14, %v234_v12  ;;  %v560_v7 = vld [vmem:[%s212_s6 + $0x8] sm:$0xff] }
  0x17   : > { %v240_v19 = vpack.c.bf16 %v237_v17, %v236_v15  ;;  %v238_v20 = vsel %vm228_vm4, %v223_v13, %v233_v16 }
  0x18   : > { %v396_v21 = vrot.slane %v239_v18, 1  ;;  %v243_v22 = vpack.c.bf16 %v238_v20, %v238_v20  ;;  %v249_v23 = vshrl.u32 %v239_v18, 16  ;;  %v251_v24 = vshll.u32 %v239_v18, 16 }
  0x19   : > { %v397_v25 = vrot.slane %v240_v19, 1  ;;  %v256_v26 = vshll.u32 %v240_v19, 16  ;;  %v260_v27 = vshrl.u32 %v240_v19, 16 }
  0x1a   : > { %v399_v28 = vrot.slane %v243_v22, 1  ;;  %v253_v29 = vrot.slane %v251_v24, 1  ;;  %v470_v30 = vrot.slane %v249_v23, 1  ;;  %v264_v31 = vshll.u32 %v243_v22, 16 }
  0x1b   : > { %v398_v32 = vsel %vm395_vm6, %v396_v21, %v397_v25  ;;  %v258_v33 = vrot.slane %v256_v26, 1  ;;  %v474_v34 = vrot.slane %v256_v26, 2  ;;  %v471_v35 = vrot.slane %v251_v24, 2 }
  0x1c   : > { %698 = vmatprep.mubr.msk.bf16.mxu0 %vm274_vm5, %v398_v32  ;;  %v400_v36 = vsel %vm395_vm6, %v397_v25, %v399_v28  ;;  %v254_v37 = vor.u32 %v253_v29, %v249_v23  ;;  %v266_v38 = vrot.slane %v264_v31, 1  ;;  %v473_v41 = vrot.slane %v260_v27, 1 }
  0x1d   : > { %699 = vmatmul.mubr.msk.bf16.vlgmr.msra.gmra.mrb[0].mxu0 %vm274_vm5, %v400_v36  ;;  %v262_v39 = vor.u32 %v260_v27, %v258_v33  ;;  %v472_v40 = vor.u32 %v471_v35, %v470_v30  ;;  %v477_v42 = vshrl.u32 %v243_v22, 16  ;;  %v480_v44 = vrot.slane %v264_v31, 2 }
  0x1e   : > { %v259_v43 = vsel %vm247_vm7, %v254_v37, %v258_v33  ;;  %703 = vmatpush3.bf16.msra.mxu0 %v732_v3  ;;  %v475_v46 = vor.u32 %v474_v34, %v473_v41  ;;  %v562_v3 = vld [vmem:[%s212_s6 + $0x18] sm:$0xff] }
  0x1f   : > { %686 = vmatprep.mubr.msk.bf16.mxu1 %vm274_vm5, %v259_v43  ;;  %v267_v45 = vsel %vm247_vm7, %v262_v39, %v266_v38  ;;  %v479_v47 = vrot.slane %v477_v42, 1 }
  0x20   : > { %687 = vmatmul.mubr.msk.bf16.vlgmr.msra.gmra.mrb[0].mxu1 %vm274_vm5, %v267_v45  ;;  %v476_v48 = vsel %vm469_vm8, %v472_v40, %v475_v46 }
  0x21   : > { %691 = vmatpush3.bf16.msra.mxu1 %v785_v2  ;;  %692 = vmatprep.mubr.msk.bf16.mxu1 %vm274_vm5, %v239_v18  ;;  %v481_v49 = vor.u32 %v480_v44, %v479_v47 }
  0x22   : > { %704 = vmatprep.mubr.msk.bf16.mxu0 %vm274_vm5, %v476_v48 }
  0x23   : > { %v482_v50 = vsel %vm469_vm8, %v475_v46, %v481_v49 }
  0x29   : > { %705 = vmatmul.mubr.msk.bf16.vlgmr.msra.gmra.mrb[0].mxu0 %vm274_vm5, %v482_v50 }
  0x2c   : > { %693 = vmatmul.mubr.msk.bf16.vlgmr.msra.gmra.mrb[0].mxu1 %vm274_vm5, %v240_v19 }
  0xfc   : > { %v706_v51 = vpop.f32.mrb[0].mxu0 }
  0xfd   : > { %v529_v52 = vpop.f32.mrb[1].mxu0 }
  0xfe   : > { %v707_v53 = vpop.f32.mrb[2].mxu0 }
  0xff   : > { %v532_v54 = vpop.f32.mrb[3].mxu0  ;;  %v694_v55 = vpop.f32.mrb[0].mxu1 }
 0x100   : > { %v708_v57 = vadd.f32 %v706_v51, %v694_v55  ;;  %v374_v58 = vpop.f32.mrb[1].mxu1 }
 0x101   : > { %v709_v60 = vadd.f32 %v529_v52, %v374_v58  ;;  %v695_v61 = vpop.f32.mrb[2].mxu1 }
 0x102   : > { %v557_v62 = vadd.f32 %v708_v57, %v667_v56  ;;  %v710_v0 = vadd.f32 %v707_v53, %v695_v61  ;;  %v377_v1 = vpop.f32.mrb[3].mxu1 }
 0x103   : > { %v555_v2 = vadd.f32 %v709_v60, %v667_v56  ;;  %v711_v4 = vadd.f32 %v532_v54, %v377_v1 }
 0x104   : > { %v565_v5 = vadd.f32 %v561_v59, %v557_v62  ;;  %v558_v6 = vadd.f32 %v710_v0, %v667_v56 }
 0x105   : > { %v563_v8 = vadd.f32 %v559_v63, %v555_v2  ;;  %v556_v9 = vadd.f32 %v711_v4, %v667_v56 }
 0x106   : > { %570 = vst.msk [vmem:[%s217_s11 + $0x10] sm:$0xff] %vm567_vm9, %v565_v5  ;;  %v566_v10 = vadd.f32 %v562_v3, %v558_v6 }
 0x107   : > { %568 = vst.msk [vmem:[%s217_s11] sm:$0xff] %vm567_vm9, %v563_v8  ;;  %v564_v11 = vadd.f32 %v560_v7, %v556_v9 }
 0x108   : > { %571 = vst.msk [vmem:[%s217_s11 + $0x18] sm:$0xff] %vm567_vm9, %v566_v10 }
 0x109   : > { %569 = vst.msk [vmem:[%s217_s11 + $0x8] sm:$0xff] %vm567_vm9, %v564_v11 }
 0x10a PF: > { %s14_s15 = sadd.s32 1, %s739_s15  }
 0x10b   : > { %p11_p4 = scmp.ge.s32.totalorder %s14_s15, 4  }
 0x10d   :  { %13 = sbr.rel (!%p11_p4) target bundleno = 1 (0x1), region = 72 }

// kernel: generator_nsf_forward.16
= control target key start
LH: loop header
LB: loop body
LE: loop exit
PB: predicated region body
PF: predicated region fallthrough
CT: control target
= control target key end

     0   :  { %s374_s12 = smov 0   ;;  %s412_s0 = inlined_call_operand.vmem [shape: f32[2,64,1], index: 0, kind: input, shape index: {}]   ;;  %s413_s1 = inlined_call_operand.vmem [shape: bf16[1,1,4], index: 1, kind: input, shape index: {}]   ;;  %s414_s2 = inlined_call_operand.vmem [shape: f32[1,4], index: 2, kind: input, shape index: {}]   ;;  %s415_s3 = inlined_call_operand.vmem [shape: f32[2,64,4], index: 3, kind: output, shape index: {}]  }
   0x1 LB: > { %s320_s13 = sadd.s32 4294967295, %s351_s12   ;;  %p324_p0 = scmp.ge.s32.totalorder %s351_s12, 1  ;;  %s351_s12 = sphi %s374_s12, %s13_s12  }
   0x2   : > { %p137_p1 = scmp.lt.s32.totalorder %s351_s12, 3 }
   0x4   : > { %p138_p2 = pnand %p324_p0, %p137_p1 }
   0x5   : > { %p161_p3 = scmp.lt.s32.totalorder (!%p138_p2), %s320_s13, 1  ;;  %v353_v0 = vmov (!%p138_p2), 0   ;;  %v221_v9 = vlaneseq (!%p138_p2)  ;;  %v179_v11 = vld [vmem:[%s413_s1] sm:$0x1] (!%p138_p2)  ;;  %vm256_vm0 = vcmask (!%p138_p2), 31744  }
   0x6   : > { %141 = sbr.rel (%p138_p2) target bundleno = 162 (0xa2), region = 32  ;;  %344 = vset.pattern.permute.xlu1 (!%p138_p2), %v353_v0  ;;  %343 = vset.pattern.permute.xlu0 (!%p138_p2), %v353_v0  ;;  %v180_v12 = vunpack.c.l.bf16 (!%p138_p2), %v179_v11  ;;  %v329_v15 = vld [vmem:[%s414_s2] ss:$0 sm:$0xff] (!%p138_p2) }
   0x7   : > { %v222_v10 = vshrl.u32 (!%p138_p2), %v221_v9, 7 }
   0x9   : > { %v223_v13 = vsub.s32 (!%p138_p2), 0, %v222_v10 }
   0xb   : > { %v224_v14 = vrot.slane (!%p138_p2), %v180_v12, %v223_v13 }
   0xd   : > { %s417_s13 = smov (!%p161_p3, %s320_s13), 1 }
   0xe   : > { %s332_s14 = sshll.u32 %s417_s13, 6 }
   0xf   : > { %s165_s17 = scalar_lea.vmem %s412_s0, %s332_s14  ;;  %s170_s24 = scalar_lea.vmem %s415_s3, %s332_s14 }
  0x10   : > { %v173_v1 = vld [vmem:[%s165_s17 + $0x10] sm:$0xff]  ;;  %v171_v2 = vld [vmem:[%s165_s17] sm:$0xff]  ;;  %v174_v3 = vld [vmem:[%s165_s17 + $0x18] sm:$0xff] }
  0x11   : > { %193 = vperm.xlu1 %344, %v173_v1   ;;  %183 = vperm.xlu0 %343, %v171_v2   ;;  %v172_v4 = vld [vmem:[%s165_s17 + $0x8] sm:$0xff]  ;;  %v175_v6 = vld [vmem:[%s165_s17 + $0x20] sm:$0xff]  ;;  %v178_v7 = vld [vmem:[%s165_s17 + $0x38] sm:$0xff] }
  0x12   : > { %v176_v5 = vld [vmem:[%s165_s17 + $0x28] sm:$0xff]  ;;  %v177_v8 = vld [vmem:[%s165_s17 + $0x30] sm:$0xff] }
  0x15   : > { %198 = vperm.xlu1 %344, %v174_v3   ;;  %188 = vperm.xlu0 %343, %v172_v4  }
  0x19   : > { %208 = vperm.xlu1 %344, %v176_v5   ;;  %203 = vperm.xlu0 %343, %v175_v6  }
  0x1d   : > { %218 = vperm.xlu1 %344, %v178_v7   ;;  %213 = vperm.xlu0 %343, %v177_v8  }
  0x90   : > { %v194_v16 = vpop.permute.xlu1 %193  ;;  %v184_v17 = vpop.permute.xlu0 %183 }
  0x91   : > { %v227_v18 = vmul.f32 %v224_v14, %v194_v16  ;;  %v225_v19 = vmul.f32 %v224_v14, %v184_v17 }
  0x93   : > { %v250_v20 = vadd.f32 %v329_v15, %v227_v18  ;;  %v248_v21 = vadd.f32 %v329_v15, %v225_v19 }
  0x94   : > { %v199_v22 = vpop.permute.xlu1 %198  ;;  %v189_v23 = vpop.permute.xlu0 %188 }
  0x95   : > { %259 = vst.msk [vmem:[%s170_s24 + $0x10] sm:$0xff] %vm256_vm0, %v250_v20  ;;  %257 = vst.msk [vmem:[%s170_s24] sm:$0xff] %vm256_vm0, %v248_v21  ;;  %v228_v24 = vmul.f32 %v224_v14, %v199_v22  ;;  %v226_v25 = vmul.f32 %v224_v14, %v189_v23 }
  0x97   : > { %v251_v26 = vadd.f32 %v329_v15, %v228_v24  ;;  %v249_v27 = vadd.f32 %v329_v15, %v226_v25 }
  0x98   : > { %v209_v28 = vpop.permute.xlu1 %208  ;;  %v204_v29 = vpop.permute.xlu0 %203 }
  0x99   : > { %260 = vst.msk [vmem:[%s170_s24 + $0x18] sm:$0xff] %vm256_vm0, %v251_v26  ;;  %258 = vst.msk [vmem:[%s170_s24 + $0x8] sm:$0xff] %vm256_vm0, %v249_v27  ;;  %v230_v30 = vmul.f32 %v224_v14, %v209_v28  ;;  %v229_v31 = vmul.f32 %v224_v14, %v204_v29 }
  0x9b   : > { %v253_v32 = vadd.f32 %v329_v15, %v230_v30  ;;  %v252_v33 = vadd.f32 %v329_v15, %v229_v31 }
  0x9c   : > { %v219_v34 = vpop.permute.xlu1 %218  ;;  %v214_v35 = vpop.permute.xlu0 %213 }
  0x9d   : > { %262 = vst.msk [vmem:[%s170_s24 + $0x28] sm:$0xff] %vm256_vm0, %v253_v32  ;;  %261 = vst.msk [vmem:[%s170_s24 + $0x20] sm:$0xff] %vm256_vm0, %v252_v33  ;;  %v232_v36 = vmul.f32 %v224_v14, %v219_v34  ;;  %v231_v37 = vmul.f32 %v224_v14, %v214_v35 }
  0x9f   : > { %v255_v38 = vadd.f32 %v329_v15, %v232_v36  ;;  %v254_v39 = vadd.f32 %v329_v15, %v231_v37 }
  0xa1   : > { %264 = vst.msk [vmem:[%s170_s24 + $0x38] sm:$0xff] %vm256_vm0, %v255_v38  ;;  %263 = vst.msk [vmem:[%s170_s24 + $0x30] sm:$0xff] %vm256_vm0, %v254_v39 }
  0xa2 PF: > { %s13_s12 = sadd.s32 1, %s351_s12  }
  0xa3   : > { %p10_p4 = scmp.ge.s32.totalorder %s13_s12, 4  }
  0xa5   :  { %12 = sbr.rel (!%p10_p4) target bundleno = 1 (0x1), region = 62 }

// kernel: generator_nsf_forward.15
= control target key start
LH: loop header
LB: loop body
LE: loop exit
PB: predicated region body
PF: predicated region fallthrough
CT: control target
= control target key end

     0   :  { %s2042_s18 = smov 0   ;;  %s2336_s0 = inlined_call_operand.vmem [shape: f32[2,32,8], index: 0, kind: input, shape index: {}]   ;;  %s2337_s1 = inlined_call_operand.vmem [shape: bf16[3,3,8,8], index: 1, kind: input, shape index: {}]   ;;  %s2338_s2 = inlined_call_operand.vmem [shape: f32[3,1,8], index: 2, kind: input, shape index: {}]   ;;  %s2339_s3 = inlined_call_operand.vmem [shape: bf16[3,3,8,8], index: 3, kind: input, shape index: {}]   ;;  %s2340_s4 = inlined_call_operand.vmem [shape: f32[3,1,8], index: 4, kind: input, shape index: {}]   ;;  %s2341_s5 = inlined_call_operand.vmem [shape: f32[2,32,8], index: 5, kind: output, shape index: {}]  }
   0x1 LB: > { %s1691_s19 = sadd.s32 4294967295, %s2009_s18   ;;  %p1695_p0 = scmp.ge.s32.totalorder %s2009_s18, 1  ;;  %s2009_s18 = sphi %s2042_s18, %s15_s18  }
   0x2   : > { %p187_p1 = scmp.lt.s32.totalorder %s2009_s18, 3 }
   0x4   : > { %p188_p2 = pnand %p1695_p0, %p187_p1 }
   0x5   : > { %v1700_v0 = vld [vmem:[%s2337_s1 + $0x4] sm:$0xf] (!%p188_p2)  ;;  %vm280_vm0 = vcmask (!%p188_p2), 1043456   ;;  %p2053_p3 = scmp.lt.s32.totalorder (!%p188_p2), %s1691_s19, 1  ;;  %vm226_vm1 = vcmask (!%p188_p2), 64512   ;;  %v2011_v2 = vmov (!%p188_p2), 0.0  }
   0x6   : > { %191 = sbr.rel (%p188_p2) target bundleno = 1555 (0x613), region = 40  ;;  %1976 = vmatprep.subr.msk.bf16.mxu0 (!%p188_p2), %vm280_vm0, %v1700_v0  ;;  %v282_v1 = vsel (!%p188_p2), %vm280_vm0, %v1700_v0, 0  ;;  %227 = vst.msk [vmem:[#allocation2] sm:$0xff] (!%p188_p2), %vm226_vm1, %v2011_v2  ;;  %228 = vst.msk [vmem:[#allocation2 + $0x8] sm:$0xff] (!%p188_p2), %vm226_vm1, %v2011_v2  ;;  %v265_v3 = vld [vmem:[%s2337_s1] sm:$0xf] (!%p188_p2) }
   0x7   : > { %229 = vst.msk [vmem:[#allocation2 + $0x10] sm:$0xff] (!%p188_p2), %vm226_vm1, %v2011_v2  ;;  %230 = vst.msk [vmem:[#allocation2 + $0x18] sm:$0xff] (!%p188_p2), %vm226_vm1, %v2011_v2  ;;  %1821 = vmatpush3.bf16.msra.mxu0 (!%p188_p2), %v282_v1  ;;  %v340_v25 = vsel (!%p188_p2), %vm280_vm0, %v265_v3, 0  ;;  %v1705_v26 = vld [vmem:[%s2337_s1 + $0x8] sm:$0xf] (!%p188_p2)  ;;  %vm232_vm6 = vcmask (!%p188_p2), 58368  }
   0x8   : > { %231 = vst.msk [vmem:[#allocation2 + $0x20] sm:$0xff] (!%p188_p2), %vm226_vm1, %v2011_v2  ;;  %234 = vst.msk [vmem:[#allocation3] sm:$0xff] (!%p188_p2), %vm226_vm1, %v2011_v2  ;;  %1977 = vmatprep.subr.msk.bf16.mxu0 (!%p188_p2), %vm280_vm0, %v265_v3  ;;  %v406_v33 = vsel (!%p188_p2), %vm280_vm0, %v1705_v26, 0  ;;  %v1709_v37 = vld [vmem:[%s2339_s3 + $0x4] sm:$0xf] (!%p188_p2) }
   0x9   : > { %235 = vst.msk [vmem:[#allocation3 + $0x8] sm:$0xff] (!%p188_p2), %vm226_vm1, %v2011_v2  ;;  %236 = vst.msk [vmem:[#allocation3 + $0x10] sm:$0xff] (!%p188_p2), %vm226_vm1, %v2011_v2  ;;  %1979 = vmatprep.subr.msk.bf16.mxu1 (!%p188_p2), %vm280_vm0, %v1709_v37  ;;  %v510_v38 = vsel (!%p188_p2), %vm280_vm0, %v1709_v37, 0  ;;  %v494_v39 = vld [vmem:[%s2339_s3] sm:$0xf] (!%p188_p2) }
   0xa   : > { %237 = vst.msk [vmem:[#allocation3 + $0x18] sm:$0xff] (!%p188_p2), %vm226_vm1, %v2011_v2  ;;  %1839 = vmatpush3.bf16.msra.mxu1 (!%p188_p2), %v510_v38  ;;  %v1708_v40 = vld [vmem:[%s2338_s2] ss:$0 sm:$0xff] (!%p188_p2)  ;;  %v568_v0 = vsel (!%p188_p2), %vm280_vm0, %v494_v39, 0  ;;  %v1714_v3 = vld [vmem:[%s2339_s3 + $0x8] sm:$0xf] (!%p188_p2) }
   0xb   : > { %233 = vst.msk [vmem:[#allocation2 + $0x28] sm:$0x3] (!%p188_p2), %vm232_vm6, %v2011_v2  ;;  %238 = vst.msk [vmem:[#allocation3 + $0x20] sm:$0x3] (!%p188_p2), %vm232_vm6, %v2011_v2  ;;  %1980 = vmatprep.subr.msk.bf16.mxu1 (!%p188_p2), %vm280_vm0, %v494_v39 }
   0xd   : > { %s2344_s19 = smov (!%p2053_p3, %s1691_s19), 1 }
   0xe   : > { %s1764_s25 = sshll.u32 %s2344_s19, 5 }
   0xf   : > { %s219_s28 = scalar_lea.vmem %s2336_s0, %s1764_s25  ;;  %s224_s6 = scalar_lea.vmem %s2341_s5, %s1764_s25 }
  0x10   : > { %v2091_v4 = vld [vmem:[%s219_s28] sm:$0xff]  ;;  %v2093_v5 = vld [vmem:[%s219_s28 + $0x8] sm:$0xff]  ;;  %v2095_v6 = vld [vmem:[%s219_s28 + $0x10] sm:$0xff] }
  0x11   : > { %vm243_vm2 = vcmp.ge.f32.partialorder %v2091_v4, 0.0  ;;  %vm244_vm3 = vcmp.ge.f32.partialorder %v2093_v5, 0.0  ;;  %v247_v7 = vmul.f32 0.1, %v2091_v4  ;;  %v248_v8 = vmul.f32 0.1, %v2093_v5 }
  0x12   : > { %v2101_v9 = vld [vmem:[%s219_s28 + $0x18] sm:$0xff]  ;;  %vm245_vm4 = vcmp.ge.f32.partialorder %v2095_v6, 0.0  ;;  %v249_v10 = vmul.f32 0.1, %v2095_v6 }
  0x13   : > { %v251_v11 = vsel %vm243_vm2, %v2091_v4, %v247_v7  ;;  %v252_v12 = vsel %vm244_vm3, %v2093_v5, %v248_v8  ;;  %vm246_vm5 = vcmp.ge.f32.partialorder %v2101_v9, 0.0  ;;  %v250_v13 = vmul.f32 0.1, %v2101_v9 }
  0x14   : > { %255 = vst.msk [vmem:[#allocation2 + $0x5] sm:$0xff] %vm226_vm1, %v251_v11  ;;  %256 = vst.msk [vmem:[#allocation2 + $0xd] sm:$0xff] %vm226_vm1, %v252_v12  ;;  %v253_v14 = vsel %vm245_vm4, %v2095_v6, %v249_v10 }
  0x15   : > { %v254_v15 = vsel %vm246_vm5, %v2101_v9, %v250_v13  ;;  %257 = vst.msk [vmem:[#allocation2 + $0x15] sm:$0xff] %vm226_vm1, %v253_v14  ;;  %v634_v13 = vsel %vm280_vm0, %v1714_v3, 0 }
  0x16   : > { %258 = vst.msk [vmem:[#allocation2 + $0x1d] sm:$0xff] %vm226_vm1, %v254_v15 }
  0x1b   : > { %v266_v16 = vld [vmem:[#allocation2 + $0x5] sm:$0xff]  ;;  %v267_v17 = vld [vmem:[#allocation2 + $0xd] sm:$0xff] }
  0x1c   : > { %v259_v18 = vld [vmem:[#allocation2 + $0x4] sm:$0xff]  ;;  %v270_v19 = vpack.c.bf16 %v267_v17, %v266_v16  ;;  %v268_v20 = vld [vmem:[#allocation2 + $0x15] sm:$0xff]  ;;  %v260_v21 = vld [vmem:[#allocation2 + $0xc] sm:$0xff] }
  0x1d   : > { %v269_v22 = vld [vmem:[#allocation2 + $0x1d] sm:$0xff]  ;;  %v263_v23 = vpack.c.bf16 %v260_v21, %v259_v18  ;;  %v261_v27 = vld [vmem:[#allocation2 + $0x14] sm:$0xff]  ;;  %v391_v29 = vld [vmem:[#allocation2 + $0x6] sm:$0xff] }
  0x1e   : > { %1822 = vmatprep.mubr.msk.bf16.mxu0 %vm226_vm1, %v270_v19  ;;  %v271_v24 = vpack.c.bf16 %v269_v22, %v268_v20  ;;  %v262_v28 = vld [vmem:[#allocation2 + $0x1c] sm:$0xff]  ;;  %v392_v30 = vld [vmem:[#allocation2 + $0xe] sm:$0xff] }
  0x1f   : > { %v264_v31 = vpack.c.bf16 %v262_v28, %v261_v27  ;;  %v395_v32 = vpack.c.bf16 %v392_v30, %v391_v29  ;;  %v393_v34 = vld [vmem:[#allocation2 + $0x16] sm:$0xff]  ;;  %v394_v35 = vld [vmem:[#allocation2 + $0x1e] sm:$0xff]  ;;  %v1719_v18 = vld [vmem:[%s2337_s1 + $0x10] sm:$0xf] }
  0x20   : > { %1823 = vmatmul.mubr.msk.bf16.vlgmr.msra.gmra.mrb[0].mxu0 %vm226_vm1, %v271_v24  ;;  %v396_v36 = vpack.c.bf16 %v394_v35, %v393_v34  ;;  %v743_v19 = vsel %vm280_vm0, %v1719_v18, 0  ;;  %v1718_v20 = vld [vmem:[%s2337_s1 + $0xc] sm:$0xf]  ;;  %v1717_v21 = vld [vmem:[%s2340_s4] ss:$0 sm:$0xff] }
  0x21   : > { %1827 = vmatpush3.bf16.msra.mxu0 %v340_v25  ;;  %1828 = vmatprep.mubr.msk.bf16.mxu0 %vm226_vm1, %v263_v23 }
  0x22   : > { %1978 = vmatprep.subr.msk.bf16.mxu0 %vm280_vm0, %v1705_v26 }
  0x2c   : > { %1829 = vmatmul.mubr.msk.bf16.vlgmr.msra.gmra.mrb[0].mxu0 %vm226_vm1, %v264_v31 }
  0x2d   : > { %1833 = vmatpush3.bf16.msra.mxu0 %v406_v33  ;;  %1834 = vmatprep.mubr.msk.bf16.mxu0 %vm226_vm1, %v395_v32 }
  0x2e   : > { %1982 = vmatprep.subr.msk.bf16.mxu0 %vm280_vm0, %v1719_v18 }
  0x38   : > { %1835 = vmatmul.mubr.msk.bf16.vlgmr.msra.gmra.mrb[0].mxu0 %vm226_vm1, %v396_v36 }
  0x39   : > { %1857 = vmatpush3.bf16.msra.mxu0 %v743_v19 }
  0x3a   : > { %1983 = vmatprep.subr.msk.bf16.mxu0 %vm280_vm0, %v1718_v20 }
 0x10b   : > { %v1836_v41 = vpop.f32.mrb[0].mxu0 }
 0x10c   : > { %v470_v42 = vadd.f32 %v1836_v41, %v1708_v40  ;;  %v442_v43 = vpop.f32.mrb[1].mxu0 }
 0x10d   : > { %v468_v44 = vadd.f32 %v1708_v40, %v442_v43  ;;  %v1837_v45 = vpop.f32.mrb[2].mxu0 }
 0x10e   : > { %vm474_vm7 = vcmp.ge.f32.partialorder %v470_v42, 0.0  ;;  %v478_v46 = vmul.f32 0.1, %v470_v42  ;;  %v471_v47 = vadd.f32 %v1837_v45, %v1708_v40  ;;  %v445_v48 = vpop.f32.mrb[3].mxu0  ;;  %v801_v45 = vsel %vm280_vm0, %v1718_v20, 0 }
 0x10f   : > { %vm472_vm8 = vcmp.ge.f32.partialorder %v468_v44, 0.0  ;;  %v476_v49 = vmul.f32 0.1, %v468_v44  ;;  %v469_v50 = vadd.f32 %v1708_v40, %v445_v48  ;;  %v1724_v48 = vld [vmem:[%s2337_s1 + $0x14] sm:$0xf] }
 0x110   : > { %v482_v51 = vsel %vm474_vm7, %v470_v42, %v478_v46  ;;  %vm475_vm9 = vcmp.ge.f32.partialorder %v471_v47, 0.0  ;;  %v479_v52 = vmul.f32 0.1, %v471_v47 }
 0x111   : > { %486 = vst.msk [vmem:[#allocation3 + $0x11] sm:$0xff] %vm226_vm1, %v482_v51  ;;  %v480_v53 = vsel %vm472_vm8, %v468_v44, %v476_v49  ;;  %vm473_vm10 = vcmp.ge.f32.partialorder %v469_v50, 0.0  ;;  %v477_v54 = vmul.f32 0.1, %v469_v50 }
 0x112   : > { %484 = vst.msk [vmem:[#allocation3 + $0x1] sm:$0xff] %vm226_vm1, %v480_v53  ;;  %v483_v55 = vsel %vm475_vm9, %v471_v47, %v479_v52 }
 0x113   : > { %487 = vst.msk [vmem:[#allocation3 + $0x19] sm:$0xff] %vm226_vm1, %v483_v55  ;;  %v481_v56 = vsel %vm473_vm10, %v469_v50, %v477_v54  ;;  %v867_v54 = vsel %vm280_vm0, %v1724_v48, 0 }
 0x114   : > { %485 = vst.msk [vmem:[#allocation3 + $0x9] sm:$0xff] %vm226_vm1, %v481_v56 }
 0x118   : > { %v497_v62 = vld [vmem:[#allocation3 + $0x11] sm:$0xff] }
 0x119   : > { %v495_v58 = vld [vmem:[#allocation3 + $0x1] sm:$0xff] }
 0x11a   : > { %v498_v57 = vld [vmem:[#allocation3 + $0x19] sm:$0xff] }
 0x11b   : > { %v496_v59 = vld [vmem:[#allocation3 + $0x9] sm:$0xff]  ;;  %v500_v63 = vpack.c.bf16 %v498_v57, %v497_v62  ;;  %v488_v1 = vld [vmem:[#allocation3] sm:$0xff]  ;;  %v491_v8 = vld [vmem:[#allocation3 + $0x18] sm:$0xff] }
 0x11c   : > { %v489_v60 = vld [vmem:[#allocation3 + $0x8] sm:$0xff]  ;;  %v499_v61 = vpack.c.bf16 %v496_v59, %v495_v58  ;;  %v490_v7 = vld [vmem:[#allocation3 + $0x10] sm:$0xff]  ;;  %v622_v16 = vld [vmem:[#allocation3 + $0x1a] sm:$0xff] }
 0x11d   : > { %v492_v2 = vpack.c.bf16 %v489_v60, %v488_v1  ;;  %v619_v10 = vld [vmem:[#allocation3 + $0x2] sm:$0xff]  ;;  %v620_v11 = vld [vmem:[#allocation3 + $0xa] sm:$0xff]  ;;  %v493_v12 = vpack.c.bf16 %v491_v8, %v490_v7  ;;  %v621_v15 = vld [vmem:[#allocation3 + $0x12] sm:$0xff] }
 0x11e   : > { %1840 = vmatprep.mubr.msk.bf16.mxu1 %vm226_vm1, %v499_v61  ;;  %v623_v14 = vpack.c.bf16 %v620_v11, %v619_v10  ;;  %v624_v17 = vpack.c.bf16 %v622_v16, %v621_v15  ;;  %v1730_v59 = vld [vmem:[%s2339_s3 + $0x10] sm:$0xf]  ;;  %v1729_v61 = vld [vmem:[%s2339_s3 + $0xc] sm:$0xf]  ;;  %v1728_v62 = vld [vmem:[%s2338_s2 + $0x1] ss:$0 sm:$0xff] }
 0x11f   : > { %1841 = vmatmul.mubr.msk.bf16.vlgmr.msra.gmra.mrb[0].mxu1 %vm226_vm1, %v500_v63  ;;  %v973_v60 = vsel %vm280_vm0, %v1730_v59, 0 }
 0x120   : > { %1845 = vmatpush3.bf16.msra.mxu1 %v568_v0  ;;  %1846 = vmatprep.mubr.msk.bf16.mxu1 %vm226_vm1, %v492_v2 }
 0x121   : > { %1981 = vmatprep.subr.msk.bf16.mxu1 %vm280_vm0, %v1714_v3 }
 0x12b   : > { %1847 = vmatmul.mubr.msk.bf16.vlgmr.msra.gmra.mrb[0].mxu1 %vm226_vm1, %v493_v12 }
 0x12c   : > { %1851 = vmatpush3.bf16.msra.mxu1 %v634_v13  ;;  %1852 = vmatprep.mubr.msk.bf16.mxu1 %vm226_vm1, %v623_v14 }
 0x12d   : > { %1985 = vmatprep.subr.msk.bf16.mxu1 %vm280_vm0, %v1730_v59 }
 0x137   : > { %1853 = vmatmul.mubr.msk.bf16.vlgmr.msra.gmra.mrb[0].mxu1 %vm226_vm1, %v624_v17 }
 0x138   : > { %1875 = vmatpush3.bf16.msra.mxu1 %v973_v60 }
 0x139   : > { %1986 = vmatprep.subr.msk.bf16.mxu1 %vm280_vm0, %v1729_v61 }
 0x20a   : > { %v1854_v22 = vpop.f32.mrb[0].mxu1 }
 0x20b   : > { %v698_v23 = vadd.f32 %v1854_v22, %v1717_v21  ;;  %v670_v24 = vpop.f32.mrb[1].mxu1 }
 0x20c   : > { %v696_v25 = vadd.f32 %v1717_v21, %v670_v24  ;;  %v1855_v26 = vpop.f32.mrb[2].mxu1 }
 0x20d   : > { %v2170_v27 = vadd.f32 %v698_v23, %v2095_v6  ;;  %v699_v28 = vadd.f32 %v1855_v26, %v1717_v21  ;;  %v673_v29 = vpop.f32.mrb[3].mxu1  ;;  %v1031_v26 = vsel %vm280_vm0, %v1729_v61, 0 }
 0x20e   : > { %v2173_v30 = vadd.f32 %v696_v25, %v2091_v4  ;;  %v697_v31 = vadd.f32 %v1717_v21, %v673_v29 }
 0x20f   : > { %vm706_vm11 = vcmp.ge.f32.partialorder %v2170_v27, 0.0  ;;  %v710_v32 = vmul.f32 0.1, %v2170_v27  ;;  %v2178_v33 = vadd.f32 %v699_v28, %v2101_v9 }
 0x210   : > { %vm704_vm12 = vcmp.ge.f32.partialorder %v2173_v30, 0.0  ;;  %v708_v34 = vmul.f32 0.1, %v2173_v30  ;;  %v2183_v6 = vadd.f32 %v697_v31, %v2093_v5  ;;  %v1735_v31 = vld [vmem:[%s2339_s3 + $0x14] sm:$0xf] }
 0x211   : > { %v714_v35 = vsel %vm706_vm11, %v2170_v27, %v710_v32  ;;  %vm707_vm13 = vcmp.ge.f32.partialorder %v2178_v33, 0.0  ;;  %v711_v4 = vmul.f32 0.1, %v2178_v33 }
 0x212   : > { %718 = vst.msk [vmem:[#allocation2 + $0x15] sm:$0xff] %vm226_vm1, %v714_v35  ;;  %v712_v36 = vsel %vm704_vm12, %v2173_v30, %v708_v34  ;;  %vm705_vm14 = vcmp.ge.f32.partialorder %v2183_v6, 0.0  ;;  %v709_v9 = vmul.f32 0.1, %v2183_v6 }
 0x213   : > { %716 = vst.msk [vmem:[#allocation2 + $0x5] sm:$0xff] %vm226_vm1, %v712_v36  ;;  %v715_v37 = vsel %vm707_vm13, %v2178_v33, %v711_v4 }
 0x214   : > { %719 = vst.msk [vmem:[#allocation2 + $0x1d] sm:$0xff] %vm226_vm1, %v715_v37  ;;  %v713_v5 = vsel %vm705_vm14, %v2183_v6, %v709_v9  ;;  %v1097_v9 = vsel %vm280_vm0, %v1735_v31, 0 }
 0x215   : > { %717 = vst.msk [vmem:[#allocation2 + $0xd] sm:$0xff] %vm226_vm1, %v713_v5 }
 0x219   : > { %v730_v43 = vld [vmem:[#allocation2 + $0x15] sm:$0xff] }
 0x21a   : > { %v728_v39 = vld [vmem:[#allocation2 + $0x5] sm:$0xff] }
 0x21b   : > { %v731_v38 = vld [vmem:[#allocation2 + $0x1d] sm:$0xff] }
 0x21c   : > { %v729_v40 = vld [vmem:[#allocation2 + $0xd] sm:$0xff]  ;;  %v733_v44 = vpack.c.bf16 %v731_v38, %v730_v43  ;;  %v720_v46 = vld [vmem:[#allocation2 + $0x2] sm:$0xff]  ;;  %v723_v50 = vld [vmem:[#allocation2 + $0x1a] sm:$0xff] }
 0x21d   : > { %v721_v41 = vld [vmem:[#allocation2 + $0xa] sm:$0xff]  ;;  %v732_v42 = vpack.c.bf16 %v729_v40, %v728_v39  ;;  %v722_v49 = vld [vmem:[#allocation2 + $0x12] sm:$0xff]  ;;  %v855_v57 = vld [vmem:[#allocation2 + $0x20] sm:$0xff] }
 0x21e   : > { %v724_v47 = vpack.c.bf16 %v721_v41, %v720_v46  ;;  %v852_v51 = vld [vmem:[#allocation2 + $0x8] sm:$0xff]  ;;  %v853_v52 = vld [vmem:[#allocation2 + $0x10] sm:$0xff]  ;;  %v725_v53 = vpack.c.bf16 %v723_v50, %v722_v49  ;;  %v854_v56 = vld [vmem:[#allocation2 + $0x18] sm:$0xff] }
 0x21f   : > { %1858 = vmatprep.mubr.msk.bf16.mxu0 %vm226_vm1, %v732_v42  ;;  %v856_v55 = vpack.c.bf16 %v853_v52, %v852_v51  ;;  %v857_v58 = vpack.c.bf16 %v855_v57, %v854_v56  ;;  %v1741_v40 = vld [vmem:[%s2337_s1 + $0x1c] sm:$0xf]  ;;  %v1740_v42 = vld [vmem:[%s2337_s1 + $0x18] sm:$0xf]  ;;  %v1739_v43 = vld [vmem:[%s2340_s4 + $0x1] ss:$0 sm:$0xff] }
 0x220   : > { %1859 = vmatmul.mubr.msk.bf16.vlgmr.msra.gmra.mrb[4].mxu0 %vm226_vm1, %v733_v44  ;;  %v1207_v41 = vsel %vm280_vm0, %v1741_v40, 0 }
 0x221   : > { %1863 = vmatpush3.bf16.msra.mxu0 %v801_v45  ;;  %1864 = vmatprep.mubr.msk.bf16.mxu0 %vm226_vm1, %v724_v47 }
 0x222   : > { %1984 = vmatprep.subr.msk.bf16.mxu0 %vm280_vm0, %v1724_v48 }
 0x22c   : > { %1865 = vmatmul.mubr.msk.bf16.vlgmr.msra.gmra.mrb[4].mxu0 %vm226_vm1, %v725_v53 }
 0x22d   : > { %1869 = vmatpush3.bf16.msra.mxu0 %v867_v54  ;;  %1870 = vmatprep.mubr.msk.bf16.mxu0 %vm226_vm1, %v856_v55 }
 0x22e   : > { %1988 = vmatprep.subr.msk.bf16.mxu0 %vm280_vm0, %v1741_v40 }
 0x238   : > { %1871 = vmatmul.mubr.msk.bf16.vlgmr.msra.gmra.mrb[4].mxu0 %vm226_vm1, %v857_v58 }
 0x239   : > { %1893 = vmatpush3.bf16.msra.mxu0 %v1207_v41 }
 0x23a   : > { %1989 = vmatprep.subr.msk.bf16.mxu0 %vm280_vm0, %v1740_v42 }
 0x30b   : > { %v1872_v63 = vpop.f32.mrb[4].mxu0 }
 0x30c   : > { %v932_v0 = vadd.f32 %v1872_v63, %v1728_v62  ;;  %v903_v1 = vpop.f32.mrb[5].mxu0 }
 0x30d   : > { %v930_v2 = vadd.f32 %v1728_v62, %v903_v1  ;;  %v1873_v3 = vpop.f32.mrb[6].mxu0 }
 0x30e   : > { %vm936_vm15 = vcmp.ge.f32.partialorder %v932_v0, 0.0  ;;  %v940_v7 = vmul.f32 0.1, %v932_v0  ;;  %v933_v8 = vadd.f32 %v1873_v3, %v1728_v62  ;;  %v906_v10 = vpop.f32.mrb[7].mxu0  ;;  %v1265_v3 = vsel %vm280_vm0, %v1740_v42, 0 }
 0x30f   : > { %vm934_vm2 = vcmp.ge.f32.partialorder %v930_v2, 0.0  ;;  %v938_v11 = vmul.f32 0.1, %v930_v2  ;;  %v931_v12 = vadd.f32 %v1728_v62, %v906_v10  ;;  %v1746_v10 = vld [vmem:[%s2337_s1 + $0x20] sm:$0xf] }
 0x310   : > { %v944_v13 = vsel %vm936_vm15, %v932_v0, %v940_v7  ;;  %vm937_vm3 = vcmp.ge.f32.partialorder %v933_v8, 0.0  ;;  %v941_v14 = vmul.f32 0.1, %v933_v8 }
 0x311   : > { %948 = vst.msk [vmem:[#allocation3 + $0x11] sm:$0xff] %vm226_vm1, %v944_v13  ;;  %v942_v15 = vsel %vm934_vm2, %v930_v2, %v938_v11  ;;  %vm935_vm4 = vcmp.ge.f32.partialorder %v931_v12, 0.0  ;;  %v939_v16 = vmul.f32 0.1, %v931_v12 }
 0x312   : > { %946 = vst.msk [vmem:[#allocation3 + $0x1] sm:$0xff] %vm226_vm1, %v942_v15  ;;  %v945_v17 = vsel %vm937_vm3, %v933_v8, %v941_v14 }
 0x313   : > { %949 = vst.msk [vmem:[#allocation3 + $0x19] sm:$0xff] %vm226_vm1, %v945_v17  ;;  %v943_v18 = vsel %vm935_vm4, %v931_v12, %v939_v16  ;;  %v1331_v16 = vsel %vm280_vm0, %v1746_v10, 0 }
 0x314   : > { %947 = vst.msk [vmem:[#allocation3 + $0x9] sm:$0xff] %vm226_vm1, %v943_v18 }
 0x318   : > { %v960_v24 = vld [vmem:[#allocation3 + $0x11] sm:$0xff] }
 0x319   : > { %v958_v20 = vld [vmem:[#allocation3 + $0x1] sm:$0xff] }
 0x31a   : > { %v961_v19 = vld [vmem:[#allocation3 + $0x19] sm:$0xff] }
 0x31b   : > { %v959_v21 = vld [vmem:[#allocation3 + $0x9] sm:$0xff]  ;;  %v963_v25 = vpack.c.bf16 %v961_v19, %v960_v24  ;;  %v950_v28 = vld [vmem:[#allocation3] sm:$0xff]  ;;  %v953_v34 = vld [vmem:[#allocation3 + $0x18] sm:$0xff] }
 0x31c   : > { %v951_v22 = vld [vmem:[#allocation3 + $0x8] sm:$0xff]  ;;  %v962_v23 = vpack.c.bf16 %v959_v21, %v958_v20  ;;  %v952_v32 = vld [vmem:[#allocation3 + $0x10] sm:$0xff]  ;;  %v1085_v38 = vld [vmem:[#allocation3 + $0x1a] sm:$0xff] }
 0x31d   : > { %v954_v29 = vpack.c.bf16 %v951_v22, %v950_v28  ;;  %v1082_v35 = vld [vmem:[#allocation3 + $0x2] sm:$0xff]  ;;  %v1083_v4 = vld [vmem:[#allocation3 + $0xa] sm:$0xff]  ;;  %v955_v36 = vpack.c.bf16 %v953_v34, %v952_v32  ;;  %v1084_v5 = vld [vmem:[#allocation3 + $0x12] sm:$0xff] }
 0x31e   : > { %1876 = vmatprep.mubr.msk.bf16.mxu1 %vm226_vm1, %v962_v23  ;;  %v1086_v37 = vpack.c.bf16 %v1083_v4, %v1082_v35  ;;  %v1087_v39 = vpack.c.bf16 %v1085_v38, %v1084_v5  ;;  %v1752_v21 = vld [vmem:[%s2339_s3 + $0x1c] sm:$0xf]  ;;  %v1751_v23 = vld [vmem:[%s2339_s3 + $0x18] sm:$0xf]  ;;  %v1750_v24 = vld [vmem:[%s2338_s2 + $0x2] ss:$0 sm:$0xff] }
 0x31f   : > { %1877 = vmatmul.mubr.msk.bf16.vlgmr.msra.gmra.mrb[4].mxu1 %vm226_vm1, %v963_v25  ;;  %v1437_v22 = vsel %vm280_vm0, %v1752_v21, 0 }
 0x320   : > { %1881 = vmatpush3.bf16.msra.mxu1 %v1031_v26  ;;  %1882 = vmatprep.mubr.msk.bf16.mxu1 %vm226_vm1, %v954_v29 }
 0x321   : > { %1987 = vmatprep.subr.msk.bf16.mxu1 %vm280_vm0, %v1735_v31 }
 0x32b   : > { %1883 = vmatmul.mubr.msk.bf16.vlgmr.msra.gmra.mrb[4].mxu1 %vm226_vm1, %v955_v36 }
 0x32c   : > { %1887 = vmatpush3.bf16.msra.mxu1 %v1097_v9  ;;  %1888 = vmatprep.mubr.msk.bf16.mxu1 %vm226_vm1, %v1086_v37 }
 0x32d   : > { %1991 = vmatprep.subr.msk.bf16.mxu1 %vm280_vm0, %v1752_v21 }
 0x337   : > { %1889 = vmatmul.mubr.msk.bf16.vlgmr.msra.gmra.mrb[4].mxu1 %vm226_vm1, %v1087_v39 }
 0x338   : > { %1911 = vmatpush3.bf16.msra.mxu1 %v1437_v22 }
 0x339   : > { %1992 = vmatprep.subr.msk.bf16.mxu1 %vm280_vm0, %v1751_v23 }
 0x40a   : > { %v1890_v44 = vpop.f32.mrb[4].mxu1 }
 0x40b   : > { %v1162_v45 = vadd.f32 %v1890_v44, %v1739_v43  ;;  %v1133_v46 = vpop.f32.mrb[5].mxu1 }
 0x40c   : > { %v1160_v47 = vadd.f32 %v1739_v43, %v1133_v46  ;;  %v1891_v48 = vpop.f32.mrb[6].mxu1 }
 0x40d   : > { %v2250_v49 = vadd.f32 %v1162_v45, %v2170_v27  ;;  %v1163_v50 = vadd.f32 %v1891_v48, %v1739_v43  ;;  %v1136_v51 = vpop.f32.mrb[7].mxu1  ;;  %v1495_v48 = vsel %vm280_vm0, %v1751_v23, 0 }
 0x40e   : > { %v2253_v52 = vadd.f32 %v1160_v47, %v2173_v30  ;;  %v1161_v53 = vadd.f32 %v1739_v43, %v1136_v51 }
 0x40f   : > { %vm1170_vm5 = vcmp.ge.f32.partialorder %v2250_v49, 0.0  ;;  %v1174_v54 = vmul.f32 0.1, %v2250_v49  ;;  %v2258_v55 = vadd.f32 %v1163_v50, %v2178_v33 }
 0x410   : > { %vm1168_vm6 = vcmp.ge.f32.partialorder %v2253_v52, 0.0  ;;  %v1172_v56 = vmul.f32 0.1, %v2253_v52  ;;  %v2263_v27 = vadd.f32 %v1161_v53, %v2183_v6  ;;  %v1757_v53 = vld [vmem:[%s2339_s3 + $0x20] sm:$0xf] }
 0x411   : > { %v1178_v57 = vsel %vm1170_vm5, %v2250_v49, %v1174_v54  ;;  %vm1171_vm7 = vcmp.ge.f32.partialorder %v2258_v55, 0.0  ;;  %v1175_v30 = vmul.f32 0.1, %v2258_v55 }
 0x412   : > { %1182 = vst.msk [vmem:[#allocation2 + $0x15] sm:$0xff] %vm226_vm1, %v1178_v57  ;;  %v1176_v58 = vsel %vm1168_vm6, %v2253_v52, %v1172_v56  ;;  %vm1169_vm8 = vcmp.ge.f32.partialorder %v2263_v27, 0.0  ;;  %v1173_v33 = vmul.f32 0.1, %v2263_v27 }
 0x413   : > { %1180 = vst.msk [vmem:[#allocation2 + $0x5] sm:$0xff] %vm226_vm1, %v1176_v58  ;;  %v1179_v59 = vsel %vm1171_vm7, %v2258_v55, %v1175_v30 }
 0x414   : > { %1183 = vst.msk [vmem:[#allocation2 + $0x1d] sm:$0xff] %vm226_vm1, %v1179_v59  ;;  %v1177_v6 = vsel %vm1169_vm8, %v2263_v27, %v1173_v33  ;;  %v1561_v33 = vsel %vm280_vm0, %v1757_v53, 0 }
 0x415   : > { %1181 = vst.msk [vmem:[#allocation2 + $0xd] sm:$0xff] %vm226_vm1, %v1177_v6 }
 0x419   : > { %v1194_v1 = vld [vmem:[#allocation2 + $0x15] sm:$0xff] }
 0x41a   : > { %v1192_v61 = vld [vmem:[#allocation2 + $0x5] sm:$0xff] }
 0x41b   : > { %v1195_v60 = vld [vmem:[#allocation2 + $0x1d] sm:$0xff] }
 0x41c   : > { %v1193_v62 = vld [vmem:[#allocation2 + $0xd] sm:$0xff]  ;;  %v1197_v2 = vpack.c.bf16 %v1195_v60, %v1194_v1  ;;  %v1184_v7 = vld [vmem:[#allocation2] sm:$0xff]  ;;  %v1187_v12 = vld [vmem:[#allocation2 + $0x18] sm:$0xff] }
 0x41d   : > { %v1185_v63 = vld [vmem:[#allocation2 + $0x8] sm:$0xff]  ;;  %v1196_v0 = vpack.c.bf16 %v1193_v62, %v1192_v61  ;;  %v1186_v11 = vld [vmem:[#allocation2 + $0x10] sm:$0xff]  ;;  %v1318_v18 = vld [vmem:[#allocation2 + $0x1a] sm:$0xff] }
 0x41e   : > { %v1188_v8 = vpack.c.bf16 %v1185_v63, %v1184_v7  ;;  %v1316_v13 = vld [vmem:[#allocation2 + $0xa] sm:$0xff]  ;;  %v1317_v14 = vld [vmem:[#allocation2 + $0x12] sm:$0xff]  ;;  %v1189_v15 = vpack.c.bf16 %v1187_v12, %v1186_v11  ;;  %v1319_v19 = vld [vmem:[#allocation2 + $0x22] sm:$0xff] }
 0x41f   : > { %1894 = vmatprep.mubr.msk.bf16.mxu0 %vm226_vm1, %v1196_v0  ;;  %v1320_v17 = vpack.c.bf16 %v1317_v14, %v1316_v13  ;;  %v1321_v20 = vpack.c.bf16 %v1319_v19, %v1318_v18  ;;  %v1761_v62 = vld [vmem:[%s2340_s4 + $0x2] ss:$0 sm:$0xff] }
 0x420   : > { %1895 = vmatmul.mubr.msk.bf16.vlgmr.msra.gmra.mrb[8].mxu0 %vm226_vm1, %v1197_v2 }
 0x421   : > { %1899 = vmatpush3.bf16.msra.mxu0 %v1265_v3  ;;  %1900 = vmatprep.mubr.msk.bf16.mxu0 %vm226_vm1, %v1188_v8 }
 0x422   : > { %1990 = vmatprep.subr.msk.bf16.mxu0 %vm280_vm0, %v1746_v10 }
 0x42c   : > { %1901 = vmatmul.mubr.msk.bf16.vlgmr.msra.gmra.mrb[8].mxu0 %vm226_vm1, %v1189_v15 }
 0x42d   : > { %1905 = vmatpush3.bf16.msra.mxu0 %v1331_v16  ;;  %1906 = vmatprep.mubr.msk.bf16.mxu0 %vm226_vm1, %v1320_v17 }
 0x438   : > { %1907 = vmatmul.mubr.msk.bf16.vlgmr.msra.gmra.mrb[8].mxu0 %vm226_vm1, %v1321_v20 }
 0x50b   : > { %v1908_v25 = vpop.f32.mrb[8].mxu0 }
 0x50c   : > { %v1396_v26 = vadd.f32 %v1908_v25, %v1750_v24  ;;  %v1367_v28 = vpop.f32.mrb[9].mxu0 }
 0x50d   : > { %v1394_v29 = vadd.f32 %v1750_v24, %v1367_v28  ;;  %v1909_v31 = vpop.f32.mrb[10].mxu0 }
 0x50e   : > { %vm1400_vm9 = vcmp.ge.f32.partialorder %v1396_v26, 0.0  ;;  %v1404_v32 = vmul.f32 0.1, %v1396_v26  ;;  %v1397_v34 = vadd.f32 %v1909_v31, %v1750_v24  ;;  %v1370_v35 = vpop.f32.mrb[11].mxu0 }
 0x50f   : > { %vm1398_vm10 = vcmp.ge.f32.partialorder %v1394_v29, 0.0  ;;  %v1402_v4 = vmul.f32 0.1, %v1394_v29  ;;  %v1395_v36 = vadd.f32 %v1750_v24, %v1370_v35 }
 0x510   : > { %v1408_v9 = vsel %vm1400_vm9, %v1396_v26, %v1404_v32  ;;  %vm1401_vm11 = vcmp.ge.f32.partialorder %v1397_v34, 0.0  ;;  %v1405_v37 = vmul.f32 0.1, %v1397_v34 }
 0x511   : > { %1412 = vst.msk [vmem:[#allocation3 + $0x11] sm:$0xff] %vm226_vm1, %v1408_v9  ;;  %v1406_v5 = vsel %vm1398_vm10, %v1394_v29, %v1402_v4  ;;  %vm1399_vm12 = vcmp.ge.f32.partialorder %v1395_v36, 0.0  ;;  %v1403_v38 = vmul.f32 0.1, %v1395_v36 }
 0x512   : > { %1410 = vst.msk [vmem:[#allocation3 + $0x1] sm:$0xff] %vm226_vm1, %v1406_v5  ;;  %v1409_v39 = vsel %vm1401_vm11, %v1397_v34, %v1405_v37 }
 0x513   : > { %1413 = vst.msk [vmem:[#allocation3 + $0x19] sm:$0xff] %vm226_vm1, %v1409_v39  ;;  %v1407_v40 = vsel %vm1399_vm12, %v1395_v36, %v1403_v38 }
 0x514   : > { %1411 = vst.msk [vmem:[#allocation3 + $0x9] sm:$0xff] %vm226_vm1, %v1407_v40 }
 0x518   : > { %v1424_v46 = vld [vmem:[#allocation3 + $0x11] sm:$0xff] }
 0x519   : > { %v1422_v42 = vld [vmem:[#allocation3 + $0x1] sm:$0xff] }
 0x51a   : > { %v1425_v41 = vld [vmem:[#allocation3 + $0x19] sm:$0xff] }
 0x51b   : > { %v1423_v43 = vld [vmem:[#allocation3 + $0x9] sm:$0xff]  ;;  %v1427_v47 = vpack.c.bf16 %v1425_v41, %v1424_v46  ;;  %v1414_v50 = vld [vmem:[#allocation3] sm:$0xff]  ;;  %v1417_v56 = vld [vmem:[#allocation3 + $0x18] sm:$0xff] }
 0x51c   : > { %v1415_v44 = vld [vmem:[#allocation3 + $0x8] sm:$0xff]  ;;  %v1426_v45 = vpack.c.bf16 %v1423_v43, %v1422_v42  ;;  %v1416_v54 = vld [vmem:[#allocation3 + $0x10] sm:$0xff]  ;;  %v1549_v60 = vld [vmem:[#allocation3 + $0x1a] sm:$0xff] }
 0x51d   : > { %v1418_v51 = vpack.c.bf16 %v1415_v44, %v1414_v50  ;;  %v1546_v57 = vld [vmem:[#allocation3 + $0x2] sm:$0xff]  ;;  %v1547_v30 = vld [vmem:[#allocation3 + $0xa] sm:$0xff]  ;;  %v1419_v58 = vpack.c.bf16 %v1417_v56, %v1416_v54  ;;  %v1548_v6 = vld [vmem:[#allocation3 + $0x12] sm:$0xff] }
 0x51e   : > { %1912 = vmatprep.mubr.msk.bf16.mxu1 %vm226_vm1, %v1426_v45  ;;  %v1550_v59 = vpack.c.bf16 %v1547_v30, %v1546_v57  ;;  %v1551_v61 = vpack.c.bf16 %v1549_v60, %v1548_v6 }
 0x51f   : > { %1913 = vmatmul.mubr.msk.bf16.vlgmr.msra.gmra.mrb[8].mxu1 %vm226_vm1, %v1427_v47 }
 0x520   : > { %1917 = vmatpush3.bf16.msra.mxu1 %v1495_v48  ;;  %1918 = vmatprep.mubr.msk.bf16.mxu1 %vm226_vm1, %v1418_v51 }
 0x521   : > { %1993 = vmatprep.subr.msk.bf16.mxu1 %vm280_vm0, %v1757_v53 }
 0x52b   : > { %1919 = vmatmul.mubr.msk.bf16.vlgmr.msra.gmra.mrb[8].mxu1 %vm226_vm1, %v1419_v58 }
 0x52c   : > { %1923 = vmatpush3.bf16.msra.mxu1 %v1561_v33  ;;  %1924 = vmatprep.mubr.msk.bf16.mxu1 %vm226_vm1, %v1550_v59 }
 0x537   : > { %1925 = vmatmul.mubr.msk.bf16.vlgmr.msra.gmra.mrb[8].mxu1 %vm226_vm1, %v1551_v61 }
 0x60a   : > { %v1926_v63 = vpop.f32.mrb[8].mxu1 }
 0x60b   : > { %v1626_v0 = vadd.f32 %v1926_v63, %v1761_v62  ;;  %v1597_v1 = vpop.f32.mrb[9].mxu1 }
 0x60c   : > { %v1624_v2 = vadd.f32 %v1761_v62, %v1597_v1  ;;  %v1927_v3 = vpop.f32.mrb[10].mxu1 }
 0x60d   : > { %v1630_v7 = vadd.f32 %v1626_v0, %v2250_v49  ;;  %v1627_v8 = vadd.f32 %v1927_v3, %v1761_v62  ;;  %v1600_v10 = vpop.f32.mrb[11].mxu1 }
 0x60e   : > { %v1628_v11 = vadd.f32 %v1624_v2, %v2253_v52  ;;  %v1625_v12 = vadd.f32 %v1761_v62, %v1600_v10 }
 0x60f   : > { %1634 = vst.msk [vmem:[%s224_s6 + $0x10] sm:$0xff] %vm226_vm1, %v1630_v7  ;;  %v1631_v13 = vadd.f32 %v1627_v8, %v2258_v55 }
 0x610   : > { %1632 = vst.msk [vmem:[%s224_s6] sm:$0xff] %vm226_vm1, %v1628_v11  ;;  %v1629_v14 = vadd.f32 %v1625_v12, %v2263_v27 }
 0x611   : > { %1635 = vst.msk [vmem:[%s224_s6 + $0x18] sm:$0xff] %vm226_vm1, %v1631_v13 }
 0x612   : > { %1633 = vst.msk [vmem:[%s224_s6 + $0x8] sm:$0xff] %vm226_vm1, %v1629_v14 }
 0x613 PF: > { %s15_s18 = sadd.s32 1, %s2009_s18  }
 0x614   : > { %p12_p4 = scmp.ge.s32.totalorder %s15_s18, 4  }
 0x616   :  { %14 = sbr.rel (!%p12_p4) target bundleno = 1 (0x1), region = 90 }

// kernel: generator_nsf_forward.17
= control target key start
LH: loop header
LB: loop body
LE: loop exit
PB: predicated region body
PF: predicated region fallthrough
CT: control target
= control target key end

     0   :  { %s946_s15 = smov 0   ;;  %s1082_s0 = inlined_call_operand.vmem [shape: f32[2,67,8], index: 0, kind: input, shape index: {}]   ;;  %s1083_s1 = inlined_call_operand.vmem [shape: bf16[4,8,4], index: 1, kind: input, shape index: {}]   ;;  %s1084_s2 = inlined_call_operand.vmem [shape: f32[1,4], index: 2, kind: input, shape index: {}]   ;;  %s1085_s3 = inlined_call_operand.vmem [shape: f32[2,64,4], index: 3, kind: input, shape index: {}]   ;;  %s1086_s4 = inlined_call_operand.vmem [shape: f32[2,64,4], index: 4, kind: output, shape index: {}]  }
   0x1 LB: > { %s782_s16 = sadd.s32 4294967295, %s919_s15   ;;  %p786_p0 = scmp.ge.s32.totalorder %s919_s15, 1  ;;  %s919_s15 = sphi %s946_s15, %s14_s15  }
   0x2   : > { %p172_p1 = scmp.lt.s32.totalorder %s919_s15, 3 }
   0x4   : > { %p173_p2 = pnand %p786_p0, %p172_p1 }
   0x5   : > { %vm313_vm0 = vcmask (!%p173_p2), 1043456   ;;  %v801_v0 = vld [vmem:[%s1083_s1 + $0x8] sm:$0xf] (!%p173_p2)  ;;  %v792_v1 = vld [vmem:[%s1083_s1 + $0x4] sm:$0xf] (!%p173_p2)  ;;  %p203_p3 = scmp.lt.s32.totalorder (!%p173_p2), %s782_s16, 1 }
   0x6   : > { %176 = sbr.rel (%p173_p2) target bundleno = 278 (0x116), region = 36  ;;  %902 = vmatprep.subr.msk.bf16.mxu0 (!%p173_p2), %vm313_vm0, %v801_v0  ;;  %v488_v2 = vsel (!%p173_p2), %vm313_vm0, %v801_v0, 0  ;;  %900 = vmatprep.subr.msk.bf16.mxu1 (!%p173_p2), %vm313_vm0, %v792_v1  ;;  %v315_v3 = vsel (!%p173_p2), %vm313_vm0, %v792_v1, 0  ;;  %v259_v4 = vld [vmem:[%s1083_s1] sm:$0xf] (!%p173_p2)  ;;  %vm300_vm1 = vcmask (!%p173_p2), 64512  }
   0x7   : > { %857 = vmatpush3.bf16.msra.mxu0 (!%p173_p2), %v488_v2  ;;  %837 = vmatpush3.bf16.msra.mxu1 (!%p173_p2), %v315_v3  ;;  %v806_v5 = vld [vmem:[%s1083_s1 + $0xc] sm:$0xf] (!%p173_p2)  ;;  %vm465_vm2 = vcmask (!%p173_p2), 1046528   ;;  %v984_v9 = vsel (!%p173_p2), %vm313_vm0, %v259_v4, 0  ;;  %vm263_vm7 = vsmask.f32 (!%p173_p2), 7424 }
   0x8   : > { %901 = vmatprep.subr.msk.bf16.mxu1 (!%p173_p2), %vm313_vm0, %v259_v4  ;;  %903 = vmatprep.subr.msk.bf16.mxu0 (!%p173_p2), %vm313_vm0, %v806_v5  ;;  %v600_v26 = vsel (!%p173_p2), %vm313_vm0, %v806_v5, 0  ;;  %vm565_vm11 = vsmask.f32 (!%p173_p2), 6400  ;;  %vm706_vm14 = vcmask (!%p173_p2), 31744  }
   0xd   : > { %s1088_s16 = smov (!%p203_p3, %s782_s16), 1 }
   0xe   : > { %s904_s25 = smul.u32 72, %s1088_s16  ;;  %s814_s29 = sshll.u32 %s1088_s16, 6 }
   0xf   : > { %s1045_s6 = scalar_lea.vmem %s1085_s3, %s814_s29  ;;  %s1055_s11 = scalar_lea.vmem %s1086_s4, %s814_s29 }
  0x10   : > { %s978_s28 = scalar_lea.vmem %s1082_s0, %s904_s25 }
  0x11   : > { %v219_v6 = vld [vmem:[%s978_s28] sm:$0xff]  ;;  %v220_v7 = vld [vmem:[%s978_s28 + $0x8] sm:$0xff]  ;;  %v221_v8 = vld [vmem:[%s978_s28 + $0x10] sm:$0xff] }
  0x12   : > { %v222_v10 = vld [vmem:[%s978_s28 + $0x18] sm:$0xff]  ;;  %vm228_vm3 = vcmp.ge.f32.partialorder %v219_v6, 0.0  ;;  %vm229_vm4 = vcmp.ge.f32.partialorder %v220_v7, 0.0  ;;  %vm230_vm5 = vcmp.ge.f32.partialorder %v221_v8, 0.0  ;;  %v237_v11 = vmul.f32 0.1, %v219_v6 }
  0x13   : > { %vm231_vm6 = vcmp.ge.f32.partialorder %v222_v10, 0.0  ;;  %v238_v12 = vmul.f32 0.1, %v220_v7  ;;  %v239_v13 = vmul.f32 0.1, %v221_v8  ;;  %v223_v14 = vld [vmem:[%s978_s28 + $0x20] sm:$0xff] }
  0x14   : > { %v240_v15 = vmul.f32 0.1, %v222_v10  ;;  %v246_v16 = vsel %vm228_vm3, %v219_v6, %v237_v11  ;;  %v224_v17 = vld [vmem:[%s978_s28 + $0x28] sm:$0xff]  ;;  %vm232_vm8 = vcmp.ge.f32.partialorder %v223_v14, 0.0  ;;  %v241_v18 = vmul.f32 0.1, %v223_v14 }
  0x15   : > { %v247_v19 = vsel %vm229_vm4, %v220_v7, %v238_v12  ;;  %v248_v20 = vsel %vm230_vm5, %v221_v8, %v239_v13  ;;  %vm233_vm9 = vcmp.ge.f32.partialorder %v224_v17, 0.0  ;;  %v242_v21 = vmul.f32 0.1, %v224_v17  ;;  %v225_v22 = vld [vmem:[%s978_s28 + $0x30] sm:$0xff]  ;;  %v226_v27 = vld [vmem:[%s978_s28 + $0x38] sm:$0xff] }
  0x16   : > { %v249_v23 = vsel %vm231_vm6, %v222_v10, %v240_v15  ;;  %v990_v24 = vpack.c.bf16 %v247_v19, %v246_v16  ;;  %v250_v25 = vsel %vm232_vm8, %v223_v14, %v241_v18  ;;  %vm234_vm10 = vcmp.ge.f32.partialorder %v225_v22, 0.0  ;;  %v227_v42 = vld [vmem:[%s978_s28 + $0x40] sm:$0x7] }
  0x17   : > { %v994_v28 = vpack.c.bf16 %v249_v23, %v248_v20  ;;  %v251_v29 = vsel %vm233_vm9, %v224_v17, %v242_v21  ;;  %v243_v30 = vmul.f32 0.1, %v225_v22  ;;  %v244_v38 = vmul.f32 0.1, %v226_v27 }
  0x18   : > { %v466_v31 = vrot.slane %v990_v24, 1  ;;  %v997_v32 = vpack.c.bf16 %v251_v29, %v250_v25  ;;  %v265_v33 = vshrl.u32 %v990_v24, 16  ;;  %v267_v34 = vshll.u32 %v990_v24, 16 }
  0x19   : > { %v467_v35 = vrot.slane %v994_v28, 1  ;;  %v272_v36 = vshll.u32 %v994_v28, 16  ;;  %v276_v37 = vshrl.u32 %v994_v28, 16  ;;  %vm235_vm12 = vcmp.ge.f32.partialorder %v226_v27, 0.0 }
  0x1a   : > { %v469_v39 = vrot.slane %v997_v32, 1  ;;  %v269_v40 = vrot.slane %v267_v34, 1  ;;  %v280_v41 = vshll.u32 %v997_v32, 16  ;;  %v566_v45 = vrot.slane %v265_v33, 1 }
  0x1b   : > { %v468_v43 = vsel %vm465_vm2, %v466_v31, %v467_v35  ;;  %v274_v44 = vrot.slane %v272_v36, 1  ;;  %v252_v46 = vsel %vm234_vm10, %v225_v22, %v243_v30  ;;  %v570_v49 = vrot.slane %v272_v36, 2 }
  0x1c   : > { %858 = vmatprep.mubr.msk.bf16.mxu0 %vm300_vm1, %v468_v43  ;;  %v470_v47 = vsel %vm465_vm2, %v467_v35, %v469_v39  ;;  %v270_v48 = vor.u32 %v269_v40, %v265_v33  ;;  %v282_v50 = vrot.slane %v280_v41, 1  ;;  %v253_v52 = vsel %vm235_vm12, %v226_v27, %v244_v38  ;;  %v692_v35 = vld [vmem:[%s1045_s6 + $0x10] sm:$0xff]  ;;  %v693_v43 = vld [vmem:[%s1045_s6 + $0x18] sm:$0xff] }
  0x1d   : > { %859 = vmatmul.mubr.msk.bf16.vlgmr.msra.gmra.mrb[0].mxu0 %vm300_vm1, %v470_v47  ;;  %v278_v51 = vor.u32 %v276_v37, %v274_v44  ;;  %vm236_vm13 = vcmp.ge.f32.partialorder %v227_v42, 0.0  ;;  %v245_v53 = vmul.f32 0.1, %v227_v42  ;;  %v258_v55 = vpack.c.bf16 %v253_v52, %v252_v46  ;;  %v691_v47 = vld [vmem:[%s1045_s6 + $0x8] sm:$0xff] }
  0x1e   : > { %v275_v54 = vsel %vm263_vm7, %v270_v48, %v274_v44  ;;  %867 = vmatpush3.bf16.msra.mxu0 %v600_v26  ;;  %v284_v56 = vshrl.u32 %v997_v32, 16  ;;  %v567_v57 = vrot.slane %v267_v34, 2  ;;  %v574_v59 = vrot.slane %v280_v41, 2 }
  0x1f   : > { %838 = vmatprep.mubr.msk.bf16.mxu1 %vm300_vm1, %v275_v54  ;;  %v283_v58 = vsel %vm263_vm7, %v278_v51, %v282_v50  ;;  %v254_v60 = vsel %vm236_vm13, %v227_v42, %v245_v53  ;;  %v569_v61 = vrot.slane %v276_v37, 1  ;;  %v471_v62 = vrot.slane %v258_v55, 1 }
  0x20   : > { %839 = vmatmul.mubr.msk.bf16.vlgmr.msra.gmra.mrb[0].mxu1 %vm300_vm1, %v283_v58  ;;  %v260_v63 = vpack.c.bf16 %v254_v60, %v254_v60  ;;  %v286_v0 = vor.u32 %v284_v56, %v282_v50  ;;  %v288_v1 = vshll.u32 %v258_v55, 16  ;;  %v573_v2 = vrot.slane %v284_v56, 1 }
  0x21   : > { %847 = vmatpush3.bf16.msra.mxu1 %v984_v9  ;;  %v292_v3 = vshrl.u32 %v258_v55, 16  ;;  %v568_v4 = vor.u32 %v567_v57, %v566_v45  ;;  %v571_v5 = vor.u32 %v570_v49, %v569_v61  ;;  %v472_v6 = vsel %vm465_vm2, %v469_v39, %v471_v62  ;;  %v690_v39 = vld [vmem:[%s1045_s6] sm:$0xff] }
  0x22   : > { %v473_v7 = vrot.slane %v260_v63, 1  ;;  %v290_v8 = vrot.slane %v288_v1, 1  ;;  %v296_v10 = vshll.u32 %v260_v63, 16  ;;  %862 = vmatprep.mubr.msk.bf16.mxu0 %vm300_vm1, %v472_v6  ;;  %v578_v13 = vrot.slane %v288_v1, 2 }
  0x23   : > { %v572_v11 = vsel %vm565_vm11, %v568_v4, %v571_v5  ;;  %v577_v12 = vrot.slane %v292_v3, 1  ;;  %v575_v18 = vor.u32 %v574_v59, %v573_v2  ;;  %v581_v19 = vshrl.u32 %v260_v63, 16  ;;  %v696_v59 = vld [vmem:[%s1045_s6 + $0x30] sm:$0xff]  ;;  %v694_v63 = vld [vmem:[%s1045_s6 + $0x20] sm:$0xff] }
  0x24   : > { %v474_v14 = vsel %vm465_vm2, %v471_v62, %v473_v7  ;;  %v291_v15 = vsel %vm263_vm7, %v286_v0, %v290_v8  ;;  %v294_v9 = vor.u32 %v292_v3, %v290_v8  ;;  %v298_v16 = vrot.slane %v296_v10, 1  ;;  %v697_v3 = vld [vmem:[%s1045_s6 + $0x38] sm:$0xff]  ;;  %v695_v7 = vld [vmem:[%s1045_s6 + $0x28] sm:$0xff] }
  0x25   : > { %863 = vmatmul.mubr.msk.bf16.gmra.mrb[4].mxu0 %vm300_vm1, %v474_v14  ;;  %842 = vmatprep.mubr.msk.bf16.mxu1 %vm300_vm1, %v291_v15  ;;  %v579_v20 = vor.u32 %v578_v13, %v577_v12  ;;  %v576_v21 = vsel %vm565_vm11, %v571_v5, %v575_v18  ;;  %v583_v22 = vrot.slane %v581_v19, 1  ;;  %v584_v23 = vrot.slane %v296_v10, 2 }
  0x26   : > { %v299_v17 = vsel %vm263_vm7, %v294_v9, %v298_v16  ;;  %868 = vmatprep.mubr.msk.bf16.mxu0 %vm300_vm1, %v572_v11 }
  0x27   : > { %v580_v25 = vsel %vm565_vm11, %v575_v18, %v579_v20  ;;  %v585_v26 = vor.u32 %v584_v23, %v583_v22 }
  0x28   : > { %843 = vmatmul.mubr.msk.bf16.gmra.mrb[4].mxu1 %vm300_vm1, %v299_v17 }
  0x29   : > { %848 = vmatprep.mubr.msk.bf16.mxu1 %vm300_vm1, %v990_v24  ;;  %v586_v27 = vsel %vm565_vm11, %v579_v20, %v585_v26 }
  0x2d   : > { %869 = vmatmul.mubr.msk.bf16.vlgmr.msra.gmra.mrb[0].mxu0 %vm300_vm1, %v576_v21 }
  0x2e   : > { %872 = vmatprep.mubr.msk.bf16.mxu0 %vm300_vm1, %v580_v25 }
  0x30   : > { %849 = vmatmul.mubr.msk.bf16.vlgmr.msra.gmra.mrb[0].mxu1 %vm300_vm1, %v994_v28 }
  0x31   : > { %852 = vmatprep.mubr.msk.bf16.mxu1 %vm300_vm1, %v997_v32  ;;  %v811_v32 = vld [vmem:[%s1084_s2] ss:$0 sm:$0xff] }
  0x35   : > { %873 = vmatmul.mubr.msk.bf16.gmra.mrb[4].mxu0 %vm300_vm1, %v586_v27 }
  0x38   : > { %853 = vmatmul.mubr.msk.bf16.gmra.mrb[4].mxu1 %vm300_vm1, %v258_v55 }
 0x100   : > { %v870_v24 = vpop.f32.mrb[0].mxu0 }
 0x101   : > { %v636_v29 = vpop.f32.mrb[1].mxu0 }
 0x102   : > { %v871_v30 = vpop.f32.mrb[2].mxu0 }
 0x103   : > { %v639_v28 = vpop.f32.mrb[3].mxu0  ;;  %v850_v31 = vpop.f32.mrb[0].mxu1 }
 0x104   : > { %v876_v33 = vadd.f32 %v870_v24, %v850_v31  ;;  %v427_v34 = vpop.f32.mrb[1].mxu1 }
 0x105   : > { %v877_v36 = vadd.f32 %v636_v29, %v427_v34  ;;  %v851_v37 = vpop.f32.mrb[2].mxu1 }
 0x106   : > { %v684_v38 = vadd.f32 %v876_v33, %v811_v32  ;;  %v878_v40 = vadd.f32 %v871_v30, %v851_v37  ;;  %v430_v41 = vpop.f32.mrb[3].mxu1 }
 0x107   : > { %v682_v42 = vadd.f32 %v877_v36, %v811_v32  ;;  %v879_v44 = vadd.f32 %v639_v28, %v430_v41 }
 0x108   : > { %v700_v45 = vadd.f32 %v692_v35, %v684_v38  ;;  %v685_v46 = vadd.f32 %v878_v40, %v811_v32  ;;  %v874_v48 = vpop.f32.mrb[4].mxu0 }
 0x109   : > { %v698_v49 = vadd.f32 %v690_v39, %v682_v42  ;;  %v683_v50 = vadd.f32 %v879_v44, %v811_v32  ;;  %v652_v51 = vpop.f32.mrb[5].mxu0 }
 0x10a   : > { %709 = vst.msk [vmem:[%s1055_s11 + $0x10] sm:$0xff] %vm706_vm14, %v700_v45  ;;  %v701_v52 = vadd.f32 %v693_v43, %v685_v46  ;;  %v875_v53 = vpop.f32.mrb[6].mxu0 }
 0x10b   : > { %707 = vst.msk [vmem:[%s1055_s11] sm:$0xff] %vm706_vm14, %v698_v49  ;;  %v699_v54 = vadd.f32 %v691_v47, %v683_v50  ;;  %v655_v55 = vpop.f32.mrb[7].mxu0  ;;  %v854_v56 = vpop.f32.mrb[4].mxu1 }
 0x10c   : > { %710 = vst.msk [vmem:[%s1055_s11 + $0x18] sm:$0xff] %vm706_vm14, %v701_v52  ;;  %v880_v57 = vadd.f32 %v874_v48, %v854_v56  ;;  %v443_v58 = vpop.f32.mrb[5].mxu1 }
 0x10d   : > { %708 = vst.msk [vmem:[%s1055_s11 + $0x8] sm:$0xff] %vm706_vm14, %v699_v54  ;;  %v881_v60 = vadd.f32 %v652_v51, %v443_v58  ;;  %v855_v61 = vpop.f32.mrb[6].mxu1 }
 0x10e   : > { %v688_v62 = vadd.f32 %v880_v57, %v811_v32  ;;  %v882_v0 = vadd.f32 %v875_v53, %v855_v61  ;;  %v446_v1 = vpop.f32.mrb[7].mxu1 }
 0x10f   : > { %v686_v2 = vadd.f32 %v881_v60, %v811_v32  ;;  %v883_v4 = vadd.f32 %v655_v55, %v446_v1 }
 0x110   : > { %v704_v5 = vadd.f32 %v696_v59, %v688_v62  ;;  %v689_v6 = vadd.f32 %v882_v0, %v811_v32 }
 0x111   : > { %v702_v8 = vadd.f32 %v694_v63, %v686_v2  ;;  %v687_v10 = vadd.f32 %v883_v4, %v811_v32 }
 0x112   : > { %713 = vst.msk [vmem:[%s1055_s11 + $0x30] sm:$0xff] %vm706_vm14, %v704_v5  ;;  %v705_v11 = vadd.f32 %v697_v3, %v689_v6 }
 0x113   : > { %711 = vst.msk [vmem:[%s1055_s11 + $0x20] sm:$0xff] %vm706_vm14, %v702_v8  ;;  %v703_v12 = vadd.f32 %v695_v7, %v687_v10 }
 0x114   : > { %714 = vst.msk [vmem:[%s1055_s11 + $0x38] sm:$0xff] %vm706_vm14, %v705_v11 }
 0x115   : > { %712 = vst.msk [vmem:[%s1055_s11 + $0x28] sm:$0xff] %vm706_vm14, %v703_v12 }
 0x116 PF: > { %s14_s15 = sadd.s32 1, %s919_s15  }
 0x117   : > { %p11_p4 = scmp.ge.s32.totalorder %s14_s15, 4  }
 0x119   :  { %13 = sbr.rel (!%p11_p4) target bundleno = 1 (0x1), region = 72 }

// kernel: generator_nsf_forward.18
= control target key start
LH: loop header
LB: loop body
LE: loop exit
PB: predicated region body
PF: predicated region fallthrough
CT: control target
= control target key end

     0   :  { %s2910_s18 = smov 0   ;;  %s3368_s0 = inlined_call_operand.vmem [shape: f32[2,64,4], index: 0, kind: input, shape index: {}]   ;;  %s3369_s1 = inlined_call_operand.vmem [shape: bf16[3,3,4,4], index: 1, kind: input, shape index: {}]   ;;  %s3370_s2 = inlined_call_operand.vmem [shape: f32[3,1,4], index: 2, kind: input, shape index: {}]   ;;  %s3371_s3 = inlined_call_operand.vmem [shape: bf16[3,3,4,4], index: 3, kind: input, shape index: {}]   ;;  %s3372_s4 = inlined_call_operand.vmem [shape: f32[3,1,4], index: 4, kind: input, shape index: {}]   ;;  %s3373_s5 = inlined_call_operand.vmem [shape: f32[2,64,4], index: 5, kind: output, shape index: {}]  }
   0x1 LB: > { %s2367_s19 = sadd.s32 4294967295, %s2877_s18   ;;  %p2371_p0 = scmp.ge.s32.totalorder %s2877_s18, 1  ;;  %s2877_s18 = sphi %s2910_s18, %s15_s18  }
   0x2   : > { %p187_p1 = scmp.lt.s32.totalorder %s2877_s18, 3 }
   0x4   : > { %p188_p2 = pnand %p2371_p0, %p187_p1 }
   0x5   : > { %v2376_v0 = vld [vmem:[%s3369_s1 + $0x2] sm:$0x3] (!%p188_p2)  ;;  %vm326_vm0 = vcmask (!%p188_p2), 1041408   ;;  %p2923_p3 = scmp.lt.s32.totalorder (!%p188_p2), %s2367_s19, 1  ;;  %vm226_vm1 = vcmask (!%p188_p2), 31744   ;;  %v2879_v2 = vmov (!%p188_p2), 0.0  }
   0x6   : > { %191 = sbr.rel (%p188_p2) target bundleno = 1611 (0x64b), region = 40  ;;  %2844 = vmatprep.subr.msk.bf16.mxu0 (!%p188_p2), %vm326_vm0, %v2376_v0  ;;  %v328_v1 = vsel (!%p188_p2), %vm326_vm0, %v2376_v0, 0  ;;  %227 = vst.msk [vmem:[#allocation2] sm:$0xff] (!%p188_p2), %vm226_vm1, %v2879_v2  ;;  %228 = vst.msk [vmem:[#allocation2 + $0x8] sm:$0xff] (!%p188_p2), %vm226_vm1, %v2879_v2  ;;  %v299_v3 = vld [vmem:[%s3369_s1] sm:$0x3] (!%p188_p2) }
   0x7   : > { %229 = vst.msk [vmem:[#allocation2 + $0x10] sm:$0xff] (!%p188_p2), %vm226_vm1, %v2879_v2  ;;  %230 = vst.msk [vmem:[#allocation2 + $0x18] sm:$0xff] (!%p188_p2), %vm226_vm1, %v2879_v2  ;;  %2569 = vmatpush3.bf16.msra.mxu0 (!%p188_p2), %v328_v1  ;;  %v408_v34 = vsel (!%p188_p2), %vm326_vm0, %v299_v3, 0  ;;  %v2385_v37 = vld [vmem:[%s3369_s1 + $0x4] sm:$0x3] (!%p188_p2)  ;;  %vm236_vm10 = vcmask (!%p188_p2), 25600  }
   0x8   : > { %231 = vst.msk [vmem:[#allocation2 + $0x20] sm:$0xff] (!%p188_p2), %vm226_vm1, %v2879_v2  ;;  %232 = vst.msk [vmem:[#allocation2 + $0x28] sm:$0xff] (!%p188_p2), %vm226_vm1, %v2879_v2  ;;  %2845 = vmatprep.subr.msk.bf16.mxu0 (!%p188_p2), %vm326_vm0, %v299_v3  ;;  %v502_v51 = vsel (!%p188_p2), %vm326_vm0, %v2385_v37, 0 }
   0x9   : > { %233 = vst.msk [vmem:[#allocation2 + $0x30] sm:$0xff] (!%p188_p2), %vm226_vm1, %v2879_v2  ;;  %234 = vst.msk [vmem:[#allocation2 + $0x38] sm:$0xff] (!%p188_p2), %vm226_vm1, %v2879_v2 }
   0xa   : > { %235 = vst.msk [vmem:[#allocation2 + $0x40] sm:$0xff] (!%p188_p2), %vm226_vm1, %v2879_v2  ;;  %238 = vst.msk [vmem:[#allocation3] sm:$0xff] (!%p188_p2), %vm226_vm1, %v2879_v2 }
   0xb   : > { %239 = vst.msk [vmem:[#allocation3 + $0x8] sm:$0xff] (!%p188_p2), %vm226_vm1, %v2879_v2  ;;  %240 = vst.msk [vmem:[#allocation3 + $0x10] sm:$0xff] (!%p188_p2), %vm226_vm1, %v2879_v2 }
   0xc   : > { %241 = vst.msk [vmem:[#allocation3 + $0x18] sm:$0xff] (!%p188_p2), %vm226_vm1, %v2879_v2  ;;  %242 = vst.msk [vmem:[#allocation3 + $0x20] sm:$0xff] (!%p188_p2), %vm226_vm1, %v2879_v2 }
   0xd   : > { %243 = vst.msk [vmem:[#allocation3 + $0x28] sm:$0xff] %vm226_vm1, %v2879_v2  ;;  %244 = vst.msk [vmem:[#allocation3 + $0x30] sm:$0xff] %vm226_vm1, %v2879_v2  ;;  %s3376_s19 = smov (!%p2923_p3, %s2367_s19), 1 }
   0xe   : > { %245 = vst.msk [vmem:[#allocation3 + $0x38] sm:$0xff] %vm226_vm1, %v2879_v2  ;;  %s2476_s25 = sshll.u32 %s3376_s19, 6 }
   0xf   : > { %s219_s28 = scalar_lea.vmem %s3368_s0, %s2476_s25  ;;  %237 = vst.msk [vmem:[#allocation2 + $0x48] sm:$0x3] %vm236_vm10, %v2879_v2  ;;  %246 = vst.msk [vmem:[#allocation3 + $0x40] sm:$0x3] %vm236_vm10, %v2879_v2  ;;  %s224_s6 = scalar_lea.vmem %s3373_s5, %s2476_s25 }
  0x10   : > { %v2979_v4 = vld [vmem:[%s219_s28] sm:$0xff]  ;;  %v2981_v5 = vld [vmem:[%s219_s28 + $0x8] sm:$0xff]  ;;  %v2983_v6 = vld [vmem:[%s219_s28 + $0x10] sm:$0xff] }
  0x11   : > { %vm255_vm2 = vcmp.ge.f32.partialorder %v2979_v4, 0.0  ;;  %vm256_vm3 = vcmp.ge.f32.partialorder %v2981_v5, 0.0  ;;  %v263_v7 = vmul.f32 0.1, %v2979_v4  ;;  %v264_v8 = vmul.f32 0.1, %v2981_v5 }
  0x12   : > { %v2989_v9 = vld [vmem:[%s219_s28 + $0x18] sm:$0xff]  ;;  %vm257_vm4 = vcmp.ge.f32.partialorder %v2983_v6, 0.0  ;;  %v265_v10 = vmul.f32 0.1, %v2983_v6  ;;  %v2993_v11 = vld [vmem:[%s219_s28 + $0x20] sm:$0xff]  ;;  %v2995_v12 = vld [vmem:[%s219_s28 + $0x28] sm:$0xff] }
  0x13   : > { %v271_v13 = vsel %vm255_vm2, %v2979_v4, %v263_v7  ;;  %v272_v14 = vsel %vm256_vm3, %v2981_v5, %v264_v8  ;;  %vm258_vm5 = vcmp.ge.f32.partialorder %v2989_v9, 0.0  ;;  %v266_v15 = vmul.f32 0.1, %v2989_v9  ;;  %v3001_v16 = vld [vmem:[%s219_s28 + $0x30] sm:$0xff]  ;;  %v3003_v17 = vld [vmem:[%s219_s28 + $0x38] sm:$0xff] }
  0x14   : > { %279 = vst.msk [vmem:[#allocation2 + $0x5] sm:$0xff] %vm226_vm1, %v271_v13  ;;  %280 = vst.msk [vmem:[#allocation2 + $0xd] sm:$0xff] %vm226_vm1, %v272_v14  ;;  %v273_v18 = vsel %vm257_vm4, %v2983_v6, %v265_v10  ;;  %vm259_vm6 = vcmp.ge.f32.partialorder %v2993_v11, 0.0  ;;  %vm260_vm7 = vcmp.ge.f32.partialorder %v2995_v12, 0.0  ;;  %v267_v19 = vmul.f32 0.1, %v2993_v11 }
  0x15   : > { %v274_v20 = vsel %vm258_vm5, %v2989_v9, %v266_v15  ;;  %281 = vst.msk [vmem:[#allocation2 + $0x15] sm:$0xff] %vm226_vm1, %v273_v18  ;;  %v268_v21 = vmul.f32 0.1, %v2995_v12  ;;  %vm261_vm8 = vcmp.ge.f32.partialorder %v3001_v16, 0.0  ;;  %vm262_vm9 = vcmp.ge.f32.partialorder %v3003_v17, 0.0 }
  0x16   : > { %282 = vst.msk [vmem:[#allocation2 + $0x1d] sm:$0xff] %vm226_vm1, %v274_v20  ;;  %v275_v22 = vsel %vm259_vm6, %v2993_v11, %v267_v19  ;;  %v269_v23 = vmul.f32 0.1, %v3001_v16  ;;  %v270_v24 = vmul.f32 0.1, %v3003_v17 }
  0x17   : > { %v276_v25 = vsel %vm260_vm7, %v2995_v12, %v268_v21  ;;  %283 = vst.msk [vmem:[#allocation2 + $0x25] sm:$0xff] %vm226_vm1, %v275_v22  ;;  %v2391_v7 = vld [vmem:[%s3371_s3 + $0x2] sm:$0x3]  ;;  %v636_v10 = vld [vmem:[%s3371_s3] sm:$0x3] }
  0x18   : > { %284 = vst.msk [vmem:[#allocation2 + $0x2d] sm:$0xff] %vm226_vm1, %v276_v25  ;;  %v277_v26 = vsel %vm261_vm8, %v3001_v16, %v269_v23  ;;  %v278_v27 = vsel %vm262_vm9, %v3003_v17, %v270_v24  ;;  %2847 = vmatprep.subr.msk.bf16.mxu1 %vm326_vm0, %v2391_v7  ;;  %v664_v8 = vsel %vm326_vm0, %v2391_v7, 0  ;;  %v2390_v13 = vld [vmem:[%s3370_s2] ss:$0 sm:$0xff] }
  0x19   : > { %285 = vst.msk [vmem:[#allocation2 + $0x35] sm:$0xff] %vm226_vm1, %v277_v26  ;;  %286 = vst.msk [vmem:[#allocation2 + $0x3d] sm:$0xff] %vm226_vm1, %v278_v27  ;;  %2599 = vmatpush3.bf16.msra.mxu1 %v664_v8 }
  0x1a   : > { %2848 = vmatprep.subr.msk.bf16.mxu1 %vm326_vm0, %v636_v10 }
  0x1b   : > { %v300_v28 = vld [vmem:[#allocation2 + $0x5] sm:$0xff]  ;;  %v301_v29 = vld [vmem:[#allocation2 + $0xd] sm:$0xff] }
  0x1c   : > { %v308_v30 = vpack.c.bf16 %v301_v29, %v300_v28  ;;  %v302_v31 = vld [vmem:[#allocation2 + $0x15] sm:$0xff]  ;;  %v287_v41 = vld [vmem:[#allocation2 + $0x4] sm:$0xff]  ;;  %v288_v42 = vld [vmem:[#allocation2 + $0xc] sm:$0xff] }
  0x1d   : > { %v303_v32 = vld [vmem:[#allocation2 + $0x1d] sm:$0xff]  ;;  %v295_v44 = vpack.c.bf16 %v288_v42, %v287_v41  ;;  %v289_v45 = vld [vmem:[#allocation2 + $0x14] sm:$0xff]  ;;  %v475_v54 = vld [vmem:[#allocation2 + $0x6] sm:$0xff] }
  0x1e   : > { %2570 = vmatprep.mubr.msk.bf16.mxu0 %vm226_vm1, %v308_v30  ;;  %v309_v33 = vpack.c.bf16 %v303_v32, %v302_v31  ;;  %v304_v35 = vld [vmem:[#allocation2 + $0x25] sm:$0xff]  ;;  %v290_v46 = vld [vmem:[#allocation2 + $0x1c] sm:$0xff]  ;;  %v476_v55 = vld [vmem:[#allocation2 + $0xe] sm:$0xff] }
  0x1f   : > { %v305_v36 = vld [vmem:[#allocation2 + $0x2d] sm:$0xff]  ;;  %v291_v47 = vld [vmem:[#allocation2 + $0x24] sm:$0xff]  ;;  %v296_v49 = vpack.c.bf16 %v290_v46, %v289_v45  ;;  %v483_v57 = vpack.c.bf16 %v476_v55, %v475_v54  ;;  %v477_v58 = vld [vmem:[#allocation2 + $0x16] sm:$0xff] }
  0x20   : > { %2571 = vmatmul.mubr.msk.bf16.vlgmr.msra.gmra.mrb[0].mxu0 %vm226_vm1, %v309_v33  ;;  %v310_v38 = vpack.c.bf16 %v305_v36, %v304_v35  ;;  %v306_v39 = vld [vmem:[#allocation2 + $0x35] sm:$0xff]  ;;  %v307_v40 = vld [vmem:[#allocation2 + $0x3d] sm:$0xff]  ;;  %v292_v48 = vld [vmem:[#allocation2 + $0x2c] sm:$0xff] }
  0x21   : > { %2579 = vmatpush3.bf16.msra.mxu0 %v408_v34  ;;  %v311_v43 = vpack.c.bf16 %v307_v40, %v306_v39  ;;  %v297_v50 = vpack.c.bf16 %v292_v48, %v291_v47  ;;  %v293_v52 = vld [vmem:[#allocation2 + $0x34] sm:$0xff]  ;;  %v294_v53 = vld [vmem:[#allocation2 + $0x3c] sm:$0xff]  ;;  %v479_v60 = vld [vmem:[#allocation2 + $0x26] sm:$0xff] }
  0x22   : > { %2574 = vmatprep.mubr.msk.bf16.mxu0 %vm226_vm1, %v310_v38  ;;  %2846 = vmatprep.subr.msk.bf16.mxu0 %vm326_vm0, %v2385_v37  ;;  %v298_v56 = vpack.c.bf16 %v294_v53, %v293_v52  ;;  %v478_v59 = vld [vmem:[#allocation2 + $0x1e] sm:$0xff]  ;;  %v480_v61 = vld [vmem:[#allocation2 + $0x2e] sm:$0xff]  ;;  %v481_v0 = vld [vmem:[#allocation2 + $0x36] sm:$0xff]  ;;  %v744_v53 = vsel %vm326_vm0, %v636_v10, 0 }
  0x23   : > { %v484_v62 = vpack.c.bf16 %v478_v59, %v477_v58  ;;  %v485_v63 = vpack.c.bf16 %v480_v61, %v479_v60  ;;  %v482_v1 = vld [vmem:[#allocation2 + $0x3e] sm:$0xff] }
  0x24   : > { %v486_v3 = vpack.c.bf16 %v482_v1, %v481_v0  ;;  %v2400_v54 = vld [vmem:[%s3371_s3 + $0x4] sm:$0x3] }
  0x25   : > { %v838_v8 = vsel %vm326_vm0, %v2400_v54, 0 }
  0x28   : > { %2575 = vmatmul.mubr.msk.bf16.gmra.mrb[4].mxu0 %vm226_vm1, %v311_v43 }
  0x29   : > { %2580 = vmatprep.mubr.msk.bf16.mxu0 %vm226_vm1, %v295_v44 }
  0x30   : > { %2581 = vmatmul.mubr.msk.bf16.vlgmr.msra.gmra.mrb[0].mxu0 %vm226_vm1, %v296_v49 }
  0x31   : > { %2589 = vmatpush3.bf16.msra.mxu0 %v502_v51  ;;  %2584 = vmatprep.mubr.msk.bf16.mxu0 %vm226_vm1, %v297_v50 }
  0x38   : > { %2585 = vmatmul.mubr.msk.bf16.gmra.mrb[4].mxu0 %vm226_vm1, %v298_v56 }
  0x39   : > { %2590 = vmatprep.mubr.msk.bf16.mxu0 %vm226_vm1, %v483_v57 }
  0x40   : > { %2591 = vmatmul.mubr.msk.bf16.vlgmr.msra.gmra.mrb[0].mxu0 %vm226_vm1, %v484_v62 }
  0x41   : > { %2594 = vmatprep.mubr.msk.bf16.mxu0 %vm226_vm1, %v485_v63 }
  0x48   : > { %2595 = vmatmul.mubr.msk.bf16.gmra.mrb[4].mxu0 %vm226_vm1, %v486_v3 }
 0x113   : > { %v2592_v2 = vpop.f32.mrb[0].mxu0 }
 0x114   : > { %v586_v14 = vadd.f32 %v2592_v2, %v2390_v13  ;;  %v538_v15 = vpop.f32.mrb[1].mxu0 }
 0x115   : > { %v584_v18 = vadd.f32 %v2390_v13, %v538_v15  ;;  %v2593_v19 = vpop.f32.mrb[2].mxu0 }
 0x116   : > { %vm594_vm11 = vcmp.ge.f32.partialorder %v586_v14, 0.0  ;;  %v602_v20 = vmul.f32 0.1, %v586_v14  ;;  %v587_v21 = vadd.f32 %v2593_v19, %v2390_v13  ;;  %v541_v22 = vpop.f32.mrb[3].mxu0 }
 0x117   : > { %vm592_vm12 = vcmp.ge.f32.partialorder %v584_v18, 0.0  ;;  %v600_v23 = vmul.f32 0.1, %v584_v18  ;;  %v585_v24 = vadd.f32 %v2390_v13, %v541_v22 }
 0x118   : > { %v610_v25 = vsel %vm594_vm11, %v586_v14, %v602_v20  ;;  %vm595_vm13 = vcmp.ge.f32.partialorder %v587_v21, 0.0  ;;  %v603_v26 = vmul.f32 0.1, %v587_v21 }
 0x119   : > { %618 = vst.msk [vmem:[#allocation3 + $0x11] sm:$0xff] %vm226_vm1, %v610_v25  ;;  %v608_v27 = vsel %vm592_vm12, %v584_v18, %v600_v23  ;;  %vm593_vm14 = vcmp.ge.f32.partialorder %v585_v24, 0.0  ;;  %v601_v28 = vmul.f32 0.1, %v585_v24 }
 0x11a   : > { %616 = vst.msk [vmem:[#allocation3 + $0x1] sm:$0xff] %vm226_vm1, %v608_v27  ;;  %v611_v29 = vsel %vm595_vm13, %v587_v21, %v603_v26 }
 0x11b   : > { %619 = vst.msk [vmem:[#allocation3 + $0x19] sm:$0xff] %vm226_vm1, %v611_v29  ;;  %v609_v30 = vsel %vm593_vm14, %v585_v24, %v601_v28  ;;  %v2596_v31 = vpop.f32.mrb[4].mxu0 }
 0x11c   : > { %617 = vst.msk [vmem:[#allocation3 + $0x9] sm:$0xff] %vm226_vm1, %v609_v30  ;;  %v590_v32 = vadd.f32 %v2596_v31, %v2390_v13  ;;  %v554_v33 = vpop.f32.mrb[5].mxu0  ;;  %v2407_v30 = vld [vmem:[%s3369_s1 + $0x8] sm:$0x3] }
 0x11d   : > { %v588_v34 = vadd.f32 %v2390_v13, %v554_v33  ;;  %v2597_v35 = vpop.f32.mrb[6].mxu0  ;;  %2850 = vmatprep.subr.msk.bf16.mxu0 %vm326_vm0, %v2407_v30  ;;  %v1009_v31 = vsel %vm326_vm0, %v2407_v30, 0  ;;  %v2405_v33 = vld [vmem:[%s3372_s4] ss:$0 sm:$0xff] }
 0x11e   : > { %vm598_vm15 = vcmp.ge.f32.partialorder %v590_v32, 0.0  ;;  %v606_v36 = vmul.f32 0.1, %v590_v32  ;;  %v591_v37 = vadd.f32 %v2597_v35, %v2390_v13  ;;  %v557_v38 = vpop.f32.mrb[7].mxu0  ;;  %2629 = vmatpush3.bf16.msra.mxu0 %v1009_v31 }
 0x11f   : > { %vm596_vm2 = vcmp.ge.f32.partialorder %v588_v34, 0.0  ;;  %v604_v39 = vmul.f32 0.1, %v588_v34  ;;  %v589_v40 = vadd.f32 %v2390_v13, %v557_v38 }
 0x120   : > { %v614_v41 = vsel %vm598_vm15, %v590_v32, %v606_v36  ;;  %vm599_vm3 = vcmp.ge.f32.partialorder %v591_v37, 0.0  ;;  %v607_v42 = vmul.f32 0.1, %v591_v37  ;;  %v639_v51 = vld [vmem:[#allocation3 + $0x11] sm:$0xff] }
 0x121   : > { %622 = vst.msk [vmem:[#allocation3 + $0x31] sm:$0xff] %vm226_vm1, %v614_v41  ;;  %v612_v43 = vsel %vm596_vm2, %v588_v34, %v604_v39  ;;  %vm597_vm4 = vcmp.ge.f32.partialorder %v589_v40, 0.0  ;;  %v605_v44 = vmul.f32 0.1, %v589_v40  ;;  %v637_v48 = vld [vmem:[#allocation3 + $0x1] sm:$0xff] }
 0x122   : > { %620 = vst.msk [vmem:[#allocation3 + $0x21] sm:$0xff] %vm226_vm1, %v612_v43  ;;  %v615_v45 = vsel %vm599_vm3, %v591_v37, %v607_v42  ;;  %v640_v46 = vld [vmem:[#allocation3 + $0x19] sm:$0xff]  ;;  %v3093_v32 = vld [vmem:[%s3369_s1 + $0x6] sm:$0x3] }
 0x123   : > { %623 = vst.msk [vmem:[#allocation3 + $0x39] sm:$0xff] %vm226_vm1, %v615_v45  ;;  %v613_v47 = vsel %vm597_vm4, %v589_v40, %v605_v44  ;;  %v638_v49 = vld [vmem:[#allocation3 + $0x9] sm:$0xff]  ;;  %v646_v52 = vpack.c.bf16 %v640_v46, %v639_v51  ;;  %v624_v62 = vld [vmem:[#allocation3] sm:$0xff]  ;;  %v627_v1 = vld [vmem:[#allocation3 + $0x18] sm:$0xff]  ;;  %2851 = vmatprep.subr.msk.bf16.mxu0 %vm326_vm0, %v3093_v32 }
 0x124   : > { %621 = vst.msk [vmem:[#allocation3 + $0x29] sm:$0xff] %vm226_vm1, %v613_v47  ;;  %v645_v50 = vpack.c.bf16 %v638_v49, %v637_v48  ;;  %v625_v58 = vld [vmem:[#allocation3 + $0x8] sm:$0xff]  ;;  %v626_v0 = vld [vmem:[#allocation3 + $0x10] sm:$0xff] }
 0x125   : > { %v632_v63 = vpack.c.bf16 %v625_v58, %v624_v62  ;;  %v633_v7 = vpack.c.bf16 %v627_v1, %v626_v0  ;;  %v811_v15 = vld [vmem:[#allocation3 + $0x2] sm:$0xff]  ;;  %v812_v18 = vld [vmem:[#allocation3 + $0xa] sm:$0xff]  ;;  %v813_v24 = vld [vmem:[#allocation3 + $0x12] sm:$0xff] }
 0x126   : > { %2600 = vmatprep.mubr.msk.bf16.mxu1 %vm226_vm1, %v645_v50  ;;  %v819_v20 = vpack.c.bf16 %v812_v18, %v811_v15  ;;  %v2416_v15 = vld [vmem:[%s3369_s1 + $0xa] sm:$0x3] }
 0x127   : > { %2601 = vmatmul.mubr.msk.bf16.vlgmr.msra.gmra.mrb[0].mxu1 %vm226_vm1, %v646_v52  ;;  %v1183_v31 = vsel %vm326_vm0, %v2416_v15, 0 }
 0x128   : > { %2609 = vmatpush3.bf16.msra.mxu1 %v744_v53  ;;  %v643_v60 = vld [vmem:[#allocation3 + $0x31] sm:$0xff] }
 0x129   : > { %2849 = vmatprep.subr.msk.bf16.mxu1 %vm326_vm0, %v2400_v54  ;;  %v641_v56 = vld [vmem:[#allocation3 + $0x21] sm:$0xff] }
 0x12a   : > { %v644_v55 = vld [vmem:[#allocation3 + $0x39] sm:$0xff] }
 0x12b   : > { %v642_v57 = vld [vmem:[#allocation3 + $0x29] sm:$0xff]  ;;  %v648_v61 = vpack.c.bf16 %v644_v55, %v643_v60  ;;  %v628_v10 = vld [vmem:[#allocation3 + $0x20] sm:$0xff]  ;;  %v631_v14 = vld [vmem:[#allocation3 + $0x38] sm:$0xff] }
 0x12c   : > { %v647_v59 = vpack.c.bf16 %v642_v57, %v641_v56  ;;  %v629_v3 = vld [vmem:[#allocation3 + $0x28] sm:$0xff]  ;;  %v630_v2 = vld [vmem:[#allocation3 + $0x30] sm:$0xff]  ;;  %v814_v21 = vld [vmem:[#allocation3 + $0x1a] sm:$0xff] }
 0x12d   : > { %v634_v13 = vpack.c.bf16 %v629_v3, %v628_v10  ;;  %v635_v19 = vpack.c.bf16 %v631_v14, %v630_v2  ;;  %v815_v22 = vld [vmem:[#allocation3 + $0x22] sm:$0xff]  ;;  %v816_v23 = vld [vmem:[#allocation3 + $0x2a] sm:$0xff]  ;;  %v820_v25 = vpack.c.bf16 %v814_v21, %v813_v24  ;;  %v817_v27 = vld [vmem:[#allocation3 + $0x32] sm:$0xff]  ;;  %v1089_v14 = vsel %vm326_vm0, %v3093_v32, 0 }
 0x12e   : > { %2604 = vmatprep.mubr.msk.bf16.mxu1 %vm226_vm1, %v647_v59  ;;  %v821_v26 = vpack.c.bf16 %v816_v23, %v815_v22  ;;  %v818_v28 = vld [vmem:[#allocation3 + $0x3a] sm:$0xff] }
 0x12f   : > { %2605 = vmatmul.mubr.msk.bf16.gmra.mrb[4].mxu1 %vm226_vm1, %v648_v61  ;;  %v822_v29 = vpack.c.bf16 %v818_v28, %v817_v27 }
 0x130   : > { %2610 = vmatprep.mubr.msk.bf16.mxu1 %vm226_vm1, %v632_v63 }
 0x137   : > { %2611 = vmatmul.mubr.msk.bf16.vlgmr.msra.gmra.mrb[0].mxu1 %vm226_vm1, %v633_v7 }
 0x138   : > { %2619 = vmatpush3.bf16.msra.mxu1 %v838_v8  ;;  %2614 = vmatprep.mubr.msk.bf16.mxu1 %vm226_vm1, %v634_v13 }
 0x13f   : > { %2615 = vmatmul.mubr.msk.bf16.gmra.mrb[4].mxu1 %vm226_vm1, %v635_v19 }
 0x140   : > { %2620 = vmatprep.mubr.msk.bf16.mxu1 %vm226_vm1, %v819_v20 }
 0x147   : > { %2621 = vmatmul.mubr.msk.bf16.vlgmr.msra.gmra.mrb[0].mxu1 %vm226_vm1, %v820_v25 }
 0x148   : > { %2624 = vmatprep.mubr.msk.bf16.mxu1 %vm226_vm1, %v821_v26 }
 0x14f   : > { %2625 = vmatmul.mubr.msk.bf16.gmra.mrb[4].mxu1 %vm226_vm1, %v822_v29 }
 0x21a   : > { %v2622_v34 = vpop.f32.mrb[0].mxu1 }
 0x21b   : > { %v922_v35 = vadd.f32 %v2622_v34, %v2405_v33  ;;  %v874_v36 = vpop.f32.mrb[1].mxu1 }
 0x21c   : > { %v920_v37 = vadd.f32 %v2405_v33, %v874_v36  ;;  %v2623_v38 = vpop.f32.mrb[2].mxu1 }
 0x21d   : > { %v3101_v39 = vadd.f32 %v922_v35, %v2983_v6  ;;  %v923_v40 = vadd.f32 %v2623_v38, %v2405_v33  ;;  %v877_v41 = vpop.f32.mrb[3].mxu1 }
 0x21e   : > { %v3104_v42 = vadd.f32 %v920_v37, %v2979_v4  ;;  %v921_v43 = vadd.f32 %v2405_v33, %v877_v41 }
 0x21f   : > { %vm938_vm5 = vcmp.ge.f32.partialorder %v3101_v39, 0.0  ;;  %v946_v44 = vmul.f32 0.1, %v3101_v39  ;;  %v3109_v45 = vadd.f32 %v923_v40, %v2989_v9 }
 0x220   : > { %vm936_vm6 = vcmp.ge.f32.partialorder %v3104_v42, 0.0  ;;  %v944_v46 = vmul.f32 0.1, %v3104_v42  ;;  %v3114_v6 = vadd.f32 %v921_v43, %v2981_v5 }
 0x221   : > { %v954_v47 = vsel %vm938_vm5, %v3101_v39, %v946_v44  ;;  %vm939_vm7 = vcmp.ge.f32.partialorder %v3109_v45, 0.0  ;;  %v947_v4 = vmul.f32 0.1, %v3109_v45 }
 0x222   : > { %962 = vst.msk [vmem:[#allocation2 + $0x15] sm:$0xff] %vm226_vm1, %v954_v47  ;;  %v952_v48 = vsel %vm936_vm6, %v3104_v42, %v944_v46  ;;  %vm937_vm8 = vcmp.ge.f32.partialorder %v3114_v6, 0.0  ;;  %v945_v9 = vmul.f32 0.1, %v3114_v6  ;;  %v2626_v49 = vpop.f32.mrb[4].mxu1 }
 0x223   : > { %960 = vst.msk [vmem:[#allocation2 + $0x5] sm:$0xff] %vm226_vm1, %v952_v48  ;;  %v955_v5 = vsel %vm939_vm7, %v3109_v45, %v947_v4  ;;  %v926_v50 = vadd.f32 %v2626_v49, %v2405_v33  ;;  %v890_v51 = vpop.f32.mrb[5].mxu1 }
 0x224   : > { %963 = vst.msk [vmem:[#allocation2 + $0x1d] sm:$0xff] %vm226_vm1, %v955_v5  ;;  %v953_v52 = vsel %vm937_vm8, %v3114_v6, %v945_v9  ;;  %v924_v53 = vadd.f32 %v2405_v33, %v890_v51  ;;  %v2627_v54 = vpop.f32.mrb[6].mxu1  ;;  %v2424_v5 = vld [vmem:[%s3371_s3 + $0x8] sm:$0x3]  ;;  %v2423_v51 = vld [vmem:[%s3371_s3 + $0x6] sm:$0x3] }
 0x225   : > { %961 = vst.msk [vmem:[#allocation2 + $0xd] sm:$0xff] %vm226_vm1, %v953_v52  ;;  %v3129_v55 = vadd.f32 %v926_v50, %v3001_v16  ;;  %v927_v56 = vadd.f32 %v2627_v54, %v2405_v33  ;;  %v893_v57 = vpop.f32.mrb[7].mxu1  ;;  %2853 = vmatprep.subr.msk.bf16.mxu1 %vm326_vm0, %v2424_v5  ;;  %v1347_v50 = vsel %vm326_vm0, %v2424_v5, 0  ;;  %v2422_v52 = vld [vmem:[%s3370_s2 + $0x1] ss:$0 sm:$0xff] }
 0x226   : > { %v3132_v58 = vadd.f32 %v924_v53, %v2993_v11  ;;  %v925_v59 = vadd.f32 %v2405_v33, %v893_v57  ;;  %2659 = vmatpush3.bf16.msra.mxu1 %v1347_v50 }
 0x227   : > { %vm942_vm9 = vcmp.ge.f32.partialorder %v3129_v55, 0.0  ;;  %v950_v60 = vmul.f32 0.1, %v3129_v55  ;;  %v3137_v61 = vadd.f32 %v927_v56, %v3003_v17  ;;  %2854 = vmatprep.subr.msk.bf16.mxu1 %vm326_vm0, %v2423_v51 }
 0x228   : > { %vm940_vm10 = vcmp.ge.f32.partialorder %v3132_v58, 0.0  ;;  %v948_v62 = vmul.f32 0.1, %v3132_v58  ;;  %v3142_v16 = vadd.f32 %v925_v59, %v2995_v12 }
 0x229   : > { %v958_v63 = vsel %vm942_vm9, %v3129_v55, %v950_v60  ;;  %vm943_vm11 = vcmp.ge.f32.partialorder %v3137_v61, 0.0  ;;  %v951_v11 = vmul.f32 0.1, %v3137_v61  ;;  %v984_v13 = vld [vmem:[#allocation2 + $0x15] sm:$0xff] }
 0x22a   : > { %966 = vst.msk [vmem:[#allocation2 + $0x35] sm:$0xff] %vm226_vm1, %v958_v63  ;;  %v956_v0 = vsel %vm940_vm10, %v3132_v58, %v948_v62  ;;  %vm941_vm12 = vcmp.ge.f32.partialorder %v3142_v16, 0.0  ;;  %v949_v17 = vmul.f32 0.1, %v3142_v16  ;;  %v982_v7 = vld [vmem:[#allocation2 + $0x5] sm:$0xff] }
 0x22b   : > { %964 = vst.msk [vmem:[#allocation2 + $0x25] sm:$0xff] %vm226_vm1, %v956_v0  ;;  %v959_v1 = vsel %vm943_vm11, %v3137_v61, %v951_v11  ;;  %v985_v12 = vld [vmem:[#allocation2 + $0x1d] sm:$0xff] }
 0x22c   : > { %967 = vst.msk [vmem:[#allocation2 + $0x3d] sm:$0xff] %vm226_vm1, %v959_v1  ;;  %v957_v3 = vsel %vm941_vm12, %v3142_v16, %v949_v17  ;;  %v983_v8 = vld [vmem:[#allocation2 + $0xd] sm:$0xff]  ;;  %v991_v2 = vpack.c.bf16 %v985_v12, %v984_v13  ;;  %v968_v25 = vld [vmem:[#allocation2 + $0x2] sm:$0xff]  ;;  %v971_v28 = vld [vmem:[#allocation2 + $0x1a] sm:$0xff] }
 0x22d   : > { %965 = vst.msk [vmem:[#allocation2 + $0x2d] sm:$0xff] %vm226_vm1, %v957_v3  ;;  %v990_v10 = vpack.c.bf16 %v983_v8, %v982_v7  ;;  %v969_v21 = vld [vmem:[#allocation2 + $0xa] sm:$0xff]  ;;  %v970_v27 = vld [vmem:[#allocation2 + $0x12] sm:$0xff] }
 0x22e   : > { %v976_v26 = vpack.c.bf16 %v969_v21, %v968_v25  ;;  %v977_v30 = vpack.c.bf16 %v971_v28, %v970_v27  ;;  %v1156_v36 = vld [vmem:[#allocation2 + $0x8] sm:$0xff]  ;;  %v1157_v37 = vld [vmem:[#allocation2 + $0x10] sm:$0xff]  ;;  %v1158_v46 = vld [vmem:[#allocation2 + $0x18] sm:$0xff] }
 0x22f   : > { %2630 = vmatprep.mubr.msk.bf16.mxu0 %vm226_vm1, %v990_v10  ;;  %v1164_v40 = vpack.c.bf16 %v1157_v37, %v1156_v36  ;;  %v2433_v36 = vld [vmem:[%s3371_s3 + $0xa] sm:$0x3] }
 0x230   : > { %2631 = vmatmul.mubr.msk.bf16.vlgmr.msra.gmra.mrb[8].mxu0 %vm226_vm1, %v991_v2  ;;  %v1521_v50 = vsel %vm326_vm0, %v2433_v36, 0 }
 0x231   : > { %2639 = vmatpush3.bf16.msra.mxu0 %v1089_v14  ;;  %v988_v23 = vld [vmem:[#allocation2 + $0x35] sm:$0xff] }
 0x232   : > { %2852 = vmatprep.subr.msk.bf16.mxu0 %vm326_vm0, %v2416_v15  ;;  %v986_v19 = vld [vmem:[#allocation2 + $0x25] sm:$0xff] }
 0x233   : > { %v989_v18 = vld [vmem:[#allocation2 + $0x3d] sm:$0xff] }
 0x234   : > { %v987_v20 = vld [vmem:[#allocation2 + $0x2d] sm:$0xff]  ;;  %v993_v24 = vpack.c.bf16 %v989_v18, %v988_v23  ;;  %v972_v32 = vld [vmem:[#allocation2 + $0x22] sm:$0xff]  ;;  %v975_v35 = vld [vmem:[#allocation2 + $0x3a] sm:$0xff] }
 0x235   : > { %v992_v22 = vpack.c.bf16 %v987_v20, %v986_v19  ;;  %v973_v29 = vld [vmem:[#allocation2 + $0x2a] sm:$0xff]  ;;  %v974_v34 = vld [vmem:[#allocation2 + $0x32] sm:$0xff]  ;;  %v1159_v41 = vld [vmem:[#allocation2 + $0x20] sm:$0xff] }
 0x236   : > { %v978_v33 = vpack.c.bf16 %v973_v29, %v972_v32  ;;  %v979_v38 = vpack.c.bf16 %v975_v35, %v974_v34  ;;  %v1160_v43 = vld [vmem:[#allocation2 + $0x28] sm:$0xff]  ;;  %v1161_v44 = vld [vmem:[#allocation2 + $0x30] sm:$0xff]  ;;  %v1165_v47 = vpack.c.bf16 %v1159_v41, %v1158_v46  ;;  %v1162_v48 = vld [vmem:[#allocation2 + $0x38] sm:$0xff]  ;;  %v1427_v35 = vsel %vm326_vm0, %v2423_v51, 0 }
 0x237   : > { %2634 = vmatprep.mubr.msk.bf16.mxu0 %vm226_vm1, %v992_v22  ;;  %v1166_v4 = vpack.c.bf16 %v1161_v44, %v1160_v43  ;;  %v1163_v9 = vld [vmem:[#allocation2 + $0x40] sm:$0xff] }
 0x238   : > { %2635 = vmatmul.mubr.msk.bf16.gmra.mrb[12].mxu0 %vm226_vm1, %v993_v24  ;;  %v1167_v49 = vpack.c.bf16 %v1163_v9, %v1162_v48 }
 0x239   : > { %2640 = vmatprep.mubr.msk.bf16.mxu0 %vm226_vm1, %v976_v26 }
 0x240   : > { %2641 = vmatmul.mubr.msk.bf16.vlgmr.msra.gmra.mrb[8].mxu0 %vm226_vm1, %v977_v30 }
 0x241   : > { %2649 = vmatpush3.bf16.msra.mxu0 %v1183_v31  ;;  %2644 = vmatprep.mubr.msk.bf16.mxu0 %vm226_vm1, %v978_v33 }
 0x248   : > { %2645 = vmatmul.mubr.msk.bf16.gmra.mrb[12].mxu0 %vm226_vm1, %v979_v38 }
 0x249   : > { %2650 = vmatprep.mubr.msk.bf16.mxu0 %vm226_vm1, %v1164_v40 }
 0x250   : > { %2651 = vmatmul.mubr.msk.bf16.vlgmr.msra.gmra.mrb[8].mxu0 %vm226_vm1, %v1165_v47 }
 0x251   : > { %2654 = vmatprep.mubr.msk.bf16.mxu0 %vm226_vm1, %v1166_v4 }
 0x258   : > { %2655 = vmatmul.mubr.msk.bf16.gmra.mrb[12].mxu0 %vm226_vm1, %v1167_v49 }
 0x323   : > { %v2652_v53 = vpop.f32.mrb[8].mxu0 }
 0x324   : > { %v1268_v54 = vadd.f32 %v2652_v53, %v2422_v52  ;;  %v1219_v56 = vpop.f32.mrb[9].mxu0 }
 0x325   : > { %v1266_v57 = vadd.f32 %v2422_v52, %v1219_v56  ;;  %v2653_v59 = vpop.f32.mrb[10].mxu0 }
 0x326   : > { %vm1276_vm13 = vcmp.ge.f32.partialorder %v1268_v54, 0.0  ;;  %v1284_v60 = vmul.f32 0.1, %v1268_v54  ;;  %v1269_v62 = vadd.f32 %v2653_v59, %v2422_v52  ;;  %v1222_v63 = vpop.f32.mrb[11].mxu0 }
 0x327   : > { %vm1274_vm14 = vcmp.ge.f32.partialorder %v1266_v57, 0.0  ;;  %v1282_v11 = vmul.f32 0.1, %v1266_v57  ;;  %v1267_v0 = vadd.f32 %v2422_v52, %v1222_v63 }
 0x328   : > { %v1292_v17 = vsel %vm1276_vm13, %v1268_v54, %v1284_v60  ;;  %vm1277_vm15 = vcmp.ge.f32.partialorder %v1269_v62, 0.0  ;;  %v1285_v1 = vmul.f32 0.1, %v1269_v62 }
 0x329   : > { %1300 = vst.msk [vmem:[#allocation3 + $0x11] sm:$0xff] %vm226_vm1, %v1292_v17  ;;  %v1290_v12 = vsel %vm1274_vm14, %v1266_v57, %v1282_v11  ;;  %vm1275_vm2 = vcmp.ge.f32.partialorder %v1267_v0, 0.0  ;;  %v1283_v3 = vmul.f32 0.1, %v1267_v0 }
 0x32a   : > { %1298 = vst.msk [vmem:[#allocation3 + $0x1] sm:$0xff] %vm226_vm1, %v1290_v12  ;;  %v1293_v7 = vsel %vm1277_vm15, %v1269_v62, %v1285_v1 }
 0x32b   : > { %1301 = vst.msk [vmem:[#allocation3 + $0x19] sm:$0xff] %vm226_vm1, %v1293_v7  ;;  %v1291_v8 = vsel %vm1275_vm2, %v1267_v0, %v1283_v3  ;;  %v2656_v10 = vpop.f32.mrb[12].mxu0 }
 0x32c   : > { %1299 = vst.msk [vmem:[#allocation3 + $0x9] sm:$0xff] %vm226_vm1, %v1291_v8  ;;  %v1272_v13 = vadd.f32 %v2656_v10, %v2422_v52  ;;  %v1235_v2 = vpop.f32.mrb[13].mxu0  ;;  %v2441_v8 = vld [vmem:[%s3369_s1 + $0xe] sm:$0x3] }
 0x32d   : > { %v1270_v14 = vadd.f32 %v2422_v52, %v1235_v2  ;;  %v2657_v15 = vpop.f32.mrb[14].mxu0  ;;  %2856 = vmatprep.subr.msk.bf16.mxu0 %vm326_vm0, %v2441_v8  ;;  %v1693_v10 = vsel %vm326_vm0, %v2441_v8, 0  ;;  %v2439_v2 = vld [vmem:[%s3372_s4 + $0x1] ss:$0 sm:$0xff] }
 0x32e   : > { %vm1280_vm3 = vcmp.ge.f32.partialorder %v1272_v13, 0.0  ;;  %v1288_v18 = vmul.f32 0.1, %v1272_v13  ;;  %v1273_v19 = vadd.f32 %v2657_v15, %v2422_v52  ;;  %v1238_v20 = vpop.f32.mrb[15].mxu0  ;;  %2689 = vmatpush3.bf16.msra.mxu0 %v1693_v10 }
 0x32f   : > { %vm1278_vm4 = vcmp.ge.f32.partialorder %v1270_v14, 0.0  ;;  %v1286_v21 = vmul.f32 0.1, %v1270_v14  ;;  %v1271_v22 = vadd.f32 %v2422_v52, %v1238_v20 }
 0x330   : > { %v1296_v23 = vsel %vm1280_vm3, %v1272_v13, %v1288_v18  ;;  %vm1281_vm5 = vcmp.ge.f32.partialorder %v1273_v19, 0.0  ;;  %v1289_v24 = vmul.f32 0.1, %v1273_v19  ;;  %v1322_v33 = vld [vmem:[#allocation3 + $0x11] sm:$0xff]  ;;  %v3221_v13 = vld [vmem:[%s3369_s1 + $0xc] sm:$0x3] }
 0x331   : > { %1304 = vst.msk [vmem:[#allocation3 + $0x31] sm:$0xff] %vm226_vm1, %v1296_v23  ;;  %v1294_v25 = vsel %vm1278_vm4, %v1270_v14, %v1286_v21  ;;  %vm1279_vm6 = vcmp.ge.f32.partialorder %v1271_v22, 0.0  ;;  %v1287_v26 = vmul.f32 0.1, %v1271_v22  ;;  %v1320_v30 = vld [vmem:[#allocation3 + $0x1] sm:$0xff]  ;;  %2857 = vmatprep.subr.msk.bf16.mxu0 %vm326_vm0, %v3221_v13 }
 0x332   : > { %1302 = vst.msk [vmem:[#allocation3 + $0x21] sm:$0xff] %vm226_vm1, %v1294_v25  ;;  %v1297_v27 = vsel %vm1281_vm5, %v1273_v19, %v1289_v24  ;;  %v1323_v28 = vld [vmem:[#allocation3 + $0x19] sm:$0xff] }
 0x333   : > { %1305 = vst.msk [vmem:[#allocation3 + $0x39] sm:$0xff] %vm226_vm1, %v1297_v27  ;;  %v1295_v29 = vsel %vm1279_vm6, %v1271_v22, %v1287_v26  ;;  %v1321_v31 = vld [vmem:[#allocation3 + $0x9] sm:$0xff]  ;;  %v1329_v34 = vpack.c.bf16 %v1323_v28, %v1322_v33  ;;  %v1306_v47 = vld [vmem:[#allocation3] sm:$0xff]  ;;  %v1309_v9 = vld [vmem:[#allocation3 + $0x18] sm:$0xff] }
 0x334   : > { %1303 = vst.msk [vmem:[#allocation3 + $0x29] sm:$0xff] %vm226_vm1, %v1295_v29  ;;  %v1328_v32 = vpack.c.bf16 %v1321_v31, %v1320_v30  ;;  %v1307_v41 = vld [vmem:[#allocation3 + $0x8] sm:$0xff]  ;;  %v1308_v48 = vld [vmem:[#allocation3 + $0x10] sm:$0xff] }
 0x335   : > { %v1314_v4 = vpack.c.bf16 %v1307_v41, %v1306_v47  ;;  %v1315_v5 = vpack.c.bf16 %v1309_v9, %v1308_v48  ;;  %v1494_v56 = vld [vmem:[#allocation3 + $0x2] sm:$0xff]  ;;  %v1495_v57 = vld [vmem:[#allocation3 + $0xa] sm:$0xff]  ;;  %v1496_v0 = vld [vmem:[#allocation3 + $0x12] sm:$0xff] }
 0x336   : > { %2660 = vmatprep.mubr.msk.bf16.mxu1 %vm226_vm1, %v1328_v32  ;;  %v1502_v60 = vpack.c.bf16 %v1495_v57, %v1494_v56  ;;  %v2450_v56 = vld [vmem:[%s3369_s1 + $0x10] sm:$0x3] }
 0x337   : > { %2661 = vmatmul.mubr.msk.bf16.vlgmr.msra.gmra.mrb[8].mxu1 %vm226_vm1, %v1329_v34  ;;  %v1867_v10 = vsel %vm326_vm0, %v2450_v56, 0 }
 0x338   : > { %2669 = vmatpush3.bf16.msra.mxu1 %v1427_v35  ;;  %v1326_v44 = vld [vmem:[#allocation3 + $0x31] sm:$0xff] }
 0x339   : > { %2855 = vmatprep.subr.msk.bf16.mxu1 %vm326_vm0, %v2433_v36  ;;  %v1324_v38 = vld [vmem:[#allocation3 + $0x21] sm:$0xff] }
 0x33a   : > { %v1327_v37 = vld [vmem:[#allocation3 + $0x39] sm:$0xff] }
 0x33b   : > { %v1325_v40 = vld [vmem:[#allocation3 + $0x29] sm:$0xff]  ;;  %v1331_v46 = vpack.c.bf16 %v1327_v37, %v1326_v44  ;;  %v1310_v51 = vld [vmem:[#allocation3 + $0x20] sm:$0xff]  ;;  %v1313_v54 = vld [vmem:[#allocation3 + $0x38] sm:$0xff] }
 0x33c   : > { %v1330_v43 = vpack.c.bf16 %v1325_v40, %v1324_v38  ;;  %v1311_v49 = vld [vmem:[#allocation3 + $0x28] sm:$0xff]  ;;  %v1312_v53 = vld [vmem:[#allocation3 + $0x30] sm:$0xff]  ;;  %v1497_v62 = vld [vmem:[#allocation3 + $0x1a] sm:$0xff] }
 0x33d   : > { %v1316_v52 = vpack.c.bf16 %v1311_v49, %v1310_v51  ;;  %v1317_v59 = vpack.c.bf16 %v1313_v54, %v1312_v53  ;;  %v1498_v63 = vld [vmem:[#allocation3 + $0x22] sm:$0xff]  ;;  %v1499_v11 = vld [vmem:[#allocation3 + $0x2a] sm:$0xff]  ;;  %v1503_v17 = vpack.c.bf16 %v1497_v62, %v1496_v0  ;;  %v1500_v12 = vld [vmem:[#allocation3 + $0x32] sm:$0xff]  ;;  %v1773_v54 = vsel %vm326_vm0, %v3221_v13, 0 }
 0x33e   : > { %2664 = vmatprep.mubr.msk.bf16.mxu1 %vm226_vm1, %v1330_v43  ;;  %v1504_v1 = vpack.c.bf16 %v1499_v11, %v1498_v63  ;;  %v1501_v3 = vld [vmem:[#allocation3 + $0x3a] sm:$0xff] }
 0x33f   : > { %2665 = vmatmul.mubr.msk.bf16.gmra.mrb[12].mxu1 %vm226_vm1, %v1331_v46  ;;  %v1505_v7 = vpack.c.bf16 %v1501_v3, %v1500_v12 }
 0x340   : > { %2670 = vmatprep.mubr.msk.bf16.mxu1 %vm226_vm1, %v1314_v4 }
 0x347   : > { %2671 = vmatmul.mubr.msk.bf16.vlgmr.msra.gmra.mrb[8].mxu1 %vm226_vm1, %v1315_v5 }
 0x348   : > { %2679 = vmatpush3.bf16.msra.mxu1 %v1521_v50  ;;  %2674 = vmatprep.mubr.msk.bf16.mxu1 %vm226_vm1, %v1316_v52 }
 0x34f   : > { %2675 = vmatmul.mubr.msk.bf16.gmra.mrb[12].mxu1 %vm226_vm1, %v1317_v59 }
 0x350   : > { %2680 = vmatprep.mubr.msk.bf16.mxu1 %vm226_vm1, %v1502_v60 }
 0x357   : > { %2681 = vmatmul.mubr.msk.bf16.vlgmr.msra.gmra.mrb[8].mxu1 %vm226_vm1, %v1503_v17 }
 0x358   : > { %2684 = vmatprep.mubr.msk.bf16.mxu1 %vm226_vm1, %v1504_v1 }
 0x35f   : > { %2685 = vmatmul.mubr.msk.bf16.gmra.mrb[12].mxu1 %vm226_vm1, %v1505_v7 }
 0x42a   : > { %v2682_v14 = vpop.f32.mrb[8].mxu1 }
 0x42b   : > { %v1606_v15 = vadd.f32 %v2682_v14, %v2439_v2  ;;  %v1557_v18 = vpop.f32.mrb[9].mxu1 }
 0x42c   : > { %v1604_v19 = vadd.f32 %v2439_v2, %v1557_v18  ;;  %v2683_v20 = vpop.f32.mrb[10].mxu1 }
 0x42d   : > { %v3229_v21 = vadd.f32 %v1606_v15, %v3101_v39  ;;  %v1607_v22 = vadd.f32 %v2683_v20, %v2439_v2  ;;  %v1560_v23 = vpop.f32.mrb[11].mxu1 }
 0x42e   : > { %v3232_v24 = vadd.f32 %v1604_v19, %v3104_v42  ;;  %v1605_v25 = vadd.f32 %v2439_v2, %v1560_v23 }
 0x42f   : > { %vm1622_vm7 = vcmp.ge.f32.partialorder %v3229_v21, 0.0  ;;  %v1630_v26 = vmul.f32 0.1, %v3229_v21  ;;  %v3237_v27 = vadd.f32 %v1607_v22, %v3109_v45 }
 0x430   : > { %vm1620_vm8 = vcmp.ge.f32.partialorder %v3232_v24, 0.0  ;;  %v1628_v28 = vmul.f32 0.1, %v3232_v24  ;;  %v3242_v39 = vadd.f32 %v1605_v25, %v3114_v6 }
 0x431   : > { %v1638_v29 = vsel %vm1622_vm7, %v3229_v21, %v1630_v26  ;;  %vm1623_vm9 = vcmp.ge.f32.partialorder %v3237_v27, 0.0  ;;  %v1631_v42 = vmul.f32 0.1, %v3237_v27 }
 0x432   : > { %1646 = vst.msk [vmem:[#allocation2 + $0x15] sm:$0xff] %vm226_vm1, %v1638_v29  ;;  %v1636_v30 = vsel %vm1620_vm8, %v3232_v24, %v1628_v28  ;;  %vm1621_vm10 = vcmp.ge.f32.partialorder %v3242_v39, 0.0  ;;  %v1629_v45 = vmul.f32 0.1, %v3242_v39  ;;  %v2686_v31 = vpop.f32.mrb[12].mxu1 }
 0x433   : > { %1644 = vst.msk [vmem:[#allocation2 + $0x5] sm:$0xff] %vm226_vm1, %v1636_v30  ;;  %v1639_v6 = vsel %vm1623_vm9, %v3237_v27, %v1631_v42  ;;  %v1610_v32 = vadd.f32 %v2686_v31, %v2439_v2  ;;  %v1573_v33 = vpop.f32.mrb[13].mxu1 }
 0x434   : > { %1647 = vst.msk [vmem:[#allocation2 + $0x1d] sm:$0xff] %vm226_vm1, %v1639_v6  ;;  %v1637_v34 = vsel %vm1621_vm10, %v3242_v39, %v1629_v45  ;;  %v1608_v35 = vadd.f32 %v2439_v2, %v1573_v33  ;;  %v2687_v36 = vpop.f32.mrb[14].mxu1  ;;  %v2458_v6 = vld [vmem:[%s3371_s3 + $0xe] sm:$0x3]  ;;  %v2457_v33 = vld [vmem:[%s3371_s3 + $0xc] sm:$0x3] }
 0x435   : > { %1645 = vst.msk [vmem:[#allocation2 + $0xd] sm:$0xff] %vm226_vm1, %v1637_v34  ;;  %v3257_v37 = vadd.f32 %v1610_v32, %v3129_v55  ;;  %v1611_v38 = vadd.f32 %v2687_v36, %v2439_v2  ;;  %v1576_v40 = vpop.f32.mrb[15].mxu1  ;;  %2859 = vmatprep.subr.msk.bf16.mxu1 %vm326_vm0, %v2458_v6  ;;  %v2031_v32 = vsel %vm326_vm0, %v2458_v6, 0  ;;  %v2456_v34 = vld [vmem:[%s3370_s2 + $0x2] ss:$0 sm:$0xff] }
 0x436   : > { %v3260_v41 = vadd.f32 %v1608_v35, %v3132_v58  ;;  %v1609_v43 = vadd.f32 %v2439_v2, %v1576_v40  ;;  %2719 = vmatpush3.bf16.msra.mxu1 %v2031_v32 }
 0x437   : > { %vm1626_vm11 = vcmp.ge.f32.partialorder %v3257_v37, 0.0  ;;  %v1634_v44 = vmul.f32 0.1, %v3257_v37  ;;  %v3265_v46 = vadd.f32 %v1611_v38, %v3137_v61  ;;  %2860 = vmatprep.subr.msk.bf16.mxu1 %vm326_vm0, %v2457_v33 }
 0x438   : > { %vm1624_vm12 = vcmp.ge.f32.partialorder %v3260_v41, 0.0  ;;  %v1632_v47 = vmul.f32 0.1, %v3260_v41  ;;  %v3270_v55 = vadd.f32 %v1609_v43, %v3142_v16 }
 0x439   : > { %v1642_v4 = vsel %vm1626_vm11, %v3257_v37, %v1634_v44  ;;  %vm1627_vm13 = vcmp.ge.f32.partialorder %v3265_v46, 0.0  ;;  %v1635_v58 = vmul.f32 0.1, %v3265_v46  ;;  %v1668_v52 = vld [vmem:[#allocation2 + $0x15] sm:$0xff] }
 0x43a   : > { %1650 = vst.msk [vmem:[#allocation2 + $0x35] sm:$0xff] %vm226_vm1, %v1642_v4  ;;  %v1640_v48 = vsel %vm1624_vm12, %v3260_v41, %v1632_v47  ;;  %vm1625_vm14 = vcmp.ge.f32.partialorder %v3270_v55, 0.0  ;;  %v1633_v61 = vmul.f32 0.1, %v3270_v55  ;;  %v1666_v5 = vld [vmem:[#allocation2 + $0x5] sm:$0xff] }
 0x43b   : > { %1648 = vst.msk [vmem:[#allocation2 + $0x25] sm:$0xff] %vm226_vm1, %v1640_v48  ;;  %v1643_v9 = vsel %vm1627_vm13, %v3265_v46, %v1635_v58  ;;  %v1669_v16 = vld [vmem:[#allocation2 + $0x1d] sm:$0xff] }
 0x43c   : > { %1651 = vst.msk [vmem:[#allocation2 + $0x3d] sm:$0xff] %vm226_vm1, %v1643_v9  ;;  %v1641_v49 = vsel %vm1625_vm14, %v3270_v55, %v1633_v61  ;;  %v1667_v50 = vld [vmem:[#allocation2 + $0xd] sm:$0xff]  ;;  %v1675_v53 = vpack.c.bf16 %v1669_v16, %v1668_v52  ;;  %v1652_v17 = vld [vmem:[#allocation2] sm:$0xff]  ;;  %v1655_v3 = vld [vmem:[#allocation2 + $0x18] sm:$0xff] }
 0x43d   : > { %1649 = vst.msk [vmem:[#allocation2 + $0x2d] sm:$0xff] %vm226_vm1, %v1641_v49  ;;  %v1674_v51 = vpack.c.bf16 %v1667_v50, %v1666_v5  ;;  %v1653_v62 = vld [vmem:[#allocation2 + $0x8] sm:$0xff]  ;;  %v1654_v12 = vld [vmem:[#allocation2 + $0x10] sm:$0xff]  ;;  %v1842_v28 = vld [vmem:[#allocation2 + $0x1a] sm:$0xff] }
 0x43e   : > { %v1660_v1 = vpack.c.bf16 %v1653_v62, %v1652_v17  ;;  %v1661_v8 = vpack.c.bf16 %v1655_v3, %v1654_v12  ;;  %v1840_v18 = vld [vmem:[#allocation2 + $0xa] sm:$0xff]  ;;  %v1841_v19 = vld [vmem:[#allocation2 + $0x12] sm:$0xff] }
 0x43f   : > { %2690 = vmatprep.mubr.msk.bf16.mxu0 %vm226_vm1, %v1674_v51  ;;  %v1848_v22 = vpack.c.bf16 %v1841_v19, %v1840_v18  ;;  %v2467_v18 = vld [vmem:[%s3371_s3 + $0x10] sm:$0x3] }
 0x440   : > { %2691 = vmatmul.mubr.msk.bf16.vlgmr.msra.gmra.mrb[16].mxu0 %vm226_vm1, %v1675_v53  ;;  %v2205_v32 = vsel %vm326_vm0, %v2467_v18, 0 }
 0x441   : > { %2699 = vmatpush3.bf16.msra.mxu0 %v1773_v54  ;;  %v1672_v11 = vld [vmem:[#allocation2 + $0x35] sm:$0xff] }
 0x442   : > { %2858 = vmatprep.subr.msk.bf16.mxu0 %vm326_vm0, %v2450_v56  ;;  %v1670_v59 = vld [vmem:[#allocation2 + $0x25] sm:$0xff] }
 0x443   : > { %v1673_v57 = vld [vmem:[#allocation2 + $0x3d] sm:$0xff] }
 0x444   : > { %v1671_v60 = vld [vmem:[#allocation2 + $0x2d] sm:$0xff]  ;;  %v1677_v0 = vpack.c.bf16 %v1673_v57, %v1672_v11  ;;  %v1656_v13 = vld [vmem:[#allocation2 + $0x20] sm:$0xff]  ;;  %v1659_v15 = vld [vmem:[#allocation2 + $0x38] sm:$0xff] }
 0x445   : > { %v1676_v63 = vpack.c.bf16 %v1671_v60, %v1670_v59  ;;  %v1657_v7 = vld [vmem:[#allocation2 + $0x28] sm:$0xff]  ;;  %v1658_v14 = vld [vmem:[#allocation2 + $0x30] sm:$0xff]  ;;  %v1846_v30 = vld [vmem:[#allocation2 + $0x3a] sm:$0xff] }
 0x446   : > { %v1662_v2 = vpack.c.bf16 %v1657_v7, %v1656_v13  ;;  %v1663_v20 = vpack.c.bf16 %v1659_v15, %v1658_v14  ;;  %v1843_v23 = vld [vmem:[#allocation2 + $0x22] sm:$0xff]  ;;  %v1844_v25 = vld [vmem:[#allocation2 + $0x2a] sm:$0xff]  ;;  %v1845_v26 = vld [vmem:[#allocation2 + $0x32] sm:$0xff]  ;;  %v2111_v15 = vsel %vm326_vm0, %v2457_v33, 0 }
 0x447   : > { %2694 = vmatprep.mubr.msk.bf16.mxu0 %vm226_vm1, %v1676_v63  ;;  %v1849_v29 = vpack.c.bf16 %v1843_v23, %v1842_v28  ;;  %v1850_v42 = vpack.c.bf16 %v1845_v26, %v1844_v25  ;;  %v1847_v45 = vld [vmem:[#allocation2 + $0x42] sm:$0xff] }
 0x448   : > { %2695 = vmatmul.mubr.msk.bf16.gmra.mrb[20].mxu0 %vm226_vm1, %v1677_v0  ;;  %v1851_v31 = vpack.c.bf16 %v1847_v45, %v1846_v30 }
 0x449   : > { %2700 = vmatprep.mubr.msk.bf16.mxu0 %vm226_vm1, %v1660_v1 }
 0x450   : > { %2701 = vmatmul.mubr.msk.bf16.vlgmr.msra.gmra.mrb[16].mxu0 %vm226_vm1, %v1661_v8 }
 0x451   : > { %2709 = vmatpush3.bf16.msra.mxu0 %v1867_v10  ;;  %2704 = vmatprep.mubr.msk.bf16.mxu0 %vm226_vm1, %v1662_v2 }
 0x458   : > { %2705 = vmatmul.mubr.msk.bf16.gmra.mrb[20].mxu0 %vm226_vm1, %v1663_v20 }
 0x459   : > { %2710 = vmatprep.mubr.msk.bf16.mxu0 %vm226_vm1, %v1848_v22 }
 0x460   : > { %2711 = vmatmul.mubr.msk.bf16.vlgmr.msra.gmra.mrb[16].mxu0 %vm226_vm1, %v1849_v29 }
 0x461   : > { %2714 = vmatprep.mubr.msk.bf16.mxu0 %vm226_vm1, %v1850_v42 }
 0x468   : > { %2715 = vmatmul.mubr.msk.bf16.gmra.mrb[20].mxu0 %vm226_vm1, %v1851_v31 }
 0x533   : > { %v2712_v35 = vpop.f32.mrb[16].mxu0 }
 0x534   : > { %v1952_v36 = vadd.f32 %v2712_v35, %v2456_v34  ;;  %v1903_v38 = vpop.f32.mrb[17].mxu0 }
 0x535   : > { %v1950_v40 = vadd.f32 %v2456_v34, %v1903_v38  ;;  %v2713_v43 = vpop.f32.mrb[18].mxu0 }
 0x536   : > { %vm1960_vm15 = vcmp.ge.f32.partialorder %v1952_v36, 0.0  ;;  %v1968_v44 = vmul.f32 0.1, %v1952_v36  ;;  %v1953_v47 = vadd.f32 %v2713_v43, %v2456_v34  ;;  %v1906_v4 = vpop.f32.mrb[19].mxu0 }
 0x537   : > { %vm1958_vm2 = vcmp.ge.f32.partialorder %v1950_v40, 0.0  ;;  %v1966_v58 = vmul.f32 0.1, %v1950_v40  ;;  %v1951_v48 = vadd.f32 %v2456_v34, %v1906_v4 }
 0x538   : > { %v1976_v61 = vsel %vm1960_vm15, %v1952_v36, %v1968_v44  ;;  %vm1961_vm3 = vcmp.ge.f32.partialorder %v1953_v47, 0.0  ;;  %v1969_v9 = vmul.f32 0.1, %v1953_v47 }
 0x539   : > { %1984 = vst.msk [vmem:[#allocation3 + $0x11] sm:$0xff] %vm226_vm1, %v1976_v61  ;;  %v1974_v16 = vsel %vm1958_vm2, %v1950_v40, %v1966_v58  ;;  %vm1959_vm4 = vcmp.ge.f32.partialorder %v1951_v48, 0.0  ;;  %v1967_v49 = vmul.f32 0.1, %v1951_v48 }
 0x53a   : > { %1982 = vst.msk [vmem:[#allocation3 + $0x1] sm:$0xff] %vm226_vm1, %v1974_v16  ;;  %v1977_v5 = vsel %vm1961_vm3, %v1953_v47, %v1969_v9 }
 0x53b   : > { %1985 = vst.msk [vmem:[#allocation3 + $0x19] sm:$0xff] %vm226_vm1, %v1977_v5  ;;  %v1975_v50 = vsel %vm1959_vm4, %v1951_v48, %v1967_v49  ;;  %v2716_v51 = vpop.f32.mrb[20].mxu0 }
 0x53c   : > { %1983 = vst.msk [vmem:[#allocation3 + $0x9] sm:$0xff] %vm226_vm1, %v1975_v50  ;;  %v1956_v52 = vadd.f32 %v2716_v51, %v2456_v34  ;;  %v1919_v53 = vpop.f32.mrb[21].mxu0  ;;  %v2473_v50 = vld [vmem:[%s3372_s4 + $0x2] ss:$0 sm:$0xff] }
 0x53d   : > { %v1954_v54 = vadd.f32 %v2456_v34, %v1919_v53  ;;  %v2717_v56 = vpop.f32.mrb[22].mxu0 }
 0x53e   : > { %vm1964_vm5 = vcmp.ge.f32.partialorder %v1956_v52, 0.0  ;;  %v1972_v57 = vmul.f32 0.1, %v1956_v52  ;;  %v1957_v59 = vadd.f32 %v2717_v56, %v2456_v34  ;;  %v1922_v60 = vpop.f32.mrb[23].mxu0 }
 0x53f   : > { %vm1962_vm6 = vcmp.ge.f32.partialorder %v1954_v54, 0.0  ;;  %v1970_v62 = vmul.f32 0.1, %v1954_v54  ;;  %v1955_v63 = vadd.f32 %v2456_v34, %v1922_v60 }
 0x540   : > { %v1980_v11 = vsel %vm1964_vm5, %v1956_v52, %v1972_v57  ;;  %vm1965_vm7 = vcmp.ge.f32.partialorder %v1957_v59, 0.0  ;;  %v1973_v0 = vmul.f32 0.1, %v1957_v59  ;;  %v2006_v2 = vld [vmem:[#allocation3 + $0x11] sm:$0xff] }
 0x541   : > { %1988 = vst.msk [vmem:[#allocation3 + $0x31] sm:$0xff] %vm226_vm1, %v1980_v11  ;;  %v1978_v17 = vsel %vm1962_vm6, %v1954_v54, %v1970_v62  ;;  %vm1963_vm8 = vcmp.ge.f32.partialorder %v1955_v63, 0.0  ;;  %v1971_v1 = vmul.f32 0.1, %v1955_v63  ;;  %v2004_v8 = vld [vmem:[#allocation3 + $0x1] sm:$0xff] }
 0x542   : > { %1986 = vst.msk [vmem:[#allocation3 + $0x21] sm:$0xff] %vm226_vm1, %v1978_v17  ;;  %v1981_v12 = vsel %vm1965_vm7, %v1957_v59, %v1973_v0  ;;  %v2007_v3 = vld [vmem:[#allocation3 + $0x19] sm:$0xff] }
 0x543   : > { %1989 = vst.msk [vmem:[#allocation3 + $0x39] sm:$0xff] %vm226_vm1, %v1981_v12  ;;  %v1979_v7 = vsel %vm1963_vm8, %v1955_v63, %v1971_v1  ;;  %v2005_v10 = vld [vmem:[#allocation3 + $0x9] sm:$0xff]  ;;  %v2013_v14 = vpack.c.bf16 %v2007_v3, %v2006_v2  ;;  %v1990_v29 = vld [vmem:[#allocation3] sm:$0xff]  ;;  %v1993_v45 = vld [vmem:[#allocation3 + $0x18] sm:$0xff] }
 0x544   : > { %1987 = vst.msk [vmem:[#allocation3 + $0x29] sm:$0xff] %vm226_vm1, %v1979_v7  ;;  %v2012_v13 = vpack.c.bf16 %v2005_v10, %v2004_v8  ;;  %v1991_v23 = vld [vmem:[#allocation3 + $0x8] sm:$0xff]  ;;  %v1992_v30 = vld [vmem:[#allocation3 + $0x10] sm:$0xff] }
 0x545   : > { %v1998_v42 = vpack.c.bf16 %v1991_v23, %v1990_v29  ;;  %v1999_v6 = vpack.c.bf16 %v1993_v45, %v1992_v30  ;;  %v2178_v38 = vld [vmem:[#allocation3 + $0x2] sm:$0xff]  ;;  %v2179_v40 = vld [vmem:[#allocation3 + $0xa] sm:$0xff]  ;;  %v2180_v48 = vld [vmem:[#allocation3 + $0x12] sm:$0xff] }
 0x546   : > { %2720 = vmatprep.mubr.msk.bf16.mxu1 %vm226_vm1, %v2012_v13  ;;  %v2186_v44 = vpack.c.bf16 %v2179_v40, %v2178_v38 }
 0x547   : > { %2721 = vmatmul.mubr.msk.bf16.vlgmr.msra.gmra.mrb[16].mxu1 %vm226_vm1, %v2013_v14 }
 0x548   : > { %2729 = vmatpush3.bf16.msra.mxu1 %v2111_v15  ;;  %v2010_v26 = vld [vmem:[#allocation3 + $0x31] sm:$0xff] }
 0x549   : > { %2861 = vmatprep.subr.msk.bf16.mxu1 %vm326_vm0, %v2467_v18  ;;  %v2008_v20 = vld [vmem:[#allocation3 + $0x21] sm:$0xff] }
 0x54a   : > { %v2011_v19 = vld [vmem:[#allocation3 + $0x39] sm:$0xff] }
 0x54b   : > { %v2009_v22 = vld [vmem:[#allocation3 + $0x29] sm:$0xff]  ;;  %v2015_v28 = vpack.c.bf16 %v2011_v19, %v2010_v26  ;;  %v1994_v33 = vld [vmem:[#allocation3 + $0x20] sm:$0xff]  ;;  %v1997_v36 = vld [vmem:[#allocation3 + $0x38] sm:$0xff] }
 0x54c   : > { %v2014_v25 = vpack.c.bf16 %v2009_v22, %v2008_v20  ;;  %v1995_v31 = vld [vmem:[#allocation3 + $0x28] sm:$0xff]  ;;  %v1996_v35 = vld [vmem:[#allocation3 + $0x30] sm:$0xff]  ;;  %v2181_v47 = vld [vmem:[#allocation3 + $0x1a] sm:$0xff] }
 0x54d   : > { %v2000_v34 = vpack.c.bf16 %v1995_v31, %v1994_v33  ;;  %v2001_v43 = vpack.c.bf16 %v1997_v36, %v1996_v35  ;;  %v2182_v4 = vld [vmem:[#allocation3 + $0x22] sm:$0xff]  ;;  %v2183_v58 = vld [vmem:[#allocation3 + $0x2a] sm:$0xff]  ;;  %v2187_v61 = vpack.c.bf16 %v2181_v47, %v2180_v48  ;;  %v2184_v16 = vld [vmem:[#allocation3 + $0x32] sm:$0xff] }
 0x54e   : > { %2724 = vmatprep.mubr.msk.bf16.mxu1 %vm226_vm1, %v2014_v25  ;;  %v2188_v9 = vpack.c.bf16 %v2183_v58, %v2182_v4  ;;  %v2185_v49 = vld [vmem:[#allocation3 + $0x3a] sm:$0xff] }
 0x54f   : > { %2725 = vmatmul.mubr.msk.bf16.gmra.mrb[20].mxu1 %vm226_vm1, %v2015_v28  ;;  %v2189_v5 = vpack.c.bf16 %v2185_v49, %v2184_v16 }
 0x550   : > { %2730 = vmatprep.mubr.msk.bf16.mxu1 %vm226_vm1, %v1998_v42 }
 0x557   : > { %2731 = vmatmul.mubr.msk.bf16.vlgmr.msra.gmra.mrb[16].mxu1 %vm226_vm1, %v1999_v6 }
 0x558   : > { %2739 = vmatpush3.bf16.msra.mxu1 %v2205_v32  ;;  %2734 = vmatprep.mubr.msk.bf16.mxu1 %vm226_vm1, %v2000_v34 }
 0x55f   : > { %2735 = vmatmul.mubr.msk.bf16.gmra.mrb[20].mxu1 %vm226_vm1, %v2001_v43 }
 0x560   : > { %2740 = vmatprep.mubr.msk.bf16.mxu1 %vm226_vm1, %v2186_v44 }
 0x567   : > { %2741 = vmatmul.mubr.msk.bf16.vlgmr.msra.gmra.mrb[16].mxu1 %vm226_vm1, %v2187_v61 }
 0x568   : > { %2744 = vmatprep.mubr.msk.bf16.mxu1 %vm226_vm1, %v2188_v9 }
 0x56f   : > { %2745 = vmatmul.mubr.msk.bf16.gmra.mrb[20].mxu1 %vm226_vm1, %v2189_v5 }
 0x63a   : > { %v2742_v51 = vpop.f32.mrb[16].mxu1 }
 0x63b   : > { %v2290_v52 = vadd.f32 %v2742_v51, %v2473_v50  ;;  %v2241_v53 = vpop.f32.mrb[17].mxu1 }
 0x63c   : > { %v2288_v54 = vadd.f32 %v2473_v50, %v2241_v53  ;;  %v2743_v56 = vpop.f32.mrb[18].mxu1 }
 0x63d   : > { %v2298_v57 = vadd.f32 %v2290_v52, %v3229_v21  ;;  %v2291_v59 = vadd.f32 %v2743_v56, %v2473_v50  ;;  %v2244_v60 = vpop.f32.mrb[19].mxu1 }
 0x63e   : > { %v2296_v62 = vadd.f32 %v2288_v54, %v3232_v24  ;;  %v2289_v63 = vadd.f32 %v2473_v50, %v2244_v60 }
 0x63f   : > { %2306 = vst.msk [vmem:[%s224_s6 + $0x10] sm:$0xff] %vm226_vm1, %v2298_v57  ;;  %v2299_v11 = vadd.f32 %v2291_v59, %v3237_v27 }
 0x640   : > { %2304 = vst.msk [vmem:[%s224_s6] sm:$0xff] %vm226_vm1, %v2296_v62  ;;  %v2297_v0 = vadd.f32 %v2289_v63, %v3242_v39 }
 0x641   : > { %2307 = vst.msk [vmem:[%s224_s6 + $0x18] sm:$0xff] %vm226_vm1, %v2299_v11 }
 0x642   : > { %2305 = vst.msk [vmem:[%s224_s6 + $0x8] sm:$0xff] %vm226_vm1, %v2297_v0  ;;  %v2746_v17 = vpop.f32.mrb[20].mxu1 }
 0x643   : > { %v2294_v1 = vadd.f32 %v2746_v17, %v2473_v50  ;;  %v2257_v21 = vpop.f32.mrb[21].mxu1 }
 0x644   : > { %v2292_v12 = vadd.f32 %v2473_v50, %v2257_v21  ;;  %v2747_v3 = vpop.f32.mrb[22].mxu1 }
 0x645   : > { %v2302_v24 = vadd.f32 %v2294_v1, %v3257_v37  ;;  %v2295_v7 = vadd.f32 %v2747_v3, %v2473_v50  ;;  %v2260_v8 = vpop.f32.mrb[23].mxu1 }
 0x646   : > { %v2300_v10 = vadd.f32 %v2292_v12, %v3260_v41  ;;  %v2293_v27 = vadd.f32 %v2473_v50, %v2260_v8 }
 0x647   : > { %2310 = vst.msk [vmem:[%s224_s6 + $0x30] sm:$0xff] %vm226_vm1, %v2302_v24  ;;  %v2303_v39 = vadd.f32 %v2295_v7, %v3265_v46 }
 0x648   : > { %2308 = vst.msk [vmem:[%s224_s6 + $0x20] sm:$0xff] %vm226_vm1, %v2300_v10  ;;  %v2301_v13 = vadd.f32 %v2293_v27, %v3270_v55 }
 0x649   : > { %2311 = vst.msk [vmem:[%s224_s6 + $0x38] sm:$0xff] %vm226_vm1, %v2303_v39 }
 0x64a   : > { %2309 = vst.msk [vmem:[%s224_s6 + $0x28] sm:$0xff] %vm226_vm1, %v2301_v13 }
 0x64b PF: > { %s15_s18 = sadd.s32 1, %s2877_s18  }
 0x64c   : > { %p12_p4 = scmp.ge.s32.totalorder %s15_s18, 4  }
 0x64e   :  { %14 = sbr.rel (!%p12_p4) target bundleno = 1 (0x1), region = 90 }

// kernel: generator_nsf_forward.19
= control target key start
LH: loop header
LB: loop body
LE: loop exit
PB: predicated region body
PF: predicated region fallthrough
CT: control target
= control target key end

     0   :  { %s1239_s9 = smov 0   ;;  %s1473_s0 = inlined_call_operand.vmem [shape: f32[2,70,4], index: 0, kind: input, shape index: {}]   ;;  %s1474_s1 = inlined_call_operand.vmem [shape: bf16[7,4,1], index: 1, kind: input, shape index: {}]   ;;  %s1475_s2 = inlined_call_operand.vmem [shape: f32[2,64,1], index: 2, kind: output, shape index: {}]  }
   0x1 LB: > { %s983_s10 = sadd.s32 4294967295, %s1222_s9   ;;  %p987_p0 = scmp.ge.s32.totalorder %s1222_s9, 1  ;;  %s1222_s9 = sphi %s1239_s9, %s12_s9  }
   0x2   : > { %p112_p1 = scmp.lt.s32.totalorder %s1222_s9, 3 }
   0x4   : > { %p113_p2 = pnand %p987_p0, %p112_p1 }
   0x5   : > { %v991_v0 = vld [vmem:[%s1474_s1 + $0x2] sm:$0x3] (!%p113_p2)  ;;  %vm239_vm0 = vcmask (!%p113_p2), 1041408   ;;  %v1253_v1 = vld [vmem:[%s1474_s1 + $0x6] sm:$0x3] (!%p113_p2)  ;;  %p134_p3 = scmp.lt.s32.totalorder (!%p113_p2), %s983_s10, 1 }
   0x6   : > { %116 = sbr.rel (%p113_p2) target bundleno = 315 (0x13b), region = 28  ;;  %1183 = vmatprep.subr.msk.bf16.mxu1 (!%p113_p2), %vm239_vm0, %v991_v0  ;;  %1186 = vmatprep.subr.msk.bf16.mxu0 (!%p113_p2), %vm239_vm0, %v1253_v1  ;;  %v241_v2 = vsel (!%p113_p2), %vm239_vm0, %v991_v0, 0  ;;  %v1261_v3 = vsel (!%p113_p2), %vm239_vm0, %v1253_v1, 0  ;;  %v185_v4 = vld [vmem:[%s1474_s1] sm:$0x3] (!%p113_p2)  ;;  %vm226_vm6 = vcmask (!%p113_p2), 31744  }
   0x7   : > { %1064 = vmatpush3.bf16.msra.mxu1 (!%p113_p2), %v241_v2  ;;  %1094 = vmatpush3.bf16.msra.mxu0 (!%p113_p2), %v1261_v3  ;;  %v1010_v5 = vld [vmem:[%s1474_s1 + $0x8] sm:$0x3] (!%p113_p2)  ;;  %v1284_v9 = vsel (!%p113_p2), %vm239_vm0, %v185_v4, 0  ;;  %vm189_vm5 = vsmask.f32 (!%p113_p2), 7424  ;;  %vm603_vm12 = vcmask (!%p113_p2), 1045504  }
   0x8   : > { %1184 = vmatprep.subr.msk.bf16.mxu1 (!%p113_p2), %vm239_vm0, %v185_v4  ;;  %1188 = vmatprep.subr.msk.bf16.mxu0 (!%p113_p2), %vm239_vm0, %v1010_v5  ;;  %v1287_v10 = vsel (!%p113_p2), %vm239_vm0, %v1010_v5, 0  ;;  %vm491_vm7 = vsmask.f32 (!%p113_p2), 6400  ;;  %v1000_v63 = vld [vmem:[%s1474_s1 + $0x4] sm:$0x3] (!%p113_p2)  ;;  %vm391_vm15 = vcmask (!%p113_p2), 1046528  }
   0x9   : > { %vm703_vm14 = vsmask.f32 (!%p113_p2), 5376 }
   0xd   : > { %s1477_s10 = smov (!%p134_p3, %s983_s10), 1 }
   0xe   : > { %s1191_s19 = smul.u32 72, %s1477_s10  ;;  %s1027_s29 = sshll.u32 %s1477_s10, 6 }
   0xf   : > { %s143_s4 = scalar_lea.vmem %s1475_s2, %s1027_s29 }
  0x10   : > { %s1278_s22 = scalar_lea.vmem %s1473_s0, %s1191_s19 }
  0x11   : > { %v145_v6 = vld [vmem:[%s1278_s22] sm:$0xff]  ;;  %v146_v7 = vld [vmem:[%s1278_s22 + $0x8] sm:$0xff]  ;;  %v147_v8 = vld [vmem:[%s1278_s22 + $0x10] sm:$0xff] }
  0x12   : > { %v148_v11 = vld [vmem:[%s1278_s22 + $0x18] sm:$0xff]  ;;  %vm154_vm1 = vcmp.ge.f32.partialorder %v145_v6, 0.0  ;;  %vm155_vm2 = vcmp.ge.f32.partialorder %v146_v7, 0.0  ;;  %vm156_vm3 = vcmp.ge.f32.partialorder %v147_v8, 0.0  ;;  %v163_v12 = vmul.f32 0.01, %v145_v6 }
  0x13   : > { %vm157_vm4 = vcmp.ge.f32.partialorder %v148_v11, 0.0  ;;  %v164_v13 = vmul.f32 0.01, %v146_v7  ;;  %v165_v14 = vmul.f32 0.01, %v147_v8  ;;  %v149_v15 = vld [vmem:[%s1278_s22 + $0x20] sm:$0xff] }
  0x14   : > { %v166_v16 = vmul.f32 0.01, %v148_v11  ;;  %v172_v17 = vsel %vm154_vm1, %v145_v6, %v163_v12  ;;  %v150_v18 = vld [vmem:[%s1278_s22 + $0x28] sm:$0xff]  ;;  %vm158_vm8 = vcmp.ge.f32.partialorder %v149_v15, 0.0  ;;  %v167_v19 = vmul.f32 0.01, %v149_v15 }
  0x15   : > { %v173_v20 = vsel %vm155_vm2, %v146_v7, %v164_v13  ;;  %v174_v21 = vsel %vm156_vm3, %v147_v8, %v165_v14  ;;  %vm159_vm9 = vcmp.ge.f32.partialorder %v150_v18, 0.0  ;;  %v168_v22 = vmul.f32 0.01, %v150_v18  ;;  %v151_v23 = vld [vmem:[%s1278_s22 + $0x30] sm:$0xff]  ;;  %v152_v24 = vld [vmem:[%s1278_s22 + $0x38] sm:$0xff] }
  0x16   : > { %v175_v25 = vsel %vm157_vm4, %v148_v11, %v166_v16  ;;  %v1295_v26 = vpack.c.bf16 %v173_v20, %v172_v17  ;;  %v176_v27 = vsel %vm158_vm8, %v149_v15, %v167_v19  ;;  %vm160_vm10 = vcmp.ge.f32.partialorder %v151_v23, 0.0  ;;  %v153_v28 = vld [vmem:[%s1278_s22 + $0x40] sm:$0x3f]  ;;  %v1015_v8 = vld [vmem:[%s1474_s1 + $0xa] sm:$0x3] }
  0x17   : > { %v1298_v29 = vpack.c.bf16 %v175_v25, %v174_v21  ;;  %v177_v30 = vsel %vm159_vm9, %v150_v18, %v168_v22  ;;  %vm161_vm11 = vcmp.ge.f32.partialorder %v152_v24, 0.0  ;;  %v169_v31 = vmul.f32 0.01, %v151_v23  ;;  %v1020_v25 = vld [vmem:[%s1474_s1 + $0xc] sm:$0x3] }
  0x18   : > { %v1301_v32 = vshrl.u32 %v1295_v26, 16  ;;  %v1304_v33 = vshll.u32 %v1295_v26, 16  ;;  %v1306_v34 = vpack.c.bf16 %v177_v30, %v176_v27  ;;  %v170_v35 = vmul.f32 0.01, %v152_v24 }
  0x19   : > { %v1309_v36 = vshll.u32 %v1298_v29, 16  ;;  %v1312_v37 = vshrl.u32 %v1298_v29, 16  ;;  %v178_v38 = vsel %vm160_vm10, %v151_v23, %v169_v31  ;;  %vm162_vm13 = vcmp.ge.f32.partialorder %v153_v28, 0.0 }
  0x1a   : > { %v195_v39 = vrot.slane %v1304_v33, 1  ;;  %v492_v40 = vrot.slane %v1301_v32, 1  ;;  %v493_v41 = vrot.slane %v1304_v33, 2  ;;  %v1318_v42 = vshll.u32 %v1306_v34, 16 }
  0x1b   : > { %v200_v43 = vrot.slane %v1309_v36, 1  ;;  %v495_v44 = vrot.slane %v1312_v37, 1  ;;  %v496_v45 = vrot.slane %v1309_v36, 2  ;;  %v1324_v46 = vshrl.u32 %v1306_v34, 16 }
  0x1c   : > { %v196_v47 = vor.u32 %v195_v39, %v1301_v32  ;;  %v494_v48 = vor.u32 %v493_v41, %v492_v40  ;;  %v208_v49 = vrot.slane %v1318_v42, 1  ;;  %v500_v50 = vrot.slane %v1318_v42, 2 }
  0x1d   : > { %v204_v51 = vor.u32 %v1312_v37, %v200_v43  ;;  %v497_v52 = vor.u32 %v496_v45, %v495_v44  ;;  %v499_v53 = vrot.slane %v1324_v46, 1  ;;  %v179_v54 = vsel %vm161_vm11, %v152_v24, %v170_v35 }
  0x1e   : > { %v201_v55 = vsel %vm189_vm5, %v196_v47, %v200_v43  ;;  %v1333_v56 = vpack.c.bf16 %v179_v54, %v178_v38  ;;  %v212_v57 = vor.u32 %v1324_v46, %v208_v49  ;;  %v171_v58 = vmul.f32 0.01, %v153_v28 }
  0x1f   : > { %1065 = vmatprep.mubr.msk.bf16.mxu1 %vm226_vm6, %v201_v55  ;;  %v498_v59 = vsel %vm491_vm7, %v494_v48, %v497_v52  ;;  %v209_v60 = vsel %vm189_vm5, %v204_v51, %v208_v49  ;;  %v1339_v61 = vor.u32 %v500_v50, %v499_v53  ;;  %v604_v62 = vrot.slane %v1295_v26, 2 }
  0x20   : > { %1095 = vmatprep.mubr.msk.bf16.mxu0 %vm226_vm6, %v498_v59  ;;  %1066 = vmatmul.mubr.msk.bf16.vlgmr.msra.gmra.mrb[0].mxu1 %vm226_vm6, %v209_v60  ;;  %v1348_v0 = vshll.u32 %v1333_v56, 16  ;;  %v180_v2 = vsel %vm162_vm13, %v153_v28, %v171_v58  ;;  %v1352_v4 = vshrl.u32 %v1333_v56, 16  ;;  %v605_v5 = vrot.slane %v1298_v29, 2 }
  0x21   : > { %1074 = vmatpush3.bf16.msra.mxu1 %v1284_v9  ;;  %v502_v6 = vsel %vm491_vm7, %v497_v52, %v1339_v61  ;;  %v1358_v7 = vpack.c.bf16 %v180_v2, %v180_v2  ;;  %v607_v17 = vrot.slane %v1306_v34, 2  ;;  %v736_v19 = vsel %vm239_vm0, %v1015_v8, 0 }
  0x22   : > { %1096 = vmatmul.mubr.msk.bf16.vlgmr.msra.gmra.mrb[0].mxu0 %vm226_vm6, %v502_v6  ;;  %v216_v11 = vrot.slane %v1348_v0, 1  ;;  %v606_v12 = vsel %vm603_vm12, %v604_v62, %v605_v5  ;;  %1185 = vmatprep.subr.msk.bf16.mxu1 %vm239_vm0, %v1000_v63  ;;  %v704_v20 = vrot.slane %v1301_v32, 2  ;;  %v705_v22 = vrot.slane %v1304_v33, 3 }
  0x23   : > { %1104 = vmatpush3.bf16.msra.mxu0 %v1287_v10  ;;  %v1369_v9 = vshll.u32 %v1358_v7, 16  ;;  %1105 = vmatprep.mubr.msk.bf16.mxu0 %vm226_vm6, %v606_v12  ;;  %v609_v10 = vrot.slane %v1333_v56, 2  ;;  %v608_v18 = vsel %vm603_vm12, %v605_v5, %v607_v17  ;;  %v707_v23 = vrot.slane %v1312_v37, 2 }
  0x24   : > { %v217_v13 = vsel %vm189_vm5, %v212_v57, %v216_v11  ;;  %v220_v14 = vor.u32 %v1352_v4, %v216_v11  ;;  %1189 = vmatprep.subr.msk.bf16.mxu0 %vm239_vm0, %v1015_v8  ;;  %v708_v24 = vrot.slane %v1309_v36, 3  ;;  %v414_v27 = vsel %vm239_vm0, %v1000_v63, 0 }
  0x25   : > { %1069 = vmatprep.mubr.msk.bf16.mxu1 %vm226_vm6, %v217_v13  ;;  %v224_v15 = vrot.slane %v1369_v9, 1  ;;  %v610_v21 = vsel %vm603_vm12, %v607_v17, %v609_v10  ;;  %v611_v28 = vrot.slane %v1358_v7, 2  ;;  %v706_v30 = vor.u32 %v705_v22, %v704_v20 }
  0x26   : > { %v709_v31 = vor.u32 %v708_v24, %v707_v23  ;;  %v392_v32 = vrot.slane %v1295_v26, 1  ;;  %v393_v33 = vrot.slane %v1298_v29, 1  ;;  %v711_v36 = vrot.slane %v1324_v46, 2 }
  0x27   : > { %v225_v16 = vsel %vm189_vm5, %v220_v14, %v224_v15  ;;  %v612_v35 = vsel %vm603_vm12, %v609_v10, %v611_v28  ;;  %v712_v37 = vrot.slane %v1318_v42, 3  ;;  %v715_v39 = vrot.slane %v1352_v4, 2 }
  0x28   : > { %1070 = vmatmul.mubr.msk.bf16.gmra.mrb[4].mxu1 %vm226_vm6, %v225_v16  ;;  %v710_v38 = vsel %vm703_vm14, %v706_v30, %v709_v31  ;;  %v716_v40 = vrot.slane %v1348_v0, 3  ;;  %v394_v41 = vsel %vm391_vm15, %v392_v32, %v393_v33  ;;  %v507_v43 = vshrl.u32 %v1358_v7, 16 }
  0x29   : > { %1075 = vmatprep.mubr.msk.bf16.mxu1 %vm226_vm6, %v1295_v26  ;;  %v395_v44 = vrot.slane %v1306_v34, 1  ;;  %v397_v45 = vrot.slane %v1333_v56, 1  ;;  %v720_v48 = vrot.slane %v1369_v9, 3  ;;  %v836_v49 = vsel %vm239_vm0, %v1020_v25, 0 }
  0x2a   : > { %v717_v42 = vor.u32 %v716_v40, %v715_v39  ;;  %v719_v47 = vrot.slane %v507_v43, 2  ;;  %v503_v53 = vrot.slane %v1352_v4, 1  ;;  %v504_v54 = vrot.slane %v1348_v0, 2 }
  0x2b   : > { %v396_v51 = vsel %vm391_vm15, %v393_v33, %v395_v44  ;;  %v398_v52 = vsel %vm391_vm15, %v395_v44, %v397_v45  ;;  %v814_v57 = vrot.slane %v1295_v26, 3  ;;  %v815_v58 = vrot.slane %v1298_v29, 3 }
  0x2c   : > { %v721_v55 = vor.u32 %v720_v48, %v719_v47  ;;  %v399_v59 = vrot.slane %v1358_v7, 1  ;;  %v505_v60 = vor.u32 %v504_v54, %v503_v53  ;;  %v509_v2 = vrot.slane %v507_v43, 1 }
  0x2d   : > { %v510_v4 = vrot.slane %v1369_v9, 2  ;;  %vm919_vm1 = vcmask 7168  }
  0x2e   : > { %1106 = vmatmul.mubr.msk.bf16.vlgmr.msra.gmra.mrb[0].mxu0 %vm226_vm6, %v608_v18  ;;  %v722_v62 = vsel %vm703_vm14, %v717_v42, %v721_v55  ;;  %v400_v0 = vsel %vm391_vm15, %v397_v45, %v399_v59  ;;  %v506_v26 = vsel %vm491_vm7, %v1339_v61, %v505_v60 }
  0x2f   : > { %1114 = vmatpush3.bf16.msra.mxu0 %v736_v19  ;;  %1109 = vmatprep.mubr.msk.bf16.mxu0 %vm226_vm6, %v610_v21  ;;  %v511_v8 = vor.u32 %v510_v4, %v509_v2 }
  0x30   : > { %1076 = vmatmul.mubr.msk.bf16.vlgmr.msra.gmra.mrb[0].mxu1 %vm226_vm6, %v1298_v29  ;;  %1190 = vmatprep.subr.msk.bf16.mxu0 %vm239_vm0, %v1020_v25  ;;  %v819_v29 = vrot.slane %v1333_v56, 3 }
  0x31   : > { %1084 = vmatpush3.bf16.msra.mxu1 %v414_v27  ;;  %1079 = vmatprep.mubr.msk.bf16.mxu1 %vm226_vm6, %v1306_v34  ;;  %v512_v61 = vsel %vm491_vm7, %v505_v60, %v511_v8 }
  0x32   : > { %1187 = vmatprep.subr.msk.bf16.mxu1 %vm239_vm0, %v1253_v1  ;;  %v713_v1 = vor.u32 %v712_v37, %v711_v36  ;;  %vm813_vm0 = vcmask 1044480  }
  0x33   : > { %v816_v63 = vsel %vm813_vm0, %v814_v57, %v815_v58 }
  0x34   : > { %v714_v46 = vsel %vm703_vm14, %v709_v31, %v713_v1  ;;  %v718_v50 = vsel %vm703_vm14, %v713_v1, %v717_v42 }
  0x36   : > { %1110 = vmatmul.mubr.msk.bf16.gmra.mrb[4].mxu0 %vm226_vm6, %v612_v35 }
  0x37   : > { %1115 = vmatprep.mubr.msk.bf16.mxu0 %vm226_vm6, %v710_v38 }
  0x38   : > { %1080 = vmatmul.mubr.msk.bf16.gmra.mrb[4].mxu1 %vm226_vm6, %v1333_v56 }
  0x39   : > { %1085 = vmatprep.mubr.msk.bf16.mxu1 %vm226_vm6, %v394_v41 }
  0x3e   : > { %1116 = vmatmul.mubr.msk.bf16.vlgmr.msra.gmra.mrb[0].mxu0 %vm226_vm6, %v714_v46 }
  0x3f   : > { %1124 = vmatpush3.bf16.msra.mxu0 %v836_v49  ;;  %1119 = vmatprep.mubr.msk.bf16.mxu0 %vm226_vm6, %v718_v50 }
  0x40   : > { %1086 = vmatmul.mubr.msk.bf16.vlgmr.msra.gmra.mrb[0].mxu1 %vm226_vm6, %v396_v51 }
  0x41   : > { %1134 = vmatpush3.bf16.msra.mxu1 %v1261_v3  ;;  %1089 = vmatprep.mubr.msk.bf16.mxu1 %vm226_vm6, %v398_v52  ;;  %v817_v3 = vrot.slane %v1306_v34, 3  ;;  %v821_v34 = vrot.slane %v1358_v7, 3 }
  0x43   : > { %v818_v5 = vsel %vm813_vm0, %v815_v58, %v817_v3  ;;  %v820_v6 = vsel %vm813_vm0, %v817_v3, %v819_v29  ;;  %v822_v56 = vsel %vm813_vm0, %v819_v29, %v821_v34 }
  0x46   : > { %1120 = vmatmul.mubr.msk.bf16.gmra.mrb[4].mxu0 %vm226_vm6, %v722_v62 }
  0x47   : > { %1125 = vmatprep.mubr.msk.bf16.mxu0 %vm226_vm6, %v816_v63 }
  0x48   : > { %1090 = vmatmul.mubr.msk.bf16.gmra.mrb[4].mxu1 %vm226_vm6, %v400_v0 }
  0x49   : > { %1099 = vmatprep.mubr.msk.bf16.mxu1 %vm226_vm6, %v506_v26 }
  0x4e   : > { %1126 = vmatmul.mubr.msk.bf16.vlgmr.msra.gmra.mrb[0].mxu0 %vm226_vm6, %v818_v5 }
  0x4f   : > { %1129 = vmatprep.mubr.msk.bf16.mxu0 %vm226_vm6, %v820_v6 }
  0x54   : > { %1100 = vmatmul.mubr.msk.bf16.vlgmr.msra.gmra.mrb[4].mxu1 %vm226_vm6, %v512_v61 }
  0x56   : > { %1130 = vmatmul.mubr.msk.bf16.gmra.mrb[4].mxu0 %vm226_vm6, %v822_v56 }
 0x113   : > { %v1087_v11 = vpop.f32.mrb[0].mxu1 }
 0x114   : > { %v450_v12 = vpop.f32.mrb[1].mxu1 }
 0x115   : > { %v1088_v9 = vpop.f32.mrb[2].mxu1 }
 0x116   : > { %v453_v13 = vpop.f32.mrb[3].mxu1 }
 0x121   : > { %v1127_v14 = vpop.f32.mrb[0].mxu0 }
 0x122   : > { %v1135_v15 = vadd.f32 %v1127_v14, %v1087_v11  ;;  %v872_v16 = vpop.f32.mrb[1].mxu0 }
 0x123   : > { %v1136_v17 = vadd.f32 %v872_v16, %v450_v12  ;;  %v1128_v10 = vpop.f32.mrb[2].mxu0 }
 0x124   : > { %1200 = vtanh.f32 %v1135_v15  ;;  %v1137_v7 = vadd.f32 %v1128_v10, %v1088_v9  ;;  %v875_v18 = vpop.f32.mrb[3].mxu0 }
 0x125   : > { %1202 = vtanh.f32 %v1136_v17  ;;  %v1138_v19 = vadd.f32 %v875_v18, %v453_v13 }
 0x126   : > { %1204 = vtanh.f32 %v1137_v7 }
 0x127   : > { %1206 = vtanh.f32 %v1138_v19  ;;  %v1101_v20 = vpop.f32.mrb[4].mxu1 }
 0x128   : > { %v578_v21 = vpop.f32.mrb[5].mxu1 }
 0x129   : > { %v1131_v22 = vpop.f32.mrb[4].mxu0  ;;  %v1102_v23 = vpop.f32.mrb[6].mxu1 }
 0x12a   : > { %v1139_v24 = vadd.f32 %v1131_v22, %v1101_v20  ;;  %v888_v25 = vpop.f32.mrb[5].mxu0  ;;  %v581_v27 = vpop.f32.mrb[7].mxu1 }
 0x12b   : > { %v1140_v28 = vadd.f32 %v888_v25, %v578_v21  ;;  %v1132_v30 = vpop.f32.mrb[6].mxu0 }
 0x12c   : > { %1208 = vtanh.f32 %v1139_v24  ;;  %v1141_v31 = vadd.f32 %v1132_v30, %v1102_v23  ;;  %v891_v32 = vpop.f32.mrb[7].mxu0 }
 0x12d   : > { %1210 = vtanh.f32 %v1140_v28  ;;  %v1142_v33 = vadd.f32 %v891_v32, %v581_v27 }
 0x12e   : > { %v1201_v35 = vpop.eup %1200  ;;  %1212 = vtanh.f32 %v1141_v31 }
 0x12f   : > { %v1203_v36 = vpop.eup %1202  ;;  %922 = vst.msk [vmem:[%s143_s4 + $0x10] sm:$0xff] %vm919_vm1, %v1201_v35  ;;  %1214 = vtanh.f32 %v1142_v33 }
 0x130   : > { %v1205_v37 = vpop.eup %1204  ;;  %920 = vst.msk [vmem:[%s143_s4] sm:$0xff] %vm919_vm1, %v1203_v36 }
 0x131   : > { %v1207_v38 = vpop.eup %1206  ;;  %923 = vst.msk [vmem:[%s143_s4 + $0x18] sm:$0xff] %vm919_vm1, %v1205_v37 }
 0x132   : > { %921 = vst.msk [vmem:[%s143_s4 + $0x8] sm:$0xff] %vm919_vm1, %v1207_v38 }
 0x136   : > { %v1209_v39 = vpop.eup %1208 }
 0x137   : > { %v1211_v40 = vpop.eup %1210  ;;  %926 = vst.msk [vmem:[%s143_s4 + $0x30] sm:$0xff] %vm919_vm1, %v1209_v39 }
 0x138   : > { %v1213_v41 = vpop.eup %1212  ;;  %924 = vst.msk [vmem:[%s143_s4 + $0x20] sm:$0xff] %vm919_vm1, %v1211_v40 }
 0x139   : > { %v1215_v1 = vpop.eup %1214  ;;  %927 = vst.msk [vmem:[%s143_s4 + $0x38] sm:$0xff] %vm919_vm1, %v1213_v41 }
 0x13a   : > { %925 = vst.msk [vmem:[%s143_s4 + $0x28] sm:$0xff] %vm919_vm1, %v1215_v1 }
 0x13b PF: > { %s12_s9 = sadd.s32 1, %s1222_s9  }
 0x13c   : > { %p9_p4 = scmp.ge.s32.totalorder %s12_s9, 4  }
 0x13e   :  { %11 = sbr.rel (!%p9_p4) target bundleno = 1 (0x1), region = 64 }

</bundles_post_ra>
